<compile_context>
chip_gen: v5e
topology: v5e:2x2
jax: 0.10.0
libtpu: 0.0.40
codegen_flags: <defaults>
</compile_context>

<pallas_src>
import functools
import math

import jax
import jax.numpy as jnp
from jax.experimental import pallas as pl
from jax.experimental.pallas import tpu as pltpu


NEG_INF = -1e30  # finite "minus infinity" for masked (padded) softmax lanes


def _actor_kernel(alpha_ref,   # SMEM (3,) f32   PReLU alphas: ac, ac1, c1
                  x_ref,       # VMEM (TB, S)    bf16 batch tile
                  wx_ref,      # (S, 2L) bf16    [:, :L]=w_a1x (scattered), [:, L:L+H]=w_ac
                  wac1_ref,    # (L, L)  bf16    [:H, :H]=w_ac1, rest 0
                  wh_ref,      # (L, 2L) bf16    [:, :L]=w_a1h (padded), [:, L:L+H]=w_c1
                  wc2_ref,     # (L, L)  bf16    only column A (rows :H) nonzero
                  bias_ref,    # (8, L)  f32     rows: b_ac, b_ac1, b_a1(+NEG_INF pad), b_c1, b_c2
                  out_ref):    # (TB, L) f32     lanes [0,A)=actor softmax, lane A=critic, rest 0
    a_ac = alpha_ref[0]
    a_ac1 = alpha_ref[1]
    a_c1 = alpha_ref[2]
    bf16 = jnp.bfloat16
    L = out_ref.shape[1]

    x = x_ref[...]                                                    # bf16 (TB, S)

    # Fused x-side matmul: x @ [w_a1x | w_ac]  -> (TB, 2L) f32.
    y = jnp.dot(x, wx_ref[...], preferred_element_type=jnp.float32)
    xw_a1 = y[:, :L]                      # options-part of the a1 logits (lanes >= A are 0)
    h = y[:, L:] + bias_ref[0:1, :]       # ac pre-activation (lanes >= H stay exactly 0)
    h = jnp.where(h > 0, h, a_ac * h)     # PReLU; padded lanes: PReLU(0) = 0

    # ac1: hidden -> hidden (zero-padded to L lanes; padded lanes remain 0).
    h = jnp.dot(h.astype(bf16), wac1_ref[...],
                preferred_element_type=jnp.float32) + bias_ref[1:2, :]
    h = jnp.where(h > 0, h, a_ac1 * h)
    h_bf = h.astype(bf16)

    # Fused h-side matmul: h @ [w_a1h | w_c1] -> (TB, 2L) f32.
    z = jnp.dot(h_bf, wh_ref[...], preferred_element_type=jnp.float32)

    # Actor logits: padded lanes carry a NEG_INF bias, so softmax over all L
    # lanes is exactly the softmax over the first A lanes.
    logits = z[:, :L] + xw_a1 + bias_ref[2:3, :]
    m = jnp.max(logits, axis=-1, keepdims=True)
    e = jnp.exp(logits - m)                           # padded lanes underflow to 0
    actor = e / jnp.sum(e, axis=-1, keepdims=True)    # exact divide (log-prob safe)

    # Critic: PReLU(Linear(ac)) -> Linear -> lands only in lane A of the output.
    c = z[:, L:] + bias_ref[3:4, :]
    c = jnp.where(c > 0, c, a_c1 * c)
    critic = jnp.dot(c.astype(bf16), wc2_ref[...],
                     preferred_element_type=jnp.float32) + bias_ref[4:5, :]

    # actor is 0 at lane A and beyond; critic is 0 everywhere except lane A.
    out_ref[...] = actor + critic


def pack_params(params, state_dim, action_dim):
    """Pack logical (PyTorch-shaped) params into kernel-ready lane-dense params."""
    S, A = state_dim, action_dim
    H = params["w_ac"].shape[1]
    assert S >= 4 * A, (
        "ActorModel.forward slices input[:, 3A:4A]; state_dim must be >= 4*action_dim")
    L = max(128, pl.cdiv(max(A + 1, H), 128) * 128)   # packed lane width (hidden + output)
    f32, bf16 = jnp.float32, jnp.bfloat16

    w_a1 = params["w_a1"]                             # (H + A, A), stored as W.T

    # x-side fused weight: [ w_a1x (scattered into x-space) | w_ac (zero padded) ]
    wx = jnp.zeros((S, 2 * L), f32)
    wx = wx.at[3 * A:4 * A, :A].set(w_a1[H:])         # `options` rows act on a1 logits
    wx = wx.at[:, L:L + H].set(params["w_ac"])

    # ac1 weight zero-padded to (L, L).
    wac1 = jnp.zeros((L, L), f32).at[:H, :H].set(params["w_ac1"])

    # h-side fused weight: [ w_a1h (zero padded) | w_c1 (zero padded) ]
    wh = jnp.zeros((L, 2 * L), f32)
    wh = wh.at[:H, :A].set(w_a1[:H])
    wh = wh.at[:H, L:L + H].set(params["w_c1"])

    # Critic head: only column A nonzero.
    wc2 = jnp.zeros((L, L), f32).at[:H, A].set(params["w_c2"][:, 0])

    # All biases packed into a single (8, L) f32 block (one vreg, one DMA).
    bias = jnp.zeros((8, L), f32)
    bias = bias.at[0, :H].set(params["b_ac"])
    bias = bias.at[1, :H].set(params["b_ac1"])
    bias = bias.at[2, :].set(NEG_INF)
    bias = bias.at[2, :A].set(params["b_a1"])
    bias = bias.at[3, :H].set(params["b_c1"])
    bias = bias.at[4, A].set(params["b_c2"][0])

    return {
        "alphas": params["alphas"].astype(f32),
        "wx": wx.astype(bf16),
        "wac1": wac1.astype(bf16),
        "wh": wh.astype(bf16),
        "wc2": wc2.astype(bf16),
        "bias": bias,
    }


def _num_tensorcores():
    """Grid-shardable TensorCores per chip (2 on v7x / megacore, else 1)."""
    try:
        kind = jax.devices()[0].device_kind.lower()
    except Exception:
        return 1
    if any(tag in kind for tag in ("v7", "7x", "v5p", "v4")):
        return 2
    return 1


def actor_model_forward(packed, x, *, action_dim, tile_b=None, max_tile_b=1024):
    """Runs the full ActorModel forward as one gridded pallas_call.

    x: (B, state_dim) or (state_dim,) float32.
    Returns (actor (B, A) softmax, critic (B, 1)); 1-D in -> 1-D out.
    """
    squeeze = x.ndim == 1
    if squeeze:
        x = x[None, :]
    B, S = x.shape
    A = action_dim
    L = packed["bias"].shape[1]

    # One tile per TensorCore (1 on v5e/v6e, 2 on v7x); rows rounded to the
    # bf16 sublane pack (16) so the batch pads to e.g. 608 rather than 768.
    if tile_b is None:
        tile_b = min(int(max_tile_b), pl.cdiv(B, _num_tensorcores()))
    tile_b = max(16, ((int(tile_b) + 15) // 16) * 16)
    b_pad = pl.cdiv(B, tile_b) * tile_b
    n_tiles = b_pad // tile_b

    x_bf = x.astype(jnp.bfloat16)
    if b_pad != B:
        # Padded rows produce softmax-of-bias garbage; they are sliced off below
        # and must never be reduced over by a caller.
        x_bf = jnp.pad(x_bf, ((0, b_pad - B), (0, 0)))

    rows = lambda i: (i, 0)     # batch-tiled arrays: new block per grid step
    const = lambda i: (0, 0)    # weights/biases: resident, DMA'd once

    weight_order = ("wx", "wac1", "wh", "wc2", "bias")
    weights = [packed[k] for k in weight_order]

    in_specs = [
        pl.BlockSpec(memory_space=pltpu.MemorySpace.SMEM),     # alphas (whole array)
        pl.BlockSpec((tile_b, S), rows),                       # x tile
    ] + [pl.BlockSpec(w.shape, const) for w in weights]        # resident weights

    # Advisory cost estimate (helps XLA scheduling when fused into a larger jit).
    w_bytes = sum(int(w.size) * w.dtype.itemsize for w in weights)
    flops = 2 * b_pad * (2 * S * L + 4 * L * L)
    bytes_accessed = b_pad * S * 2 + b_pad * L * 4 + w_bytes

    # Tile-scaled scoped-VMEM budget: I/O buffers + a few (tile_b, 2L) f32
    # temporaries; far below physical VMEM on every generation.
    vmem_limit = int(max(8 * 1024 * 1024, 32 * tile_b * L * 4))

    out = pl.pallas_call(
        _actor_kernel,
        out_shape=jax.ShapeDtypeStruct((b_pad, L), jnp.float32),
        grid=(n_tiles,),
        in_specs=in_specs,
        out_specs=pl.BlockSpec((tile_b, L), rows),
        compiler_params=pltpu.CompilerParams(
            dimension_semantics=("parallel",),
            vmem_limit_bytes=vmem_limit,
        ),
        cost_estimate=pl.CostEstimate(
            flops=int(flops),
            transcendentals=int(b_pad * L),
            bytes_accessed=int(bytes_accessed),
        ),
    )(packed["alphas"], x_bf, *weights)

    actor = out[:B, :A]
    critic = out[:B, A:A + 1]
    if squeeze:
        actor, critic = actor[0], critic[0]
    return actor, critic


def init_params(key, state_dim, action_dim, n_latent_var):
    """Synthetic init matching the PyTorch module's shapes (weights stored as W.T)."""
    S, A, H = state_dim, action_dim, n_latent_var
    ks = jax.random.split(key, 10)

    def unif(k, shape, fan_in):
        bound = 1.0 / math.sqrt(fan_in)
        return jax.random.uniform(k, shape, jnp.float32, -bound, bound)

    return {
        "w_ac": unif(ks[0], (S, H), S),          "b_ac": unif(ks[1], (H,), S),
        "w_ac1": unif(ks[2], (H, H), H),         "b_ac1": unif(ks[3], (H,), H),
        "w_a1": unif(ks[4], (H + A, A), H + A),  "b_a1": unif(ks[5], (A,), H + A),
        "w_c1": unif(ks[6], (H, H), H),          "b_c1": unif(ks[7], (H,), H),
        "w_c2": unif(ks[8], (H, 1), H),          "b_c2": unif(ks[9], (1,), H),
        "alphas": jnp.array([0.25, 0.25, 0.25], jnp.float32),  # PyTorch PReLU default
    }


def reference_forward(params, x, *, action_dim):
    """Pure-JAX f32 reference faithful to the PyTorch module."""
    A = action_dim
    al = params["alphas"]
    prelu = lambda v, a: jnp.where(v > 0, v, a * v)
    h = prelu(x @ params["w_ac"] + params["b_ac"], al[0])
    h = prelu(h @ params["w_ac1"] + params["b_ac1"], al[1])
    cat = jnp.concatenate([h, x[:, 3 * A:4 * A]], axis=-1)
    actor = jax.nn.softmax(cat @ params["w_a1"] + params["b_a1"], axis=-1)
    c = prelu(h @ params["w_c1"] + params["b_c1"], al[2])
    critic = c @ params["w_c2"] + params["b_c2"]
    return actor, critic


def reference_forward_bf16(params, x, *, action_dim):
    """Reference mirroring the kernel's precision (bf16 MXU operands, f32 accumulate)."""
    A = action_dim
    H = params["w_ac"].shape[1]
    al = params["alphas"]
    bf = lambda v: v.astype(jnp.bfloat16)
    dot = lambda a, b: jnp.dot(bf(a), bf(b), preferred_element_type=jnp.float32)
    prelu = lambda v, a: jnp.where(v > 0, v, a * v)
    xb = bf(x)
    h = prelu(dot(xb, params["w_ac"]) + params["b_ac"], al[0])
    h = prelu(dot(h, params["w_ac1"]) + params["b_ac1"], al[1])
    logits = (dot(h, params["w_a1"][:H])
              + dot(xb[:, 3 * A:4 * A], params["w_a1"][H:]) + params["b_a1"])
    actor = jax.nn.softmax(logits, axis=-1)
    c = prelu(dot(h, params["w_c1"]) + params["b_c1"], al[2])
    critic = dot(c, params["w_c2"]) + params["b_c2"]
    return actor, critic


if __name__ == "__main__":
    ACTION_DIM = 16
    STATE_DIM = 4 * ACTION_DIM     # options slice [3A:4A] must exist -> 64
    HIDDEN = 32
    BATCH = 600                    # pads to 608 (one 16-row pad), 1-2 grid steps

    key = jax.random.PRNGKey(0)
    k_params, k_x = jax.random.split(key)
    params = init_params(k_params, STATE_DIM, ACTION_DIM, HIDDEN)
    packed = pack_params(params, STATE_DIM, ACTION_DIM)
    x = jax.random.normal(k_x, (BATCH, STATE_DIM), dtype=jnp.float32)

    fwd = jax.jit(functools.partial(actor_model_forward, action_dim=ACTION_DIM))
    actor, critic = fwd(packed, x)
    jax.block_until_ready((actor, critic))

    # Tight check vs. a reference that uses the same precision choices.
    ref_a, ref_c = reference_forward_bf16(params, x, action_dim=ACTION_DIM)
    assert actor.shape == (BATCH, ACTION_DIM)
    assert critic.shape == (BATCH, 1)
    assert jnp.allclose(actor, ref_a, atol=2e-3), float(jnp.max(jnp.abs(actor - ref_a)))
    assert jnp.allclose(critic, ref_c, atol=2e-3), float(jnp.max(jnp.abs(critic - ref_c)))
    assert jnp.allclose(jnp.sum(actor, axis=-1), 1.0, atol=1e-3)

    # Looser sanity check vs. the full-f32 PyTorch-faithful reference.
    f32_a, f32_c = reference_forward(params, x, action_dim=ACTION_DIM)
    assert jnp.allclose(actor, f32_a, atol=5e-2, rtol=5e-2)
    assert jnp.allclose(critic, f32_c, atol=5e-2, rtol=5e-2)

    # 1-D input path (PyTorch module supports unbatched forward).
    a1, c1 = jax.jit(functools.partial(actor_model_forward,
                                       action_dim=ACTION_DIM))(packed, x[0])
    jax.block_until_ready((a1, c1))
    assert a1.shape == (ACTION_DIM,) and c1.shape == (1,)
    assert jnp.allclose(a1, ref_a[0], atol=2e-3)

    print("KERNEL_OK")
</pallas_src>

<mosaic_0001>
module attributes {stable_mosaic.version = 11 : i64} {
  func.func @_actor_kernel(%arg0: i32, %arg1: memref<3xf32, #tpu.memory_space<smem>>, %arg2: memref<608x64xbf16, #tpu.memory_space<vmem>>, %arg3: memref<64x256xbf16, #tpu.memory_space<vmem>>, %arg4: memref<128x128xbf16, #tpu.memory_space<vmem>>, %arg5: memref<128x256xbf16, #tpu.memory_space<vmem>>, %arg6: memref<128x128xbf16, #tpu.memory_space<vmem>>, %arg7: memref<8x128xf32, #tpu.memory_space<vmem>>, %arg8: memref<608x128xf32, #tpu.memory_space<vmem>>) attributes {dimension_semantics = [#tpu.dimension_semantics<parallel>], iteration_bounds = array<i64: 1>, scalar_prefetch = 0 : i64, scratch_operands = 0 : i64, tpu.core_type = #tpu.core_type<tc>, window_params = [{transform_indices = @transform_0, window_bounds = array<i64: 3>}, {transform_indices = @transform_1, window_bounds = array<i64: 608, 64>}, {pipeline_mode = #tpu.pipeline_mode<synchronous>, transform_indices = @transform_2, window_bounds = array<i64: 64, 256>}, {pipeline_mode = #tpu.pipeline_mode<synchronous>, transform_indices = @transform_3, window_bounds = array<i64: 128, 128>}, {pipeline_mode = #tpu.pipeline_mode<synchronous>, transform_indices = @transform_4, window_bounds = array<i64: 128, 256>}, {pipeline_mode = #tpu.pipeline_mode<synchronous>, transform_indices = @transform_5, window_bounds = array<i64: 128, 128>}, {pipeline_mode = #tpu.pipeline_mode<synchronous>, transform_indices = @transform_6, window_bounds = array<i64: 8, 128>}, {transform_indices = @transform_7, window_bounds = array<i64: 608, 128>}]} {
    %c0 = arith.constant 0 : index
    %0 = memref.load %arg1[%c0] : memref<3xf32, #tpu.memory_space<smem>>
    %c1 = arith.constant 1 : index
    %1 = memref.load %arg1[%c1] : memref<3xf32, #tpu.memory_space<smem>>
    %c2 = arith.constant 2 : index
    %2 = memref.load %arg1[%c2] : memref<3xf32, #tpu.memory_space<smem>>
    %c0_0 = arith.constant 0 : index
    %c0_1 = arith.constant 0 : index
    %3 = vector.load %arg2[%c0_0, %c0_1] : memref<608x64xbf16, #tpu.memory_space<vmem>>, vector<608x64xbf16>
    %c0_2 = arith.constant 0 : index
    %c0_3 = arith.constant 0 : index
    %4 = vector.load %arg3[%c0_2, %c0_3] : memref<64x256xbf16, #tpu.memory_space<vmem>>, vector<64x256xbf16>
    %cst = arith.constant dense<0.000000e+00> : vector<608x256xf32>
    %5 = tpu.matmul %3, %4, %cst {dimension_numbers = #tpu.dot_dimension_numbers<[1], [0], [0], [1], [0, 0, 1, 1], [], []>} : vector<608x64xbf16>, vector<64x256xbf16>, vector<608x256xf32> -> vector<608x256xf32>
    %6 = vector.extract_strided_slice %5 {offsets = [0, 0], sizes = [608, 128], strides = [1, 1]} : vector<608x256xf32> to vector<608x128xf32>
    %7 = vector.extract_strided_slice %5 {offsets = [0, 128], sizes = [608, 128], strides = [1, 1]} : vector<608x256xf32> to vector<608x128xf32>
    %c0_4 = arith.constant 0 : index
    %c0_5 = arith.constant 0 : index
    %8 = vector.load %arg7[%c0_4, %c0_5] : memref<8x128xf32, #tpu.memory_space<vmem>>, vector<1x128xf32>
    %9 = vector.broadcast %8 : vector<1x128xf32> to vector<608x128xf32>
    %10 = arith.addf %7, %9 : vector<608x128xf32>
    %cst_6 = arith.constant 0.000000e+00 : f32
    %11 = vector.broadcast %cst_6 : f32 to vector<608x128xf32>
    %12 = arith.cmpf ogt, %10, %11 : vector<608x128xf32>
    %13 = vector.broadcast %0 : f32 to vector<608x128xf32>
    %14 = arith.mulf %13, %10 : vector<608x128xf32>
    %15 = arith.select %12, %10, %14 : vector<608x128xi1>, vector<608x128xf32>
    %16 = arith.truncf %15 : vector<608x128xf32> to vector<608x128xbf16>
    %c0_7 = arith.constant 0 : index
    %c0_8 = arith.constant 0 : index
    %17 = vector.load %arg4[%c0_7, %c0_8] : memref<128x128xbf16, #tpu.memory_space<vmem>>, vector<128x128xbf16>
    %cst_9 = arith.constant dense<0.000000e+00> : vector<608x128xf32>
    %18 = tpu.matmul %16, %17, %cst_9 {dimension_numbers = #tpu.dot_dimension_numbers<[1], [0], [0], [1], [0, 0, 1, 1], [], []>} : vector<608x128xbf16>, vector<128x128xbf16>, vector<608x128xf32> -> vector<608x128xf32>
    %c1_10 = arith.constant 1 : index
    %c0_11 = arith.constant 0 : index
    %19 = vector.load %arg7[%c1_10, %c0_11] : memref<8x128xf32, #tpu.memory_space<vmem>>, vector<1x128xf32>
    %20 = vector.broadcast %19 : vector<1x128xf32> to vector<608x128xf32>
    %21 = arith.addf %18, %20 : vector<608x128xf32>
    %cst_12 = arith.constant 0.000000e+00 : f32
    %22 = vector.broadcast %cst_12 : f32 to vector<608x128xf32>
    %23 = arith.cmpf ogt, %21, %22 : vector<608x128xf32>
    %24 = vector.broadcast %1 : f32 to vector<608x128xf32>
    %25 = arith.mulf %24, %21 : vector<608x128xf32>
    %26 = arith.select %23, %21, %25 : vector<608x128xi1>, vector<608x128xf32>
    %27 = arith.truncf %26 : vector<608x128xf32> to vector<608x128xbf16>
    %c0_13 = arith.constant 0 : index
    %c0_14 = arith.constant 0 : index
    %28 = vector.load %arg5[%c0_13, %c0_14] : memref<128x256xbf16, #tpu.memory_space<vmem>>, vector<128x256xbf16>
    %cst_15 = arith.constant dense<0.000000e+00> : vector<608x256xf32>
    %29 = tpu.matmul %27, %28, %cst_15 {dimension_numbers = #tpu.dot_dimension_numbers<[1], [0], [0], [1], [0, 0, 1, 1], [], []>} : vector<608x128xbf16>, vector<128x256xbf16>, vector<608x256xf32> -> vector<608x256xf32>
    %30 = vector.extract_strided_slice %29 {offsets = [0, 0], sizes = [608, 128], strides = [1, 1]} : vector<608x256xf32> to vector<608x128xf32>
    %31 = arith.addf %30, %6 : vector<608x128xf32>
    %c2_16 = arith.constant 2 : index
    %c0_17 = arith.constant 0 : index
    %32 = vector.load %arg7[%c2_16, %c0_17] : memref<8x128xf32, #tpu.memory_space<vmem>>, vector<1x128xf32>
    %33 = vector.broadcast %32 : vector<1x128xf32> to vector<608x128xf32>
    %34 = arith.addf %31, %33 : vector<608x128xf32>
    %cst_18 = arith.constant dense<0xFF800000> : vector<608xf32>
    %35 = vector.multi_reduction <maximumf>, %34, %cst_18 [1] : vector<608x128xf32> to vector<608xf32>
    %36 = vector.shape_cast %35 : vector<608xf32> to vector<608x1xf32>
    %37 = vector.broadcast %36 : vector<608x1xf32> to vector<608x128xf32>
    %38 = arith.subf %34, %37 : vector<608x128xf32>
    %39 = math.exp %38 : vector<608x128xf32>
    %cst_19 = arith.constant dense<0.000000e+00> : vector<608xf32>
    %40 = vector.multi_reduction <add>, %39, %cst_19 [1] : vector<608x128xf32> to vector<608xf32>
    %41 = vector.shape_cast %40 : vector<608xf32> to vector<608x1xf32>
    %42 = vector.broadcast %41 : vector<608x1xf32> to vector<608x128xf32>
    %43 = arith.divf %39, %42 : vector<608x128xf32>
    %44 = vector.extract_strided_slice %29 {offsets = [0, 128], sizes = [608, 128], strides = [1, 1]} : vector<608x256xf32> to vector<608x128xf32>
    %c3 = arith.constant 3 : index
    %c0_20 = arith.constant 0 : index
    %45 = vector.load %arg7[%c3, %c0_20] : memref<8x128xf32, #tpu.memory_space<vmem>>, vector<1x128xf32>
    %46 = vector.broadcast %45 : vector<1x128xf32> to vector<608x128xf32>
    %47 = arith.addf %44, %46 : vector<608x128xf32>
    %cst_21 = arith.constant 0.000000e+00 : f32
    %48 = vector.broadcast %cst_21 : f32 to vector<608x128xf32>
    %49 = arith.cmpf ogt, %47, %48 : vector<608x128xf32>
    %50 = vector.broadcast %2 : f32 to vector<608x128xf32>
    %51 = arith.mulf %50, %47 : vector<608x128xf32>
    %52 = arith.select %49, %47, %51 : vector<608x128xi1>, vector<608x128xf32>
    %53 = arith.truncf %52 : vector<608x128xf32> to vector<608x128xbf16>
    %c0_22 = arith.constant 0 : index
    %c0_23 = arith.constant 0 : index
    %54 = vector.load %arg6[%c0_22, %c0_23] : memref<128x128xbf16, #tpu.memory_space<vmem>>, vector<128x128xbf16>
    %cst_24 = arith.constant dense<0.000000e+00> : vector<608x128xf32>
    %55 = tpu.matmul %53, %54, %cst_24 {dimension_numbers = #tpu.dot_dimension_numbers<[1], [0], [0], [1], [0, 0, 1, 1], [], []>} : vector<608x128xbf16>, vector<128x128xbf16>, vector<608x128xf32> -> vector<608x128xf32>
    %c4 = arith.constant 4 : index
    %c0_25 = arith.constant 0 : index
    %56 = vector.load %arg7[%c4, %c0_25] : memref<8x128xf32, #tpu.memory_space<vmem>>, vector<1x128xf32>
    %57 = vector.broadcast %56 : vector<1x128xf32> to vector<608x128xf32>
    %58 = arith.addf %55, %57 : vector<608x128xf32>
    %59 = arith.addf %43, %58 : vector<608x128xf32>
    %c0_26 = arith.constant 0 : index
    %c0_27 = arith.constant 0 : index
    %60 = vector.load %arg8[%c0_26, %c0_27] : memref<608x128xf32, #tpu.memory_space<vmem>>, vector<608x128xf32>
    tpu.vector_store %arg8[%c0_26, %c0_27], %59 {strides = array<i32>} : memref<608x128xf32, #tpu.memory_space<vmem>>, vector<608x128xf32>,
    return
  }
  func.func @transform_0(%arg0: i32) -> i32 {
    %c0_i32 = arith.constant 0 : i32
    %c0_i32_0 = arith.constant 0 : i32
    return %c0_i32 : i32
  }
  func.func @transform_1(%arg0: i32) -> (i32, i32) {
    %c0_i32 = arith.constant 0 : i32
    %c0_i32_0 = arith.constant 0 : i32
    return %arg0, %c0_i32 : i32, i32
  }
  func.func @transform_2(%arg0: i32) -> (i32, i32) {
    %c0_i32 = arith.constant 0 : i32
    %c0_i32_0 = arith.constant 0 : i32
    %c0_i32_1 = arith.constant 0 : i32
    return %c0_i32, %c0_i32_0 : i32, i32
  }
  func.func @transform_3(%arg0: i32) -> (i32, i32) {
    %c0_i32 = arith.constant 0 : i32
    %c0_i32_0 = arith.constant 0 : i32
    %c0_i32_1 = arith.constant 0 : i32
    return %c0_i32, %c0_i32_0 : i32, i32
  }
  func.func @transform_4(%arg0: i32) -> (i32, i32) {
    %c0_i32 = arith.constant 0 : i32
    %c0_i32_0 = arith.constant 0 : i32
    %c0_i32_1 = arith.constant 0 : i32
    return %c0_i32, %c0_i32_0 : i32, i32
  }
  func.func @transform_5(%arg0: i32) -> (i32, i32) {
    %c0_i32 = arith.constant 0 : i32
    %c0_i32_0 = arith.constant 0 : i32
    %c0_i32_1 = arith.constant 0 : i32
    return %c0_i32, %c0_i32_0 : i32, i32
  }
  func.func @transform_6(%arg0: i32) -> (i32, i32) {
    %c0_i32 = arith.constant 0 : i32
    %c0_i32_0 = arith.constant 0 : i32
    %c0_i32_1 = arith.constant 0 : i32
    return %c0_i32, %c0_i32_0 : i32, i32
  }
  func.func @transform_7(%arg0: i32) -> (i32, i32) {
    %c0_i32 = arith.constant 0 : i32
    %c0_i32_0 = arith.constant 0 : i32
    return %arg0, %c0_i32 : i32, i32
  }
}

</mosaic_0001>

<bundles_post_ra>
// kernel: actor_model_forward.1
= control target key start
LH: loop header
LB: loop body
LE: loop exit
PB: predicated region body
PF: predicated region fallthrough
CT: control target
= control target key end

     0   :  { %12 = vsyncpa [#allocation3], 0  ;;  %s5659_s27 = smov [#allocation2]   ;;  %s8982_s0 = inlined_call_operand.vmem [shape: f32[3], index: 0, kind: input, shape index: {}]   ;;  %s8983_s1 = inlined_call_operand.vmem [shape: bf16[608,64], index: 1, kind: input, shape index: {}]   ;;  %s8984_s2 = inlined_call_operand.vmem [shape: bf16[64,256], index: 2, kind: input, shape index: {}]   ;;  %s8985_s3 = inlined_call_operand.vmem [shape: bf16[128,128], index: 3, kind: input, shape index: {}]   ;;  %s8986_s4 = inlined_call_operand.vmem [shape: bf16[128,256], index: 4, kind: input, shape index: {}]   ;;  %s8987_s5 = inlined_call_operand.vmem [shape: bf16[128,128], index: 5, kind: input, shape index: {}]   ;;  %s8988_s6 = inlined_call_operand.vmem [shape: f32[8,128], index: 6, kind: input, shape index: {}]   ;;  %s8989_s7 = inlined_call_operand.vmem [shape: f32[608,128], index: 7, kind: output, shape index: {}]  }
   0x1   :  { %s18_s26 = sshll.u32 %s8982_s0, 4  ;;  %s19_s26 = int_to_ptr.vmem [resolvable:$true] %s18_s26 }
   0x2   :  { %21 = dma.vmem_to_smem %s19_s26, 16, %s5659_s27, [#allocation3]  }
   0x3   :  { %5657 = dma.done.wait [#allocation3], 16  }
   0x4   :  { %5658 = vsyncadd [#allocation3], 4294967280 }
   0x5   :  { %38 = sfence }
   0x6   :  { %v5014_v0 = vld [vmem:[%s8984_s2 + $0x30] sm:$0xf]  ;;  %v5269_v1 = vld [vmem:[%s8984_s2 + $0x34] sm:$0xf0]  ;;  %v5006_v2 = vld [vmem:[%s8984_s2 + $0x20] sm:$0xf] }
   0x7   :  { %v5015_v3 = vor.u32 %v5269_v1, %v5014_v0  ;;  %v5267_v4 = vld [vmem:[%s8984_s2 + $0x24] sm:$0xf0]  ;;  %v4998_v6 = vld [vmem:[%s8984_s2 + $0x10] sm:$0xf]  ;;  %v5265_v7 = vld [vmem:[%s8984_s2 + $0x14] sm:$0xf0] }
   0x8   :  { %v5007_v5 = vor.u32 %v5267_v4, %v5006_v2  ;;  %v4999_v8 = vor.u32 %v5265_v7, %v4998_v6  ;;  %v4990_v9 = vld [vmem:[%s8984_s2] sm:$0xf]  ;;  %v5263_v10 = vld [vmem:[%s8984_s2 + $0x4] sm:$0xf0]  ;;  %v5277_v12 = vld [vmem:[%s8985_s3 + $0x38] sm:$0xff]  ;;  %vm357_vm0 = vcmask 523264  }
   0x9   :  { %5302 = vmatpush.bf16.msra.mxu2 %v5015_v3  ;;  %476 = vmatpush.bf16.msra.mxu0 %v5015_v3  ;;  %v4991_v11 = vor.u32 %v5263_v10, %v4990_v9  ;;  %v5244_v13 = vld [vmem:[%s8983_s1 + $0xa0] sm:$0xff]  ;;  %v5276_v14 = vld [vmem:[%s8985_s3 + $0x30] sm:$0xff]  ;;  %v5245_v15 = vld [vmem:[%s8983_s1 + $0xa8] sm:$0xff]  ;;  %s40_s19 = sld [smem:[#allocation2]] }
   0xa   :  { %v5744_v16 = vld [vmem:[%s8983_s1 + $0xb0] sm:$0xff]  ;;  %v5275_v17 = vld [vmem:[%s8985_s3 + $0x28] sm:$0xff]  ;;  %v5754_v18 = vld [vmem:[%s8983_s1 + $0xb8] sm:$0xff]  ;;  %s4834_s20 = sld [smem:[#allocation2 + $0x1]] }
   0xb   :  { %v5761_v19 = vld [vmem:[%s8983_s1 + $0xc0] sm:$0xff]  ;;  %v5268_v20 = vld [vmem:[%s8984_s2 + $0x34] sm:$0xf]  ;;  %v5016_v21 = vld [vmem:[%s8984_s2 + $0x38] sm:$0xf0] }
   0xc   :  { %v5274_v22 = vld [vmem:[%s8985_s3 + $0x20] sm:$0xff]  ;;  %v5019_v23 = vor.u32 %v5268_v20, %v5016_v21  ;;  %v5008_v25 = vld [vmem:[%s8984_s2 + $0x28] sm:$0xf0]  ;;  %v5264_v28 = vld [vmem:[%s8984_s2 + $0x14] sm:$0xf] }
   0xd   :  { %5303 = vmatpush.bf16.msra.mxu2 %v5007_v5  ;;  %477 = vmatpush.bf16.msra.mxu0 %v5007_v5  ;;  %v5266_v24 = vld [vmem:[%s8984_s2 + $0x24] sm:$0xf]  ;;  %v5783_v27 = vld [vmem:[%s8983_s1 + $0xc8] sm:$0xff]  ;;  %v5000_v29 = vld [vmem:[%s8984_s2 + $0x18] sm:$0xf0] }
   0xe   :  { %5306 = vmatpush.bf16.msra.mxu3 %v5019_v23  ;;  %v5011_v26 = vor.u32 %v5266_v24, %v5008_v25  ;;  %675 = vmatpush.bf16.msra.mxu1 %v5019_v23  ;;  %v5003_v30 = vor.u32 %v5264_v28, %v5000_v29  ;;  %v5224_v31 = vld [vmem:[%s8983_s1] sm:$0xff]  ;;  %v4992_v33 = vld [vmem:[%s8984_s2 + $0x8] sm:$0xf0]  ;;  %v5806_v35 = vld [vmem:[%s8983_s1 + $0x98] sm:$0xff] }
   0xf   :  { %v5262_v32 = vld [vmem:[%s8984_s2 + $0x4] sm:$0xf]  ;;  %v5814_v36 = vld [vmem:[%s8983_s1 + $0xd0] sm:$0xff]  ;;  %v5225_v37 = vld [vmem:[%s8983_s1 + $0x8] sm:$0xff]  ;;  %v6012_v28 = vstv %s40_s19 }
  0x10   :  { %v4995_v34 = vor.u32 %v5262_v32, %v4992_v33  ;;  %v5186_v38 = vld [vmem:[%s8986_s4 + $0x70] sm:$0xf]  ;;  %v5293_v39 = vld [vmem:[%s8986_s4 + $0x74] sm:$0xf0]  ;;  %v5849_v44 = vld [vmem:[%s8983_s1 + $0xe0] sm:$0xff] }
  0x11   :  { %5304 = vmatpush.bf16.msra.mxu2 %v4999_v8  ;;  %478 = vmatpush.bf16.msra.mxu0 %v4999_v8  ;;  %v5187_v40 = vor.u32 %v5293_v39, %v5186_v38  ;;  %v5833_v41 = vld [vmem:[%s8983_s1 + $0xd8] sm:$0xff]  ;;  %v5226_v43 = vld [vmem:[%s8983_s1 + $0x10] sm:$0xff]  ;;  %v5178_v47 = vld [vmem:[%s8986_s4 + $0x60] sm:$0xf] }
  0x12   :  { %5307 = vmatpush.bf16.msra.mxu3 %v5011_v26  ;;  %676 = vmatpush.bf16.msra.mxu1 %v5011_v26  ;;  %v5273_v42 = vld [vmem:[%s8985_s3 + $0x18] sm:$0xff]  ;;  %v5291_v48 = vld [vmem:[%s8986_s4 + $0x64] sm:$0xf0]  ;;  %v5228_v52 = vld [vmem:[%s8983_s1 + $0x20] sm:$0xff] }
  0x13   :  { %v5227_v45 = vld [vmem:[%s8983_s1 + $0x18] sm:$0xff]  ;;  %v5179_v49 = vor.u32 %v5291_v48, %v5178_v47  ;;  %v5873_v51 = vld [vmem:[%s8983_s1 + $0xe8] sm:$0xff]  ;;  %v5272_v54 = vld [vmem:[%s8985_s3 + $0x10] sm:$0xff] }
  0x14   :  { %v5894_v56 = vld [vmem:[%s8983_s1 + $0xf0] sm:$0xff]  ;;  %v5229_v57 = vld [vmem:[%s8983_s1 + $0x28] sm:$0xff]  ;;  %v5289_v61 = vld [vmem:[%s8986_s4 + $0x54] sm:$0xf0] }
  0x15   :  { %5305 = vmatpush.bf16.msra.mxu2 %v4991_v11  ;;  %479 = vmatpush.bf16.msra.mxu0 %v4991_v11  ;;  %v5170_v60 = vld [vmem:[%s8986_s4 + $0x50] sm:$0xf]  ;;  %v5918_v62 = vld [vmem:[%s8983_s1 + $0xf8] sm:$0xff]  ;;  %v5271_v2 = vld [vmem:[%s8985_s3 + $0x8] sm:$0xff] }
  0x16   :  { %5308 = vmatpush.bf16.msra.mxu3 %v5003_v30  ;;  %677 = vmatpush.bf16.msra.mxu1 %v5003_v30  ;;  %v5171_v63 = vor.u32 %v5289_v61, %v5170_v60  ;;  %v5230_v0 = vld [vmem:[%s8983_s1 + $0x30] sm:$0xff]  ;;  %v5939_v4 = vld [vmem:[%s8983_s1 + $0x100] sm:$0xff]  ;;  %v5231_v5 = vld [vmem:[%s8983_s1 + $0x38] sm:$0xff] }
  0x17   :  { %v5957_v8 = vld [vmem:[%s8983_s1 + $0x108] sm:$0xff]  ;;  %v5232_v10 = vld [vmem:[%s8983_s1 + $0x40] sm:$0xff]  ;;  %v5994_v21 = vld [vmem:[%s8983_s1 + $0x110] sm:$0xff] }
  0x18   :  { %5040 = vmatmul.msk.bf16.vlgmr.msra.gmra.mxu2 %vm357_vm0, %v5244_v13  ;;  %5020 = vmatmul.msk.bf16.vlgmr.msra.gmra.mxu0 %vm357_vm0, %v5224_v31  ;;  %v5270_v20 = vld [vmem:[%s8985_s3] sm:$0xff]  ;;  %v5233_v25 = vld [vmem:[%s8983_s1 + $0x48] sm:$0xff] }
  0x19   :  { %1281 = vmatpush.bf16.msrb.mxu2 %v5277_v12  ;;  %v5292_v12 = vld [vmem:[%s8986_s4 + $0x74] sm:$0xf]  ;;  %v5999_v23 = vld [vmem:[%s8988_s6] ss:$0 sm:$0xff] }
  0x1a   :  { %5309 = vmatpush.bf16.msra.mxu3 %v4995_v34  ;;  %678 = vmatpush.bf16.msra.mxu1 %v4995_v34 }
  0x1d   :  { %1282 = vmatpush.bf16.msrb.mxu2 %v5276_v14  ;;  %5077 = vmatmul.msk.bf16.vlgmr.msra.gmra.mxu3 %vm357_vm0, %v5806_v35  ;;  %v5162_v14 = vld [vmem:[%s8986_s4 + $0x40] sm:$0xf] }
  0x1e   :  { %5058 = vmatmul.msk.bf16.vlgmr.msra.gmra.mxu1 %vm357_vm0, %v5224_v31  ;;  %1843 = vmatpush.bf16.msrb.mxu3 %v5187_v40 }
  0x21   :  { %1283 = vmatpush.bf16.msrb.mxu2 %v5275_v17 }
  0x22   :  { %1844 = vmatpush.bf16.msrb.mxu3 %v5179_v49 }
  0x25   :  { %1284 = vmatpush.bf16.msrb.mxu2 %v5274_v22 }
  0x26   :  { %1845 = vmatpush.bf16.msrb.mxu3 %v5171_v63 }
  0x28   :  { %5041 = vmatmul.msk.bf16.gmra.mxu2 %vm357_vm0, %v5245_v15  ;;  %5021 = vmatmul.msk.bf16.gmra.mxu0 %vm357_vm0, %v5225_v37 }
  0x29   :  { %1285 = vmatpush.bf16.msrb.mxu2 %v5273_v42 }
  0x2d   :  { %5078 = vmatmul.msk.bf16.gmra.mxu3 %vm357_vm0, %v5244_v13  ;;  %1286 = vmatpush.bf16.msrb.mxu2 %v5272_v54  ;;  %v5188_v13 = vld [vmem:[%s8986_s4 + $0x78] sm:$0xf0] }
  0x2e   :  { %5059 = vmatmul.msk.bf16.gmra.mxu1 %vm357_vm0, %v5225_v37 }
  0x31   :  { %1287 = vmatpush.bf16.msrb.mxu2 %v5271_v2  ;;  %v5154_v2 = vld [vmem:[%s8986_s4 + $0x30] sm:$0xf] }
  0x35   :  { %1288 = vmatpush.bf16.msrb.mxu2 %v5270_v20 }
  0x38   :  { %5042 = vmatmul.msk.bf16.gmra.mxu2 %vm357_vm0, %v5744_v16  ;;  %5022 = vmatmul.msk.bf16.gmra.mxu0 %vm357_vm0, %v5226_v43 }
  0x3d   :  { %5079 = vmatmul.msk.bf16.gmra.mxu3 %vm357_vm0, %v5245_v15  ;;  %v5191_v15 = vor.u32 %v5292_v12, %v5188_v13  ;;  %v6082_v13 = vld [vmem:[%s8983_s1 + $0x120] sm:$0xff] }
  0x3e   :  { %5060 = vmatmul.msk.bf16.gmra.mxu1 %vm357_vm0, %v5226_v43 }
  0x3f   :  { %2042 = vmatpush.bf16.msrb.mxu0 %v5191_v15  ;;  %5310 = vmatpush.bf16.msra.mxu2 %v5191_v15 }
  0x48   :  { %5043 = vmatmul.msk.bf16.gmra.mxu2 %vm357_vm0, %v5754_v18  ;;  %5023 = vmatmul.msk.bf16.gmra.mxu0 %vm357_vm0, %v5227_v45 }
  0x4d   :  { %5080 = vmatmul.msk.bf16.gmra.mxu3 %vm357_vm0, %v5744_v16  ;;  %v5287_v16 = vld [vmem:[%s8986_s4 + $0x44] sm:$0xf0] }
  0x4e   :  { %5061 = vmatmul.msk.bf16.gmra.mxu1 %vm357_vm0, %v5227_v45  ;;  %v5163_v17 = vor.u32 %v5287_v16, %v5162_v14  ;;  %v5180_v16 = vld [vmem:[%s8986_s4 + $0x68] sm:$0xf0] }
  0x50   :  { %1846 = vmatpush.bf16.msrb.mxu3 %v5163_v17 }
  0x58   :  { %5044 = vmatmul.msk.bf16.gmra.mxu2 %vm357_vm0, %v5761_v19  ;;  %5024 = vmatmul.msk.bf16.gmra.mxu0 %vm357_vm0, %v5228_v52 }
  0x5d   :  { %5081 = vmatmul.msk.bf16.gmra.mxu3 %vm357_vm0, %v5754_v18 }
  0x5e   :  { %5062 = vmatmul.msk.bf16.gmra.mxu1 %vm357_vm0, %v5228_v52 }
  0x68   :  { %5045 = vmatmul.msk.bf16.gmra.mxu2 %vm357_vm0, %v5783_v27  ;;  %5025 = vmatmul.msk.bf16.gmra.mxu0 %vm357_vm0, %v5229_v57 }
  0x6d   :  { %5082 = vmatmul.msk.bf16.gmra.mxu3 %vm357_vm0, %v5761_v19 }
  0x6e   :  { %5063 = vmatmul.msk.bf16.gmra.mxu1 %vm357_vm0, %v5229_v57 }
  0x78   :  { %5046 = vmatmul.msk.bf16.gmra.mxu2 %vm357_vm0, %v5814_v36  ;;  %5026 = vmatmul.msk.bf16.gmra.mxu0 %vm357_vm0, %v5230_v0 }
  0x7d   :  { %5083 = vmatmul.msk.bf16.gmra.mxu3 %vm357_vm0, %v5783_v27 }
  0x7e   :  { %5064 = vmatmul.msk.bf16.gmra.mxu1 %vm357_vm0, %v5230_v0 }
  0x88   :  { %5047 = vmatmul.msk.bf16.gmra.mxu2 %vm357_vm0, %v5833_v41  ;;  %5027 = vmatmul.msk.bf16.gmra.mxu0 %vm357_vm0, %v5231_v5 }
  0x8d   :  { %5084 = vmatmul.msk.bf16.gmra.mxu3 %vm357_vm0, %v5814_v36 }
  0x8e   :  { %5065 = vmatmul.msk.bf16.gmra.mxu1 %vm357_vm0, %v5231_v5  ;;  %v5285_v5 = vld [vmem:[%s8986_s4 + $0x34] sm:$0xf0] }
  0x8f   :  { %v5155_v14 = vor.u32 %v5285_v5, %v5154_v2  ;;  %v6121_v2 = vld [vmem:[%s8983_s1 + $0x128] sm:$0xff] }
  0x91   :  { %1847 = vmatpush.bf16.msrb.mxu3 %v5155_v14 }
  0x95   :  { %v5959_v9 = vpop.f32.mrf.mxu0 }
  0x98   :  { %5048 = vmatmul.msk.bf16.gmra.mxu2 %vm357_vm0, %v5849_v44  ;;  %5028 = vmatmul.msk.bf16.gmra.mxu0 %vm357_vm0, %v5232_v10 }
  0x9b   :  { %v5857_v46 = vpop.f32.mrf.mxu2  ;;  %v6014_v29 = vpop.f32.mrf.mxu1 }
  0x9c   :  { %9025 = vst [vmem:[#allocation5_spill] sm:$0xff] %v5857_v46  ;;  %v872_v14 = vadd.f32 %v5999_v23, %v6014_v29 }
  0x9d   :  { %v5981_v18 = vpop.f32.mrf.mxu0  ;;  %5085 = vmatmul.msk.bf16.gmra.mxu3 %vm357_vm0, %v5833_v41  ;;  %v6037_v41 = vld [vmem:[%s8983_s1 + $0x118] sm:$0xff] }
  0x9e   :  { %5066 = vmatmul.msk.bf16.gmra.mxu1 %vm357_vm0, %v5232_v10  ;;  %vm948_vm9 = vcmp.gt.f32.partialorder %v872_v14, 0.0 }
  0xa0   :  { %v775_v22 = vpop.f32.mrf.mxu3 }
  0xa1   :  { %v910_v26 = vadd.f32 %v5999_v23, %v775_v22  ;;  %v5235_v22 = vld [vmem:[%s8983_s1 + $0x58] sm:$0xff] }
  0xa3   :  { %v5868_v50 = vpop.f32.mrf.mxu2  ;;  %v1063_v32 = vmul.f32 %v6012_v28, %v910_v26  ;;  %vm986_vm1 = vcmp.gt.f32.partialorder %v910_v26, 0.0  ;;  %v6030_v39 = vpop.f32.mrf.mxu1 }
  0xa4   :  { %9026 = vst [vmem:[#allocation6_spill] sm:$0xff] %v5868_v50 }
  0xa5   :  { %v6001_v24 = vpop.f32.mrf.mxu0  ;;  %v6024_v36 = vsel %vm986_vm1, %v910_v26, %v1063_v32 }
  0xa8   :  { %5049 = vmatmul.msk.bf16.gmra.mxu2 %vm357_vm0, %v5873_v51  ;;  %5029 = vmatmul.msk.bf16.gmra.mxu0 %vm357_vm0, %v5233_v25  ;;  %v777_v30 = vpop.f32.mrf.mxu3 }
  0xa9   :  { %v911_v31 = vadd.f32 %v5999_v23, %v777_v30 }
  0xab   :  { %v5881_v53 = vpop.f32.mrf.mxu2  ;;  %vm987_vm2 = vcmp.gt.f32.partialorder %v911_v31, 0.0  ;;  %v1064_v33 = vmul.f32 %v6012_v28, %v911_v31  ;;  %v6050_v48 = vpop.f32.mrf.mxu1 }
  0xac   :  { %9027 = vst [vmem:[#allocation7_spill] sm:$0xff] %v5881_v53 }
  0xad   :  { %v6019_v34 = vpop.f32.mrf.mxu0  ;;  %5086 = vmatmul.msk.bf16.gmra.mxu3 %vm357_vm0, %v5849_v44  ;;  %v6026_v37 = vsel %vm987_vm2, %v911_v31, %v1064_v33  ;;  %v5234_v44 = vld [vmem:[%s8983_s1 + $0x50] sm:$0xff] }
  0xae   :  { %5067 = vmatmul.msk.bf16.gmra.mxu1 %vm357_vm0, %v5233_v25 }
  0xb0   :  { %v780_v42 = vpop.f32.mrf.mxu3 }
  0xb1   :  { %v912_v45 = vadd.f32 %v5999_v23, %v780_v42 }
  0xb3   :  { %v5889_v55 = vpop.f32.mrf.mxu2  ;;  %v1065_v54 = vmul.f32 %v6012_v28, %v912_v45  ;;  %vm988_vm3 = vcmp.gt.f32.partialorder %v912_v45, 0.0  ;;  %v6075_v10 = vpop.f32.mrf.mxu1 }
  0xb4   :  { %9028 = vst [vmem:[#allocation8_spill] sm:$0xff] %v5889_v55 }
  0xb5   :  { %v6039_v43 = vpop.f32.mrf.mxu0  ;;  %v6060_v61 = vsel %vm988_vm3, %v912_v45, %v1065_v54 }
  0xb8   :  { %5050 = vmatmul.msk.bf16.gmra.mxu2 %vm357_vm0, %v5894_v56  ;;  %5030 = vmatmul.msk.bf16.gmra.mxu0 %vm357_vm0, %v5234_v44  ;;  %v782_v49 = vpop.f32.mrf.mxu3 }
  0xb9   :  { %v913_v52 = vadd.f32 %v5999_v23, %v782_v49 }
  0xbb   :  { %v5902_v58 = vpop.f32.mrf.mxu2  ;;  %vm989_vm4 = vcmp.gt.f32.partialorder %v913_v52, 0.0  ;;  %v1066_v57 = vmul.f32 %v6012_v28, %v913_v52  ;;  %v6098_v30 = vpop.f32.mrf.mxu1 }
  0xbc   :  { %9029 = vst [vmem:[#allocation9_spill] sm:$0xff] %v5902_v58 }
  0xbd   :  { %v6055_v60 = vpop.f32.mrf.mxu0  ;;  %5087 = vmatmul.msk.bf16.gmra.mxu3 %vm357_vm0, %v5873_v51  ;;  %v6062_v63 = vsel %vm989_vm4, %v913_v52, %v1066_v57  ;;  %v5290_v51 = vld [vmem:[%s8986_s4 + $0x64] sm:$0xf] }
  0xbe   :  { %5068 = vmatmul.msk.bf16.gmra.mxu1 %vm357_vm0, %v5234_v44  ;;  %v5183_v17 = vor.u32 %v5290_v51, %v5180_v16  ;;  %v5236_v51 = vld [vmem:[%s8983_s1 + $0x60] sm:$0xff]  ;;  %v873_v16 = vadd.f32 %v5999_v23, %v6030_v39 }
  0xc0   :  { %v785_v15 = vpop.f32.mrf.mxu3  ;;  %2043 = vmatpush.bf16.msrb.mxu0 %v5183_v17  ;;  %5311 = vmatpush.bf16.msra.mxu2 %v5183_v17  ;;  %v1026_v29 = vmul.f32 %v6012_v28, %v873_v16  ;;  %vm949_vm10 = vcmp.gt.f32.partialorder %v873_v16, 0.0 }
  0xc1   :  { %v914_v25 = vadd.f32 %v5999_v23, %v785_v15 }
  0xc2   :  { %v1102_v12 = vsel %vm949_vm10, %v873_v16, %v1026_v29  ;;  %v874_v16 = vadd.f32 %v5999_v23, %v6050_v48 }
  0xc3   :  { %v5907_v59 = vpop.f32.mrf.mxu2  ;;  %v1067_v33 = vmul.f32 %v6012_v28, %v914_v25  ;;  %vm990_vm5 = vcmp.gt.f32.partialorder %v914_v25, 0.0  ;;  %v6114_v54 = vpop.f32.mrf.mxu1 }
  0xc4   :  { %9030 = vst [vmem:[#allocation10_spill] sm:$0xff] %v5907_v59  ;;  %vm950_vm13 = vcmp.gt.f32.partialorder %v874_v16, 0.0 }
  0xc5   :  { %v6087_v20 = vpop.f32.mrf.mxu0  ;;  %v6108_v45 = vsel %vm990_vm5, %v914_v25, %v1067_v33 }
  0xc8   :  { %5051 = vmatmul.msk.bf16.gmra.mxu2 %vm357_vm0, %v5918_v62  ;;  %5031 = vmatmul.msk.bf16.gmra.mxu0 %vm357_vm0, %v5235_v22  ;;  %v787_v31 = vpop.f32.mrf.mxu3 }
  0xc9   :  { %v915_v32 = vadd.f32 %v5999_v23, %v787_v31 }
  0xcb   :  { %v5926_v1 = vpop.f32.mrf.mxu2  ;;  %vm991_vm6 = vcmp.gt.f32.partialorder %v915_v32, 0.0  ;;  %v1068_v42 = vmul.f32 %v6012_v28, %v915_v32 }
  0xcc   :  { %9031 = vst [vmem:[#allocation11_spill] sm:$0xff] %v5926_v1  ;;  %v5241_v1 = vld [vmem:[%s8983_s1 + $0x88] sm:$0xff] }
  0xcd   :  { %v6103_v44 = vpop.f32.mrf.mxu0  ;;  %5088 = vmatmul.msk.bf16.gmra.mxu3 %vm357_vm0, %v5894_v56  ;;  %v6110_v49 = vsel %vm991_vm6, %v915_v32, %v1068_v42  ;;  %v1025_v32 = vmul.f32 %v6012_v28, %v872_v14 }
  0xce   :  { %5069 = vmatmul.msk.bf16.gmra.mxu1 %vm357_vm0, %v5235_v22  ;;  %v6138_v22 = vpop.f32.mrf.mxu1 }
  0xcf   :  { %v1101_v57 = vsel %vm948_vm9, %v872_v14, %v1025_v32  ;;  %v5237_v14 = vld [vmem:[%s8983_s1 + $0x68] sm:$0xff]  ;;  %v5172_v32 = vld [vmem:[%s8986_s4 + $0x58] sm:$0xf0] }
  0xd0   :  { %v790_v5 = vpop.f32.mrf.mxu3 }
  0xd1   :  { %v916_v15 = vadd.f32 %v5999_v23, %v790_v5 }
  0xd3   :  { %v5934_v3 = vpop.f32.mrf.mxu2  ;;  %v1069_v33 = vmul.f32 %v6012_v28, %v916_v15  ;;  %vm992_vm7 = vcmp.gt.f32.partialorder %v916_v15, 0.0 }
  0xd4   :  { %9032 = vst [vmem:[#allocation12_spill] sm:$0xff] %v5934_v3 }
  0xd5   :  { %v6123_v56 = vpop.f32.mrf.mxu0  ;;  %v6150_v39 = vsel %vm992_vm7, %v916_v15, %v1069_v33 }
  0xd8   :  { %5052 = vmatmul.msk.bf16.gmra.mxu2 %vm357_vm0, %v5939_v4  ;;  %5032 = vmatmul.msk.bf16.gmra.mxu0 %vm357_vm0, %v5236_v51  ;;  %v792_v25 = vpop.f32.mrf.mxu3 }
  0xd9   :  { %v917_v31 = vadd.f32 %v5999_v23, %v792_v25 }
  0xdb   :  { %v5947_v6 = vpop.f32.mrf.mxu2  ;;  %vm993_vm8 = vcmp.gt.f32.partialorder %v917_v31, 0.0  ;;  %v1070_v42 = vmul.f32 %v6012_v28, %v917_v31 }
  0xdc   :  { %9033 = vst [vmem:[#allocation13_spill] sm:$0xff] %v5947_v6 }
  0xdd   :  { %v6145_v5 = vpop.f32.mrf.mxu0  ;;  %5089 = vmatmul.msk.bf16.gmra.mxu3 %vm357_vm0, %v5918_v62  ;;  %v6152_v25 = vsel %vm993_vm8, %v917_v31, %v1070_v42  ;;  %v5146_v62 = vld [vmem:[%s8986_s4 + $0x20] sm:$0xf]  ;;  %v5288_v31 = vld [vmem:[%s8986_s4 + $0x54] sm:$0xf]  ;;  %v1027_v42 = vmul.f32 %v6012_v28, %v874_v16 }
  0xde   :  { %5070 = vmatmul.msk.bf16.gmra.mxu1 %vm357_vm0, %v5236_v51  ;;  %v5283_v51 = vld [vmem:[%s8986_s4 + $0x24] sm:$0xf0] }
  0xdf   :  { %v5147_v15 = vor.u32 %v5283_v51, %v5146_v62 }
  0xe1   :  { %1848 = vmatpush.bf16.msrb.mxu3 %v5147_v15 }
  0xe3   :  { %v5952_v7 = vpop.f32.mrf.mxu2 }
  0xe4   :  { %9034 = vst [vmem:[#allocation14_spill] sm:$0xff] %v5952_v7 }
  0xe8   :  { %5053 = vmatmul.msk.bf16.gmra.mxu2 %vm357_vm0, %v5957_v8  ;;  %5033 = vmatmul.msk.bf16.gmra.mxu0 %vm357_vm0, %v5237_v14 }
  0xeb   :  { %v5967_v11 = vpop.f32.mrf.mxu2 }
  0xec   :  { %9035 = vst [vmem:[#allocation15_spill] sm:$0xff] %v5967_v11 }
  0xed   :  { %5090 = vmatmul.msk.bf16.gmra.mxu3 %vm357_vm0, %v5939_v4  ;;  %v5238_v4 = vld [vmem:[%s8983_s1 + $0x70] sm:$0xff] }
  0xee   :  { %5071 = vmatmul.msk.bf16.gmra.mxu1 %vm357_vm0, %v5237_v14  ;;  %v876_v14 = vadd.f32 %v5999_v23, %v6098_v30 }
  0xf0   :  { %vm952_vm2 = vcmp.gt.f32.partialorder %v876_v14, 0.0 }
  0xf3   :  { %v5986_v19 = vpop.f32.mrf.mxu2 }
  0xf4   :  { %9036 = vst [vmem:[#allocation16_spill] sm:$0xff] %v5986_v19 }
  0xf8   :  { %5054 = vmatmul.msk.bf16.gmra.mxu2 %vm357_vm0, %v5994_v21  ;;  %5034 = vmatmul.msk.bf16.gmra.mxu0 %vm357_vm0, %v5238_v4 }
  0xfb   :  { %v6010_v27 = vpop.f32.mrf.mxu2 }
  0xfc   :  { %9037 = vst [vmem:[#allocation17_spill] sm:$0xff] %v6010_v27 }
  0xfd   :  { %5091 = vmatmul.msk.bf16.gmra.mxu3 %vm357_vm0, %v5957_v8  ;;  %v5239_v8 = vld [vmem:[%s8983_s1 + $0x78] sm:$0xff] }
  0xfe   :  { %5072 = vmatmul.msk.bf16.gmra.mxu1 %vm357_vm0, %v5238_v4  ;;  %v878_v4 = vadd.f32 %v5999_v23, %v6138_v22 }
 0x100   :  { %vm954_vm6 = vcmp.gt.f32.partialorder %v878_v4, 0.0 }
 0x103   :  { %v6028_v38 = vpop.f32.mrf.mxu2 }
 0x104   :  { %9038 = vst [vmem:[#allocation18_spill] sm:$0xff] %v6028_v38 }
 0x108   :  { %5055 = vmatmul.msk.bf16.gmra.mxu2 %vm357_vm0, %v6037_v41  ;;  %5035 = vmatmul.msk.bf16.gmra.mxu0 %vm357_vm0, %v5239_v8 }
 0x10b   :  { %v6048_v47 = vpop.f32.mrf.mxu2 }
 0x10c   :  { %9039 = vst [vmem:[#allocation19_spill] sm:$0xff] %v6048_v47  ;;  %v6160_v47 = vpop.f32.mrf.mxu0 }
 0x10d   :  { %5092 = vmatmul.msk.bf16.gmra.mxu3 %vm357_vm0, %v5994_v21 }
 0x113   :  { %v6064_v0 = vpop.f32.mrf.mxu2 }
 0x114   :  { %9040 = vst [vmem:[#allocation20_spill] sm:$0xff] %v6064_v0  ;;  %v1177_v0 = vpack.c.bf16 %v1102_v12, %v1101_v57  ;;  %v6192_v15 = vpop.f32.mrf.mxu0 }
 0x118   :  { %5056 = vmatmul.msk.bf16.gmra.mxu2 %vm357_vm0, %v6082_v13 }
 0x11b   :  { %v6096_v26 = vpop.f32.mrf.mxu2 }
 0x11c   :  { %9041 = vst [vmem:[#allocation21_spill] sm:$0xff] %v6096_v26  ;;  %v795_v26 = vpop.f32.mrf.mxu3  ;;  %v6207_v19 = vpop.f32.mrf.mxu0 }
 0x11d   :  { %v918_v12 = vadd.f32 %v5999_v23, %v795_v26  ;;  %v5175_v26 = vor.u32 %v5288_v31, %v5172_v32 }
 0x11f   :  { %2044 = vmatpush.bf16.msrb.mxu0 %v5175_v26  ;;  %5312 = vmatpush.bf16.msra.mxu2 %v5175_v26  ;;  %vm994_vm11 = vcmp.gt.f32.partialorder %v918_v12, 0.0  ;;  %v1103_v26 = vsel %vm950_vm13, %v874_v16, %v1027_v42  ;;  %v1029_v42 = vmul.f32 %v6012_v28, %v876_v14 }
 0x123   :  { %v6112_v52 = vpop.f32.mrf.mxu2 }
 0x124   :  { %9042 = vst [vmem:[#allocation22_spill] sm:$0xff] %v6112_v52  ;;  %v797_v48 = vpop.f32.mrf.mxu3  ;;  %5093 = vmatmul.msk.bf16.gmra.mxu3 %vm357_vm0, %v6037_v41 }
 0x125   :  { %v919_v29 = vadd.f32 %v5999_v23, %v797_v48 }
 0x127   :  { %vm995_vm12 = vcmp.gt.f32.partialorder %v919_v29, 0.0  ;;  %v1072_v51 = vmul.f32 %v6012_v28, %v919_v29 }
 0x128   :  { %5057 = vmatmul.msk.bf16.gmra.mxu2 %vm357_vm0, %v6121_v2 }
 0x129   :  { %v6199_v32 = vsel %vm995_vm12, %v919_v29, %v1072_v51 }
 0x12b   :  { %v6136_v17 = vpop.f32.mrf.mxu2 }
 0x12c   :  { %9043 = vst [vmem:[#allocation23_spill] sm:$0xff] %v6136_v17  ;;  %v6156_v17 = vpop.f32.mrf.mxu1  ;;  %v800_v38 = vpop.f32.mrf.mxu3  ;;  %5073 = vmatmul.msk.bf16.gmra.mxu1 %vm357_vm0, %v5239_v8 }
 0x12d   :  { %v920_v16 = vadd.f32 %v5999_v23, %v800_v38 }
 0x12f   :  { %vm996_vm15 = vcmp.gt.f32.partialorder %v920_v16, 0.0 }
 0x133   :  { %v6154_v40 = vpop.f32.mrf.mxu2 }
 0x134   :  { %9044 = vst [vmem:[#allocation24_spill] sm:$0xff] %v6154_v40  ;;  %v6185_v33 = vpop.f32.mrf.mxu1  ;;  %v802_v29 = vpop.f32.mrf.mxu3  ;;  %5094 = vmatmul.msk.bf16.gmra.mxu3 %vm357_vm0, %v6082_v13 }
 0x138   :  { %1289 = vmatmul.bf16.vlgmr.msrb.gmra.mxu2 %v1177_v0  ;;  %v875_v0 = vadd.f32 %v5999_v23, %v6075_v10  ;;  %v1071_v10 = vmul.f32 %v6012_v28, %v918_v12 }
 0x13a   :  { %v1028_v62 = vmul.f32 %v6012_v28, %v875_v0  ;;  %vm951_vm14 = vcmp.gt.f32.partialorder %v875_v0, 0.0  ;;  %v6197_v31 = vsel %vm994_vm11, %v918_v12, %v1071_v10  ;;  %v877_v12 = vadd.f32 %v5999_v23, %v6114_v54 }
 0x13b   :  { %v6177_v57 = vpop.f32.mrf.mxu2  ;;  %v1073_v10 = vmul.f32 %v6012_v28, %v920_v16 }
 0x13c   :  { %9045 = vst [vmem:[#allocation25_spill] sm:$0xff] %v6177_v57  ;;  %v1104_v52 = vsel %vm951_vm14, %v875_v0, %v1028_v62  ;;  %v6203_v57 = vpop.f32.mrf.mxu1  ;;  %v1030_v30 = vmul.f32 %v6012_v28, %v877_v12  ;;  %v6227_v62 = vpop.f32.mrf.mxu0  ;;  %vm953_vm3 = vcmp.gt.f32.partialorder %v877_v12, 0.0 }
 0x13d   :  { %v1178_v27 = vpack.c.bf16 %v1104_v52, %v1103_v26  ;;  %v6232_v54 = vsel %vm996_vm15, %v920_v16, %v1073_v10  ;;  %v805_v11 = vpop.f32.mrf.mxu3  ;;  %v879_v16 = vadd.f32 %v5999_v23, %v6156_v17  ;;  %v1031_v10 = vmul.f32 %v6012_v28, %v878_v4 }
 0x13e   :  { %v1106_v40 = vsel %vm953_vm3, %v877_v12, %v1030_v30 }
 0x13f   :  { %v1032_v30 = vmul.f32 %v6012_v28, %v879_v16  ;;  %vm955_vm7 = vcmp.gt.f32.partialorder %v879_v16, 0.0 }
 0x143   :  { %v6201_v48 = vpop.f32.mrf.mxu2 }
 0x144   :  { %9046 = vst [vmem:[#allocation26_spill] sm:$0xff] %v6201_v48  ;;  %v6220_v52 = vpop.f32.mrf.mxu1  ;;  %v6242_v6 = vpop.f32.mrf.mxu0  ;;  %v1108_v48 = vsel %vm955_vm7, %v879_v16, %v1032_v30  ;;  %v5240_v16 = vld [vmem:[%s8983_s1 + $0x80] sm:$0xff] }
 0x145   :  { %v807_v22 = vpop.f32.mrf.mxu3  ;;  %5036 = vmatmul.msk.bf16.gmra.mxu0 %vm357_vm0, %v5240_v16  ;;  %5074 = vmatmul.msk.bf16.gmra.mxu1 %vm357_vm0, %v5240_v16  ;;  %v882_v41 = vadd.f32 %v5999_v23, %v6220_v52 }
 0x146   :  { %5095 = vmatmul.msk.bf16.gmra.mxu3 %vm357_vm0, %v6121_v2 }
 0x147   :  { %vm958_vm10 = vcmp.gt.f32.partialorder %v882_v41, 0.0 }
 0x148   :  { %1294 = vmatmul.bf16.gmra.mxu2 %v1178_v27  ;;  %v921_v27 = vadd.f32 %v5999_v23, %v802_v29  ;;  %v1105_v29 = vsel %vm952_vm2, %v876_v14, %v1029_v42  ;;  %v922_v14 = vadd.f32 %v5999_v23, %v805_v11  ;;  %v923_v11 = vadd.f32 %v5999_v23, %v807_v22 }
 0x149   :  { %v1179_v7 = vpack.c.bf16 %v1106_v40, %v1105_v29 }
 0x14a   :  { %vm997_vm1 = vcmp.gt.f32.partialorder %v921_v27, 0.0  ;;  %v1074_v38 = vmul.f32 %v6012_v28, %v921_v27  ;;  %v1075_v17 = vmul.f32 %v6012_v28, %v922_v14  ;;  %vm998_vm4 = vcmp.gt.f32.partialorder %v922_v14, 0.0 }
 0x14b   :  { %v6218_v0 = vpop.f32.mrf.mxu2  ;;  %vm999_vm5 = vcmp.gt.f32.partialorder %v923_v11, 0.0 }
 0x14c   :  { %9047 = vst [vmem:[#allocation27_spill] sm:$0xff] %v6218_v0  ;;  %v6234_v51 = vsel %vm997_vm1, %v921_v27, %v1074_v38  ;;  %v6238_v0 = vpop.f32.mrf.mxu1  ;;  %v5281_v27 = vld [vmem:[%s8986_s4 + $0x14] sm:$0xf0]  ;;  %v1076_v38 = vmul.f32 %v6012_v28, %v923_v11  ;;  %v6268_v29 = vpop.f32.mrf.mxu0 }
 0x14d   :  { %v6287_v8 = vpop.f32.mrf.mxu3  ;;  %v883_v16 = vadd.f32 %v5999_v23, %v6238_v0 }
 0x14f   :  { %vm959_vm11 = vcmp.gt.f32.partialorder %v883_v16, 0.0 }
 0x153   :  { %v6236_v26 = vpop.f32.mrf.mxu2 }
 0x154   :  { %9048 = vst [vmem:[#allocation28_spill] sm:$0xff] %v6236_v26  ;;  %v6255_v40 = vpop.f32.mrf.mxu1  ;;  %v5164_v26 = vld [vmem:[%s8986_s4 + $0x48] sm:$0xf0] }
 0x155   :  { %5037 = vmatmul.msk.bf16.gmra.mxu0 %vm357_vm0, %v5241_v1  ;;  %5075 = vmatmul.msk.bf16.gmra.mxu1 %vm357_vm0, %v5241_v1 }
 0x158   :  { %1299 = vmatmul.bf16.gmra.mxu2 %v1179_v7  ;;  %v5138_v7 = vld [vmem:[%s8986_s4 + $0x10] sm:$0xf] }
 0x159   :  { %v5139_v42 = vor.u32 %v5281_v27, %v5138_v7  ;;  %v6273_v7 = vsel %vm998_vm4, %v922_v14, %v1075_v17  ;;  %v6275_v27 = vsel %vm999_vm5, %v923_v11, %v1076_v38  ;;  %v881_v17 = vadd.f32 %v5999_v23, %v6203_v57 }
 0x15b   :  { %v6253_v12 = vpop.f32.mrf.mxu2  ;;  %1849 = vmatpush.bf16.msrb.mxu3 %v5139_v42  ;;  %v1107_v42 = vsel %vm954_vm6, %v878_v4, %v1031_v10  ;;  %v6289_v4 = vpop.f32.mrf.mxu0  ;;  %v880_v10 = vadd.f32 %v5999_v23, %v6185_v33  ;;  %v1034_v38 = vmul.f32 %v6012_v28, %v881_v17  ;;  %vm957_vm9 = vcmp.gt.f32.partialorder %v881_v17, 0.0 }
 0x15c   :  { %9049 = vst [vmem:[#allocation29_spill] sm:$0xff] %v6253_v12  ;;  %v5286_v12 = vld [vmem:[%s8986_s4 + $0x44] sm:$0xf]  ;;  %v712_v3 = vpop.f32.mrf.mxu1  ;;  %v1180_v11 = vpack.c.bf16 %v1108_v48, %v1107_v42 }
 0x15d   :  { %v5167_v14 = vor.u32 %v5286_v12, %v5164_v26  ;;  %v6303_v26 = vpop.f32.mrf.mxu3  ;;  %v1033_v12 = vmul.f32 %v6012_v28, %v880_v10  ;;  %vm956_vm8 = vcmp.gt.f32.partialorder %v880_v10, 0.0 }
 0x15f   :  { %2045 = vmatpush.bf16.msrb.mxu0 %v5167_v14  ;;  %5313 = vmatpush.bf16.msra.mxu2 %v5167_v14  ;;  %v1109_v33 = vsel %vm956_vm8, %v880_v10, %v1033_v12  ;;  %v1110_v14 = vsel %vm957_vm9, %v881_v17, %v1034_v38  ;;  %v1036_v38 = vmul.f32 %v6012_v28, %v883_v16 }
 0x163   :  { %v6277_v22 = vpop.f32.mrf.mxu2  ;;  %v6307_v42 = vpop.f32.mrf.mxu0 }
 0x164   :  { %9050 = vst [vmem:[#allocation30_spill] sm:$0xff] %v6277_v22  ;;  %v6301_v48 = vpop.f32.mrf.mxu1 }
 0x165   :  { %9052 = vst [vmem:[#allocation32_spill] sm:$0xff] %v6307_v42  ;;  %v6314_v21 = vpop.f32.mrf.mxu3  ;;  %v886_v50 = vadd.f32 %v5999_v23, %v6301_v48 }
 0x168   :  { %1304 = vmatmul.bf16.gmra.mxu2 %v1180_v11 }
 0x16b   :  { %v6299_v30 = vpop.f32.mrf.mxu2  ;;  %v6316_v22 = vpop.f32.mrf.mxu0 }
 0x16c   :  { %9051 = vst [vmem:[#allocation31_spill] sm:$0xff] %v6299_v30  ;;  %v717_v11 = vpop.f32.mrf.mxu1  ;;  %v1181_v30 = vpack.c.bf16 %v1110_v14, %v1109_v33  ;;  %v1112_v14 = vsel %vm959_vm11, %v883_v16, %v1036_v38  ;;  %v5242_v16 = vld [vmem:[%s8983_s1 + $0x90] sm:$0xff] }
 0x16d   :  { %9054 = vst [vmem:[#allocation34_spill] sm:$0xff] %v6316_v22  ;;  %v6330_v12 = vpop.f32.mrf.mxu3  ;;  %5038 = vmatmul.msk.bf16.gmra.mxu0 %vm357_vm0, %v5242_v16  ;;  %5076 = vmatmul.msk.bf16.gmra.mxu1 %vm357_vm0, %v5242_v16  ;;  %v887_v2 = vadd.f32 %v5999_v23, %v717_v11 }
 0x16f   :  { %v1040_v48 = vmul.f32 %v6012_v28, %v887_v2  ;;  %vm963_vm14 = vcmp.gt.f32.partialorder %v887_v2, 0.0 }
 0x173   :  { %v6312_v57 = vpop.f32.mrf.mxu2  ;;  %v6334_v33 = vpop.f32.mrf.mxu0 }
 0x174   :  { %9053 = vst [vmem:[#allocation33_spill] sm:$0xff] %v6312_v57  ;;  %v6328_v17 = vpop.f32.mrf.mxu1  ;;  %v5279_v57 = vld [vmem:[%s8986_s4 + $0x4] sm:$0xf0] }
 0x175   :  { %9056 = vst [vmem:[#allocation36_spill] sm:$0xff] %v6334_v33  ;;  %v6351_v1 = vpop.f32.mrf.mxu3 }
 0x176   :  { %9059 = vst [vmem:[#allocation39_spill] sm:$0xff] %v6351_v1 }
 0x178   :  { %1309 = vmatmul.bf16.gmra.mxu2 %v1181_v30  ;;  %v1035_v30 = vmul.f32 %v6012_v28, %v882_v41 }
 0x17a   :  { %v1111_v52 = vsel %vm958_vm10, %v882_v41, %v1035_v30  ;;  %v5301_v41 = vld [vmem:[%s8987_s5 + $0x38] sm:$0xff] }
 0x17b   :  { %v6326_v10 = vpop.f32.mrf.mxu2  ;;  %v1182_v55 = vpack.c.bf16 %v1112_v14, %v1111_v52  ;;  %v6349_v13 = vpop.f32.mrf.mxu0  ;;  %4478 = vmatpush.bf16.msrb.mxu1 %v5301_v41  ;;  %v5156_v30 = vld [vmem:[%s8986_s4 + $0x38] sm:$0xf0] }
 0x17c   :  { %9055 = vst [vmem:[#allocation35_spill] sm:$0xff] %v6326_v10  ;;  %v5130_v10 = vld [vmem:[%s8986_s4] sm:$0xf]  ;;  %v6347_v59 = vpop.f32.mrf.mxu1 }
 0x17d   :  { %v5131_v58 = vor.u32 %v5279_v57, %v5130_v10  ;;  %9058 = vst [vmem:[#allocation38_spill] sm:$0xff] %v6349_v13  ;;  %v884_v57 = vadd.f32 %v5999_v23, %v6255_v40  ;;  %v6379_v41 = vpop.f32.mrf.mxu3  ;;  %5039 = vmatmul.msk.bf16.gmra.mxu0 %vm357_vm0, %v5806_v35  ;;  %vm962_vm0 = vcmp.gt.f32.partialorder %v886_v50, 0.0 }
 0x17e   :  { %9062 = vst [vmem:[#allocation42_spill] sm:$0xff] %v6379_v41 }
 0x17f   :  { %1850 = vmatpush.bf16.msrb.mxu3 %v5131_v58  ;;  %v885_v58 = vadd.f32 %v5999_v23, %v712_v3  ;;  %v1037_v14 = vmul.f32 %v6012_v28, %v884_v57  ;;  %vm960_vm12 = vcmp.gt.f32.partialorder %v884_v57, 0.0 }
 0x181   :  { %v1038_v40 = vmul.f32 %v6012_v28, %v885_v58  ;;  %vm961_vm13 = vcmp.gt.f32.partialorder %v885_v58, 0.0 }
 0x183   :  { %v6339_v0 = vpop.f32.mrf.mxu2  ;;  %v6375_v3 = vpop.f32.mrf.mxu0 }
 0x184   :  { %9057 = vst [vmem:[#allocation37_spill] sm:$0xff] %v6339_v0  ;;  %v6371_v38 = vpop.f32.mrf.mxu1 }
 0x185   :  { %9061 = vst [vmem:[#allocation41_spill] sm:$0xff] %v6375_v3  ;;  %v6393_v16 = vpop.f32.mrf.mxu3 }
 0x186   :  { %9066 = vst [vmem:[#allocation46_spill] sm:$0xff] %v6393_v16 }
 0x188   :  { %1314 = vmatmul.bf16.gmra.mxu2 %v1182_v55  ;;  %v5284_v55 = vld [vmem:[%s8986_s4 + $0x34] sm:$0xf] }
 0x189   :  { %v5159_v52 = vor.u32 %v5284_v55, %v5156_v30  ;;  %v1113_v55 = vsel %vm960_vm12, %v884_v57, %v1037_v14  ;;  %v1114_v30 = vsel %vm961_vm13, %v885_v58, %v1038_v40  ;;  %v5282_v57 = vld [vmem:[%s8986_s4 + $0x24] sm:$0xf]  ;;  %v1039_v14 = vmul.f32 %v6012_v28, %v886_v50  ;;  %v5280_v40 = vld [vmem:[%s8986_s4 + $0x14] sm:$0xf] }
 0x18a   :  { %v1183_v0 = vpack.c.bf16 %v1114_v30, %v1113_v55  ;;  %v5140_v55 = vld [vmem:[%s8986_s4 + $0x18] sm:$0xf0] }
 0x18b   :  { %v6363_v10 = vpop.f32.mrf.mxu2  ;;  %2046 = vmatpush.bf16.msrb.mxu0 %v5159_v52  ;;  %5314 = vmatpush.bf16.msra.mxu2 %v5159_v52  ;;  %v6384_v53 = vpop.f32.mrf.mxu0  ;;  %v5143_v30 = vor.u32 %v5280_v40, %v5140_v55 }
 0x18c   :  { %9060 = vst [vmem:[#allocation40_spill] sm:$0xff] %v6363_v10  ;;  %v727_v52 = vpop.f32.mrf.mxu1 }
 0x18d   :  { %9064 = vst [vmem:[#allocation44_spill] sm:$0xff] %v6384_v53  ;;  %v6421_v53 = vpop.f32.mrf.mxu3 }
 0x18e   :  { %9069 = vst [vmem:[#allocation49_spill] sm:$0xff] %v6421_v53 }
 0x193   :  { %v6382_v10 = vpop.f32.mrf.mxu2  ;;  %v6405_v11 = vpop.f32.mrf.mxu0 }
 0x194   :  { %9063 = vst [vmem:[#allocation43_spill] sm:$0xff] %v6382_v10  ;;  %v6401_v58 = vpop.f32.mrf.mxu1  ;;  %v5278_v10 = vld [vmem:[%s8986_s4 + $0x4] sm:$0xf] }
 0x195   :  { %9067 = vst [vmem:[#allocation47_spill] sm:$0xff] %v6405_v11 }
 0x198   :  { %1319 = vmatmul.bf16.gmra.mxu2 %v1183_v0  ;;  %v5148_v0 = vld [vmem:[%s8986_s4 + $0x28] sm:$0xf0] }
 0x199   :  { %v5151_v35 = vor.u32 %v5282_v57, %v5148_v0  ;;  %v1115_v0 = vsel %vm962_vm0, %v886_v50, %v1039_v14  ;;  %v888_v50 = vadd.f32 %v5999_v23, %v6328_v17 }
 0x19b   :  { %v6391_v46 = vpop.f32.mrf.mxu2  ;;  %2047 = vmatpush.bf16.msrb.mxu0 %v5151_v35  ;;  %5315 = vmatpush.bf16.msra.mxu2 %v5151_v35  ;;  %v5132_v35 = vld [vmem:[%s8986_s4 + $0x8] sm:$0xf0]  ;;  %v6423_v55 = vpop.f32.mrf.mxu0  ;;  %vm964_vm15 = vcmp.gt.f32.partialorder %v888_v50, 0.0 }
 0x19c   :  { %9065 = vst [vmem:[#allocation45_spill] sm:$0xff] %v6391_v46  ;;  %v1116_v46 = vsel %vm963_vm14, %v887_v2, %v1040_v48  ;;  %v5135_v3 = vor.u32 %v5278_v10, %v5132_v35  ;;  %v732_v40 = vpop.f32.mrf.mxu1  ;;  %v889_v2 = vadd.f32 %v5999_v23, %v6347_v59  ;;  %v1041_v10 = vmul.f32 %v6012_v28, %v888_v50 }
 0x19d   :  { %v1184_v11 = vpack.c.bf16 %v1116_v46, %v1115_v0  ;;  %9070 = vst [vmem:[#allocation50_spill] sm:$0xff] %v6423_v55  ;;  %v5300_v46 = vld [vmem:[%s8987_s5 + $0x30] sm:$0xff]  ;;  %v891_v55 = vadd.f32 %v5999_v23, %v727_v52 }
 0x19e   :  { %v1042_v48 = vmul.f32 %v6012_v28, %v889_v2  ;;  %vm965_vm1 = vcmp.gt.f32.partialorder %v889_v2, 0.0  ;;  %4479 = vmatpush.bf16.msrb.mxu1 %v5300_v46  ;;  %v6452_v46 = vld [vmem:[%s8988_s6 + $0x1] ss:$0 sm:$0xff] }
 0x19f   :  { %2048 = vmatpush.bf16.msrb.mxu0 %v5143_v30  ;;  %5316 = vmatpush.bf16.msra.mxu2 %v5143_v30  ;;  %v1117_v30 = vsel %vm964_vm15, %v888_v50, %v1041_v10  ;;  %vm967_vm3 = vcmp.gt.f32.partialorder %v891_v55, 0.0 }
 0x1a0   :  { %v1118_v0 = vsel %vm965_vm1, %v889_v2, %v1042_v48  ;;  %v1044_v2 = vmul.f32 %v6012_v28, %v891_v55 }
 0x1a1   :  { %v1185_v35 = vpack.c.bf16 %v1118_v0, %v1117_v30 }
 0x1a2   :  { %v1120_v30 = vsel %vm967_vm3, %v891_v55, %v1044_v2  ;;  %v892_v55 = vadd.f32 %v5999_v23, %v6401_v58 }
 0x1a3   :  { %v6413_v57 = vpop.f32.mrf.mxu2  ;;  %2049 = vmatpush.bf16.msrb.mxu0 %v5135_v3  ;;  %5317 = vmatpush.bf16.msra.mxu2 %v5135_v3  ;;  %v6440_v17 = vpop.f32.mrf.mxu0 }
 0x1a4   :  { %9068 = vst [vmem:[#allocation48_spill] sm:$0xff] %v6413_v57  ;;  %v6438_v3 = vpop.f32.mrf.mxu1  ;;  %vm968_vm6 = vcmp.gt.f32.partialorder %v892_v55, 0.0 }
 0x1a5   :  { %9073 = vst [vmem:[#allocation53_spill] sm:$0xff] %v6440_v17 }
 0x1a8   :  { %1324 = vmatmul.bf16.gmra.mxu2 %v1184_v11  ;;  %v6436_v11 = vpop.f32.mrf.mxu3 }
 0x1a9   :  { %9072 = vst [vmem:[#allocation52_spill] sm:$0xff] %v6436_v11 }
 0x1ab   :  { %v6429_v14 = vpop.f32.mrf.mxu2 }
 0x1ac   :  { %9071 = vst [vmem:[#allocation51_spill] sm:$0xff] %v6429_v14  ;;  %v890_v14 = vadd.f32 %v5999_v23, %v6371_v38  ;;  %v737_v17 = vpop.f32.mrf.mxu1  ;;  %v6459_v38 = vstv %s4834_s20 }
 0x1ae   :  { %v1043_v50 = vmul.f32 %v6012_v28, %v890_v14  ;;  %vm966_vm2 = vcmp.gt.f32.partialorder %v890_v14, 0.0 }
 0x1b0   :  { %v6444_v57 = vpop.f32.mrf.mxu3  ;;  %v1119_v48 = vsel %vm966_vm2, %v890_v14, %v1043_v50  ;;  %v893_v50 = vadd.f32 %v5999_v23, %v732_v40 }
 0x1b1   :  { %9075 = vst [vmem:[#allocation55_spill] sm:$0xff] %v6444_v57  ;;  %v1186_v53 = vpack.c.bf16 %v1120_v30, %v1119_v48  ;;  %v1045_v48 = vmul.f32 %v6012_v28, %v892_v55 }
 0x1b2   :  { %v1046_v30 = vmul.f32 %v6012_v28, %v893_v50  ;;  %vm969_vm7 = vcmp.gt.f32.partialorder %v893_v50, 0.0 }
 0x1b3   :  { %v6442_v59 = vpop.f32.mrf.mxu2  ;;  %v1121_v58 = vsel %vm968_vm6, %v892_v55, %v1045_v48 }
 0x1b4   :  { %9074 = vst [vmem:[#allocation54_spill] sm:$0xff] %v6442_v59  ;;  %v6454_v59 = vpop.f32.mrf.mxu0  ;;  %v6466_v16 = vpop.f32.mrf.mxu1 }
 0x1b5   :  { %9076 = vst [vmem:[#allocation56_spill] sm:$0xff] %v6454_v59 }
 0x1b8   :  { %1329 = vmatmul.bf16.gmra.mxu2 %v1185_v35  ;;  %v6463_v57 = vpop.f32.mrf.mxu3 }
 0x1b9   :  { %9077 = vst [vmem:[#allocation57_spill] sm:$0xff] %v6463_v57 }
 0x1bb   :  { %v1290_v11 = vpop.f32.mrf.mxu2 }
 0x1bc   :  { %v1291_v10 = vadd.f32 %v6452_v46, %v1290_v11  ;;  %v6468_v13 = vpop.f32.mrf.mxu0 }
 0x1bd   :  { %9078 = vst [vmem:[#allocation58_spill] sm:$0xff] %v6468_v13  ;;  %v5299_v13 = vld [vmem:[%s8987_s5 + $0x28] sm:$0xff] }
 0x1be   :  { %v1557_v0 = vmul.f32 %v6459_v38, %v1291_v10  ;;  %vm1480_vm4 = vcmp.gt.f32.partialorder %v1291_v10, 0.0  ;;  %4480 = vmatpush.bf16.msrb.mxu1 %v5299_v13 }
 0x1c0   :  { %v1633_v11 = vsel %vm1480_vm4, %v1291_v10, %v1557_v0  ;;  %v1122_v0 = vsel %vm969_vm7, %v893_v50, %v1046_v30  ;;  %v894_v30 = vadd.f32 %v5999_v23, %v6438_v3 }
 0x1c2   :  { %vm970_vm10 = vcmp.gt.f32.partialorder %v894_v30, 0.0 }
 0x1c3   :  { %v1292_v52 = vpop.f32.mrf.mxu2 }
 0x1c4   :  { %v1293_v35 = vadd.f32 %v6452_v46, %v1292_v52  ;;  %v6473_v52 = vpop.f32.mrf.mxu3 }
 0x1c5   :  { %9079 = vst [vmem:[#allocation59_spill] sm:$0xff] %v6473_v52 }
 0x1c6   :  { %vm1481_vm5 = vcmp.gt.f32.partialorder %v1293_v35, 0.0  ;;  %v1558_v59 = vmul.f32 %v6459_v38, %v1293_v35 }
 0x1c8   :  { %v1634_v33 = vsel %vm1481_vm5, %v1293_v35, %v1558_v59  ;;  %1334 = vmatmul.bf16.gmra.mxu2 %v1186_v53  ;;  %v742_v53 = vpop.f32.mrf.mxu1 }
 0x1c9   :  { %v1709_v14 = vpack.c.bf16 %v1634_v33, %v1633_v11  ;;  %v6478_v33 = vpop.f32.mrf.mxu0 }
 0x1ca   :  { %9080 = vst [vmem:[#allocation60_spill] sm:$0xff] %v6478_v33 }
 0x1cb   :  { %v1295_v2 = vpop.f32.mrf.mxu2  ;;  %1851 = vmatmul.bf16.vlgmr.msrb.gmra.mxu3 %v1709_v14  ;;  %2050 = vmatmul.bf16.vlgmr.msrb.gmra.mxu0 %v1709_v14  ;;  %v1187_v14 = vpack.c.bf16 %v1122_v0, %v1121_v58  ;;  %v1047_v0 = vmul.f32 %v6012_v28, %v894_v30 }
 0x1cc   :  { %v1296_v59 = vadd.f32 %v6452_v46, %v1295_v2  ;;  %v6486_v33 = vpop.f32.mrf.mxu3 }
 0x1cd   :  { %9081 = vst [vmem:[#allocation61_spill] sm:$0xff] %v6486_v33 }
 0x1ce   :  { %v1559_v40 = vmul.f32 %v6459_v38, %v1296_v59  ;;  %vm1482_vm8 = vcmp.gt.f32.partialorder %v1296_v59, 0.0 }
 0x1d0   :  { %v1635_v2 = vsel %vm1482_vm8, %v1296_v59, %v1559_v40  ;;  %v745_v50 = vpop.f32.mrf.mxu1 }
 0x1d1   :  { %v6488_v48 = vpop.f32.mrf.mxu0 }
 0x1d2   :  { %9082 = vst [vmem:[#allocation62_spill] sm:$0xff] %v6488_v48 }
 0x1d3   :  { %v1297_v10 = vpop.f32.mrf.mxu2 }
 0x1d4   :  { %v1298_v35 = vadd.f32 %v6452_v46, %v1297_v10  ;;  %v895_v10 = vadd.f32 %v5999_v23, %v737_v17 }
 0x1d6   :  { %vm1483_vm9 = vcmp.gt.f32.partialorder %v1298_v35, 0.0  ;;  %v1560_v11 = vmul.f32 %v6459_v38, %v1298_v35  ;;  %v1048_v59 = vmul.f32 %v6012_v28, %v895_v10  ;;  %vm971_vm11 = vcmp.gt.f32.partialorder %v895_v10, 0.0 }
 0x1d8   :  { %1339 = vmatmul.bf16.gmra.mxu2 %v1187_v14  ;;  %v1636_v52 = vsel %vm1483_vm9, %v1298_v35, %v1560_v11  ;;  %v1123_v35 = vsel %vm970_vm10, %v894_v30, %v1047_v0  ;;  %v1124_v11 = vsel %vm971_vm11, %v895_v10, %v1048_v59  ;;  %v747_v14 = vpop.f32.mrf.mxu1  ;;  %v896_v30 = vadd.f32 %v5999_v23, %v6466_v16 }
 0x1d9   :  { %v1710_v55 = vpack.c.bf16 %v1636_v52, %v1635_v2  ;;  %v6496_v52 = vpop.f32.mrf.mxu3  ;;  %v6500_v2 = vpop.f32.mrf.mxu0  ;;  %v1188_v48 = vpack.c.bf16 %v1124_v11, %v1123_v35  ;;  %v897_v10 = vadd.f32 %v5999_v23, %v742_v53 }
 0x1da   :  { %9083 = vst [vmem:[#allocation63_spill] sm:$0xff] %v6496_v52  ;;  %v1049_v52 = vmul.f32 %v6012_v28, %v896_v30  ;;  %vm972_vm0 = vcmp.gt.f32.partialorder %v896_v30, 0.0 }
 0x1db   :  { %v1300_v58 = vpop.f32.mrf.mxu2  ;;  %1856 = vmatmul.bf16.gmra.mxu3 %v1710_v55  ;;  %2055 = vmatmul.bf16.gmra.mxu0 %v1710_v55  ;;  %9084 = vst [vmem:[#allocation64_spill] sm:$0xff] %v6500_v2  ;;  %vm973_vm14 = vcmp.gt.f32.partialorder %v897_v10, 0.0 }
 0x1dc   :  { %v1301_v13 = vadd.f32 %v6452_v46, %v1300_v58  ;;  %v1125_v16 = vsel %vm972_vm0, %v896_v30, %v1049_v52  ;;  %v898_v52 = vadd.f32 %v5999_v23, %v745_v50  ;;  %v899_v30 = vadd.f32 %v5999_v23, %v747_v14 }
 0x1de   :  { %v1561_v3 = vmul.f32 %v6459_v38, %v1301_v13  ;;  %vm1484_vm12 = vcmp.gt.f32.partialorder %v1301_v13, 0.0  ;;  %vm974_vm2 = vcmp.gt.f32.partialorder %v898_v52, 0.0  ;;  %vm975_vm3 = vcmp.gt.f32.partialorder %v899_v30, 0.0 }
 0x1e0   :  { %v1637_v33 = vsel %vm1484_vm12, %v1301_v13, %v1561_v3 }
 0x1e1   :  { %v6506_v59 = vpop.f32.mrf.mxu3  ;;  %v6508_v2 = vpop.f32.mrf.mxu0 }
 0x1e2   :  { %9085 = vst [vmem:[#allocation65_spill] sm:$0xff] %v6506_v59 }
 0x1e3   :  { %v1302_v40 = vpop.f32.mrf.mxu2  ;;  %9086 = vst [vmem:[#allocation66_spill] sm:$0xff] %v6508_v2 }
 0x1e4   :  { %v1303_v17 = vadd.f32 %v6452_v46, %v1302_v40  ;;  %v750_v40 = vpop.f32.mrf.mxu1 }
 0x1e6   :  { %vm1485_vm13 = vcmp.gt.f32.partialorder %v1303_v17, 0.0  ;;  %v1562_v55 = vmul.f32 %v6459_v38, %v1303_v17 }
 0x1e8   :  { %1344 = vmatmul.bf16.gmra.mxu2 %v1188_v48  ;;  %v1638_v58 = vsel %vm1485_vm13, %v1303_v17, %v1562_v55  ;;  %v1050_v48 = vmul.f32 %v6012_v28, %v897_v10 }
 0x1e9   :  { %v1711_v57 = vpack.c.bf16 %v1638_v58, %v1637_v33  ;;  %v6516_v17 = vpop.f32.mrf.mxu3  ;;  %v6518_v59 = vpop.f32.mrf.mxu0 }
 0x1ea   :  { %v1126_v35 = vsel %vm973_vm14, %v897_v10, %v1050_v48  ;;  %9087 = vst [vmem:[#allocation67_spill] sm:$0xff] %v6516_v17  ;;  %v5298_v48 = vld [vmem:[%s8987_s5 + $0x20] sm:$0xff] }
 0x1eb   :  { %v1305_v0 = vpop.f32.mrf.mxu2  ;;  %1861 = vmatmul.bf16.gmra.mxu3 %v1711_v57  ;;  %2060 = vmatmul.bf16.gmra.mxu0 %v1711_v57  ;;  %v1189_v3 = vpack.c.bf16 %v1126_v35, %v1125_v16  ;;  %9088 = vst [vmem:[#allocation68_spill] sm:$0xff] %v6518_v59 }
 0x1ec   :  { %v1306_v33 = vadd.f32 %v6452_v46, %v1305_v0  ;;  %v752_v2 = vpop.f32.mrf.mxu1  ;;  %4481 = vmatpush.bf16.msrb.mxu1 %v5298_v48 }
 0x1ee   :  { %v1563_v53 = vmul.f32 %v6459_v38, %v1306_v33  ;;  %vm1486_vm15 = vcmp.gt.f32.partialorder %v1306_v33, 0.0 }
 0x1f0   :  { %v1639_v55 = vsel %vm1486_vm15, %v1306_v33, %v1563_v53  ;;  %v1052_v33 = vmul.f32 %v6012_v28, %v899_v30 }
 0x1f1   :  { %v6528_v35 = vpop.f32.mrf.mxu3  ;;  %v6530_v14 = vpop.f32.mrf.mxu0 }
 0x1f2   :  { %9089 = vst [vmem:[#allocation69_spill] sm:$0xff] %v6528_v35 }
 0x1f3   :  { %v1307_v13 = vpop.f32.mrf.mxu2  ;;  %9090 = vst [vmem:[#allocation70_spill] sm:$0xff] %v6530_v14  ;;  %v900_v14 = vadd.f32 %v5999_v23, %v750_v40 }
 0x1f4   :  { %v1308_v57 = vadd.f32 %v6452_v46, %v1307_v13  ;;  %v1051_v13 = vmul.f32 %v6012_v28, %v898_v52  ;;  %v755_v50 = vpop.f32.mrf.mxu1 }
 0x1f5   :  { %vm976_vm6 = vcmp.gt.f32.partialorder %v900_v14, 0.0 }
 0x1f6   :  { %vm1487_vm1 = vcmp.gt.f32.partialorder %v1308_v57, 0.0  ;;  %v1564_v11 = vmul.f32 %v6459_v38, %v1308_v57 }
 0x1f8   :  { %1349 = vmatmul.bf16.gmra.mxu2 %v1189_v3  ;;  %v1640_v58 = vsel %vm1487_vm1, %v1308_v57, %v1564_v11  ;;  %v1127_v57 = vsel %vm974_vm2, %v898_v52, %v1051_v13  ;;  %v1128_v11 = vsel %vm975_vm3, %v899_v30, %v1052_v33  ;;  %v901_v52 = vadd.f32 %v5999_v23, %v752_v2 }
 0x1f9   :  { %v1712_v0 = vpack.c.bf16 %v1640_v58, %v1639_v55  ;;  %v6535_v48 = vpop.f32.mrf.mxu3  ;;  %v6539_v33 = vpop.f32.mrf.mxu0 }
 0x1fa   :  { %9091 = vst [vmem:[#allocation71_spill] sm:$0xff] %v6535_v48  ;;  %vm977_vm7 = vcmp.gt.f32.partialorder %v901_v52, 0.0 }
 0x1fb   :  { %v1310_v10 = vpop.f32.mrf.mxu2  ;;  %1866 = vmatmul.bf16.gmra.mxu3 %v1712_v0  ;;  %2065 = vmatmul.bf16.gmra.mxu0 %v1712_v0  ;;  %v1190_v0 = vpack.c.bf16 %v1128_v11, %v1127_v57  ;;  %9092 = vst [vmem:[#allocation72_spill] sm:$0xff] %v6539_v33  ;;  %v1054_v57 = vmul.f32 %v6012_v28, %v901_v52 }
 0x1fc   :  { %v1311_v16 = vadd.f32 %v6452_v46, %v1310_v10  ;;  %v757_v13 = vpop.f32.mrf.mxu1 }
 0x1fe   :  { %v1565_v3 = vmul.f32 %v6459_v38, %v1311_v16  ;;  %vm1488_vm4 = vcmp.gt.f32.partialorder %v1311_v16, 0.0 }
 0x200   :  { %v1641_v10 = vsel %vm1488_vm4, %v1311_v16, %v1565_v3  ;;  %v1130_v3 = vsel %vm977_vm7, %v901_v52, %v1054_v57 }
 0x201   :  { %v6546_v2 = vpop.f32.mrf.mxu3 }
 0x202   :  { %9093 = vst [vmem:[#allocation73_spill] sm:$0xff] %v6546_v2 }
 0x203   :  { %v1312_v53 = vpop.f32.mrf.mxu2 }
 0x204   :  { %v1313_v55 = vadd.f32 %v6452_v46, %v1312_v53  ;;  %v1053_v53 = vmul.f32 %v6012_v28, %v900_v14 }
 0x206   :  { %vm1489_vm5 = vcmp.gt.f32.partialorder %v1313_v55, 0.0  ;;  %v1566_v58 = vmul.f32 %v6459_v38, %v1313_v55  ;;  %v1129_v11 = vsel %vm976_vm6, %v900_v14, %v1053_v53  ;;  %v6554_v14 = vld [vmem:[%s8988_s6] ss:$0 sm:$0xff] }
 0x207   :  { %v902_v52 = vadd.f32 %v6554_v14, %v755_v50  ;;  %v903_v53 = vadd.f32 %v6554_v14, %v757_v13 }
 0x208   :  { %1354 = vmatmul.bf16.gmra.mxu2 %v1190_v0  ;;  %v1642_v59 = vsel %vm1489_vm5, %v1313_v55, %v1566_v58  ;;  %v1191_v55 = vpack.c.bf16 %v1130_v3, %v1129_v11  ;;  %v760_v58 = vpop.f32.mrf.mxu1  ;;  %v6549_v0 = vpop.f32.mrf.mxu0 }
 0x209   :  { %v1713_v35 = vpack.c.bf16 %v1642_v59, %v1641_v10  ;;  %9094 = vst [vmem:[#allocation74_spill] sm:$0xff] %v6549_v0  ;;  %v1055_v11 = vmul.f32 %v6012_v28, %v902_v52  ;;  %v1056_v3 = vmul.f32 %v6012_v28, %v903_v53  ;;  %vm978_vm10 = vcmp.gt.f32.partialorder %v902_v52, 0.0 }
 0x20a   :  { %vm979_vm11 = vcmp.gt.f32.partialorder %v903_v53, 0.0 }
 0x20b   :  { %v1315_v30 = vpop.f32.mrf.mxu2  ;;  %1871 = vmatmul.bf16.gmra.mxu3 %v1713_v35  ;;  %2070 = vmatmul.bf16.gmra.mxu0 %v1713_v35 }
 0x20c   :  { %v1316_v59 = vadd.f32 %v6452_v46, %v1315_v30 }
 0x20e   :  { %v1567_v40 = vmul.f32 %v6459_v38, %v1316_v59  ;;  %vm1490_vm8 = vcmp.gt.f32.partialorder %v1316_v59, 0.0 }
 0x210   :  { %v1643_v10 = vsel %vm1490_vm8, %v1316_v59, %v1567_v40  ;;  %v5297_v59 = vld [vmem:[%s8987_s5 + $0x18] sm:$0xff]  ;;  %v762_v50 = vpop.f32.mrf.mxu1 }
 0x211   :  { %4482 = vmatpush.bf16.msrb.mxu1 %v5297_v59 }
 0x213   :  { %v1317_v16 = vpop.f32.mrf.mxu2 }
 0x214   :  { %v1318_v23 = vadd.f32 %v6452_v46, %v1317_v16  ;;  %v6558_v16 = vpop.f32.mrf.mxu3 }
 0x215   :  { %9095 = vst [vmem:[#allocation75_spill] sm:$0xff] %v6558_v16 }
 0x216   :  { %vm1491_vm9 = vcmp.gt.f32.partialorder %v1318_v23, 0.0  ;;  %v1568_v35 = vmul.f32 %v6459_v38, %v1318_v23 }
 0x218   :  { %1359 = vmatmul.bf16.gmra.mxu2 %v1191_v55  ;;  %v1644_v30 = vsel %vm1491_vm9, %v1318_v23, %v1568_v35  ;;  %v6566_v23 = vpop.f32.mrf.mxu0  ;;  %v1132_v35 = vsel %vm979_vm11, %v903_v53, %v1056_v3  ;;  %v905_v53 = vadd.f32 %v6554_v14, %v762_v50  ;;  %v5296_v3 = vld [vmem:[%s8987_s5 + $0x10] sm:$0xff] }
 0x219   :  { %v1714_v33 = vpack.c.bf16 %v1644_v30, %v1643_v10  ;;  %9096 = vst [vmem:[#allocation76_spill] sm:$0xff] %v6566_v23  ;;  %v765_v23 = vpop.f32.mrf.mxu1  ;;  %4483 = vmatpush.bf16.msrb.mxu1 %v5296_v3 }
 0x21a   :  { %vm981_vm14 = vcmp.gt.f32.partialorder %v905_v53, 0.0 }
 0x21b   :  { %v1320_v57 = vpop.f32.mrf.mxu2  ;;  %1876 = vmatmul.bf16.gmra.mxu3 %v1714_v33  ;;  %2075 = vmatmul.bf16.gmra.mxu0 %v1714_v33  ;;  %v1131_v33 = vsel %vm978_vm10, %v902_v52, %v1055_v11  ;;  %v904_v52 = vadd.f32 %v6554_v14, %v760_v58 }
 0x21c   :  { %v1321_v40 = vadd.f32 %v6452_v46, %v1320_v57  ;;  %v1192_v0 = vpack.c.bf16 %v1132_v35, %v1131_v33  ;;  %v6571_v16 = vpop.f32.mrf.mxu3  ;;  %v5294_v35 = vld [vmem:[%s8987_s5] sm:$0xff] }
 0x21d   :  { %9097 = vst [vmem:[#allocation77_spill] sm:$0xff] %v6571_v16  ;;  %vm980_vm0 = vcmp.gt.f32.partialorder %v904_v52, 0.0 }
 0x21e   :  { %v1569_v55 = vmul.f32 %v6459_v38, %v1321_v40  ;;  %vm1492_vm12 = vcmp.gt.f32.partialorder %v1321_v40, 0.0 }
 0x220   :  { %v1645_v57 = vsel %vm1492_vm12, %v1321_v40, %v1569_v55  ;;  %v6573_v59 = vpop.f32.mrf.mxu0  ;;  %v1058_v40 = vmul.f32 %v6012_v28, %v905_v53 }
 0x221   :  { %9098 = vst [vmem:[#allocation78_spill] sm:$0xff] %v6573_v59 }
 0x222   :  { %v1134_v33 = vsel %vm981_vm14, %v905_v53, %v1058_v40  ;;  %v906_v40 = vadd.f32 %v6554_v14, %v765_v23 }
 0x223   :  { %v1322_v13 = vpop.f32.mrf.mxu2 }
 0x224   :  { %v1323_v10 = vadd.f32 %v6452_v46, %v1322_v13  ;;  %v6586_v50 = vpop.f32.mrf.mxu3  ;;  %vm982_vm2 = vcmp.gt.f32.partialorder %v906_v40, 0.0 }
 0x225   :  { %9099 = vst [vmem:[#allocation79_spill] sm:$0xff] %v6586_v50 }
 0x226   :  { %vm1493_vm13 = vcmp.gt.f32.partialorder %v1323_v10, 0.0  ;;  %v1570_v30 = vmul.f32 %v6459_v38, %v1323_v10 }
 0x228   :  { %1364 = vmatmul.bf16.gmra.mxu2 %v1192_v0  ;;  %v1646_v2 = vsel %vm1493_vm13, %v1323_v10, %v1570_v30  ;;  %v1057_v0 = vmul.f32 %v6012_v28, %v904_v52  ;;  %v767_v30 = vpop.f32.mrf.mxu1 }
 0x229   :  { %v1715_v48 = vpack.c.bf16 %v1646_v2, %v1645_v57  ;;  %v5295_v2 = vld [vmem:[%s8987_s5 + $0x8] sm:$0xff]  ;;  %v6593_v57 = vpop.f32.mrf.mxu0  ;;  %s4835_s5 = sld [smem:[#allocation2 + $0x2]] }
 0x22a   :  { %4484 = vmatpush.bf16.msrb.mxu1 %v5295_v2  ;;  %v1133_v13 = vsel %vm980_vm0, %v904_v52, %v1057_v0  ;;  %9100 = vst [vmem:[#allocation80_spill] sm:$0xff] %v6593_v57  ;;  %v907_v2 = vadd.f32 %v6554_v14, %v767_v30 }
 0x22b   :  { %v1325_v11 = vpop.f32.mrf.mxu2  ;;  %1881 = vmatmul.bf16.gmra.mxu3 %v1715_v48  ;;  %2080 = vmatmul.bf16.gmra.mxu0 %v1715_v48  ;;  %v1193_v3 = vpack.c.bf16 %v1134_v33, %v1133_v13 }
 0x22c   :  { %v1326_v58 = vadd.f32 %v6452_v46, %v1325_v11  ;;  %v1060_v13 = vmul.f32 %v6012_v28, %v907_v2  ;;  %vm983_vm3 = vcmp.gt.f32.partialorder %v907_v2, 0.0 }
 0x22e   :  { %v1571_v55 = vmul.f32 %v6459_v38, %v1326_v58  ;;  %vm1494_vm15 = vcmp.gt.f32.partialorder %v1326_v58, 0.0  ;;  %4485 = vmatpush.bf16.msrb.mxu1 %v5294_v35  ;;  %v1059_v35 = vmul.f32 %v6012_v28, %v906_v40 }
 0x230   :  { %v1647_v52 = vsel %vm1494_vm15, %v1326_v58, %v1571_v55  ;;  %v770_v57 = vpop.f32.mrf.mxu1  ;;  %v1135_v23 = vsel %vm982_vm2, %v906_v40, %v1059_v35  ;;  %v1136_v55 = vsel %vm983_vm3, %v907_v2, %v1060_v13  ;;  %v6613_v40 = vld [vmem:[%s8988_s6 + $0x3] ss:$0 sm:$0xff] }
 0x231   :  { %v6600_v50 = vpop.f32.mrf.mxu0  ;;  %v908_v35 = vadd.f32 %v6554_v14, %v770_v57 }
 0x232   :  { %9102 = vst [vmem:[#allocation82_spill] sm:$0xff] %v6600_v50 }
 0x233   :  { %v1327_v48 = vpop.f32.mrf.mxu2  ;;  %vm984_vm6 = vcmp.gt.f32.partialorder %v908_v35, 0.0 }
 0x234   :  { %v1328_v10 = vadd.f32 %v6452_v46, %v1327_v48  ;;  %v6598_v48 = vpop.f32.mrf.mxu3 }
 0x235   :  { %9101 = vst [vmem:[#allocation81_spill] sm:$0xff] %v6598_v48 }
 0x236   :  { %vm1495_vm1 = vcmp.gt.f32.partialorder %v1328_v10, 0.0  ;;  %v1572_v11 = vmul.f32 %v6459_v38, %v1328_v10 }
 0x238   :  { %1369 = vmatmul.bf16.gmra.mxu2 %v1193_v3  ;;  %v1648_v53 = vsel %vm1495_vm1, %v1328_v10, %v1572_v11 }
 0x239   :  { %v1716_v0 = vpack.c.bf16 %v1648_v53, %v1647_v52  ;;  %v1194_v52 = vpack.c.bf16 %v1136_v55, %v1135_v23  ;;  %v772_v53 = vpop.f32.mrf.mxu1  ;;  %v6623_v55 = vstv %s4835_s5 }
 0x23a   :  { %v909_v13 = vadd.f32 %v6554_v14, %v772_v53 }
 0x23b   :  { %v1330_v59 = vpop.f32.mrf.mxu2  ;;  %1886 = vmatmul.bf16.gmra.mxu3 %v1716_v0  ;;  %2085 = vmatmul.bf16.gmra.mxu0 %v1716_v0 }
 0x23c   :  { %v1331_v58 = vadd.f32 %v6452_v46, %v1330_v59  ;;  %v6607_v11 = vpop.f32.mrf.mxu3  ;;  %vm985_vm7 = vcmp.gt.f32.partialorder %v909_v13, 0.0 }
 0x23d   :  { %9103 = vst [vmem:[#allocation83_spill] sm:$0xff] %v6607_v11 }
 0x23e   :  { %v1573_v10 = vmul.f32 %v6459_v38, %v1331_v58  ;;  %vm1496_vm4 = vcmp.gt.f32.partialorder %v1331_v58, 0.0 }
 0x240   :  { %v1649_v50 = vsel %vm1496_vm4, %v1331_v58, %v1573_v10  ;;  %v6621_v58 = vld [vmem:[%s8988_s6 + $0x2] ss:$0 sm:$0xff] }
 0x243   :  { %v1332_v33 = vpop.f32.mrf.mxu2 }
 0x244   :  { %v1333_v30 = vadd.f32 %v6452_v46, %v1332_v33 }
 0x246   :  { %vm1497_vm5 = vcmp.gt.f32.partialorder %v1333_v30, 0.0  ;;  %v1574_v3 = vmul.f32 %v6459_v38, %v1333_v30 }
 0x248   :  { %1374 = vmatmul.bf16.gmra.mxu2 %v1194_v52  ;;  %v2051_v0 = vpop.f32.mrf.mxu0  ;;  %v1650_v59 = vsel %vm1497_vm5, %v1333_v30, %v1574_v3  ;;  %v1061_v30 = vmul.f32 %v6012_v28, %v908_v35 }
 0x249   :  { %v1717_v2 = vpack.c.bf16 %v1650_v59, %v1649_v50  ;;  %v4069_v23 = vadd.f32 %v6613_v40, %v2051_v0  ;;  %v1062_v50 = vmul.f32 %v6012_v28, %v909_v13 }
 0x24b   :  { %v1335_v33 = vpop.f32.mrf.mxu2  ;;  %1891 = vmatmul.bf16.gmra.mxu3 %v1717_v2  ;;  %2090 = vmatmul.bf16.gmra.mxu0 %v1717_v2  ;;  %v4222_v53 = vmul.f32 %v6623_v55, %v4069_v23  ;;  %vm4145_vm8 = vcmp.gt.f32.partialorder %v4069_v23, 0.0 }
 0x24c   :  { %v1336_v3 = vadd.f32 %v6452_v46, %v1335_v33 }
 0x24d   :  { %v4298_v16 = vsel %vm4145_vm8, %v4069_v23, %v4222_v53 }
 0x24e   :  { %v1852_v10 = vpop.f32.mrf.mxu3  ;;  %v1575_v48 = vmul.f32 %v6459_v38, %v1336_v3  ;;  %vm1498_vm10 = vcmp.gt.f32.partialorder %v1336_v3, 0.0 }
 0x24f   :  { %v2241_v57 = vadd.f32 %v1852_v10, %v5959_v9  ;;  %v1137_v9 = vsel %vm984_vm6, %v908_v35, %v1061_v30  ;;  %v1138_v10 = vsel %vm985_vm7, %v909_v13, %v1062_v50 }
 0x250   :  { %v2053_v52 = vpop.f32.mrf.mxu0  ;;  %v1195_v1 = vpack.c.bf16 %v1138_v10, %v1137_v9  ;;  %v1651_v35 = vsel %vm1498_vm10, %v1336_v3, %v1575_v48 }
 0x251   :  { %v4070_v0 = vadd.f32 %v6613_v40, %v2053_v52  ;;  %v6632_v59 = vadd.f32 %v6621_v58, %v2241_v57 }
 0x253   :  { %vm4146_vm9 = vcmp.gt.f32.partialorder %v4070_v0, 0.0  ;;  %v4223_v2 = vmul.f32 %v6623_v55, %v4070_v0  ;;  %v1337_v11 = vpop.f32.mrf.mxu2  ;;  %2395 = vmax.xlane.f32.xlu0 %v6632_v59 }
 0x254   :  { %v1338_v33 = vadd.f32 %v6452_v46, %v1337_v11 }
 0x255   :  { %v4299_v17 = vsel %vm4146_vm9, %v4070_v0, %v4223_v2 }
 0x256   :  { %v4374_v52 = vpack.c.bf16 %v4299_v17, %v4298_v16  ;;  %vm1499_vm11 = vcmp.gt.f32.partialorder %v1338_v33, 0.0  ;;  %v1576_v57 = vmul.f32 %v6459_v38, %v1338_v33  ;;  %v1854_v41 = vpop.f32.mrf.mxu3 }
 0x257   :  { %v2242_v22 = vadd.f32 %v1854_v41, %v5981_v18 }
 0x258   :  { %1379 = vmatmul.bf16.gmra.mxu2 %v1195_v1  ;;  %v2056_v42 = vpop.f32.mrf.mxu0  ;;  %4486 = vmatmul.bf16.vlgmr.msrb.gmra.mxu1 %v4374_v52  ;;  %v1652_v13 = vsel %vm1499_vm11, %v1338_v33, %v1576_v57  ;;  %v9104_v57 = vpack.c.bf16 %v6026_v37, %v6024_v36 }
 0x259   :  { %v1718_v30 = vpack.c.bf16 %v1652_v13, %v1651_v35  ;;  %v6641_v50 = vadd.f32 %v6621_v58, %v2242_v22  ;;  %v4071_v17 = vadd.f32 %v6613_v40, %v2056_v42 }
 0x25b   :  { %v1340_v11 = vpop.f32.mrf.mxu2  ;;  %1896 = vmatmul.bf16.gmra.mxu3 %v1718_v30  ;;  %2095 = vmatmul.bf16.gmra.mxu0 %v1718_v30  ;;  %v4224_v41 = vmul.f32 %v6623_v55, %v4071_v17  ;;  %vm4147_vm12 = vcmp.gt.f32.partialorder %v4071_v17, 0.0 }
 0x25c   :  { %2397 = vmax.xlane.f32.xlu0 %v6641_v50  ;;  %v1341_v18 = vadd.f32 %v6452_v46, %v1340_v11 }
 0x25d   :  { %v4300_v0 = vsel %vm4147_vm12, %v4071_v17, %v4224_v41 }
 0x25e   :  { %v1857_v16 = vpop.f32.mrf.mxu3  ;;  %v1577_v42 = vmul.f32 %v6459_v38, %v1341_v18  ;;  %vm1500_vm0 = vcmp.gt.f32.partialorder %v1341_v18, 0.0 }
 0x25f   :  { %v2243_v23 = vadd.f32 %v1857_v16, %v6001_v24 }
 0x260   :  { %v2058_v1 = vpop.f32.mrf.mxu0  ;;  %v1653_v13 = vsel %vm1500_vm0, %v1341_v18, %v1577_v42 }
 0x261   :  { %v4072_v48 = vadd.f32 %v6613_v40, %v2058_v1  ;;  %v6650_v22 = vadd.f32 %v6621_v58, %v2243_v23 }
 0x263   :  { %vm4148_vm13 = vcmp.gt.f32.partialorder %v4072_v48, 0.0  ;;  %v4225_v3 = vmul.f32 %v6623_v55, %v4072_v48  ;;  %v1342_v53 = vpop.f32.mrf.mxu2  ;;  %2399 = vmax.xlane.f32.xlu1 %v6650_v22 }
 0x264   :  { %v1343_v24 = vadd.f32 %v6452_v46, %v1342_v53 }
 0x265   :  { %v4301_v2 = vsel %vm4148_vm13, %v4072_v48, %v4225_v3 }
 0x266   :  { %vm1501_vm14 = vcmp.gt.f32.partialorder %v1343_v24, 0.0  ;;  %v1578_v9 = vmul.f32 %v6459_v38, %v1343_v24  ;;  %v1859_v10 = vpop.f32.mrf.mxu3  ;;  %v4375_v33 = vpack.c.bf16 %v4301_v2, %v4300_v0 }
 0x267   :  { %v2244_v52 = vadd.f32 %v1859_v10, %v6019_v34 }
 0x268   :  { %1384 = vmatmul.bf16.gmra.mxu2 %v9104_v57  ;;  %v2061_v35 = vpop.f32.mrf.mxu0  ;;  %4491 = vmatmul.bf16.gmra.mxu1 %v4375_v33  ;;  %v1654_v30 = vsel %vm1501_vm14, %v1343_v24, %v1578_v9 }
 0x269   :  { %v1719_v11 = vpack.c.bf16 %v1654_v30, %v1653_v13  ;;  %v6662_v16 = vadd.f32 %v6621_v58, %v2244_v52  ;;  %v4073_v23 = vadd.f32 %v6613_v40, %v2061_v35  ;;  %v9105_v52 = vpack.c.bf16 %v6062_v63, %v6060_v61 }
 0x26b   :  { %v1345_v17 = vpop.f32.mrf.mxu2  ;;  %1901 = vmatmul.bf16.gmra.mxu3 %v1719_v11  ;;  %2100 = vmatmul.bf16.gmra.mxu0 %v1719_v11  ;;  %v4226_v18 = vmul.f32 %v6623_v55, %v4073_v23  ;;  %vm4149_vm15 = vcmp.gt.f32.partialorder %v4073_v23, 0.0 }
 0x26c   :  { %2401 = vmax.xlane.f32.xlu1 %v6662_v16  ;;  %v1346_v36 = vadd.f32 %v6452_v46, %v1345_v17 }
 0x26d   :  { %v4302_v24 = vsel %vm4149_vm15, %v4073_v23, %v4226_v18 }
 0x26e   :  { %v1862_v34 = vpop.f32.mrf.mxu3  ;;  %v1579_v42 = vmul.f32 %v6459_v38, %v1346_v36  ;;  %vm1502_vm2 = vcmp.gt.f32.partialorder %v1346_v36, 0.0 }
 0x26f   :  { %v2245_v1 = vadd.f32 %v1862_v34, %v6039_v43 }
 0x270   :  { %v2063_v37 = vpop.f32.mrf.mxu0  ;;  %v1655_v35 = vsel %vm1502_vm2, %v1346_v36, %v1579_v42 }
 0x271   :  { %v4074_v41 = vadd.f32 %v6613_v40, %v2063_v37  ;;  %v6671_v48 = vadd.f32 %v6621_v58, %v2245_v1 }
 0x273   :  { %vm4150_vm1 = vcmp.gt.f32.partialorder %v4074_v41, 0.0  ;;  %v4227_v3 = vmul.f32 %v6623_v55, %v4074_v41  ;;  %v1347_v53 = vpop.f32.mrf.mxu2  ;;  %2403 = vmax.xlane.f32.xlu2 %v6671_v48 }
 0x274   :  { %v1348_v43 = vadd.f32 %v6452_v46, %v1347_v53 }
 0x275   :  { %v4303_v0 = vsel %vm4150_vm1, %v4074_v41, %v4227_v3 }
 0x276   :  { %vm1503_vm3 = vcmp.gt.f32.partialorder %v1348_v43, 0.0  ;;  %v1580_v2 = vmul.f32 %v6459_v38, %v1348_v43  ;;  %v1864_v9 = vpop.f32.mrf.mxu3  ;;  %v4376_v10 = vpack.c.bf16 %v4303_v0, %v4302_v24 }
 0x277   :  { %v2246_v33 = vadd.f32 %v1864_v9, %v6055_v60  ;;  %v9106_v9 = vpack.c.bf16 %v6110_v49, %v6108_v45 }
 0x278   :  { %1389 = vmatmul.bf16.gmra.mxu2 %v9105_v52  ;;  %v2066_v57 = vpop.f32.mrf.mxu0  ;;  %4496 = vmatmul.bf16.gmra.mxu1 %v4376_v10  ;;  %v1656_v13 = vsel %vm1503_vm3, %v1348_v43, %v1580_v2 }
 0x279   :  { %v1720_v30 = vpack.c.bf16 %v1656_v13, %v1655_v35  ;;  %v6683_v11 = vadd.f32 %v6621_v58, %v2246_v33  ;;  %v4075_v23 = vadd.f32 %v6613_v40, %v2066_v57 }
 0x27b   :  { %v1350_v17 = vpop.f32.mrf.mxu2  ;;  %1906 = vmatmul.bf16.gmra.mxu3 %v1720_v30  ;;  %2105 = vmatmul.bf16.gmra.mxu0 %v1720_v30  ;;  %v4228_v1 = vmul.f32 %v6623_v55, %v4075_v23  ;;  %vm4151_vm4 = vcmp.gt.f32.partialorder %v4075_v23, 0.0 }
 0x27c   :  { %2405 = vmax.xlane.f32.xlu2 %v6683_v11  ;;  %v1351_v61 = vadd.f32 %v6452_v46, %v1350_v17 }
 0x27d   :  { %v4304_v53 = vsel %vm4151_vm4, %v4075_v23, %v4228_v1 }
 0x27e   :  { %v1867_v60 = vpop.f32.mrf.mxu3  ;;  %v1581_v3 = vmul.f32 %v6459_v38, %v1351_v61  ;;  %vm1504_vm6 = vcmp.gt.f32.partialorder %v1351_v61, 0.0 }
 0x27f   :  { %v2247_v34 = vadd.f32 %v1867_v60, %v6087_v20 }
 0x280   :  { %v2068_v63 = vpop.f32.mrf.mxu0  ;;  %v1657_v33 = vsel %vm1504_vm6, %v1351_v61, %v1581_v3 }
 0x281   :  { %v4076_v36 = vadd.f32 %v6613_v40, %v2068_v63  ;;  %v6692_v37 = vadd.f32 %v6621_v58, %v2247_v34 }
 0x283   :  { %vm4152_vm5 = vcmp.gt.f32.partialorder %v4076_v36, 0.0  ;;  %v4229_v18 = vmul.f32 %v6623_v55, %v4076_v36  ;;  %v1352_v41 = vpop.f32.mrf.mxu2  ;;  %2407 = vmax.xlane.f32.xlu0 %v6692_v37 }
 0x284   :  { %v1353_v20 = vadd.f32 %v6452_v46, %v1352_v41 }
 0x285   :  { %v4305_v42 = vsel %vm4152_vm5, %v4076_v36, %v4229_v18 }
 0x286   :  { %vm1505_vm7 = vcmp.gt.f32.partialorder %v1353_v20, 0.0  ;;  %v1582_v43 = vmul.f32 %v6459_v38, %v1353_v20  ;;  %v1869_v24 = vpop.f32.mrf.mxu3  ;;  %v4377_v0 = vpack.c.bf16 %v4305_v42, %v4304_v53  ;;  %v9107_v42 = vpack.c.bf16 %v6152_v25, %v6150_v39 }
 0x287   :  { %v2248_v2 = vadd.f32 %v1869_v24, %v6103_v44 }
 0x288   :  { %1394 = vmatmul.bf16.gmra.mxu2 %v9106_v9  ;;  %v2071_v10 = vpop.f32.mrf.mxu0  ;;  %4501 = vmatmul.bf16.gmra.mxu1 %v4377_v0  ;;  %v1658_v52 = vsel %vm1505_vm7, %v1353_v20, %v1582_v43 }
 0x289   :  { %v1721_v57 = vpack.c.bf16 %v1658_v52, %v1657_v33  ;;  %v6704_v35 = vadd.f32 %v6621_v58, %v2248_v2  ;;  %v4077_v30 = vadd.f32 %v6613_v40, %v2071_v10 }
 0x28b   :  { %v1355_v13 = vpop.f32.mrf.mxu2  ;;  %1911 = vmatmul.bf16.gmra.mxu3 %v1721_v57  ;;  %2110 = vmatmul.bf16.gmra.mxu0 %v1721_v57  ;;  %v4230_v23 = vmul.f32 %v6623_v55, %v4077_v30  ;;  %vm4153_vm8 = vcmp.gt.f32.partialorder %v4077_v30, 0.0 }
 0x28c   :  { %2409 = vmax.xlane.f32.xlu1 %v6704_v35  ;;  %v1356_v45 = vadd.f32 %v6452_v46, %v1355_v13 }
 0x28d   :  { %v4306_v36 = vsel %vm4153_vm8, %v4077_v30, %v4230_v23 }
 0x28e   :  { %v1872_v44 = vpop.f32.mrf.mxu3  ;;  %v1583_v1 = vmul.f32 %v6459_v38, %v1356_v45  ;;  %vm1506_vm10 = vcmp.gt.f32.partialorder %v1356_v45, 0.0 }
 0x28f   :  { %v2249_v17 = vadd.f32 %v1872_v44, %v6123_v56 }
 0x290   :  { %v2073_v49 = vpop.f32.mrf.mxu0  ;;  %v1659_v24 = vsel %vm1506_vm10, %v1356_v45, %v1583_v1 }
 0x291   :  { %v4078_v60 = vadd.f32 %v6613_v40, %v2073_v49  ;;  %v6713_v34 = vadd.f32 %v6621_v58, %v2249_v17 }
 0x293   :  { %vm4154_vm9 = vcmp.gt.f32.partialorder %v4078_v60, 0.0  ;;  %v4231_v61 = vmul.f32 %v6623_v55, %v4078_v60  ;;  %v1357_v63 = vpop.f32.mrf.mxu2  ;;  %2411 = vmax.xlane.f32.xlu2 %v6713_v34 }
 0x294   :  { %v1358_v56 = vadd.f32 %v6452_v46, %v1357_v63 }
 0x295   :  { %v4307_v18 = vsel %vm4154_vm9, %v4078_v60, %v4231_v61 }
 0x296   :  { %vm1507_vm11 = vcmp.gt.f32.partialorder %v1358_v56, 0.0  ;;  %v1584_v41 = vmul.f32 %v6459_v38, %v1358_v56  ;;  %v1874_v3 = vpop.f32.mrf.mxu3  ;;  %v4378_v20 = vpack.c.bf16 %v4307_v18, %v4306_v36 }
 0x297   :  { %v2250_v53 = vadd.f32 %v1874_v3, %v6145_v5 }
 0x298   :  { %1399 = vmatmul.bf16.gmra.mxu2 %v9107_v42  ;;  %v2076_v43 = vpop.f32.mrf.mxu0  ;;  %4506 = vmatmul.bf16.gmra.mxu1 %v4378_v20  ;;  %v1660_v0 = vsel %vm1507_vm11, %v1358_v56, %v1584_v41  ;;  %v9108_v56 = vpack.c.bf16 %v6199_v32, %v6197_v31 }
 0x299   :  { %v1722_v2 = vpack.c.bf16 %v1660_v0, %v1659_v24  ;;  %v6725_v9 = vadd.f32 %v6621_v58, %v2250_v53  ;;  %v4079_v33 = vadd.f32 %v6613_v40, %v2076_v43 }
 0x29b   :  { %v1360_v10 = vpop.f32.mrf.mxu2  ;;  %1916 = vmatmul.bf16.gmra.mxu3 %v1722_v2  ;;  %2115 = vmatmul.bf16.gmra.mxu0 %v1722_v2  ;;  %v4232_v57 = vmul.f32 %v6623_v55, %v4079_v33  ;;  %vm4155_vm12 = vcmp.gt.f32.partialorder %v4079_v33, 0.0 }
 0x29c   :  { %2413 = vmax.xlane.f32.xlu0 %v6725_v9  ;;  %v1361_v39 = vadd.f32 %v6452_v46, %v1360_v10 }
 0x29d   :  { %v4308_v49 = vsel %vm4155_vm12, %v4079_v33, %v4232_v57 }
 0x29e   :  { %v1877_v5 = vpop.f32.mrf.mxu3  ;;  %v1585_v45 = vmul.f32 %v6459_v38, %v1361_v39  ;;  %vm1508_vm0 = vcmp.gt.f32.partialorder %v1361_v39, 0.0 }
 0x29f   :  { %v2251_v52 = vadd.f32 %v1877_v5, %v6160_v47 }
 0x2a0   :  { %v2078_v25 = vpop.f32.mrf.mxu0  ;;  %v1661_v18 = vsel %vm1508_vm0, %v1361_v39, %v1585_v45 }
 0x2a1   :  { %v4080_v13 = vadd.f32 %v6613_v40, %v2078_v25  ;;  %v6734_v30 = vadd.f32 %v6621_v58, %v2251_v52 }
 0x2a3   :  { %vm4156_vm13 = vcmp.gt.f32.partialorder %v4080_v13, 0.0  ;;  %v4233_v44 = vmul.f32 %v6623_v55, %v4080_v13  ;;  %v1362_v17 = vpop.f32.mrf.mxu2  ;;  %2415 = vmax.xlane.f32.xlu1 %v6734_v30 }
 0x2a4   :  { %v1363_v47 = vadd.f32 %v6452_v46, %v1362_v17  ;;  %v9109_v17 = vpack.c.bf16 %v6234_v51, %v6232_v54  ;;  %v6775_v54 = vld [vmem:[%s8988_s6 + $0x1] ss:$0 sm:$0xff] }
 0x2a5   :  { %v4309_v23 = vsel %vm4156_vm13, %v4080_v13, %v4233_v44 }
 0x2a6   :  { %vm1509_vm14 = vcmp.gt.f32.partialorder %v1363_v47, 0.0  ;;  %v1586_v60 = vmul.f32 %v6459_v38, %v1363_v47  ;;  %v1879_v61 = vpop.f32.mrf.mxu3  ;;  %v4379_v63 = vpack.c.bf16 %v4309_v23, %v4308_v49 }
 0x2a7   :  { %v2252_v1 = vadd.f32 %v1879_v61, %v6192_v15 }
 0x2a8   :  { %1404 = vmatmul.bf16.gmra.mxu2 %v9108_v56  ;;  %v2081_v36 = vpop.f32.mrf.mxu0  ;;  %4511 = vmatmul.bf16.gmra.mxu1 %v4379_v63  ;;  %v1662_v41 = vsel %vm1509_vm14, %v1363_v47, %v1586_v60 }
 0x2a9   :  { %v1723_v3 = vpack.c.bf16 %v1662_v41, %v1661_v18  ;;  %v6746_v20 = vadd.f32 %v6621_v58, %v2252_v1  ;;  %v4081_v42 = vadd.f32 %v6613_v40, %v2081_v36 }
 0x2ab   :  { %v1365_v53 = vpop.f32.mrf.mxu2  ;;  %1921 = vmatmul.bf16.gmra.mxu3 %v1723_v3  ;;  %2120 = vmatmul.bf16.gmra.mxu0 %v1723_v3  ;;  %v4234_v24 = vmul.f32 %v6623_v55, %v4081_v42  ;;  %vm4157_vm15 = vcmp.gt.f32.partialorder %v4081_v42, 0.0 }
 0x2ac   :  { %2417 = vmax.xlane.f32.xlu2 %v6746_v20  ;;  %v1366_v31 = vadd.f32 %v6452_v46, %v1365_v53 }
 0x2ad   :  { %v4310_v52 = vsel %vm4157_vm15, %v4081_v42, %v4234_v24 }
 0x2ae   :  { %v1882_v15 = vpop.f32.mrf.mxu3  ;;  %v1587_v5 = vmul.f32 %v6459_v38, %v1366_v31  ;;  %vm1510_vm2 = vcmp.gt.f32.partialorder %v1366_v31, 0.0 }
 0x2af   :  { %v2253_v43 = vadd.f32 %v1882_v15, %v6207_v19 }
 0x2b0   :  { %v2083_v32 = vpop.f32.mrf.mxu0  ;;  %v1663_v47 = vsel %vm1510_vm2, %v1366_v31, %v1587_v5 }
 0x2b1   :  { %v4082_v0 = vadd.f32 %v6613_v40, %v2083_v32  ;;  %v6755_v2 = vadd.f32 %v6621_v58, %v2253_v43 }
 0x2b3   :  { %vm4158_vm1 = vcmp.gt.f32.partialorder %v4082_v0, 0.0  ;;  %v4235_v10 = vmul.f32 %v6623_v55, %v4082_v0  ;;  %v1367_v33 = vpop.f32.mrf.mxu2  ;;  %2419 = vmax.xlane.f32.xlu0 %v6755_v2 }
 0x2b4   :  { %v1368_v19 = vadd.f32 %v6452_v46, %v1367_v33  ;;  %v9110_v33 = vpack.c.bf16 %v6275_v27, %v6273_v7 }
 0x2b5   :  { %v4311_v39 = vsel %vm4158_vm1, %v4082_v0, %v4235_v10 }
 0x2b6   :  { %vm1511_vm3 = vcmp.gt.f32.partialorder %v1368_v19, 0.0  ;;  %v1588_v25 = vmul.f32 %v6459_v38, %v1368_v19  ;;  %v1884_v57 = vpop.f32.mrf.mxu3  ;;  %v4380_v13 = vpack.c.bf16 %v4311_v39, %v4310_v52 }
 0x2b7   :  { %v2254_v44 = vadd.f32 %v1884_v57, %v6227_v62 }
 0x2b8   :  { %1409 = vmatmul.bf16.gmra.mxu2 %v9109_v17  ;;  %v2086_v45 = vpop.f32.mrf.mxu0  ;;  %4516 = vmatmul.bf16.gmra.mxu1 %v4380_v13  ;;  %v1664_v49 = vsel %vm1511_vm3, %v1368_v19, %v1588_v25  ;;  %v924_v13 = vadd.f32 %v6554_v14, %v6287_v8 }
 0x2b9   :  { %v1724_v23 = vpack.c.bf16 %v1664_v49, %v1663_v47  ;;  %v6767_v46 = vadd.f32 %v6621_v58, %v2254_v44  ;;  %v4083_v61 = vadd.f32 %v6613_v40, %v2086_v45 }
 0x2ba   :  { %v1077_v44 = vmul.f32 %v6012_v28, %v924_v13  ;;  %vm1000_vm8 = vcmp.gt.f32.partialorder %v924_v13, 0.0 }
 0x2bb   :  { %v1370_v60 = vpop.f32.mrf.mxu2  ;;  %1926 = vmatmul.bf16.gmra.mxu3 %v1724_v23  ;;  %2125 = vmatmul.bf16.gmra.mxu0 %v1724_v23  ;;  %v4236_v56 = vmul.f32 %v6623_v55, %v4083_v61  ;;  %vm4159_vm4 = vcmp.gt.f32.partialorder %v4083_v61, 0.0 }
 0x2bc   :  { %2421 = vmax.xlane.f32.xlu1 %v6767_v46  ;;  %v1371_v51 = vadd.f32 %v6775_v54, %v1370_v60 }
 0x2bd   :  { %v4312_v42 = vsel %vm4159_vm4, %v4083_v61, %v4236_v56 }
 0x2be   :  { %v1887_v62 = vpop.f32.mrf.mxu3  ;;  %v1589_v3 = vmul.f32 %v6459_v38, %v1371_v51  ;;  %vm1512_vm6 = vcmp.gt.f32.partialorder %v1371_v51, 0.0 }
 0x2bf   :  { %v2255_v63 = vadd.f32 %v1887_v62, %v6242_v6 }
 0x2c0   :  { %v2088_v1 = vpop.f32.mrf.mxu0  ;;  %v1665_v19 = vsel %vm1512_vm6, %v1371_v51, %v1589_v3  ;;  %v1153_v51 = vsel %vm1000_vm8, %v924_v13, %v1077_v44 }
 0x2c1   :  { %v4084_v36 = vadd.f32 %v6613_v40, %v2088_v1  ;;  %v6781_v18 = vadd.f32 %v6621_v58, %v2255_v63 }
 0x2c3   :  { %vm4160_vm5 = vcmp.gt.f32.partialorder %v4084_v36, 0.0  ;;  %v4237_v41 = vmul.f32 %v6623_v55, %v4084_v36  ;;  %v1372_v6 = vpop.f32.mrf.mxu2  ;;  %2423 = vmax.xlane.f32.xlu2 %v6781_v18 }
 0x2c4   :  { %v1373_v53 = vadd.f32 %v6775_v54, %v1372_v6 }
 0x2c5   :  { %v4313_v15 = vsel %vm4160_vm5, %v4084_v36, %v4237_v41 }
 0x2c6   :  { %vm1513_vm7 = vcmp.gt.f32.partialorder %v1373_v53, 0.0  ;;  %v1590_v43 = vmul.f32 %v6459_v38, %v1373_v53  ;;  %v2396_v31 = vpop.xlane.xlu0 %2395  ;;  %v1889_v32 = vpop.f32.mrf.mxu3  ;;  %v4381_v24 = vpack.c.bf16 %v4313_v15, %v4312_v42 }
 0x2c7   :  { %v2547_v0 = vsub.f32 %v6632_v59, %v2396_v31  ;;  %v2256_v10 = vadd.f32 %v1889_v32, %v6268_v29  ;;  %v925_v59 = vadd.f32 %v6554_v14, %v6303_v26 }
 0x2c8   :  { %1414 = vmatmul.bf16.gmra.mxu2 %v9110_v33  ;;  %v2091_v5 = vpop.f32.mrf.mxu0  ;;  %4521 = vmatmul.bf16.gmra.mxu1 %v4381_v24  ;;  %v1666_v52 = vsel %vm1513_vm7, %v1373_v53, %v1590_v43 }
 0x2c9   :  { %v2623_v39 = vmul.f32 1.442695, %v2547_v0  ;;  %v1725_v25 = vpack.c.bf16 %v1666_v52, %v1665_v19  ;;  %v6794_v57 = vadd.f32 %v6621_v58, %v2256_v10  ;;  %v4085_v7 = vadd.f32 %v6613_v40, %v2091_v5 }
 0x2ca   :  { %v1078_v17 = vmul.f32 %v6012_v28, %v925_v59  ;;  %vm1001_vm9 = vcmp.gt.f32.partialorder %v925_v59, 0.0  ;;  %v926_v52 = vadd.f32 %v6554_v14, %v6314_v21 }
 0x2cb   :  { %5324 = vpow2.f32 %v2623_v39  ;;  %v1375_v29 = vpop.f32.mrf.mxu2  ;;  %1931 = vmatmul.bf16.gmra.mxu3 %v1725_v25  ;;  %2130 = vmatmul.bf16.gmra.mxu0 %v1725_v25  ;;  %v4238_v23 = vmul.f32 %v6623_v55, %v4085_v7  ;;  %vm4161_vm10 = vcmp.gt.f32.partialorder %v4085_v7, 0.0  ;;  %v9111_v25 = vld [vmem:[#allocation32_spill] sm:$0xff] }
 0x2cc   :  { %2425 = vmax.xlane.f32.xlu0 %v6794_v57  ;;  %v1376_v8 = vadd.f32 %v6775_v54, %v1375_v29  ;;  %v1154_v1 = vsel %vm1001_vm9, %v925_v59, %v1078_v17  ;;  %vm1002_vm0 = vcmp.gt.f32.partialorder %v926_v52, 0.0 }
 0x2cd   :  { %v4314_v6 = vsel %vm4161_vm10, %v4085_v7, %v4238_v23  ;;  %v1203_v43 = vpack.c.bf16 %v1154_v1, %v1153_v51  ;;  %v9112_v1 = vld [vmem:[#allocation34_spill] sm:$0xff] }
 0x2ce   :  { %v1892_v27 = vpop.f32.mrf.mxu3  ;;  %v1591_v56 = vmul.f32 %v6459_v38, %v1376_v8  ;;  %vm1514_vm12 = vcmp.gt.f32.partialorder %v1376_v8, 0.0 }
 0x2cf   :  { %v2398_v45 = vpop.xlane.xlu0 %2397 }
 0x2d0   :  { %v2548_v26 = vsub.f32 %v6641_v50, %v2398_v45  ;;  %v2093_v47 = vpop.f32.mrf.mxu0  ;;  %v2257_v50 = vadd.f32 %v1892_v27, %v6289_v4  ;;  %v1667_v0 = vsel %vm1514_vm12, %v1376_v8, %v1591_v56  ;;  %v1079_v27 = vmul.f32 %v6012_v28, %v926_v52 }
 0x2d1   :  { %v6806_v49 = vpop.eup %5324  ;;  %v4086_v60 = vadd.f32 %v6613_v40, %v2093_v47 }
 0x2d2   :  { %v2625_v61 = vmul.f32 1.442695, %v2548_v26  ;;  %2775 = vadd.xlane.f32.xlu1 %v6806_v49  ;;  %v6820_v4 = vadd.f32 %v6621_v58, %v2257_v50 }
 0x2d3   :  { %vm4162_vm11 = vcmp.gt.f32.partialorder %v4086_v60, 0.0  ;;  %v4239_v62 = vmul.f32 %v6623_v55, %v4086_v60  ;;  %v1377_v63 = vpop.f32.mrf.mxu2 }
 0x2d4   :  { %5326 = vpow2.f32 %v2625_v61  ;;  %v1378_v36 = vadd.f32 %v6775_v54, %v1377_v63 }
 0x2d5   :  { %v6815_v41 = vpop.f32.mrf.mxu1  ;;  %v4315_v3 = vsel %vm4162_vm11, %v4086_v60, %v4239_v62  ;;  %v1155_v62 = vsel %vm1002_vm0, %v926_v52, %v1079_v27 }
 0x2d6   :  { %vm1515_vm13 = vcmp.gt.f32.partialorder %v1378_v36, 0.0  ;;  %v1592_v53 = vmul.f32 %v6459_v38, %v1378_v36  ;;  %v2400_v42 = vpop.xlane.xlu1 %2399  ;;  %v1894_v15 = vpop.f32.mrf.mxu3  ;;  %v4382_v31 = vpack.c.bf16 %v4315_v3, %v4314_v6 }
 0x2d7   :  { %v2549_v32 = vsub.f32 %v6650_v22, %v2400_v42  ;;  %v927_v22 = vadd.f32 %v6554_v14, %v6330_v12  ;;  %v2258_v13 = vadd.f32 %v1894_v15, %v9111_v25 }
 0x2d8   :  { %1419 = vmatmul.bf16.gmra.mxu2 %v1203_v43  ;;  %v2096_v24 = vpop.f32.mrf.mxu0  ;;  %4526 = vmatmul.bf16.gmra.mxu1 %v4382_v31  ;;  %v1668_v10 = vsel %vm1515_vm13, %v1378_v36, %v1592_v53 }
 0x2d9   :  { %v2627_v33 = vmul.f32 1.442695, %v2549_v32  ;;  %v1726_v5 = vpack.c.bf16 %v1668_v10, %v1667_v0  ;;  %v4087_v59 = vadd.f32 %v6613_v40, %v2096_v24  ;;  %v1080_v21 = vmul.f32 %v6012_v28, %v927_v22 }
 0x2da   :  { %v6822_v19 = vpop.eup %5326  ;;  %2427 = vmax.xlane.f32.xlu1 %v6820_v4  ;;  %vm1003_vm14 = vcmp.gt.f32.partialorder %v927_v22, 0.0  ;;  %v6843_v23 = vadd.f32 %v6621_v58, %v2258_v13  ;;  %v9114_v13 = vld [vmem:[#allocation42_spill] sm:$0xff] }
 0x2db   :  { %5328 = vpow2.f32 %v2627_v33  ;;  %2777 = vadd.xlane.f32.xlu2 %v6822_v19  ;;  %v1380_v39 = vpop.f32.mrf.mxu2  ;;  %1936 = vmatmul.bf16.gmra.mxu3 %v1726_v5  ;;  %v4240_v26 = vmul.f32 %v6623_v55, %v4087_v59  ;;  %vm4163_vm15 = vcmp.gt.f32.partialorder %v4087_v59, 0.0  ;;  %v1156_v63 = vsel %vm1003_vm14, %v927_v22, %v1080_v21 }
 0x2dc   :  { %2135 = vmatmul.bf16.gmra.mxu0 %v1726_v5  ;;  %v1381_v12 = vadd.f32 %v6775_v54, %v1380_v39  ;;  %v1204_v43 = vpack.c.bf16 %v1156_v63, %v1155_v62  ;;  %v9113_v39 = vld [vmem:[#allocation39_spill] sm:$0xff] }
 0x2dd   :  { %v6832_v29 = vpop.f32.mrf.mxu1  ;;  %v4316_v6 = vsel %vm4163_vm15, %v4087_v59, %v4240_v26  ;;  %v928_v25 = vadd.f32 %v6554_v14, %v9113_v39 }
 0x2de   :  { %v1897_v7 = vpop.f32.mrf.mxu3  ;;  %v1593_v51 = vmul.f32 %v6459_v38, %v1381_v12  ;;  %vm1516_vm2 = vcmp.gt.f32.partialorder %v1381_v12, 0.0 }
 0x2df   :  { %v2402_v44 = vpop.xlane.xlu1 %2401  ;;  %v2259_v56 = vadd.f32 %v1897_v7, %v9112_v1  ;;  %v9115_v7 = vld [vmem:[#allocation36_spill] sm:$0xff]  ;;  %vm1004_vm4 = vcmp.gt.f32.partialorder %v928_v25, 0.0 }
 0x2e0   :  { %v2550_v17 = vsub.f32 %v6662_v16, %v2402_v44  ;;  %v2098_v45 = vpop.f32.mrf.mxu0  ;;  %v1669_v10 = vsel %vm1516_vm2, %v1381_v12, %v1593_v51 }
 0x2e1   :  { %v6838_v8 = vpop.eup %5328  ;;  %v4088_v47 = vadd.f32 %v6613_v40, %v2098_v45  ;;  %v6858_v0 = vadd.f32 %v6621_v58, %v2259_v56 }
 0x2e2   :  { %v2629_v60 = vmul.f32 1.442695, %v2550_v17  ;;  %2779 = vadd.xlane.f32.xlu0 %v6838_v8  ;;  %v1081_v17 = vmul.f32 %v6012_v28, %v928_v25 }
 0x2e3   :  { %vm4164_vm1 = vcmp.gt.f32.partialorder %v4088_v47, 0.0  ;;  %v4241_v61 = vmul.f32 %v6623_v55, %v4088_v47  ;;  %2429 = vmax.xlane.f32.xlu2 %v6843_v23  ;;  %v1382_v16 = vpop.f32.mrf.mxu2 }
 0x2e4   :  { %5330 = vpow2.f32 %v2629_v60  ;;  %v1383_v50 = vadd.f32 %v6775_v54, %v1382_v16  ;;  %v1157_v56 = vsel %vm1004_vm4, %v928_v25, %v1081_v17  ;;  %v9118_v17 = vld [vmem:[#allocation49_spill] sm:$0xff] }
 0x2e5   :  { %v6853_v36 = vpop.f32.mrf.mxu1  ;;  %v4317_v3 = vsel %vm4164_vm1, %v4088_v47, %v4241_v61 }
 0x2e6   :  { %vm1517_vm3 = vcmp.gt.f32.partialorder %v1383_v50, 0.0  ;;  %v1594_v53 = vmul.f32 %v6459_v38, %v1383_v50  ;;  %v2404_v42 = vpop.xlane.xlu2 %2403  ;;  %v1899_v15 = vpop.f32.mrf.mxu3  ;;  %v4383_v31 = vpack.c.bf16 %v4317_v3, %v4316_v6  ;;  %v9116_v3 = vld [vmem:[#allocation38_spill] sm:$0xff] }
 0x2e7   :  { %v2551_v32 = vsub.f32 %v6671_v48, %v2404_v42  ;;  %v929_v48 = vadd.f32 %v6554_v14, %v9114_v13  ;;  %v2260_v27 = vadd.f32 %v1899_v15, %v9115_v7 }
 0x2e8   :  { %1424 = vmatmul.bf16.gmra.mxu2 %v1204_v43  ;;  %v2101_v24 = vpop.f32.mrf.mxu0  ;;  %4531 = vmatmul.bf16.gmra.mxu1 %v4383_v31  ;;  %v1670_v33 = vsel %vm1517_vm3, %v1383_v50, %v1594_v53 }
 0x2e9   :  { %v2631_v5 = vmul.f32 1.442695, %v2551_v32  ;;  %v1727_v52 = vpack.c.bf16 %v1670_v33, %v1669_v10  ;;  %v4089_v21 = vadd.f32 %v6613_v40, %v2101_v24  ;;  %v1082_v45 = vmul.f32 %v6012_v28, %v929_v48 }
 0x2ea   :  { %v6860_v22 = vpop.eup %5330  ;;  %2431 = vmax.xlane.f32.xlu0 %v6858_v0  ;;  %vm1005_vm5 = vcmp.gt.f32.partialorder %v929_v48, 0.0  ;;  %v6881_v63 = vadd.f32 %v6621_v58, %v2260_v27 }
 0x2eb   :  { %5332 = vpow2.f32 %v2631_v5  ;;  %2781 = vadd.xlane.f32.xlu1 %v6860_v22  ;;  %v1385_v59 = vpop.f32.mrf.mxu2  ;;  %1941 = vmatmul.bf16.gmra.mxu3 %v1727_v52  ;;  %v4242_v16 = vmul.f32 %v6623_v55, %v4089_v21  ;;  %vm4165_vm6 = vcmp.gt.f32.partialorder %v4089_v21, 0.0  ;;  %v1158_v50 = vsel %vm1005_vm5, %v929_v48, %v1082_v45 }
 0x2ec   :  { %2140 = vmatmul.bf16.gmra.mxu0 %v1727_v52  ;;  %v1386_v14 = vadd.f32 %v6775_v54, %v1385_v59  ;;  %v1205_v33 = vpack.c.bf16 %v1158_v50, %v1157_v56 }
 0x2ed   :  { %v6870_v44 = vpop.f32.mrf.mxu1  ;;  %v4318_v43 = vsel %vm4165_vm6, %v4089_v21, %v4242_v16  ;;  %v6904_v21 = vld [vmem:[%s8988_s6] ss:$0 sm:$0xff] }
 0x2ee   :  { %v1902_v12 = vpop.f32.mrf.mxu3  ;;  %v1595_v6 = vmul.f32 %v6459_v38, %v1386_v14  ;;  %vm1518_vm8 = vcmp.gt.f32.partialorder %v1386_v14, 0.0  ;;  %v931_v45 = vadd.f32 %v6904_v21, %v9118_v17 }
 0x2ef   :  { %v2406_v26 = vpop.xlane.xlu2 %2405  ;;  %v2261_v53 = vadd.f32 %v1902_v12, %v9116_v3 }
 0x2f0   :  { %v2552_v47 = vsub.f32 %v6683_v11, %v2406_v26  ;;  %v2103_v60 = vpop.f32.mrf.mxu0  ;;  %v1671_v13 = vsel %vm1518_vm8, %v1386_v14, %v1595_v6  ;;  %v9119_v14 = vld [vmem:[#allocation41_spill] sm:$0xff]  ;;  %vm1007_vm11 = vcmp.gt.f32.partialorder %v931_v45, 0.0 }
 0x2f1   :  { %v6876_v61 = vpop.eup %5332  ;;  %v4090_v62 = vadd.f32 %v6613_v40, %v2103_v60  ;;  %v6896_v25 = vadd.f32 %v6621_v58, %v2261_v53 }
 0x2f2   :  { %v2633_v51 = vmul.f32 1.442695, %v2552_v47  ;;  %2783 = vadd.xlane.f32.xlu2 %v6876_v61 }
 0x2f3   :  { %vm4166_vm7 = vcmp.gt.f32.partialorder %v4090_v62, 0.0  ;;  %v4243_v1 = vmul.f32 %v6623_v55, %v4090_v62  ;;  %2433 = vmax.xlane.f32.xlu1 %v6881_v63  ;;  %v1387_v11 = vpop.f32.mrf.mxu2 }
 0x2f4   :  { %5334 = vpow2.f32 %v2633_v51  ;;  %v1388_v42 = vadd.f32 %v6775_v54, %v1387_v11 }
 0x2f5   :  { %v6891_v15 = vpop.f32.mrf.mxu1  ;;  %v4319_v31 = vsel %vm4166_vm7, %v4090_v62, %v4243_v1  ;;  %v1084_v1 = vmul.f32 %v6012_v28, %v931_v45 }
 0x2f6   :  { %vm1519_vm9 = vcmp.gt.f32.partialorder %v1388_v42, 0.0  ;;  %v1596_v32 = vmul.f32 %v6459_v38, %v1388_v42  ;;  %v2408_v24 = vpop.xlane.xlu0 %2407  ;;  %v1904_v10 = vpop.f32.mrf.mxu3  ;;  %v4384_v5 = vpack.c.bf16 %v4319_v31, %v4318_v43 }
 0x2f7   :  { %v2553_v52 = vsub.f32 %v6692_v37, %v2408_v24  ;;  %v9117_v37 = vld [vmem:[#allocation46_spill] sm:$0xff]  ;;  %v2262_v47 = vadd.f32 %v1904_v10, %v9119_v14  ;;  %v1160_v10 = vsel %vm1007_vm11, %v931_v45, %v1084_v1 }
 0x2f8   :  { %1429 = vmatmul.bf16.gmra.mxu2 %v1205_v33  ;;  %v2106_v39 = vpop.f32.mrf.mxu0  ;;  %4536 = vmatmul.bf16.gmra.mxu1 %v4384_v5  ;;  %v1672_v48 = vsel %vm1519_vm9, %v1388_v42, %v1596_v32  ;;  %v930_v12 = vadd.f32 %v6904_v21, %v9117_v37 }
 0x2f9   :  { %v2635_v59 = vmul.f32 1.442695, %v2553_v52  ;;  %v1728_v7 = vpack.c.bf16 %v1672_v48, %v1671_v13  ;;  %v4091_v60 = vadd.f32 %v6613_v40, %v2106_v39  ;;  %v6924_v43 = vadd.f32 %v6621_v58, %v2262_v47 }
 0x2fa   :  { %v6898_v27 = vpop.eup %5334  ;;  %2435 = vmax.xlane.f32.xlu2 %v6896_v25  ;;  %v1083_v51 = vmul.f32 %v6012_v28, %v930_v12  ;;  %vm1006_vm10 = vcmp.gt.f32.partialorder %v930_v12, 0.0 }
 0x2fb   :  { %5336 = vpow2.f32 %v2635_v59  ;;  %2785 = vadd.xlane.f32.xlu0 %v6898_v27  ;;  %v1390_v26 = vpop.f32.mrf.mxu2  ;;  %1946 = vmatmul.bf16.gmra.mxu3 %v1728_v7  ;;  %v4244_v53 = vmul.f32 %v6623_v55, %v4091_v60  ;;  %vm4167_vm12 = vcmp.gt.f32.partialorder %v4091_v60, 0.0 }
 0x2fc   :  { %2145 = vmatmul.bf16.gmra.mxu0 %v1728_v7  ;;  %v1391_v56 = vadd.f32 %v6775_v54, %v1390_v26  ;;  %v1159_v24 = vsel %vm1006_vm10, %v930_v12, %v1083_v51 }
 0x2fd   :  { %v6913_v16 = vpop.f32.mrf.mxu1  ;;  %v4320_v13 = vsel %vm4167_vm12, %v4091_v60, %v4244_v53  ;;  %v1206_v12 = vpack.c.bf16 %v1160_v10, %v1159_v24 }
 0x2fe   :  { %v1907_v62 = vpop.f32.mrf.mxu3  ;;  %v1597_v33 = vmul.f32 %v6459_v38, %v1391_v56  ;;  %vm1520_vm0 = vcmp.gt.f32.partialorder %v1391_v56, 0.0 }
 0x2ff   :  { %v2410_v11 = vpop.xlane.xlu1 %2409 }
 0x300   :  { %v2554_v50 = vsub.f32 %v6704_v35, %v2410_v11  ;;  %v2108_v6 = vpop.f32.mrf.mxu0  ;;  %v1673_v47 = vsel %vm1520_vm0, %v1391_v56, %v1597_v33  ;;  %v9121_v11 = vld [vmem:[#allocation52_spill] sm:$0xff] }
 0x301   :  { %v6919_v3 = vpop.eup %5336  ;;  %v4092_v42 = vadd.f32 %v6613_v40, %v2108_v6  ;;  %v9120_v40 = vld [vmem:[#allocation44_spill] sm:$0xff]  ;;  %v9122_v6 = vld [vmem:[#allocation55_spill] sm:$0xff] }
 0x302   :  { %v2637_v31 = vmul.f32 1.442695, %v2554_v50  ;;  %2787 = vadd.xlane.f32.xlu1 %v6919_v3  ;;  %v2263_v5 = vadd.f32 %v1907_v62, %v9120_v40  ;;  %v932_v50 = vadd.f32 %v6904_v21, %v9121_v11 }
 0x303   :  { %vm4168_vm13 = vcmp.gt.f32.partialorder %v4092_v42, 0.0  ;;  %v4245_v32 = vmul.f32 %v6623_v55, %v4092_v42  ;;  %2437 = vmax.xlane.f32.xlu0 %v6924_v43  ;;  %v1392_v35 = vpop.f32.mrf.mxu2 }
 0x304   :  { %5338 = vpow2.f32 %v2637_v31  ;;  %v1393_v52 = vadd.f32 %v6775_v54, %v1392_v35  ;;  %v6939_v14 = vadd.f32 %v6621_v58, %v2263_v5  ;;  %v9123_v58 = vld [vmem:[#allocation47_spill] sm:$0xff]  ;;  %v1085_v24 = vmul.f32 %v6012_v28, %v932_v50 }
 0x305   :  { %v6934_v39 = vpop.f32.mrf.mxu1  ;;  %v4321_v48 = vsel %vm4168_vm13, %v4092_v42, %v4245_v32  ;;  %v6953_v42 = vld [vmem:[%s8988_s6 + $0x3] ss:$0 sm:$0xff]  ;;  %vm1008_vm15 = vcmp.gt.f32.partialorder %v932_v50, 0.0 }
 0x306   :  { %vm1521_vm14 = vcmp.gt.f32.partialorder %v1393_v52, 0.0  ;;  %v1598_v59 = vmul.f32 %v6459_v38, %v1393_v52  ;;  %v2412_v7 = vpop.xlane.xlu2 %2411  ;;  %v1909_v37 = vpop.f32.mrf.mxu3  ;;  %v4385_v17 = vpack.c.bf16 %v4321_v48, %v4320_v13 }
 0x307   :  { %v2555_v45 = vsub.f32 %v6713_v34, %v2412_v7  ;;  %v933_v34 = vadd.f32 %v6904_v21, %v9122_v6  ;;  %v2264_v56 = vadd.f32 %v1909_v37, %v9123_v58  ;;  %v6969_v7 = vld [vmem:[%s8988_s6 + $0x2] ss:$0 sm:$0xff] }
 0x308   :  { %1434 = vmatmul.bf16.gmra.mxu2 %v1206_v12  ;;  %v2111_v26 = vpop.f32.mrf.mxu0  ;;  %4541 = vmatmul.bf16.gmra.mxu1 %v4385_v17  ;;  %v1674_v62 = vsel %vm1521_vm14, %v1393_v52, %v1598_v59 }
 0x309   :  { %v2639_v51 = vmul.f32 1.442695, %v2555_v45  ;;  %v1729_v60 = vpack.c.bf16 %v1674_v62, %v1673_v47  ;;  %v4093_v31 = vadd.f32 %v6953_v42, %v2111_v26  ;;  %v1086_v10 = vmul.f32 %v6012_v28, %v933_v34  ;;  %v9124_v62 = vld [vmem:[#allocation50_spill] sm:$0xff] }
 0x30a   :  { %v6941_v1 = vpop.eup %5338  ;;  %2439 = vmax.xlane.f32.xlu1 %v6939_v14  ;;  %vm1009_vm1 = vcmp.gt.f32.partialorder %v933_v34, 0.0  ;;  %v6972_v37 = vadd.f32 %v6969_v7, %v2264_v56  ;;  %v1161_v45 = vsel %vm1008_vm15, %v932_v50, %v1085_v24 }
 0x30b   :  { %5340 = vpow2.f32 %v2639_v51  ;;  %2789 = vadd.xlane.f32.xlu2 %v6941_v1  ;;  %v1395_v53 = vpop.f32.mrf.mxu2  ;;  %1951 = vmatmul.bf16.gmra.mxu3 %v1729_v60  ;;  %v4246_v48 = vmul.f32 %v6623_v55, %v4093_v31  ;;  %vm4169_vm2 = vcmp.gt.f32.partialorder %v4093_v31, 0.0  ;;  %v1162_v26 = vsel %vm1009_vm1, %v933_v34, %v1086_v10 }
 0x30c   :  { %2150 = vmatmul.bf16.gmra.mxu0 %v1729_v60  ;;  %v1396_v40 = vadd.f32 %v6775_v54, %v1395_v53  ;;  %v1207_v50 = vpack.c.bf16 %v1162_v26, %v1161_v45 }
 0x30d   :  { %v6956_v32 = vpop.f32.mrf.mxu1  ;;  %v4322_v6 = vsel %vm4169_vm2, %v4093_v31, %v4246_v48 }
 0x30e   :  { %v1912_v35 = vpop.f32.mrf.mxu3  ;;  %v1599_v47 = vmul.f32 %v6459_v38, %v1396_v40  ;;  %vm1522_vm4 = vcmp.gt.f32.partialorder %v1396_v40, 0.0 }
 0x30f   :  { %v2414_v33 = vpop.xlane.xlu0 %2413  ;;  %v2265_v51 = vadd.f32 %v1912_v35, %v9124_v62 }
 0x310   :  { %v2556_v5 = vsub.f32 %v6725_v9, %v2414_v33  ;;  %v2113_v52 = vpop.f32.mrf.mxu0 }
 0x311   :  { %v6962_v13 = vpop.eup %5340  ;;  %v4094_v59 = vadd.f32 %v6953_v42, %v2113_v52  ;;  %v6987_v35 = vadd.f32 %v6969_v7, %v2265_v51 }
 0x312   :  { %v2641_v12 = vmul.f32 1.442695, %v2556_v5  ;;  %2791 = vadd.xlane.f32.xlu0 %v6962_v13  ;;  %v1675_v5 = vsel %vm1522_vm4, %v1396_v40, %v1599_v47  ;;  %v9128_v40 = vld [vmem:[#allocation53_spill] sm:$0xff] }
 0x313   :  { %vm4170_vm3 = vcmp.gt.f32.partialorder %v4094_v59, 0.0  ;;  %v4247_v9 = vmul.f32 %v6623_v55, %v4094_v59  ;;  %2441 = vmax.xlane.f32.xlu2 %v6972_v37  ;;  %v1397_v17 = vpop.f32.mrf.mxu2 }
 0x314   :  { %5342 = vpow2.f32 %v2641_v12  ;;  %v1398_v60 = vadd.f32 %v6775_v54, %v1397_v17  ;;  %v9127_v17 = vld [vmem:[#allocation59_spill] sm:$0xff] }
 0x315   :  { %v6982_v11 = vpop.f32.mrf.mxu1  ;;  %v4323_v53 = vsel %vm4170_vm3, %v4094_v59, %v4247_v9  ;;  %v9126_v59 = vld [vmem:[#allocation57_spill] sm:$0xff] }
 0x316   :  { %vm1523_vm5 = vcmp.gt.f32.partialorder %v1398_v60, 0.0  ;;  %v1600_v58 = vmul.f32 %v6459_v38, %v1398_v60  ;;  %v2416_v56 = vpop.xlane.xlu1 %2415  ;;  %v1914_v33 = vpop.f32.mrf.mxu3  ;;  %v4386_v24 = vpack.c.bf16 %v4323_v53, %v4322_v6  ;;  %v934_v9 = vadd.f32 %v6904_v21, %v9126_v59 }
 0x317   :  { %v2557_v34 = vsub.f32 %v6734_v30, %v2416_v56  ;;  %v935_v30 = vadd.f32 %v6904_v21, %v9127_v17  ;;  %v2266_v26 = vadd.f32 %v1914_v33, %v9128_v40  ;;  %v9132_v17 = vld [vmem:[#allocation56_spill] sm:$0xff] }
 0x318   :  { %1439 = vmatmul.bf16.gmra.mxu2 %v1207_v50  ;;  %v2116_v10 = vpop.f32.mrf.mxu0  ;;  %4546 = vmatmul.bf16.gmra.mxu1 %v4386_v24  ;;  %v1676_v52 = vsel %vm1523_vm5, %v1398_v60, %v1600_v58  ;;  %v1087_v60 = vmul.f32 %v6012_v28, %v934_v9  ;;  %vm1010_vm6 = vcmp.gt.f32.partialorder %v934_v9, 0.0 }
 0x319   :  { %v2643_v12 = vmul.f32 1.442695, %v2557_v34  ;;  %v1730_v31 = vpack.c.bf16 %v1676_v52, %v1675_v5  ;;  %v4095_v47 = vadd.f32 %v6953_v42, %v2116_v10  ;;  %v1088_v6 = vmul.f32 %v6012_v28, %v935_v30 }
 0x31a   :  { %v6989_v48 = vpop.eup %5342  ;;  %2443 = vmax.xlane.f32.xlu0 %v6987_v35  ;;  %vm1011_vm7 = vcmp.gt.f32.partialorder %v935_v30, 0.0  ;;  %v7010_v10 = vadd.f32 %v6969_v7, %v2266_v26 }
 0x31b   :  { %9125 = vst [vmem:[#allocation32_spill] sm:$0xff] %v6989_v48  ;;  %5344 = vpow2.f32 %v2643_v12  ;;  %2793 = vadd.xlane.f32.xlu1 %v6989_v48  ;;  %v1400_v45 = vpop.f32.mrf.mxu2  ;;  %1956 = vmatmul.bf16.gmra.mxu3 %v1730_v31  ;;  %v4248_v33 = vmul.f32 %v6623_v55, %v4095_v47  ;;  %vm4171_vm8 = vcmp.gt.f32.partialorder %v4095_v47, 0.0  ;;  %v1163_v12 = vsel %vm1010_vm6, %v934_v9, %v1087_v60 }
 0x31c   :  { %2155 = vmatmul.bf16.gmra.mxu0 %v1730_v31  ;;  %v1401_v58 = vadd.f32 %v6775_v54, %v1400_v45  ;;  %9131 = vst [vmem:[#allocation42_spill] sm:$0xff] %v7010_v10  ;;  %v1164_v31 = vsel %vm1011_vm7, %v935_v30, %v1088_v6 }
 0x31d   :  { %v6999_v62 = vpop.f32.mrf.mxu1  ;;  %v1208_v9 = vpack.c.bf16 %v1164_v31, %v1163_v12  ;;  %v9137_v12 = vld [vmem:[#allocation63_spill] sm:$0xff] }
 0x31e   :  { %9129 = vst [vmem:[#allocation34_spill] sm:$0xff] %v6999_v62  ;;  %v1917_v51 = vpop.f32.mrf.mxu3  ;;  %v1601_v59 = vmul.f32 %v6459_v38, %v1401_v58  ;;  %vm1524_vm10 = vcmp.gt.f32.partialorder %v1401_v58, 0.0 }
 0x31f   :  { %v2418_v53 = vpop.xlane.xlu2 %2417  ;;  %v2267_v45 = vadd.f32 %v1917_v51, %v9132_v17 }
 0x320   :  { %v2558_v56 = vsub.f32 %v6746_v20, %v2418_v53  ;;  %v2118_v50 = vpop.f32.mrf.mxu0  ;;  %v4324_v53 = vsel %vm4171_vm8, %v4095_v47, %v4248_v33 }
 0x321   :  { %v7005_v24 = vpop.eup %5344  ;;  %v4096_v34 = vadd.f32 %v6953_v42, %v2118_v50  ;;  %v7025_v51 = vadd.f32 %v6969_v7, %v2267_v45 }
 0x322   :  { %9130 = vst [vmem:[#allocation39_spill] sm:$0xff] %v7005_v24  ;;  %v2645_v5 = vmul.f32 1.442695, %v2558_v56  ;;  %2795 = vadd.xlane.f32.xlu2 %v7005_v24 }
 0x323   :  { %vm4172_vm9 = vcmp.gt.f32.partialorder %v4096_v34, 0.0  ;;  %v4249_v52 = vmul.f32 %v6623_v55, %v4096_v34  ;;  %2445 = vmax.xlane.f32.xlu1 %v7010_v10  ;;  %v1402_v20 = vpop.f32.mrf.mxu2  ;;  %9134 = vst [vmem:[#allocation38_spill] sm:$0xff] %v7025_v51 }
 0x324   :  { %5346 = vpow2.f32 %v2645_v5  ;;  %v1403_v40 = vadd.f32 %v6775_v54, %v1402_v20  ;;  %v1677_v5 = vsel %vm1524_vm10, %v1401_v58, %v1601_v59  ;;  %v9138_v58 = vld [vmem:[#allocation58_spill] sm:$0xff] }
 0x325   :  { %v7020_v26 = vpop.f32.mrf.mxu1  ;;  %v4325_v56 = vsel %vm4172_vm9, %v4096_v34, %v4249_v52  ;;  %v9136_v34 = vld [vmem:[#allocation61_spill] sm:$0xff] }
 0x326   :  { %9133 = vst [vmem:[#allocation36_spill] sm:$0xff] %v7020_v26  ;;  %vm1525_vm11 = vcmp.gt.f32.partialorder %v1403_v40, 0.0  ;;  %v1602_v50 = vmul.f32 %v6459_v38, %v1403_v40  ;;  %v2420_v24 = vpop.xlane.xlu0 %2419  ;;  %v1919_v48 = vpop.f32.mrf.mxu3  ;;  %v4387_v60 = vpack.c.bf16 %v4325_v56, %v4324_v53  ;;  %v936_v52 = vadd.f32 %v6904_v21, %v9136_v34 }
 0x327   :  { %v2559_v30 = vsub.f32 %v6755_v2, %v2420_v24  ;;  %v937_v2 = vadd.f32 %v6904_v21, %v9137_v12  ;;  %v2268_v31 = vadd.f32 %v1919_v48, %v9138_v58  ;;  %v9142_v58 = vld [vmem:[#allocation60_spill] sm:$0xff] }
 0x328   :  { %1444 = vmatmul.bf16.gmra.mxu2 %v1208_v9  ;;  %v2121_v6 = vpop.f32.mrf.mxu0  ;;  %4551 = vmatmul.bf16.gmra.mxu1 %v4387_v60  ;;  %v1678_v20 = vsel %vm1525_vm11, %v1403_v40, %v1602_v50  ;;  %v1089_v53 = vmul.f32 %v6012_v28, %v936_v52  ;;  %vm1012_vm12 = vcmp.gt.f32.partialorder %v936_v52, 0.0 }
 0x329   :  { %v2647_v17 = vmul.f32 1.442695, %v2559_v30  ;;  %v1731_v47 = vpack.c.bf16 %v1678_v20, %v1677_v5  ;;  %v4097_v59 = vadd.f32 %v6953_v42, %v2121_v6  ;;  %v1090_v56 = vmul.f32 %v6012_v28, %v937_v2 }
 0x32a   :  { %v7027_v33 = vpop.eup %5346  ;;  %2447 = vmax.xlane.f32.xlu2 %v7025_v51  ;;  %vm1013_vm13 = vcmp.gt.f32.partialorder %v937_v2, 0.0  ;;  %v7048_v20 = vadd.f32 %v6969_v7, %v2268_v31  ;;  %v1165_v34 = vsel %vm1012_vm12, %v936_v52, %v1089_v53 }
 0x32b   :  { %9135 = vst [vmem:[#allocation46_spill] sm:$0xff] %v7027_v33  ;;  %5348 = vpow2.f32 %v2647_v17  ;;  %2797 = vadd.xlane.f32.xlu0 %v7027_v33  ;;  %v1405_v24 = vpop.f32.mrf.mxu2  ;;  %1961 = vmatmul.bf16.gmra.mxu3 %v1731_v47  ;;  %v4250_v48 = vmul.f32 %v6623_v55, %v4097_v59  ;;  %vm4173_vm0 = vcmp.gt.f32.partialorder %v4097_v59, 0.0  ;;  %v1166_v12 = vsel %vm1013_vm13, %v937_v2, %v1090_v56  ;;  %v9144_v2 = vld [vmem:[#allocation65_spill] sm:$0xff] }
 0x32c   :  { %2160 = vmatmul.bf16.gmra.mxu0 %v1731_v47  ;;  %v1406_v9 = vadd.f32 %v6775_v54, %v1405_v24  ;;  %9141 = vst [vmem:[#allocation44_spill] sm:$0xff] %v7048_v20  ;;  %v1209_v52 = vpack.c.bf16 %v1166_v12, %v1165_v34  ;;  %v938_v56 = vadd.f32 %v6904_v21, %v9144_v2 }
 0x32d   :  { %v7037_v45 = vpop.f32.mrf.mxu1 }
 0x32e   :  { %9139 = vst [vmem:[#allocation49_spill] sm:$0xff] %v7037_v45  ;;  %v1922_v40 = vpop.f32.mrf.mxu3  ;;  %v1603_v24 = vmul.f32 %v6459_v38, %v1406_v9  ;;  %vm1526_vm15 = vcmp.gt.f32.partialorder %v1406_v9, 0.0  ;;  %v1091_v12 = vmul.f32 %v6012_v28, %v938_v56  ;;  %vm1014_vm2 = vcmp.gt.f32.partialorder %v938_v56, 0.0 }
 0x32f   :  { %v2422_v50 = vpop.xlane.xlu1 %2421  ;;  %v2269_v31 = vadd.f32 %v1922_v40, %v9142_v58 }
 0x330   :  { %v2560_v60 = vsub.f32 %v6767_v46, %v2422_v50  ;;  %v2123_v30 = vpop.f32.mrf.mxu0 }
 0x331   :  { %v7043_v5 = vpop.eup %5348  ;;  %v4098_v6 = vadd.f32 %v6953_v42, %v2123_v30  ;;  %v4326_v30 = vsel %vm4173_vm0, %v4097_v59, %v4250_v48  ;;  %v7067_v59 = vadd.f32 %v6969_v7, %v2269_v31  ;;  %v1679_v48 = vsel %vm1526_vm15, %v1406_v9, %v1603_v24 }
 0x332   :  { %9140 = vst [vmem:[#allocation41_spill] sm:$0xff] %v7043_v5  ;;  %v2649_v17 = vmul.f32 1.442695, %v2560_v60  ;;  %2799 = vadd.xlane.f32.xlu1 %v7043_v5 }
 0x333   :  { %vm4174_vm14 = vcmp.gt.f32.partialorder %v4098_v6, 0.0  ;;  %v4251_v47 = vmul.f32 %v6623_v55, %v4098_v6  ;;  %2449 = vmax.xlane.f32.xlu0 %v7048_v20  ;;  %v1407_v46 = vpop.f32.mrf.mxu2  ;;  %9146 = vst [vmem:[#allocation55_spill] sm:$0xff] %v7067_v59 }
 0x334   :  { %5350 = vpow2.f32 %v2649_v17  ;;  %v1408_v50 = vadd.f32 %v6775_v54, %v1407_v46  ;;  %v9145_v17 = vld [vmem:[#allocation67_spill] sm:$0xff] }
 0x335   :  { %v7058_v60 = vpop.f32.mrf.mxu1  ;;  %v4327_v5 = vsel %vm4174_vm14, %v4098_v6, %v4251_v47  ;;  %v939_v40 = vadd.f32 %v6904_v21, %v9145_v17 }
 0x336   :  { %9143 = vst [vmem:[#allocation52_spill] sm:$0xff] %v7058_v60  ;;  %vm1527_vm1 = vcmp.gt.f32.partialorder %v1408_v50, 0.0  ;;  %v1604_v33 = vmul.f32 %v6459_v38, %v1408_v50  ;;  %v2424_v45 = vpop.xlane.xlu2 %2423  ;;  %v1924_v20 = vpop.f32.mrf.mxu3  ;;  %v4388_v53 = vpack.c.bf16 %v4327_v5, %v4326_v30 }
 0x337   :  { %v2561_v46 = vsub.f32 %v6781_v18, %v2424_v45  ;;  %v1092_v30 = vmul.f32 %v6012_v28, %v939_v40  ;;  %vm1015_vm3 = vcmp.gt.f32.partialorder %v939_v40, 0.0  ;;  %v9148_v45 = vld [vmem:[#allocation62_spill] sm:$0xff] }
 0x338   :  { %1449 = vmatmul.bf16.gmra.mxu2 %v1209_v52  ;;  %v2126_v58 = vpop.f32.mrf.mxu0  ;;  %4556 = vmatmul.bf16.gmra.mxu1 %v4388_v53  ;;  %v1680_v6 = vsel %vm1527_vm1, %v1408_v50, %v1604_v33  ;;  %v2270_v33 = vadd.f32 %v1924_v20, %v9148_v45  ;;  %v1167_v52 = vsel %vm1014_vm2, %v938_v56, %v1091_v12  ;;  %v9152_v12 = vld [vmem:[#allocation64_spill] sm:$0xff]  ;;  %v9153_v45 = vld [vmem:[#allocation69_spill] sm:$0xff] }
 0x339   :  { %v2651_v47 = vmul.f32 1.442695, %v2561_v46  ;;  %v1732_v34 = vpack.c.bf16 %v1680_v6, %v1679_v48  ;;  %v4099_v31 = vadd.f32 %v6953_v42, %v2126_v58  ;;  %v1168_v53 = vsel %vm1015_vm3, %v939_v40, %v1092_v30 }
 0x33a   :  { %v7070_v5 = vpop.eup %5350  ;;  %2451 = vmax.xlane.f32.xlu1 %v7067_v59 }
 0x33b   :  { %9147 = vst [vmem:[#allocation47_spill] sm:$0xff] %v7070_v5  ;;  %5352 = vpow2.f32 %v2651_v47  ;;  %2801 = vadd.xlane.f32.xlu2 %v7070_v5  ;;  %v1410_v18 = vpop.f32.mrf.mxu2  ;;  %1966 = vmatmul.bf16.gmra.mxu3 %v1732_v34  ;;  %v7086_v47 = vadd.f32 %v6969_v7, %v2270_v33  ;;  %vm4175_vm4 = vcmp.gt.f32.partialorder %v4099_v31, 0.0  ;;  %v4252_v56 = vmul.f32 %v6623_v55, %v4099_v31 }
 0x33c   :  { %2165 = vmatmul.bf16.gmra.mxu0 %v1732_v34  ;;  %v1411_v2 = vadd.f32 %v6775_v54, %v1410_v18  ;;  %v1210_v34 = vpack.c.bf16 %v1168_v53, %v1167_v52  ;;  %v940_v33 = vadd.f32 %v6904_v21, %v9153_v45 }
 0x33d   :  { %v7077_v9 = vpop.f32.mrf.mxu1  ;;  %9151 = vst [vmem:[#allocation59_spill] sm:$0xff] %v7086_v47 }
 0x33e   :  { %9149 = vst [vmem:[#allocation50_spill] sm:$0xff] %v7077_v9  ;;  %v1927_v24 = vpop.f32.mrf.mxu3  ;;  %v1605_v58 = vmul.f32 %v6459_v38, %v1411_v2  ;;  %vm1528_vm6 = vcmp.gt.f32.partialorder %v1411_v2, 0.0  ;;  %vm1016_vm8 = vcmp.gt.f32.partialorder %v940_v33, 0.0 }
 0x33f   :  { %v2426_v50 = vpop.xlane.xlu0 %2425  ;;  %v2271_v30 = vadd.f32 %v1927_v24, %v9152_v12  ;;  %v4328_v12 = vsel %vm4175_vm4, %v4099_v31, %v4252_v56 }
 0x340   :  { %v2562_v17 = vsub.f32 %v6794_v57, %v2426_v50  ;;  %v2128_v46 = vpop.f32.mrf.mxu0  ;;  %v9154_v50 = vld [vmem:[#allocation71_spill] sm:$0xff] }
 0x341   :  { %v7082_v48 = vpop.eup %5352  ;;  %v4100_v6 = vadd.f32 %v6953_v42, %v2128_v46  ;;  %v941_v52 = vadd.f32 %v6904_v21, %v9154_v50 }
 0x342   :  { %9150 = vst [vmem:[#allocation57_spill] sm:$0xff] %v7082_v48  ;;  %v2653_v20 = vmul.f32 1.442695, %v2562_v17  ;;  %2803 = vadd.xlane.f32.xlu0 %v7082_v48  ;;  %v9156_v48 = vld [vmem:[#allocation73_spill] sm:$0xff] }
 0x343   :  { %vm4176_vm5 = vcmp.gt.f32.partialorder %v4100_v6, 0.0  ;;  %v4253_v40 = vmul.f32 %v6623_v55, %v4100_v6  ;;  %2453 = vmax.xlane.f32.xlu2 %v7086_v47  ;;  %v1412_v57 = vpop.f32.mrf.mxu2  ;;  %v942_v5 = vadd.f32 %v6904_v21, %v9156_v48  ;;  %v1093_v48 = vmul.f32 %v6012_v28, %v940_v33 }
 0x344   :  { %5354 = vpow2.f32 %v2653_v20  ;;  %v1413_v18 = vadd.f32 %v6775_v54, %v1412_v57  ;;  %v9157_v20 = vld [vmem:[#allocation75_spill] sm:$0xff]  ;;  %v1094_v9 = vmul.f32 %v6012_v28, %v941_v52  ;;  %vm1017_vm9 = vcmp.gt.f32.partialorder %v941_v52, 0.0 }
 0x345   :  { %v7099_v53 = vpop.f32.mrf.mxu1  ;;  %v7101_v17 = vpop.xlane.xlu1 %2775  ;;  %v4329_v46 = vsel %vm4176_vm5, %v4100_v6, %v4253_v40  ;;  %v943_v57 = vadd.f32 %v6904_v21, %v9157_v20  ;;  %v1681_v6 = vsel %vm1528_vm6, %v1411_v2, %v1605_v58  ;;  %v1095_v20 = vmul.f32 %v6012_v28, %v942_v5  ;;  %v9160_v58 = vld [vmem:[#allocation66_spill] sm:$0xff] }
 0x346   :  { %9155 = vst [vmem:[#allocation53_spill] sm:$0xff] %v7099_v53  ;;  %vm1529_vm7 = vcmp.gt.f32.partialorder %v1413_v18, 0.0  ;;  %v1606_v24 = vmul.f32 %v6459_v38, %v1413_v18  ;;  %5356 = vrcp.f32 %v7101_v17  ;;  %v1929_v54 = vpop.f32.mrf.mxu3  ;;  %v4389_v50 = vpack.c.bf16 %v4329_v46, %v4328_v12 }
 0x347   :  { %v7111_v53 = vadd.f32 %v6969_v7, %v2271_v30  ;;  %vm1018_vm10 = vcmp.gt.f32.partialorder %v942_v5, 0.0  ;;  %v1096_v31 = vmul.f32 %v6012_v28, %v943_v57  ;;  %vm1019_vm11 = vcmp.gt.f32.partialorder %v943_v57, 0.0 }
 0x348   :  { %1454 = vmatmul.bf16.gmra.mxu2 %v1210_v34  ;;  %v2131_v45 = vpop.f32.mrf.mxu0  ;;  %v1682_v40 = vsel %vm1529_vm7, %v1413_v18, %v1606_v24  ;;  %4561 = vmatmul.bf16.gmra.mxu1 %v4389_v50  ;;  %v2272_v30 = vadd.f32 %v1929_v54, %v9160_v58  ;;  %v1169_v24 = vsel %vm1016_vm8, %v940_v33, %v1093_v48  ;;  %v9162_v50 = vld [vmem:[#allocation77_spill] sm:$0xff]  ;;  %v2936_v33 = vand.u32 2147483647, %v7101_v17 }
 0x349   :  { %9158 = vst [vmem:[#allocation56_spill] sm:$0xff] %v7111_v53  ;;  %v1733_v47 = vpack.c.bf16 %v1682_v40, %v1681_v6  ;;  %v1170_v12 = vsel %vm1017_vm9, %v941_v52, %v1094_v9  ;;  %v7129_v6 = vadd.f32 %v6904_v21, %v9162_v50  ;;  %v4101_v58 = vadd.f32 %v6953_v42, %v2131_v45 }
 0x34a   :  { %v7115_v60 = vpop.eup %5354  ;;  %2455 = vmax.xlane.f32.xlu0 %v7111_v53  ;;  %v7137_v53 = vsel %vm1018_vm10, %v942_v5, %v1095_v20  ;;  %v7142_v9 = vsel %vm1019_vm11, %v943_v57, %v1096_v31  ;;  %v2938_v52 = vand.u32 2147483648, %v7101_v17  ;;  %v7148_v20 = vadd.f32 %v6969_v7, %v2272_v30  ;;  %v7154_v57 = vld [vmem:[%s8988_s6 + $0x4] ss:$0 sm:$0xff] }
 0x34b   :  { %9159 = vst [vmem:[#allocation61_spill] sm:$0xff] %v7115_v60  ;;  %2805 = vadd.xlane.f32.xlu1 %v7115_v60  ;;  %v1415_v2 = vpop.f32.mrf.mxu2  ;;  %1971 = vmatmul.bf16.gmra.mxu3 %v1733_v47  ;;  %vm1020_vm13 = vcmp.gt.f32.partialorder %v7129_v6, 0.0  ;;  %vm2932_vm0 = vweird.f32 %v7101_v17  ;;  %v4254_v31 = vmul.f32 %v6623_v55, %v4101_v58  ;;  %vm4177_vm1 = vcmp.gt.f32.partialorder %v4101_v58, 0.0 }
 0x34c   :  { %v5357_v34 = vpop.eup %5356  ;;  %2170 = vmatmul.bf16.gmra.mxu0 %v1733_v47  ;;  %9163 = vst [vmem:[#allocation58_spill] sm:$0xff] %v7148_v20  ;;  %vm2937_vm2 = vcmp.eq.f32.partialorder %v2936_v33, 8.507059e+37  ;;  %v4488_v59 = vadd.f32 %v7154_v57, %v6815_v41 }
 0x34d   :  { %v2928_v56 = vmul.f32 %v5357_v34, %v7101_v17  ;;  %v7123_v18 = vpop.f32.mrf.mxu1  ;;  %v2428_v46 = vpop.xlane.xlu1 %2427  ;;  %vm2933_vm12 = vweird.f32 %v5357_v34  ;;  %v7165_v17 = vld [vmem:[%s8988_s6 + $0x1] ss:$0 sm:$0xff] }
 0x34e   :  { %9161 = vst [vmem:[#allocation63_spill] sm:$0xff] %v7123_v18  ;;  %v7131_v40 = vpop.xlane.xlu2 %2777  ;;  %v2563_v60 = vsub.f32 %v6820_v4, %v2428_v46  ;;  %v7134_v47 = vpop.f32.mrf.mxu3  ;;  %v1211_v4 = vpack.c.bf16 %v1170_v12, %v1169_v24  ;;  %vm2934_vm15 = vmor %vm2932_vm0, %vm2933_vm12  ;;  %v2939_v24 = vor.u32 1.1754944e-38, %v2938_v52  ;;  %v1416_v12 = vadd.f32 %v7165_v17, %v1415_v2 }
 0x34f   :  { %v2929_v54 = vsub.f32 1.0, %v2928_v56  ;;  %5358 = vrcp.f32 %v7131_v40  ;;  %vm2947_vm7 = vweird.f32 %v7131_v40 }
 0x350   :  { %v2655_v48 = vmul.f32 1.442695, %v2563_v60  ;;  %v2133_v50 = vpop.f32.mrf.mxu0  ;;  %vm1530_vm3 = vcmp.gt.f32.partialorder %v1416_v12, 0.0  ;;  %v1607_v41 = vmul.f32 %v6459_v38, %v1416_v12 }
 0x351   :  { %v2930_v46 = vmul.f32 %v5357_v34, %v2929_v54  ;;  %v4102_v5 = vadd.f32 %v6953_v42, %v2133_v50  ;;  %v1097_v50 = vmul.f32 %v6012_v28, %v7129_v6 }
 0x352   :  { %5360 = vpow2.f32 %v2655_v48 }
 0x353   :  { %v2931_v45 = vadd.f32 %v5357_v34, %v2930_v46  ;;  %vm4178_vm14 = vcmp.gt.f32.partialorder %v4102_v5, 0.0  ;;  %v4255_v56 = vmul.f32 %v6623_v55, %v4102_v5  ;;  %2457 = vmax.xlane.f32.xlu1 %v7148_v20  ;;  %v1417_v30 = vpop.f32.mrf.mxu2  ;;  %v9164_v46 = vld [vmem:[#allocation79_spill] sm:$0xff] }
 0x354   :  { %v1418_v54 = vadd.f32 %v7165_v17, %v1417_v30  ;;  %v945_v60 = vadd.f32 %v6904_v21, %v9164_v46 }
 0x355   :  { %v5359_v48 = vpop.eup %5358  ;;  %v2935_v18 = vsel %vm2934_vm15, %v5357_v34, %v2931_v45  ;;  %v7173_v52 = vpop.f32.mrf.mxu1  ;;  %v4331_v62 = vsel %vm4178_vm14, %v4102_v5, %v4255_v56  ;;  %v4330_v34 = vsel %vm4177_vm1, %v4101_v58, %v4254_v31  ;;  %v2951_v31 = vand.u32 2147483647, %v7131_v40 }
 0x356   :  { %9165 = vst [vmem:[#allocation60_spill] sm:$0xff] %v7173_v52  ;;  %v7175_v20 = vpop.xlane.xlu0 %2779  ;;  %v2940_v26 = vsel %vm2937_vm2, %v2939_v24, %v2935_v18  ;;  %v2943_v2 = vmul.f32 %v5359_v48, %v7131_v40  ;;  %v2430_v30 = vpop.xlane.xlu2 %2429  ;;  %v1608_v46 = vmul.f32 %v6459_v38, %v1418_v54  ;;  %vm1531_vm4 = vcmp.gt.f32.partialorder %v1418_v54, 0.0 }
 0x357   :  { %v1934_v51 = vpop.f32.mrf.mxu3  ;;  %v2941_v10 = vmul.f32 %v6806_v49, %v2940_v26  ;;  %5362 = vrcp.f32 %v7175_v20  ;;  %v2953_v24 = vand.u32 2147483648, %v7131_v40  ;;  %v2564_v5 = vsub.f32 %v6843_v23, %v2430_v30 }
 0x358   :  { %v7185_v33 = vpop.eup %5360  ;;  %v2944_v18 = vsub.f32 1.0, %v2943_v2  ;;  %1459 = vmatmul.bf16.gmra.mxu2 %v1211_v4  ;;  %v4390_v26 = vpack.c.bf16 %v4331_v62, %v4330_v34  ;;  %v1098_v56 = vmul.f32 %v6012_v28, %v945_v60  ;;  %vm2948_vm5 = vweird.f32 %v5359_v48  ;;  %v9168_v2 = vld [vmem:[#allocation81_spill] sm:$0xff] }
 0x359   :  { %9166 = vst [vmem:[#allocation65_spill] sm:$0xff] %v7185_v33  ;;  %v4677_v45 = vadd.f32 %v4488_v59, %v2941_v10  ;;  %v2136_v49 = vpop.f32.mrf.mxu0  ;;  %2807 = vadd.xlane.f32.xlu2 %v7185_v33  ;;  %vm1021_vm6 = vcmp.gt.f32.partialorder %v945_v60, 0.0  ;;  %v9167_v10 = vld [vmem:[#allocation68_spill] sm:$0xff]  ;;  %v2657_v4 = vmul.f32 1.442695, %v2564_v5  ;;  %v1684_v62 = vsel %vm1531_vm4, %v1418_v54, %v1608_v46  ;;  %vm2949_vm8 = vmor %vm2947_vm7, %vm2948_vm5 }
 0x35a   :  { %v2945_v58 = vmul.f32 %v5359_v48, %v2944_v18  ;;  %v2273_v59 = vadd.f32 %v7134_v47, %v9167_v10  ;;  %4566 = vmatmul.bf16.gmra.mxu1 %v4390_v26  ;;  %v7201_v30 = vadd.f32 %v6904_v21, %v9168_v2  ;;  %v1683_v18 = vsel %vm1530_vm3, %v1416_v12, %v1607_v41 }
 0x35b   :  { %4753 = vst [vmem:[%s8989_s7] sm:$0xff] %v4677_v45  ;;  %v1420_v23 = vpop.f32.mrf.mxu2  ;;  %v2954_v45 = vor.u32 1.1754944e-38, %v2953_v24  ;;  %5364 = vpow2.f32 %v2657_v4  ;;  %v1734_v52 = vpack.c.bf16 %v1684_v62, %v1683_v18  ;;  %v7210_v54 = vsel %vm1020_vm13, %v7129_v6, %v1097_v50 }
 0x35c   :  { %v2946_v34 = vadd.f32 %v5359_v48, %v2945_v58  ;;  %vm2952_vm9 = vcmp.eq.f32.partialorder %v2951_v31, 8.507059e+37  ;;  %v7218_v41 = vsel %vm1021_vm6, %v945_v60, %v1098_v56  ;;  %v4490_v24 = vadd.f32 %v7154_v57, %v6832_v29  ;;  %v9170_v29 = vld [vmem:[#allocation70_spill] sm:$0xff] }
 0x35d   :  { %v5363_v33 = vpop.eup %5362  ;;  %v7205_v47 = vpop.f32.mrf.mxu1  ;;  %1976 = vmatmul.bf16.gmra.mxu3 %v1734_v52  ;;  %2175 = vmatmul.bf16.gmra.mxu0 %v1734_v52  ;;  %v7224_v6 = vadd.f32 %v6969_v7, %v2273_v59  ;;  %v2966_v31 = vand.u32 2147483647, %v7175_v20  ;;  %v2968_v10 = vand.u32 2147483648, %v7175_v20  ;;  %v7231_v60 = vmul.f32 %v6012_v28, %v7201_v30 }
 0x35e   :  { %9169 = vst [vmem:[#allocation67_spill] sm:$0xff] %v7205_v47  ;;  %v2432_v5 = vpop.xlane.xlu0 %2431  ;;  %v2950_v46 = vsel %vm2949_vm8, %v5359_v48, %v2946_v34  ;;  %v2958_v26 = vmul.f32 %v5363_v33, %v7175_v20  ;;  %v7213_v40 = vpop.xlane.xlu1 %2781  ;;  %v2274_v56 = vadd.f32 %v1934_v51, %v9170_v29  ;;  %v4103_v52 = vadd.f32 %v6953_v42, %v2136_v49 }
 0x35f   :  { %v7215_v12 = vpop.f32.mrf.mxu3  ;;  %v2955_v58 = vsel %vm2952_vm9, %v2954_v45, %v2950_v46  ;;  %5366 = vrcp.f32 %v7213_v40  ;;  %v2565_v4 = vsub.f32 %v6858_v0, %v2432_v5  ;;  %vm2963_vm10 = vweird.f32 %v5363_v33 }
 0x360   :  { %v2956_v48 = vmul.f32 %v6822_v19, %v2955_v58  ;;  %v2959_v50 = vsub.f32 1.0, %v2958_v26  ;;  %v4493_v18 = vadd.f32 %v7154_v57, %v6853_v36  ;;  %vm2962_vm11 = vweird.f32 %v7175_v20 }
 0x361   :  { %v2138_v62 = vpop.f32.mrf.mxu0  ;;  %2459 = vmax.xlane.f32.xlu2 %v7224_v6  ;;  %v7238_v34 = vpop.eup %5364  ;;  %v1421_v51 = vadd.f32 %v7165_v17, %v1420_v23  ;;  %v2659_v49 = vmul.f32 1.442695, %v2565_v4  ;;  %vm7247_vm12 = vcmp.eq.f32.partialorder %v2966_v31, 8.507059e+37  ;;  %v2969_v46 = vor.u32 1.1754944e-38, %v2968_v10  ;;  %vm2964_vm13 = vmor %vm2962_vm11, %vm2963_vm10 }
 0x362   :  { %v4678_v59 = vadd.f32 %v4490_v24, %v2956_v48  ;;  %v2960_v19 = vmul.f32 %v5363_v33, %v2959_v50  ;;  %v4104_v2 = vadd.f32 %v6953_v42, %v2138_v62  ;;  %9171 = vst [vmem:[#allocation62_spill] sm:$0xff] %v7238_v34  ;;  %2809 = vadd.xlane.f32.xlu0 %v7238_v34  ;;  %vm4179_vm0 = vcmp.gt.f32.partialorder %v4103_v52, 0.0 }
 0x363   :  { %v1422_v45 = vpop.f32.mrf.mxu2  ;;  %5368 = vpow2.f32 %v2659_v49  ;;  %v7258_v24 = vadd.f32 %v6969_v7, %v2274_v56  ;;  %v4256_v48 = vmul.f32 %v6623_v55, %v4103_v52  ;;  %vm1532_vm15 = vcmp.gt.f32.partialorder %v1421_v51, 0.0 }
 0x364   :  { %4754 = vst [vmem:[%s8989_s7 + $0x8] sm:$0xff] %v4678_v59  ;;  %v2961_v0 = vadd.f32 %v5363_v33, %v2960_v19  ;;  %v1423_v36 = vadd.f32 %v7165_v17, %v1422_v45  ;;  %v4257_v20 = vmul.f32 %v6623_v55, %v4104_v2  ;;  %vm4180_vm14 = vcmp.gt.f32.partialorder %v4104_v2, 0.0 }
 0x365   :  { %v5367_v26 = vpop.eup %5366  ;;  %v7255_v23 = vpop.xlane.xlu2 %2783  ;;  %v9175_v19 = vpack.c.bf16 %v7142_v9, %v7137_v53  ;;  %v2981_v49 = vand.u32 2147483647, %v7213_v40  ;;  %v2983_v45 = vand.u32 2147483648, %v7213_v40  ;;  %vm2977_vm3 = vweird.f32 %v7213_v40 }
 0x366   :  { %v2965_v58 = vsel %vm2964_vm13, %v5363_v33, %v2961_v0  ;;  %v2973_v50 = vmul.f32 %v5367_v26, %v7213_v40  ;;  %v2434_v31 = vpop.xlane.xlu1 %2433  ;;  %v1610_v4 = vmul.f32 %v6459_v38, %v1423_v36  ;;  %v7265_v62 = vpop.f32.mrf.mxu1  ;;  %5370 = vrcp.f32 %v7255_v23 }
 0x367   :  { %v1939_v10 = vpop.f32.mrf.mxu3  ;;  %v2970_v29 = vsel %vm7247_vm12, %v2969_v46, %v2965_v58  ;;  %9174 = vst [vmem:[#allocation64_spill] sm:$0xff] %v7265_v62  ;;  %v1609_v33 = vmul.f32 %v6459_v38, %v1421_v51  ;;  %vm1533_vm1 = vcmp.gt.f32.partialorder %v1423_v36, 0.0  ;;  %v2566_v0 = vsub.f32 %v6881_v63, %v2434_v31 }
 0x368   :  { %v2971_v56 = vmul.f32 %v6838_v8, %v2970_v29  ;;  %v2974_v59 = vsub.f32 1.0, %v2973_v50  ;;  %1464 = vmatmul.bf16.gmra.mxu2 %v9175_v19  ;;  %v4333_v46 = vsel %vm4180_vm14, %v4104_v2, %v4257_v20  ;;  %vm2978_vm2 = vweird.f32 %v5367_v26  ;;  %v9176_v29 = vld [vmem:[#allocation83_spill] sm:$0xff] }
 0x369   :  { %v2141_v5 = vpop.f32.mrf.mxu0  ;;  %v4332_v8 = vsel %vm4179_vm0, %v4103_v52, %v4256_v48  ;;  %v7278_v50 = vpop.eup %5368  ;;  %v7282_v53 = vadd.f32 %v6904_v21, %v9176_v29  ;;  %v2661_v9 = vmul.f32 1.442695, %v2566_v0  ;;  %v1686_v47 = vsel %vm1533_vm1, %v1423_v36, %v1610_v4  ;;  %vm2979_vm4 = vmor %vm2977_vm3, %vm2978_vm2 }
 0x36a   :  { %v4679_v58 = vadd.f32 %v4493_v18, %v2971_v56  ;;  %v2975_v62 = vmul.f32 %v5367_v26, %v2974_v59  ;;  %v4391_v19 = vpack.c.bf16 %v4333_v46, %v4332_v8  ;;  %2811 = vadd.xlane.f32.xlu1 %v7278_v50  ;;  %2461 = vmax.xlane.f32.xlu0 %v7258_v24  ;;  %v2984_v2 = vor.u32 1.1754944e-38, %v2983_v45  ;;  %v9177_v18 = vld [vmem:[#allocation72_spill] sm:$0xff] }
 0x36b   :  { %v1425_v34 = vpop.f32.mrf.mxu2  ;;  %v1685_v52 = vsel %vm1532_vm15, %v1421_v51, %v1609_v33  ;;  %v2275_v36 = vadd.f32 %v7215_v12, %v9177_v18  ;;  %5372 = vpow2.f32 %v2661_v9  ;;  %vm2982_vm5 = vcmp.eq.f32.partialorder %v2981_v49, 8.507059e+37 }
 0x36c   :  { %4755 = vst [vmem:[%s8989_s7 + $0x10] sm:$0xff] %v4679_v58  ;;  %v2976_v63 = vadd.f32 %v5367_v26, %v2975_v62  ;;  %v7292_v21 = vpop.eup %5370  ;;  %4571 = vmatmul.bf16.gmra.mxu1 %v4391_v19  ;;  %v1735_v20 = vpack.c.bf16 %v1686_v47, %v1685_v52  ;;  %v1213_v62 = vpack.c.bf16 %v7218_v41, %v7210_v54  ;;  %v2996_v33 = vand.u32 2147483647, %v7255_v23 }
 0x36d   :  { %v2436_v48 = vpop.xlane.xlu2 %2435  ;;  %v2988_v40 = vmul.f32 %v7292_v21, %v7255_v23  ;;  %v4495_v56 = vadd.f32 %v7154_v57, %v6870_v44  ;;  %vm1022_vm6 = vcmp.gt.f32.partialorder %v7201_v30, 0.0  ;;  %v2998_v59 = vand.u32 2147483648, %v7255_v23  ;;  %v9178_v44 = vld [vmem:[#allocation74_spill] sm:$0xff] }
 0x36e   :  { %v2980_v31 = vsel %vm2979_vm4, %v5367_v26, %v2976_v63  ;;  %v7299_v4 = vpop.xlane.xlu0 %2785  ;;  %1981 = vmatmul.bf16.gmra.mxu3 %v1735_v20  ;;  %2180 = vmatmul.bf16.gmra.mxu0 %v1735_v20  ;;  %v4105_v49 = vadd.f32 %v6953_v42, %v2141_v5  ;;  %v7315_v54 = vmul.f32 %v6012_v28, %v7282_v53  ;;  %v7318_v45 = vpop.f32.mrf.mxu1  ;;  %vm2993_vm7 = vweird.f32 %v7292_v21 }
 0x36f   :  { %v7301_v51 = vpop.f32.mrf.mxu3  ;;  %v2985_v12 = vsel %vm2982_vm5, %v2984_v2, %v2980_v31  ;;  %5374 = vrcp.f32 %v7299_v4  ;;  %v2989_v26 = vsub.f32 1.0, %v2988_v40  ;;  %v2276_v41 = vadd.f32 %v1939_v10, %v9178_v44 }
 0x370   :  { %v2986_v47 = vmul.f32 %v6860_v22, %v2985_v12  ;;  %v2567_v0 = vsub.f32 %v6896_v25, %v2436_v48  ;;  %v7322_v58 = vadd.f32 %v6969_v7, %v2275_v36  ;;  %vm1023_vm8 = vcmp.gt.f32.partialorder %v7282_v53, 0.0 }
 0x371   :  { %v2143_v46 = vpop.f32.mrf.mxu0  ;;  %v2990_v8 = vmul.f32 %v7292_v21, %v2989_v26  ;;  %v7327_v29 = vpop.eup %5372  ;;  %v4498_v28 = vadd.f32 %v7154_v57, %v6891_v15  ;;  %vm2992_vm9 = vweird.f32 %v7255_v23  ;;  %v1426_v25 = vadd.f32 %v7165_v17, %v1425_v34 }
 0x372   :  { %v4680_v22 = vadd.f32 %v4495_v56, %v2986_v47  ;;  %v4106_v5 = vadd.f32 %v6953_v42, %v2143_v46  ;;  %v2663_v10 = vmul.f32 1.442695, %v2567_v0  ;;  %vm7338_vm10 = vcmp.eq.f32.partialorder %v2996_v33, 8.507059e+37  ;;  %2813 = vadd.xlane.f32.xlu2 %v7327_v29  ;;  %2463 = vmax.xlane.f32.xlu1 %v7322_v58  ;;  %vm2994_vm12 = vmor %vm2992_vm9, %vm2993_vm7 }
 0x373   :  { %v1427_v9 = vpop.f32.mrf.mxu2  ;;  %v2991_v19 = vadd.f32 %v7292_v21, %v2990_v8  ;;  %v2999_v63 = vor.u32 1.1754944e-38, %v2998_v59  ;;  %vm4181_vm11 = vcmp.gt.f32.partialorder %v4105_v49, 0.0  ;;  %v4258_v34 = vmul.f32 %v6623_v55, %v4105_v49 }
 0x374   :  { %4756 = vst [vmem:[%s8989_s7 + $0x18] sm:$0xff] %v4680_v22  ;;  %5376 = vpow2.f32 %v2663_v10  ;;  %v4259_v23 = vmul.f32 %v6623_v55, %v4106_v5  ;;  %v1428_v52 = vadd.f32 %v7165_v17, %v1427_v9  ;;  %vm4182_vm13 = vcmp.gt.f32.partialorder %v4106_v5, 0.0 }
 0x375   :  { %v5375_v15 = vpop.eup %5374  ;;  %v7349_v2 = vpop.xlane.xlu1 %2787  ;;  %v2995_v18 = vsel %vm2994_vm12, %v7292_v21, %v2991_v19  ;;  %v7354_v31 = vadd.f32 %v6969_v7, %v2276_v41  ;;  %vm1534_vm0 = vcmp.gt.f32.partialorder %v1426_v25, 0.0  ;;  %v1611_v21 = vmul.f32 %v6459_v38, %v1426_v25 }
 0x376   :  { %v3003_v36 = vmul.f32 %v5375_v15, %v7299_v4  ;;  %v2438_v20 = vpop.xlane.xlu0 %2437  ;;  %v3000_v40 = vsel %vm7338_vm10, %v2999_v63, %v2995_v18  ;;  %v1612_v56 = vmul.f32 %v6459_v38, %v1428_v52  ;;  %5378 = vrcp.f32 %v7349_v2  ;;  %v7369_v22 = vpop.f32.mrf.mxu1 }
 0x377   :  { %v1944_v48 = vpop.f32.mrf.mxu3  ;;  %v3001_v12 = vmul.f32 %v6876_v61, %v3000_v40  ;;  %vm1535_vm14 = vcmp.gt.f32.partialorder %v1428_v52, 0.0  ;;  %v3011_v47 = vand.u32 2147483647, %v7299_v4  ;;  %v3013_v7 = vand.u32 2147483648, %v7299_v4 }
 0x378   :  { %v3004_v33 = vsub.f32 1.0, %v3003_v36  ;;  %1469 = vmatmul.bf16.gmra.mxu2 %v1213_v62  ;;  %v2568_v26 = vsub.f32 %v6924_v43, %v2438_v20  ;;  %v4335_v44 = vsel %vm4182_vm13, %v4106_v5, %v4259_v23  ;;  %vm3008_vm15 = vweird.f32 %v5375_v15 }
 0x379   :  { %v2146_v59 = vpop.f32.mrf.mxu0  ;;  %v4681_v41 = vadd.f32 %v4498_v28, %v3001_v12  ;;  %v4334_v46 = vsel %vm4181_vm11, %v4105_v49, %v4258_v34  ;;  %v1688_v9 = vsel %vm1535_vm14, %v1428_v52, %v1612_v56  ;;  %v7376_v43 = vsel %vm1022_vm6, %v7201_v30, %v7231_v60  ;;  %v9181_v30 = vld [vmem:[#allocation76_spill] sm:$0xff]  ;;  %v7409_v56 = vld [vmem:[%s8988_s6 + $0x3] ss:$0 sm:$0xff] }
 0x37a   :  { %v3005_v0 = vmul.f32 %v5375_v15, %v3004_v33  ;;  %v7367_v61 = vpop.eup %5376  ;;  %v2665_v8 = vmul.f32 1.442695, %v2568_v26  ;;  %v4392_v62 = vpack.c.bf16 %v4335_v44, %v4334_v46  ;;  %vm3007_vm1 = vweird.f32 %v7299_v4  ;;  %2465 = vmax.xlane.f32.xlu2 %v7354_v31  ;;  %v7417_v33 = vld [vmem:[%s8988_s6 + $0x2] ss:$0 sm:$0xff] }
 0x37b   :  { %v1430_v10 = vpop.f32.mrf.mxu2  ;;  %4757 = vst [vmem:[%s8989_s7 + $0x20] sm:$0xff] %v4681_v41  ;;  %2815 = vadd.xlane.f32.xlu0 %v7367_v61  ;;  %v1687_v5 = vsel %vm1534_vm0, %v1426_v25, %v1611_v21  ;;  %vm3009_vm2 = vmor %vm3007_vm1, %vm3008_vm15  ;;  %v3014_v19 = vor.u32 1.1754944e-38, %v3013_v7  ;;  %v2277_v60 = vadd.f32 %v7301_v51, %v9181_v30  ;;  %vm3012_vm3 = vcmp.eq.f32.partialorder %v3011_v47, 8.507059e+37 }
 0x37c   :  { %v3006_v49 = vadd.f32 %v5375_v15, %v3005_v0  ;;  %v7385_v28 = vpop.eup %5378  ;;  %5380 = vpow2.f32 %v2665_v8  ;;  %4576 = vmatmul.bf16.gmra.mxu1 %v4392_v62  ;;  %v1736_v42 = vpack.c.bf16 %v1688_v9, %v1687_v5  ;;  %v1176_v52 = vsel %vm1023_vm8, %v7282_v53, %v7315_v54 }
 0x37d   :  { %v2440_v63 = vpop.xlane.xlu1 %2439  ;;  %v3018_v4 = vmul.f32 %v7385_v28, %v7349_v2  ;;  %v4500_v51 = vadd.f32 %v7154_v57, %v6913_v16  ;;  %v3026_v36 = vand.u32 2147483647, %v7349_v2  ;;  %v3028_v40 = vand.u32 2147483648, %v7349_v2  ;;  %v9182_v16 = vld [vmem:[#allocation78_spill] sm:$0xff] }
 0x37e   :  { %v3010_v34 = vsel %vm3009_vm2, %v5375_v15, %v3006_v49  ;;  %v7392_v23 = vpop.xlane.xlu2 %2789  ;;  %1986 = vmatmul.bf16.gmra.mxu3 %v1736_v42  ;;  %2185 = vmatmul.bf16.gmra.mxu0 %v1736_v42  ;;  %v4107_v53 = vadd.f32 %v7409_v56, %v2146_v59  ;;  %v2278_v54 = vadd.f32 %v1944_v48, %v9182_v16  ;;  %vm3023_vm4 = vweird.f32 %v7385_v28 }
 0x37f   :  { %v7394_v25 = vpop.f32.mrf.mxu3  ;;  %v3015_v18 = vsel %vm3012_vm3, %v3014_v19, %v3010_v34  ;;  %5382 = vrcp.f32 %v7392_v23  ;;  %v3019_v20 = vsub.f32 1.0, %v3018_v4  ;;  %v2569_v12 = vsub.f32 %v6939_v14, %v2440_v63 }
 0x380   :  { %v3016_v15 = vmul.f32 %v6898_v27, %v3015_v18  ;;  %v7420_v27 = vadd.f32 %v7417_v33, %v2277_v60  ;;  %v1214_v47 = vpack.c.bf16 %v1176_v52, %v7376_v43  ;;  %v4503_v14 = vadd.f32 %v7154_v57, %v6934_v39 }
 0x381   :  { %v2148_v21 = vpop.f32.mrf.mxu0  ;;  %v3020_v26 = vmul.f32 %v7385_v28, %v3019_v20  ;;  %vm3022_vm5 = vweird.f32 %v7349_v2  ;;  %v1431_v44 = vadd.f32 %v7165_v17, %v1430_v10  ;;  %v2667_v41 = vmul.f32 1.442695, %v2569_v12  ;;  %v7445_v10 = vpop.f32.mrf.mxu1 }
 0x382   :  { %v4682_v7 = vadd.f32 %v4500_v51, %v3016_v15  ;;  %v4108_v48 = vadd.f32 %v7409_v56, %v2148_v21  ;;  %v7426_v59 = vpop.eup %5380  ;;  %vm7436_vm6 = vcmp.eq.f32.partialorder %v3026_v36, 8.507059e+37  ;;  %v3029_v62 = vor.u32 1.1754944e-38, %v3028_v40  ;;  %vm3024_vm8 = vmor %vm3022_vm5, %vm3023_vm4 }
 0x383   :  { %v1432_v0 = vpop.f32.mrf.mxu2  ;;  %v3021_v46 = vadd.f32 %v7385_v28, %v3020_v26  ;;  %vm4183_vm7 = vcmp.gt.f32.partialorder %v4107_v53, 0.0  ;;  %2817 = vadd.xlane.f32.xlu1 %v7426_v59  ;;  %2467 = vmax.xlane.f32.xlu0 %v7420_v27  ;;  %v4260_v2 = vmul.f32 %v6623_v55, %v4107_v53  ;;  %5384 = vpow2.f32 %v2667_v41 }
 0x384   :  { %4758 = vst [vmem:[%s8989_s7 + $0x28] sm:$0xff] %v4682_v7  ;;  %v4261_v9 = vmul.f32 %v6623_v55, %v4108_v48  ;;  %v1433_v43 = vadd.f32 %v7165_v17, %v1432_v0  ;;  %vm4184_vm9 = vcmp.gt.f32.partialorder %v4108_v48, 0.0  ;;  %v7454_v42 = vadd.f32 %v7417_v33, %v2278_v54 }
 0x385   :  { %v5383_v39 = vpop.eup %5382  ;;  %v7449_v49 = vpop.xlane.xlu0 %2791  ;;  %v3025_v5 = vsel %vm3024_vm8, %v7385_v28, %v3021_v46  ;;  %vm1536_vm10 = vcmp.gt.f32.partialorder %v1431_v44, 0.0  ;;  %v1613_v28 = vmul.f32 %v6459_v38, %v1431_v44  ;;  %v3041_v51 = vand.u32 2147483647, %v7392_v23 }
 0x386   :  { %v3033_v19 = vmul.f32 %v5383_v39, %v7392_v23  ;;  %v2442_v30 = vpop.xlane.xlu2 %2441  ;;  %v3030_v63 = vsel %vm7436_vm6, %v3029_v62, %v3025_v5  ;;  %v1614_v34 = vmul.f32 %v6459_v38, %v1433_v43  ;;  %5386 = vrcp.f32 %v7449_v49 }
 0x387   :  { %v1949_v60 = vpop.f32.mrf.mxu3  ;;  %v3031_v4 = vmul.f32 %v6919_v3, %v3030_v63  ;;  %vm1537_vm11 = vcmp.gt.f32.partialorder %v1433_v43, 0.0  ;;  %v3043_v18 = vand.u32 2147483648, %v7392_v23  ;;  %v2570_v36 = vsub.f32 %v6972_v37, %v2442_v30  ;;  %v9186_v63 = vld [vmem:[#allocation82_spill] sm:$0xff] }
 0x388   :  { %v3034_v52 = vsub.f32 1.0, %v3033_v19  ;;  %1474 = vmatmul.bf16.gmra.mxu2 %v1214_v47  ;;  %v4337_v20 = vsel %vm4184_vm9, %v4108_v48, %v4261_v9  ;;  %vm3038_vm12 = vweird.f32 %v5383_v39  ;;  %v4336_v54 = vsel %vm4183_vm7, %v4107_v53, %v4260_v2 }
 0x389   :  { %v2151_v15 = vpop.f32.mrf.mxu0  ;;  %v4683_v40 = vadd.f32 %v4503_v14, %v3031_v4  ;;  %v7467_v3 = vpop.eup %5384  ;;  %v2669_v12 = vmul.f32 1.442695, %v2570_v36  ;;  %v4393_v21 = vpack.c.bf16 %v4337_v20, %v4336_v54  ;;  %v1690_v47 = vsel %vm1537_vm11, %v1433_v43, %v1614_v34  ;;  %v9185_v14 = vld [vmem:[#allocation80_spill] sm:$0xff] }
 0x38a   :  { %v3035_v16 = vmul.f32 %v5383_v39, %v3034_v52  ;;  %vm3037_vm13 = vweird.f32 %v7392_v23  ;;  %2819 = vadd.xlane.f32.xlu2 %v7467_v3  ;;  %v1689_v37 = vsel %vm1536_vm10, %v1431_v44, %v1613_v28  ;;  %v3044_v48 = vor.u32 1.1754944e-38, %v3043_v18  ;;  %v7485_v43 = vpop.f32.mrf.mxu1 }
 0x38b   :  { %v1435_v7 = vpop.f32.mrf.mxu2  ;;  %4759 = vst [vmem:[%s8989_s7 + $0x30] sm:$0xff] %v4683_v40  ;;  %2469 = vmax.xlane.f32.xlu1 %v7454_v42  ;;  %vm3039_vm0 = vmor %vm3037_vm13, %vm3038_vm12  ;;  %v2279_v41 = vadd.f32 %v7394_v25, %v9185_v14  ;;  %5388 = vpow2.f32 %v2669_v12  ;;  %v1737_v0 = vpack.c.bf16 %v1690_v47, %v1689_v37  ;;  %vm3042_vm14 = vcmp.eq.f32.partialorder %v3041_v51, 8.507059e+37 }
 0x38c   :  { %v3036_v26 = vadd.f32 %v5383_v39, %v3035_v16  ;;  %v5387_v53 = vpop.eup %5386  ;;  %4581 = vmatmul.bf16.gmra.mxu1 %v4393_v21  ;;  %v4505_v44 = vadd.f32 %v7154_v57, %v6956_v32  ;;  %v3056_v25 = vand.u32 2147483647, %v7449_v49  ;;  %v3058_v19 = vand.u32 2147483648, %v7449_v49 }
 0x38d   :  { %v2444_v46 = vpop.xlane.xlu0 %2443  ;;  %v3048_v23 = vmul.f32 %v5387_v53, %v7449_v49  ;;  %v4109_v30 = vadd.f32 %v7409_v56, %v2151_v15  ;;  %v2280_v34 = vadd.f32 %v1949_v60, %v9186_v63  ;;  %v7495_v28 = vadd.f32 %v7417_v33, %v2279_v41 }
 0x38e   :  { %v3040_v8 = vsel %vm3039_vm0, %v5383_v39, %v3036_v26  ;;  %v7479_v62 = vpop.xlane.xlu1 %2793  ;;  %1991 = vmatmul.bf16.gmra.mxu3 %v1737_v0  ;;  %2190 = vmatmul.bf16.gmra.mxu0 %v1737_v0  ;;  %v2571_v32 = vsub.f32 %v6987_v35, %v2444_v46  ;;  %vm3053_vm15 = vweird.f32 %v5387_v53  ;;  %vm3052_vm1 = vweird.f32 %v7449_v49 }
 0x38f   :  { %v7481_v2 = vpop.f32.mrf.mxu3  ;;  %v3045_v9 = vsel %vm3042_vm14, %v3044_v48, %v3040_v8  ;;  %5390 = vrcp.f32 %v7479_v62  ;;  %v3049_v5 = vsub.f32 1.0, %v3048_v23  ;;  %v1436_v60 = vadd.f32 %v7165_v17, %v1435_v7  ;;  %vm3054_vm4 = vmor %vm3052_vm1, %vm3053_vm15 }
 0x390   :  { %v3046_v39 = vmul.f32 %v6941_v1, %v3045_v9  ;;  %v4508_v1 = vadd.f32 %v7154_v57, %v6982_v11  ;;  %v2671_v15 = vmul.f32 1.442695, %v2571_v32  ;;  %vm7507_vm2 = vcmp.eq.f32.partialorder %v3056_v25, 8.507059e+37  ;;  %v9189_v9 = vld [vmem:[#allocation42_spill] sm:$0xff] }
 0x391   :  { %v2153_v4 = vpop.f32.mrf.mxu0  ;;  %v3050_v51 = vmul.f32 %v5387_v53, %v3049_v5  ;;  %v7498_v36 = vpop.eup %5388  ;;  %v3059_v16 = vor.u32 1.1754944e-38, %v3058_v19  ;;  %vm4185_vm3 = vcmp.gt.f32.partialorder %v4109_v30, 0.0  ;;  %v4262_v49 = vmul.f32 %v6623_v55, %v4109_v30 }
 0x392   :  { %v4684_v52 = vadd.f32 %v4505_v44, %v3046_v39  ;;  %v4110_v18 = vadd.f32 %v7409_v56, %v2153_v4  ;;  %2821 = vadd.xlane.f32.xlu0 %v7498_v36  ;;  %2471 = vmax.xlane.f32.xlu2 %v7495_v28  ;;  %5392 = vpow2.f32 %v2671_v15  ;;  %v7521_v48 = vadd.f32 %v7417_v33, %v2280_v34  ;;  %v7529_v8 = vpop.f32.mrf.mxu1 }
 0x393   :  { %v1437_v35 = vpop.f32.mrf.mxu2  ;;  %v3051_v20 = vadd.f32 %v5387_v53, %v3050_v51  ;;  %vm1538_vm6 = vcmp.gt.f32.partialorder %v1436_v60, 0.0  ;;  %v3071_v23 = vand.u32 2147483647, %v7479_v62  ;;  %v3073_v44 = vand.u32 2147483648, %v7479_v62 }
 0x394   :  { %4760 = vst [vmem:[%s8989_s7 + $0x38] sm:$0xff] %v4684_v52  ;;  %v4263_v54 = vmul.f32 %v6623_v55, %v4110_v18  ;;  %v1438_v12 = vadd.f32 %v7165_v17, %v1437_v35  ;;  %vm4186_vm5 = vcmp.gt.f32.partialorder %v4110_v18, 0.0  ;;  %vm3067_vm9 = vweird.f32 %v7479_v62  ;;  %v9190_v35 = vld [vmem:[#allocation5_spill] sm:$0xff] }
 0x395   :  { %v5391_v11 = vpop.eup %5390  ;;  %v7517_v21 = vpop.xlane.xlu2 %2795  ;;  %v3055_v7 = vsel %vm3054_vm4, %v5387_v53, %v3051_v20  ;;  %v1615_v53 = vmul.f32 %v6459_v38, %v1436_v60  ;;  %v2281_v20 = vadd.f32 %v7481_v2, %v9190_v35  ;;  %vm3072_vm11 = vcmp.eq.f32.partialorder %v3071_v23, 8.507059e+37  ;;  %v9192_v2 = vld [vmem:[#allocation32_spill] sm:$0xff]  ;;  %v9194_v23 = vld [vmem:[#allocation38_spill] sm:$0xff] }
 0x396   :  { %v3063_v47 = vmul.f32 %v5391_v11, %v7479_v62  ;;  %v2446_v26 = vpop.xlane.xlu1 %2445  ;;  %v3060_v14 = vsel %vm7507_vm2, %v3059_v16, %v3055_v7  ;;  %v1616_v41 = vmul.f32 %v6459_v38, %v1438_v12  ;;  %5394 = vrcp.f32 %v7517_v21  ;;  %v9191_v7 = vld [vmem:[#allocation34_spill] sm:$0xff] }
 0x397   :  { %v1954_v37 = vpop.f32.mrf.mxu3  ;;  %v3061_v0 = vmul.f32 %v6962_v13, %v3060_v14  ;;  %vm1539_vm7 = vcmp.gt.f32.partialorder %v1438_v12, 0.0  ;;  %v2572_v25 = vsub.f32 %v9189_v9, %v2446_v26  ;;  %v4339_v5 = vsel %vm4186_vm5, %v4110_v18, %v4263_v54 }
 0x398   :  { %v3064_v46 = vsub.f32 1.0, %v3063_v47  ;;  %vm3068_vm8 = vweird.f32 %v5391_v11  ;;  %v4338_v13 = vsel %vm4185_vm3, %v4109_v30, %v4262_v49  ;;  %v7536_v34 = vpop.eup %5392  ;;  %v1692_v51 = vsel %vm1539_vm7, %v1438_v12, %v1616_v41 }
 0x399   :  { %v2156_v39 = vpop.f32.mrf.mxu0  ;;  %v4685_v19 = vadd.f32 %v4508_v1, %v3061_v0  ;;  %v2673_v32 = vmul.f32 1.442695, %v2572_v25  ;;  %v4394_v4 = vpack.c.bf16 %v4339_v5, %v4338_v13  ;;  %2823 = vadd.xlane.f32.xlu1 %v7536_v34  ;;  %v1691_v18 = vsel %vm1538_vm6, %v1436_v60, %v1615_v53  ;;  %vm3069_vm10 = vmor %vm3067_vm9, %vm3068_vm8  ;;  %v9193_v53 = vld [vmem:[#allocation6_spill] sm:$0xff] }
 0x39a   :  { %v3065_v63 = vmul.f32 %v5391_v11, %v3064_v46  ;;  %2473 = vmax.xlane.f32.xlu0 %v7521_v48  ;;  %v3074_v1 = vor.u32 1.1754944e-38, %v3073_v44  ;;  %v1738_v40 = vpack.c.bf16 %v1692_v51, %v1691_v18  ;;  %v4510_v60 = vadd.f32 %v7154_v57, %v9191_v7  ;;  %v7569_v51 = vpop.f32.mrf.mxu1 }
 0x39b   :  { %v1440_v52 = vpop.f32.mrf.mxu2  ;;  %4761 = vst [vmem:[%s8989_s7 + $0x40] sm:$0xff] %v4685_v19  ;;  %5396 = vpow2.f32 %v2673_v32  ;;  %v3086_v26 = vand.u32 2147483647, %v7517_v21  ;;  %v3088_v41 = vand.u32 2147483648, %v7517_v21  ;;  %v4111_v0 = vadd.f32 %v7409_v56, %v2156_v39  ;;  %v9195_v32 = vld [vmem:[#allocation36_spill] sm:$0xff] }
 0x39c   :  { %v3066_v15 = vadd.f32 %v5391_v11, %v3065_v63  ;;  %v5395_v30 = vpop.eup %5394  ;;  %4586 = vmatmul.bf16.gmra.mxu1 %v4394_v4  ;;  %v2282_v46 = vadd.f32 %v1954_v37, %v9193_v53  ;;  %v7562_v25 = vadd.f32 %v7417_v33, %v2281_v20  ;;  %v4513_v4 = vadd.f32 %v7154_v57, %v9195_v32  ;;  %v9199_v53 = vld [vmem:[#allocation44_spill] sm:$0xff] }
 0x39d   :  { %v2448_v16 = vpop.xlane.xlu2 %2447  ;;  %v3078_v62 = vmul.f32 %v5395_v30, %v7517_v21  ;;  %vm3083_vm12 = vweird.f32 %v5395_v30  ;;  %vm3082_vm13 = vweird.f32 %v7517_v21  ;;  %v1441_v37 = vadd.f32 %v7165_v17, %v1440_v52 }
 0x39e   :  { %v3070_v49 = vsel %vm3069_vm10, %v5391_v11, %v3066_v15  ;;  %v7548_v54 = vpop.xlane.xlu0 %2797  ;;  %1996 = vmatmul.bf16.gmra.mxu3 %v1738_v40  ;;  %2195 = vmatmul.bf16.gmra.mxu0 %v1738_v40  ;;  %v2573_v44 = vsub.f32 %v9194_v23, %v2448_v16  ;;  %vm7576_vm0 = vcmp.eq.f32.partialorder %v3086_v26, 8.507059e+37  ;;  %v3089_v35 = vor.u32 1.1754944e-38, %v3088_v41  ;;  %vm3084_vm15 = vmor %vm3082_vm13, %vm3083_vm12 }
 0x39f   :  { %v7550_v12 = vpop.f32.mrf.mxu3  ;;  %v3075_v47 = vsel %vm3072_vm11, %v3074_v1, %v3070_v49  ;;  %5398 = vrcp.f32 %v7548_v54  ;;  %v3079_v11 = vsub.f32 1.0, %v3078_v62  ;;  %vm4187_vm14 = vcmp.gt.f32.partialorder %v4111_v0, 0.0 }
 0x3a0   :  { %v3076_v14 = vmul.f32 %v9192_v2, %v3075_v47  ;;  %v2675_v39 = vmul.f32 1.442695, %v2573_v44  ;;  %v4264_v21 = vmul.f32 %v6623_v55, %v4111_v0  ;;  %vm1540_vm2 = vcmp.gt.f32.partialorder %v1441_v37, 0.0 }
 0x3a1   :  { %v2158_v9 = vpop.f32.mrf.mxu0  ;;  %v3080_v19 = vmul.f32 %v5395_v30, %v3079_v11  ;;  %v7565_v13 = vpop.eup %5396  ;;  %2475 = vmax.xlane.f32.xlu1 %v7562_v25  ;;  %v3101_v11 = vand.u32 2147483647, %v7548_v54  ;;  %v3103_v41 = vand.u32 2147483648, %v7548_v54  ;;  %vm3097_vm5 = vweird.f32 %v7548_v54 }
 0x3a2   :  { %v4686_v5 = vadd.f32 %v4510_v60, %v3076_v14  ;;  %v4112_v63 = vadd.f32 %v7409_v56, %v2158_v9  ;;  %2825 = vadd.xlane.f32.xlu2 %v7565_v13  ;;  %5400 = vpow2.f32 %v2675_v39  ;;  %v7590_v60 = vadd.f32 %v7417_v33, %v2282_v46 }
 0x3a3   :  { %v1442_v15 = vpop.f32.mrf.mxu2  ;;  %v3081_v18 = vadd.f32 %v5395_v30, %v3080_v19  ;;  %v4340_v19 = vsel %vm4187_vm14, %v4111_v0, %v4264_v21  ;;  %v3104_v21 = vor.u32 1.1754944e-38, %v3103_v41  ;;  %vm3102_vm7 = vcmp.eq.f32.partialorder %v3101_v11, 8.507059e+37 }
 0x3a4   :  { %4762 = vst [vmem:[%s8989_s7 + $0x48] sm:$0xff] %v4686_v5  ;;  %v4265_v52 = vmul.f32 %v6623_v55, %v4112_v63  ;;  %v1443_v20 = vadd.f32 %v7165_v17, %v1442_v15  ;;  %vm4188_vm1 = vcmp.gt.f32.partialorder %v4112_v63, 0.0  ;;  %v9198_v17 = vld [vmem:[#allocation39_spill] sm:$0xff] }
 0x3a5   :  { %v5399_v57 = vpop.eup %5398  ;;  %v7586_v40 = vpop.xlane.xlu1 %2799  ;;  %v3085_v16 = vsel %vm3084_vm15, %v5395_v30, %v3081_v18  ;;  %v1617_v30 = vmul.f32 %v6459_v38, %v1441_v37 }
 0x3a6   :  { %v3093_v49 = vmul.f32 %v5399_v57, %v7548_v54  ;;  %v2450_v62 = vpop.xlane.xlu0 %2449  ;;  %v3090_v47 = vsel %vm7576_vm0, %v3089_v35, %v3085_v16  ;;  %v1618_v26 = vmul.f32 %v6459_v38, %v1443_v20  ;;  %5402 = vrcp.f32 %v7586_v40 }
 0x3a7   :  { %v1959_v7 = vpop.f32.mrf.mxu3  ;;  %v3091_v2 = vmul.f32 %v9198_v17, %v3090_v47  ;;  %vm1541_vm3 = vcmp.gt.f32.partialorder %v1443_v20, 0.0  ;;  %v2574_v46 = vsub.f32 %v9199_v53, %v2450_v62  ;;  %v4341_v44 = vsel %vm4188_vm1, %v4112_v63, %v4265_v52  ;;  %v9201_v52 = vld [vmem:[#allocation7_spill] sm:$0xff]  ;;  %v9202_v17 = vld [vmem:[#allocation49_spill] sm:$0xff] }
 0x3a8   :  { %v3094_v14 = vsub.f32 1.0, %v3093_v49  ;;  %vm3098_vm4 = vweird.f32 %v5399_v57  ;;  %v7603_v32 = vpop.eup %5400  ;;  %v4395_v15 = vpack.c.bf16 %v4341_v44, %v4340_v19  ;;  %v1694_v1 = vsel %vm1541_vm3, %v1443_v20, %v1618_v26  ;;  %v7625_v26 = vld [vmem:[%s8988_s6 + $0x4] ss:$0 sm:$0xff] }
 0x3a9   :  { %v2161_v23 = vpop.f32.mrf.mxu0  ;;  %v4687_v9 = vadd.f32 %v4513_v4, %v3091_v2  ;;  %9200 = vst [vmem:[#allocation69_spill] sm:$0xff] %v7603_v32  ;;  %v2677_v39 = vmul.f32 1.442695, %v2574_v46  ;;  %2827 = vadd.xlane.f32.xlu0 %v7603_v32  ;;  %v1693_v63 = vsel %vm1540_vm2, %v1441_v37, %v1617_v30  ;;  %v7612_v4 = vpop.f32.mrf.mxu1  ;;  %vm3099_vm6 = vmor %vm3097_vm5, %vm3098_vm4  ;;  %v2283_v20 = vadd.f32 %v7550_v12, %v9201_v52  ;;  %v9204_v46 = vld [vmem:[#allocation8_spill] sm:$0xff] }
 0x3aa   :  { %v3095_v5 = vmul.f32 %v5399_v57, %v3094_v14  ;;  %2477 = vmax.xlane.f32.xlu2 %v7590_v60  ;;  %v1739_v16 = vpack.c.bf16 %v1694_v1, %v1693_v63  ;;  %v4515_v12 = vadd.f32 %v7625_v26, %v9202_v17  ;;  %v3116_v30 = vand.u32 2147483647, %v7586_v40 }
 0x3ab   :  { %v1445_v18 = vpop.f32.mrf.mxu2  ;;  %4763 = vst [vmem:[%s8989_s7 + $0x50] sm:$0xff] %v4687_v9  ;;  %5404 = vpow2.f32 %v2677_v39  ;;  %v3118_v41 = vand.u32 2147483648, %v7586_v40  ;;  %v4113_v53 = vadd.f32 %v7409_v56, %v2161_v23  ;;  %v2284_v44 = vadd.f32 %v1959_v7, %v9204_v46  ;;  %v9205_v9 = vld [vmem:[#allocation55_spill] sm:$0xff]  ;;  %v7648_v7 = vld [vmem:[%s8988_s6 + $0x1] ss:$0 sm:$0xff] }
 0x3ac   :  { %v3096_v35 = vadd.f32 %v5399_v57, %v3095_v5  ;;  %v5403_v0 = vpop.eup %5402  ;;  %4591 = vmatmul.bf16.gmra.mxu1 %v4395_v15  ;;  %v7637_v39 = vadd.f32 %v7417_v33, %v2283_v20  ;;  %vm3112_vm9 = vweird.f32 %v7586_v40  ;;  %v1446_v23 = vadd.f32 %v7648_v7, %v1445_v18 }
 0x3ad   :  { %v2452_v49 = vpop.xlane.xlu1 %2451  ;;  %v3108_v62 = vmul.f32 %v5403_v0, %v7586_v40  ;;  %vm3113_vm8 = vweird.f32 %v5403_v0  ;;  %vm7654_vm10 = vcmp.eq.f32.partialorder %v3116_v30, 8.507059e+37  ;;  %vm4189_vm11 = vcmp.gt.f32.partialorder %v4113_v53, 0.0 }
 0x3ae   :  { %v3100_v54 = vsel %vm3099_vm6, %v5399_v57, %v3096_v35  ;;  %v7618_v47 = vpop.xlane.xlu2 %2801  ;;  %2001 = vmatmul.bf16.gmra.mxu3 %v1739_v16  ;;  %2200 = vmatmul.bf16.gmra.mxu0 %v1739_v16  ;;  %v9203_v57 = vld [vmem:[#allocation46_spill] sm:$0xff]  ;;  %v2575_v5 = vsub.f32 %v9205_v9, %v2452_v49  ;;  %vm3114_vm12 = vmor %vm3112_vm9, %vm3113_vm8  ;;  %v4266_v18 = vmul.f32 %v6623_v55, %v4113_v53  ;;  %vm1542_vm0 = vcmp.gt.f32.partialorder %v1446_v23, 0.0 }
 0x3af   :  { %v7620_v37 = vpop.f32.mrf.mxu3  ;;  %v3105_v2 = vsel %vm3102_vm7, %v3104_v21, %v3100_v54  ;;  %5406 = vrcp.f32 %v7618_v47  ;;  %v3109_v11 = vsub.f32 1.0, %v3108_v62  ;;  %v9207_v21 = vld [vmem:[#allocation52_spill] sm:$0xff]  ;;  %v3119_v62 = vor.u32 1.1754944e-38, %v3118_v41 }
 0x3b0   :  { %v3106_v14 = vmul.f32 %v9203_v57, %v3105_v2  ;;  %v4518_v52 = vadd.f32 %v7625_v26, %v9207_v21  ;;  %v2679_v20 = vmul.f32 1.442695, %v2575_v5  ;;  %v7668_v41 = vadd.f32 %v7417_v33, %v2284_v44 }
 0x3b1   :  { %v2163_v19 = vpop.f32.mrf.mxu0  ;;  %v3110_v1 = vmul.f32 %v5403_v0, %v3109_v11  ;;  %v7640_v63 = vpop.eup %5404  ;;  %2479 = vmax.xlane.f32.xlu0 %v7637_v39  ;;  %v3131_v21 = vand.u32 2147483647, %v7618_v47  ;;  %v3133_v44 = vand.u32 2147483648, %v7618_v47  ;;  %vm3127_vm1 = vweird.f32 %v7618_v47 }
 0x3b2   :  { %v4688_v15 = vadd.f32 %v4515_v12, %v3106_v14  ;;  %v4114_v35 = vadd.f32 %v7409_v56, %v2163_v19  ;;  %9206 = vst [vmem:[#allocation71_spill] sm:$0xff] %v7640_v63  ;;  %2829 = vadd.xlane.f32.xlu1 %v7640_v63  ;;  %5408 = vpow2.f32 %v2679_v20  ;;  %v7674_v5 = vpop.f32.mrf.mxu1  ;;  %v9212_v19 = vld [vmem:[#allocation41_spill] sm:$0xff]  ;;  %v9213_v20 = vld [vmem:[#allocation59_spill] sm:$0xff]  ;;  %v4342_v63 = vsel %vm4189_vm11, %v4113_v53, %v4266_v18 }
 0x3b3   :  { %v1447_v16 = vpop.f32.mrf.mxu2  ;;  %v3111_v49 = vadd.f32 %v5403_v0, %v3110_v1  ;;  %9210 = vst [vmem:[#allocation73_spill] sm:$0xff] %v7668_v41  ;;  %v3134_v18 = vor.u32 1.1754944e-38, %v3133_v44  ;;  %vm3132_vm3 = vcmp.eq.f32.partialorder %v3131_v21, 8.507059e+37  ;;  %v9218_v21 = vld [vmem:[#allocation47_spill] sm:$0xff] }
 0x3b4   :  { %4764 = vst [vmem:[%s8989_s7 + $0x58] sm:$0xff] %v4688_v15  ;;  %v4267_v17 = vmul.f32 %v6623_v55, %v4114_v35  ;;  %v1448_v12 = vadd.f32 %v7648_v7, %v1447_v16  ;;  %vm4190_vm13 = vcmp.gt.f32.partialorder %v4114_v35, 0.0  ;;  %v1619_v15 = vmul.f32 %v6459_v38, %v1446_v23 }
 0x3b5   :  { %v5407_v40 = vpop.eup %5406  ;;  %v7664_v2 = vpop.xlane.xlu0 %2803  ;;  %v3115_v30 = vsel %vm3114_vm12, %v5403_v0, %v3111_v49  ;;  %9211 = vst [vmem:[#allocation75_spill] sm:$0xff] %v7674_v5 }
 0x3b6   :  { %v3123_v57 = vmul.f32 %v5407_v40, %v7618_v47  ;;  %v2454_v14 = vpop.xlane.xlu2 %2453  ;;  %v3120_v46 = vsel %vm7654_vm10, %v3119_v62, %v3115_v30  ;;  %v1620_v9 = vmul.f32 %v6459_v38, %v1448_v12  ;;  %5410 = vrcp.f32 %v7664_v2  ;;  %v9216_v47 = vld [vmem:[#allocation50_spill] sm:$0xff] }
 0x3b7   :  { %v1964_v11 = vpop.f32.mrf.mxu3  ;;  %v3121_v0 = vmul.f32 %v9212_v19, %v3120_v46  ;;  %vm1543_vm14 = vcmp.gt.f32.partialorder %v1448_v12, 0.0  ;;  %v2576_v16 = vsub.f32 %v9213_v20, %v2454_v14  ;;  %v4343_v54 = vsel %vm4190_vm13, %v4114_v35, %v4267_v17  ;;  %v9215_v20 = vld [vmem:[#allocation9_spill] sm:$0xff] }
 0x3b8   :  { %v3124_v1 = vsub.f32 1.0, %v3123_v57  ;;  %vm3128_vm15 = vweird.f32 %v5407_v40  ;;  %v7683_v32 = vpop.eup %5408  ;;  %v4396_v46 = vpack.c.bf16 %v4343_v54, %v4342_v63  ;;  %v1696_v5 = vsel %vm1543_vm14, %v1448_v12, %v1620_v9 }
 0x3b9   :  { %v2166_v49 = vpop.f32.mrf.mxu0  ;;  %v4689_v62 = vadd.f32 %v4518_v52, %v3121_v0  ;;  %9214 = vst [vmem:[#allocation66_spill] sm:$0xff] %v7683_v32  ;;  %v2681_v57 = vmul.f32 1.442695, %v2576_v16  ;;  %v2285_v35 = vadd.f32 %v7620_v37, %v9215_v20  ;;  %2831 = vadd.xlane.f32.xlu2 %v7683_v32  ;;  %v1695_v53 = vsel %vm1542_vm0, %v1446_v23, %v1619_v15  ;;  %vm3129_vm2 = vmor %vm3127_vm1, %vm3128_vm15 }
 0x3ba   :  { %v3125_v30 = vmul.f32 %v5407_v40, %v3124_v1  ;;  %2481 = vmax.xlane.f32.xlu1 %v7668_v41  ;;  %v4520_v63 = vadd.f32 %v7625_v26, %v9216_v47  ;;  %v1740_v17 = vpack.c.bf16 %v1696_v5, %v1695_v53  ;;  %v3146_v0 = vand.u32 2147483647, %v7664_v2  ;;  %v9217_v5 = vld [vmem:[#allocation53_spill] sm:$0xff]  ;;  %v7716_v47 = vpop.f32.mrf.mxu1 }
 0x3bb   :  { %v1450_v19 = vpop.f32.mrf.mxu2  ;;  %4765 = vst [vmem:[%s8989_s7 + $0x60] sm:$0xff] %v4689_v62  ;;  %5412 = vpow2.f32 %v2681_v57  ;;  %v3148_v16 = vand.u32 2147483648, %v7664_v2  ;;  %v4115_v54 = vadd.f32 %v7409_v56, %v2166_v49  ;;  %vm3142_vm4 = vweird.f32 %v7664_v2  ;;  %v9220_v57 = vld [vmem:[#allocation10_spill] sm:$0xff]  ;;  %v9221_v49 = vld [vmem:[#allocation56_spill] sm:$0xff] }
 0x3bc   :  { %v3126_v14 = vadd.f32 %v5407_v40, %v3125_v30  ;;  %v5411_v52 = vpop.eup %5410  ;;  %4596 = vmatmul.bf16.gmra.mxu1 %v4396_v46  ;;  %v7710_v30 = vadd.f32 %v7417_v33, %v2285_v35  ;;  %v2286_v46 = vadd.f32 %v1964_v11, %v9220_v57  ;;  %9222 = vst [vmem:[#allocation79_spill] sm:$0xff] %v7716_v47  ;;  %vm7721_vm6 = vcmp.eq.f32.partialorder %v3146_v0, 8.507059e+37 }
 0x3bd   :  { %v2456_v12 = vpop.xlane.xlu0 %2455  ;;  %v3138_v37 = vmul.f32 %v5411_v52, %v7664_v2  ;;  %vm3143_vm5 = vweird.f32 %v5411_v52  ;;  %v4268_v11 = vmul.f32 %v6623_v55, %v4115_v54  ;;  %vm4191_vm7 = vcmp.gt.f32.partialorder %v4115_v54, 0.0 }
 0x3be   :  { %v3130_v9 = vsel %vm3129_vm2, %v5407_v40, %v3126_v14  ;;  %v7699_v1 = vpop.xlane.xlu1 %2805  ;;  %2006 = vmatmul.bf16.gmra.mxu3 %v1740_v17  ;;  %2205 = vmatmul.bf16.gmra.mxu0 %v1740_v17  ;;  %v4523_v40 = vadd.f32 %v7625_v26, %v9217_v5  ;;  %9219 = vst [vmem:[#allocation77_spill] sm:$0xff] %v7710_v30  ;;  %vm3144_vm9 = vmor %vm3142_vm4, %vm3143_vm5 }
 0x3bf   :  { %v7701_v23 = vpop.f32.mrf.mxu3  ;;  %v3135_v15 = vsel %vm3132_vm3, %v3134_v18, %v3130_v9  ;;  %5414 = vrcp.f32 %v7699_v1  ;;  %v3139_v62 = vsub.f32 1.0, %v3138_v37  ;;  %v1451_v14 = vadd.f32 %v7648_v7, %v1450_v19 }
 0x3c0   :  { %v3136_v44 = vmul.f32 %v9218_v21, %v3135_v15  ;;  %v2577_v20 = vsub.f32 %v9221_v49, %v2456_v12  ;;  %v3149_v15 = vor.u32 1.1754944e-38, %v3148_v16  ;;  %v7737_v21 = vadd.f32 %v7417_v33, %v2286_v46 }
 0x3c1   :  { %v2168_v53 = vpop.f32.mrf.mxu0  ;;  %v3140_v17 = vmul.f32 %v5411_v52, %v3139_v62  ;;  %v7719_v37 = vpop.eup %5412  ;;  %2483 = vmax.xlane.f32.xlu2 %v7710_v30  ;;  %vm1544_vm10 = vcmp.gt.f32.partialorder %v1451_v14, 0.0  ;;  %v1621_v62 = vmul.f32 %v6459_v38, %v1451_v14  ;;  %v3163_v32 = vand.u32 2147483648, %v7699_v1 }
 0x3c2   :  { %v4690_v18 = vadd.f32 %v4520_v63, %v3136_v44  ;;  %v4116_v9 = vadd.f32 %v7409_v56, %v2168_v53  ;;  %9223 = vst [vmem:[#allocation68_spill] sm:$0xff] %v7719_v37  ;;  %v2683_v19 = vmul.f32 1.442695, %v2577_v20  ;;  %2833 = vadd.xlane.f32.xlu0 %v7719_v37  ;;  %vm3157_vm13 = vweird.f32 %v7699_v1 }
 0x3c3   :  { %v1452_v5 = vpop.f32.mrf.mxu2  ;;  %v3141_v63 = vadd.f32 %v5411_v52, %v3140_v17  ;;  %v9226_v17 = vld [vmem:[#allocation58_spill] sm:$0xff] }
 0x3c4   :  { %4766 = vst [vmem:[%s8989_s7 + $0x68] sm:$0xff] %v4690_v18  ;;  %vm4192_vm8 = vcmp.gt.f32.partialorder %v4116_v9, 0.0  ;;  %v4269_v12 = vmul.f32 %v6623_v55, %v4116_v9  ;;  %5416 = vpow2.f32 %v2683_v19  ;;  %v1453_v16 = vadd.f32 %v7648_v7, %v1452_v5  ;;  %v9227_v5 = vld [vmem:[#allocation57_spill] sm:$0xff] }
 0x3c5   :  { %v5415_v0 = vpop.eup %5414  ;;  %v3145_v44 = vsel %vm3144_vm9, %v5411_v52, %v3141_v63  ;;  %v3161_v52 = vand.u32 2147483647, %v7699_v1  ;;  %v4344_v63 = vsel %vm4191_vm7, %v4115_v54, %v4268_v11 }
 0x3c6   :  { %v3153_v57 = vmul.f32 %v5415_v0, %v7699_v1  ;;  %v2458_v49 = vpop.xlane.xlu1 %2457  ;;  %v4345_v53 = vsel %vm4192_vm8, %v4116_v9, %v4269_v12  ;;  %v3150_v18 = vsel %vm7721_vm6, %v3149_v15, %v3145_v44  ;;  %vm1545_vm11 = vcmp.gt.f32.partialorder %v1453_v16, 0.0  ;;  %v9230_v1 = vld [vmem:[#allocation12_spill] sm:$0xff] }
 0x3c7   :  { %v1969_v20 = vpop.f32.mrf.mxu3  ;;  %v1622_v2 = vmul.f32 %v6459_v38, %v1453_v16  ;;  %v2578_v19 = vsub.f32 %v9226_v17, %v2458_v49  ;;  %v3151_v37 = vmul.f32 %v9227_v5, %v3150_v18  ;;  %v4397_v9 = vpack.c.bf16 %v4345_v53, %v4344_v63  ;;  %v7752_v18 = vpop.f32.mrf.mxu1 }
 0x3c8   :  { %v3154_v46 = vsub.f32 1.0, %v3153_v57  ;;  %vm3158_vm12 = vweird.f32 %v5415_v0  ;;  %v1697_v44 = vsel %vm1544_vm10, %v1451_v14, %v1621_v62  ;;  %v3164_v14 = vor.u32 1.1754944e-38, %v3163_v32 }
 0x3c9   :  { %v2685_v30 = vmul.f32 1.442695, %v2578_v19  ;;  %v2171_v47 = vpop.f32.mrf.mxu0  ;;  %v1698_v12 = vsel %vm1545_vm11, %v1453_v16, %v1622_v2  ;;  %v4691_v35 = vadd.f32 %v4523_v40, %v3151_v37  ;;  %vm3159_vm0 = vmor %vm3157_vm13, %vm3158_vm12  ;;  %vm3162_vm14 = vcmp.eq.f32.partialorder %v3161_v52, 8.507059e+37  ;;  %v9229_v37 = vld [vmem:[#allocation11_spill] sm:$0xff]  ;;  %v9232_v19 = vld [vmem:[#allocation61_spill] sm:$0xff] }
 0x3ca   :  { %v3155_v15 = vmul.f32 %v5415_v0, %v3154_v46  ;;  %v7750_v41 = vpop.eup %5416  ;;  %v1741_v57 = vpack.c.bf16 %v1698_v12, %v1697_v44  ;;  %2485 = vmax.xlane.f32.xlu0 %v7737_v21  ;;  %v2287_v11 = vadd.f32 %v7701_v23, %v9229_v37  ;;  %v2288_v53 = vadd.f32 %v1969_v20, %v9230_v1  ;;  %v9231_v2 = vld [vmem:[#allocation63_spill] sm:$0xff] }
 0x3cb   :  { %9228 = vst [vmem:[#allocation81_spill] sm:$0xff] %v7750_v41  ;;  %5418 = vpow2.f32 %v2685_v30  ;;  %v1455_v49 = vpop.f32.mrf.mxu2  ;;  %2835 = vadd.xlane.f32.xlu1 %v7750_v41  ;;  %v4525_v17 = vadd.f32 %v7625_v26, %v9231_v2  ;;  %v4117_v5 = vadd.f32 %v7409_v56, %v2171_v47 }
 0x3cc   :  { %4767 = vst [vmem:[%s8989_s7 + $0x70] sm:$0xff] %v4691_v35  ;;  %v3156_v54 = vadd.f32 %v5415_v0, %v3155_v15  ;;  %v7760_v40 = vpop.xlane.xlu2 %2807  ;;  %4601 = vmatmul.bf16.gmra.mxu1 %v4397_v9  ;;  %v1456_v23 = vadd.f32 %v7648_v7, %v1455_v49  ;;  %v7778_v20 = vadd.f32 %v7417_v33, %v2287_v11 }
 0x3cd   :  { %5420 = vrcp.f32 %v7760_v40  ;;  %v7781_v35 = vadd.f32 %v7417_v33, %v2288_v53  ;;  %v4270_v47 = vmul.f32 %v6623_v55, %v4117_v5  ;;  %vm4193_vm1 = vcmp.gt.f32.partialorder %v4117_v5, 0.0 }
 0x3ce   :  { %v3160_v30 = vsel %vm3159_vm0, %v5415_v0, %v3156_v54  ;;  %2011 = vmatmul.bf16.gmra.mxu3 %v1741_v57  ;;  %2210 = vmatmul.bf16.gmra.mxu0 %v1741_v57  ;;  %v3176_v57 = vand.u32 2147483647, %v7760_v40  ;;  %v1623_v37 = vmul.f32 %v6459_v38, %v1456_v23  ;;  %vm1546_vm2 = vcmp.gt.f32.partialorder %v1456_v23, 0.0 }
 0x3cf   :  { %v7765_v16 = vpop.f32.mrf.mxu3  ;;  %v3165_v62 = vsel %vm3162_vm14, %v3164_v14, %v3160_v30  ;;  %9234 = vst [vmem:[#allocation83_spill] sm:$0xff] %v7781_v35  ;;  %v7793_v30 = vpop.f32.mrf.mxu1  ;;  %vm3172_vm5 = vweird.f32 %v7760_v40 }
 0x3d0   :  { %v3166_v32 = vmul.f32 %v9232_v19, %v3165_v62  ;;  %v3178_v62 = vand.u32 2147483648, %v7760_v40  ;;  %vm3177_vm7 = vcmp.eq.f32.partialorder %v3176_v57, 8.507059e+37  ;;  %v9239_v57 = vld [vmem:[#allocation13_spill] sm:$0xff] }
 0x3d1   :  { %v7772_v46 = vpop.eup %5418  ;;  %v2173_v0 = vpop.f32.mrf.mxu0 }
 0x3d2   :  { %9233 = vst [vmem:[#allocation70_spill] sm:$0xff] %v7772_v46  ;;  %v4692_v52 = vadd.f32 %v4525_v17, %v3166_v32  ;;  %v4118_v63 = vadd.f32 %v7409_v56, %v2173_v0  ;;  %2837 = vadd.xlane.f32.xlu2 %v7772_v46 }
 0x3d3   :  { %v5421_v9 = vpop.eup %5420  ;;  %v1457_v12 = vpop.f32.mrf.mxu2  ;;  %2487 = vmax.xlane.f32.xlu1 %v7778_v20 }
 0x3d4   :  { %4768 = vst [vmem:[%s8989_s7 + $0x78] sm:$0xff] %v4692_v52  ;;  %v3168_v15 = vmul.f32 %v5421_v9, %v7760_v40  ;;  %vm4194_vm15 = vcmp.gt.f32.partialorder %v4118_v63, 0.0  ;;  %v4271_v44 = vmul.f32 %v6623_v55, %v4118_v63  ;;  %v2460_v49 = vpop.xlane.xlu2 %2459  ;;  %v1458_v54 = vadd.f32 %v7648_v7, %v1457_v12 }
 0x3d5   :  { %v2579_v14 = vsub.f32 %v7224_v6, %v2460_v49  ;;  %v2810_v2 = vpop.xlane.xlu0 %2809  ;;  %vm3173_vm4 = vweird.f32 %v5421_v9  ;;  %v4346_v6 = vsel %vm4193_vm1, %v4117_v5, %v4270_v47  ;;  %v9235_v5 = vld [vmem:[#allocation60_spill] sm:$0xff] }
 0x3d6   :  { %v3169_v11 = vsub.f32 1.0, %v3168_v15  ;;  %v4347_v1 = vsel %vm4194_vm15, %v4118_v63, %v4271_v44  ;;  %vm1547_vm3 = vcmp.gt.f32.partialorder %v1458_v54, 0.0  ;;  %v1624_v53 = vmul.f32 %v6459_v38, %v1458_v54  ;;  %vm3174_vm6 = vmor %vm3172_vm5, %vm3173_vm4 }
 0x3d7   :  { %v2687_v17 = vmul.f32 1.442695, %v2579_v14  ;;  %5422 = vrcp.f32 %v2810_v2  ;;  %v7798_v32 = vpop.f32.mrf.mxu3  ;;  %v4398_v0 = vpack.c.bf16 %v4347_v1, %v4346_v6  ;;  %v1699_v63 = vsel %vm1546_vm2, %v1456_v23, %v1623_v37  ;;  %v9236_v1 = vld [vmem:[#allocation65_spill] sm:$0xff]  ;;  %v7810_v37 = vpop.f32.mrf.mxu1 }
 0x3d8   :  { %v3170_v19 = vmul.f32 %v5421_v9, %v3169_v11  ;;  %v1700_v12 = vsel %vm1547_vm3, %v1458_v54, %v1624_v53  ;;  %v3179_v15 = vor.u32 1.1754944e-38, %v3178_v62  ;;  %v4528_v47 = vadd.f32 %v7625_v26, %v9235_v5  ;;  %9238 = vst [vmem:[#allocation74_spill] sm:$0xff] %v7810_v37 }
 0x3d9   :  { %5424 = vpow2.f32 %v2687_v17  ;;  %v1742_v49 = vpack.c.bf16 %v1700_v12, %v1699_v63  ;;  %v2289_v62 = vadd.f32 %v7765_v16, %v9239_v57  ;;  %vm3187_vm9 = vweird.f32 %v2810_v2 }
 0x3da   :  { %v3171_v52 = vadd.f32 %v5421_v9, %v3170_v19  ;;  %2489 = vmax.xlane.f32.xlu2 %v7781_v35  ;;  %v2176_v11 = vpop.f32.mrf.mxu0 }
 0x3db   :  { %v1460_v44 = vpop.f32.mrf.mxu2 }
 0x3dc   :  { %v3175_v14 = vsel %vm3174_vm6, %v5421_v9, %v3171_v52  ;;  %4606 = vmatmul.bf16.gmra.mxu1 %v4398_v0  ;;  %v3193_v0 = vand.u32 2147483648, %v2810_v2  ;;  %v4119_v52 = vadd.f32 %v7409_v56, %v2176_v11  ;;  %v1461_v63 = vadd.f32 %v7648_v7, %v1460_v44  ;;  %v7837_v44 = vld [vmem:[%s8988_s6 + $0x3] ss:$0 sm:$0xff] }
 0x3dd   :  { %v3180_v46 = vsel %vm3177_vm7, %v3179_v15, %v3175_v14  ;;  %v5423_v41 = vpop.eup %5422  ;;  %v7808_v23 = vpop.xlane.xlu1 %2811  ;;  %v9240_v14 = vld [vmem:[#allocation67_spill] sm:$0xff] }
 0x3de   :  { %v3181_v17 = vmul.f32 %v9236_v1, %v3180_v46  ;;  %v3183_v19 = vmul.f32 %v5423_v41, %v2810_v2  ;;  %2016 = vmatmul.bf16.gmra.mxu3 %v1742_v49  ;;  %2215 = vmatmul.bf16.gmra.mxu0 %v1742_v49  ;;  %v2462_v54 = vpop.xlane.xlu0 %2461  ;;  %5426 = vrcp.f32 %v7808_v23  ;;  %v3191_v46 = vand.u32 2147483647, %v2810_v2 }
 0x3df   :  { %v7806_v40 = vpop.eup %5424  ;;  %v2580_v6 = vsub.f32 %v7258_v24, %v2462_v54  ;;  %vm3188_vm8 = vweird.f32 %v5423_v41  ;;  %v4530_v5 = vadd.f32 %v7625_v26, %v9240_v14  ;;  %v7828_v1 = vadd.f32 %v7417_v33, %v2289_v62  ;;  %v7853_v14 = vpop.f32.mrf.mxu1 }
 0x3e0   :  { %9237 = vst [vmem:[#allocation72_spill] sm:$0xff] %v7806_v40  ;;  %v4693_v9 = vadd.f32 %v4528_v47, %v3181_v17  ;;  %2839 = vadd.xlane.f32.xlu0 %v7806_v40  ;;  %v3184_v53 = vsub.f32 1.0, %v3183_v19  ;;  %v7822_v12 = vpop.f32.mrf.mxu3  ;;  %vm7830_vm10 = vcmp.eq.f32.partialorder %v3191_v46, 8.507059e+37  ;;  %vm3189_vm11 = vmor %vm3187_vm9, %vm3188_vm8  ;;  %v3194_v19 = vor.u32 1.1754944e-38, %v3193_v0 }
 0x3e1   :  { %v2689_v15 = vmul.f32 1.442695, %v2580_v6  ;;  %9241 = vst [vmem:[#allocation76_spill] sm:$0xff] %v7828_v1  ;;  %v4272_v54 = vmul.f32 %v6623_v55, %v4119_v52  ;;  %v1625_v33 = vmul.f32 %v6459_v38, %v1461_v63  ;;  %vm4195_vm0 = vcmp.gt.f32.partialorder %v4119_v52, 0.0 }
 0x3e2   :  { %4769 = vst [vmem:[%s8989_s7 + $0x80] sm:$0xff] %v4693_v9  ;;  %v3185_v16 = vmul.f32 %v5423_v41, %v3184_v53  ;;  %v2178_v24 = vpop.f32.mrf.mxu0  ;;  %vm1548_vm14 = vcmp.gt.f32.partialorder %v1461_v63, 0.0  ;;  %vm3202_vm1 = vweird.f32 %v7808_v23 }
 0x3e3   :  { %v1462_v49 = vpop.f32.mrf.mxu2  ;;  %5428 = vpow2.f32 %v2689_v15  ;;  %v4120_v11 = vadd.f32 %v7837_v44, %v2178_v24  ;;  %9245 = vst [vmem:[#allocation78_spill] sm:$0xff] %v7853_v14  ;;  %v3208_v24 = vand.u32 2147483648, %v7808_v23 }
 0x3e4   :  { %v1463_v47 = vadd.f32 %v7648_v7, %v1462_v49  ;;  %v3186_v17 = vadd.f32 %v5423_v41, %v3185_v16  ;;  %v5427_v2 = vpop.eup %5426  ;;  %v9244_v16 = vld [vmem:[#allocation62_spill] sm:$0xff]  ;;  %v3206_v49 = vand.u32 2147483647, %v7808_v23 }
 0x3e5   :  { %v3198_v62 = vmul.f32 %v5427_v2, %v7808_v23  ;;  %vm4196_vm12 = vcmp.gt.f32.partialorder %v4120_v11, 0.0  ;;  %v7844_v53 = vpop.xlane.xlu2 %2813  ;;  %v2464_v46 = vpop.xlane.xlu1 %2463  ;;  %v4273_v0 = vmul.f32 %v6623_v55, %v4120_v11  ;;  %vm3203_vm15 = vweird.f32 %v5427_v2 }
 0x3e6   :  { %v1626_v9 = vmul.f32 %v6459_v38, %v1463_v47  ;;  %v3190_v57 = vsel %vm3189_vm11, %v5423_v41, %v3186_v17  ;;  %vm1549_vm13 = vcmp.gt.f32.partialorder %v1463_v47, 0.0  ;;  %5430 = vrcp.f32 %v7844_v53  ;;  %vm3204_vm2 = vmor %vm3202_vm1, %vm3203_vm15 }
 0x3e7   :  { %v3195_v6 = vsel %vm7830_vm10, %v3194_v19, %v3190_v57  ;;  %v3199_v41 = vsub.f32 1.0, %v3198_v62  ;;  %v2581_v17 = vsub.f32 %v7322_v58, %v2464_v46  ;;  %v4349_v19 = vsel %vm4196_vm12, %v4120_v11, %v4273_v0  ;;  %v9247_v0 = vld [vmem:[#allocation64_spill] sm:$0xff] }
 0x3e8   :  { %2491 = vmax.xlane.f32.xlu0 %v7828_v1  ;;  %v3196_v15 = vmul.f32 %v9244_v16, %v3195_v6  ;;  %v7857_v56 = vpop.f32.mrf.mxu3  ;;  %v1702_v57 = vsel %vm1549_vm13, %v1463_v47, %v1626_v9  ;;  %v4348_v62 = vsel %vm4195_vm0, %v4119_v52, %v4272_v54  ;;  %v1701_v58 = vsel %vm1548_vm14, %v1461_v63, %v1625_v33  ;;  %v9246_v9 = vld [vmem:[#allocation14_spill] sm:$0xff] }
 0x3e9   :  { %v7861_v40 = vpop.eup %5428  ;;  %v3200_v6 = vmul.f32 %v5427_v2, %v3199_v41  ;;  %v2691_v37 = vmul.f32 1.442695, %v2581_v17  ;;  %v4399_v35 = vpack.c.bf16 %v4349_v19, %v4348_v62  ;;  %v2290_v52 = vadd.f32 %v7798_v32, %v9246_v9  ;;  %v7889_v19 = vld [vmem:[%s8988_s6 + $0x2] ss:$0 sm:$0xff] }
 0x3ea   :  { %v4694_v1 = vadd.f32 %v4530_v5, %v3196_v15  ;;  %2841 = vadd.xlane.f32.xlu1 %v7861_v40  ;;  %v1743_v5 = vpack.c.bf16 %v1702_v57, %v1701_v58  ;;  %v3209_v54 = vor.u32 1.1754944e-38, %v3208_v24  ;;  %vm3207_vm3 = vcmp.eq.f32.partialorder %v3206_v49, 8.507059e+37 }
 0x3eb   :  { %v1465_v16 = vpop.f32.mrf.mxu2  ;;  %v2181_v14 = vpop.f32.mrf.mxu0  ;;  %v3201_v47 = vadd.f32 %v5427_v2, %v3200_v6  ;;  %5432 = vpow2.f32 %v2691_v37  ;;  %v4533_v23 = vadd.f32 %v7625_v26, %v9247_v0  ;;  %v3221_v41 = vand.u32 2147483647, %v7844_v53  ;;  %v9248_v6 = vld [vmem:[#allocation15_spill] sm:$0xff] }
 0x3ec   :  { %4770 = vst [vmem:[%s8989_s7 + $0x88] sm:$0xff] %v4694_v1  ;;  %v5431_v11 = vpop.eup %5430  ;;  %4611 = vmatmul.bf16.gmra.mxu1 %v4399_v35  ;;  %v3223_v32 = vand.u32 2147483648, %v7844_v53  ;;  %v1466_v49 = vadd.f32 %v7648_v7, %v1465_v16  ;;  %v7892_v57 = vadd.f32 %v7889_v19, %v2290_v52  ;;  %vm3217_vm5 = vweird.f32 %v7844_v53 }
 0x3ed   :  { %v3205_v46 = vsel %vm3204_vm2, %v5427_v2, %v3201_v47  ;;  %v3213_v63 = vmul.f32 %v5431_v11, %v7844_v53  ;;  %v2466_v1 = vpop.xlane.xlu2 %2465  ;;  %v4121_v2 = vadd.f32 %v7837_v44, %v2181_v14  ;;  %v2291_v14 = vadd.f32 %v7822_v12, %v9248_v6 }
 0x3ee   :  { %2021 = vmatmul.bf16.gmra.mxu3 %v1743_v5  ;;  %2220 = vmatmul.bf16.gmra.mxu0 %v1743_v5  ;;  %v7873_v33 = vpop.xlane.xlu0 %2815  ;;  %v3210_v15 = vsel %vm3207_vm3, %v3209_v54, %v3205_v46  ;;  %v2582_v24 = vsub.f32 %v7354_v31, %v2466_v1  ;;  %vm3218_vm4 = vweird.f32 %v5431_v11  ;;  %v7898_v31 = vpop.f32.mrf.mxu1  ;;  %vm7901_vm6 = vcmp.eq.f32.partialorder %v3221_v41, 8.507059e+37 }
 0x3ef   :  { %v3211_v37 = vmul.f32 %v7278_v50, %v3210_v15  ;;  %v3214_v35 = vsub.f32 1.0, %v3213_v63  ;;  %5434 = vrcp.f32 %v7873_v33  ;;  %v3224_v54 = vor.u32 1.1754944e-38, %v3223_v32  ;;  %vm3219_vm8 = vmor %vm3217_vm5, %vm3218_vm4 }
 0x3f0   :  { %v2693_v5 = vmul.f32 1.442695, %v2582_v24  ;;  %vm4197_vm7 = vcmp.gt.f32.partialorder %v4121_v2, 0.0  ;;  %v4274_v53 = vmul.f32 %v6623_v55, %v4121_v2  ;;  %v1627_v63 = vmul.f32 %v6459_v38, %v1466_v49 }
 0x3f1   :  { %v7884_v17 = vpop.f32.mrf.mxu3  ;;  %v4695_v50 = vadd.f32 %v4533_v23, %v3211_v37  ;;  %v3215_v62 = vmul.f32 %v5431_v11, %v3214_v35  ;;  %v7896_v16 = vpop.eup %5432  ;;  %vm1550_vm11 = vcmp.gt.f32.partialorder %v1466_v49, 0.0  ;;  %v4535_v24 = vadd.f32 %v7625_v26, %v7318_v45 }
 0x3f2   :  { %9249 = vst [vmem:[#allocation80_spill] sm:$0xff] %v7896_v16  ;;  %2493 = vmax.xlane.f32.xlu1 %v7892_v57  ;;  %2843 = vadd.xlane.f32.xlu2 %v7896_v16  ;;  %5436 = vpow2.f32 %v2693_v5  ;;  %v7928_v6 = vadd.f32 %v7889_v19, %v2291_v14  ;;  %v4350_v45 = vsel %vm4197_vm7, %v4121_v2, %v4274_v53  ;;  %vm3232_vm13 = vweird.f32 %v7873_v33 }
 0x3f3   :  { %v1467_v58 = vpop.f32.mrf.mxu2  ;;  %v2183_v9 = vpop.f32.mrf.mxu0  ;;  %4771 = vst [vmem:[%s8989_s7 + $0x90] sm:$0xff] %v4695_v50  ;;  %v3216_v12 = vadd.f32 %v5431_v11, %v3215_v62  ;;  %v3236_v50 = vand.u32 2147483647, %v7873_v33 }
 0x3f4   :  { %v1468_v52 = vadd.f32 %v7648_v7, %v1467_v58  ;;  %v4122_v46 = vadd.f32 %v7837_v44, %v2183_v9 }
 0x3f5   :  { %v5435_v0 = vpop.eup %5434  ;;  %v3220_v23 = vsel %vm3219_vm8, %v5431_v11, %v3216_v12  ;;  %vm3237_vm14 = vcmp.eq.f32.partialorder %v3236_v50, 8.507059e+37 }
 0x3f6   :  { %v1628_v1 = vmul.f32 %v6459_v38, %v1468_v52  ;;  %vm4198_vm9 = vcmp.gt.f32.partialorder %v4122_v46, 0.0  ;;  %v4275_v15 = vmul.f32 %v6623_v55, %v4122_v46  ;;  %vm1551_vm10 = vcmp.gt.f32.partialorder %v1468_v52, 0.0  ;;  %v7917_v41 = vpop.xlane.xlu1 %2817  ;;  %v2468_v32 = vpop.xlane.xlu0 %2467 }
 0x3f7   :  { %v3225_v37 = vsel %vm7901_vm6, %v3224_v54, %v3220_v23  ;;  %v3228_v35 = vmul.f32 %v5435_v0, %v7873_v33  ;;  %5438 = vrcp.f32 %v7917_v41  ;;  %v2583_v58 = vsub.f32 %v7420_v27, %v2468_v32  ;;  %v9253_v32 = vld [vmem:[#allocation17_spill] sm:$0xff] }
 0x3f8   :  { %v3226_v11 = vmul.f32 %v7327_v29, %v3225_v37  ;;  %v4351_v5 = vsel %vm4198_vm9, %v4122_v46, %v4275_v15  ;;  %v1704_v9 = vsel %vm1551_vm10, %v1468_v52, %v1628_v1  ;;  %v3238_v54 = vand.u32 2147483648, %v7873_v33  ;;  %v7937_v37 = vpop.eup %5436  ;;  %v7946_v46 = vpop.f32.mrf.mxu1 }
 0x3f9   :  { %v3229_v62 = vsub.f32 1.0, %v3228_v35  ;;  %v7931_v47 = vpop.f32.mrf.mxu3  ;;  %v1703_v29 = vsel %vm1550_vm11, %v1466_v49, %v1627_v63  ;;  %vm3233_vm12 = vweird.f32 %v5435_v0  ;;  %v2695_v35 = vmul.f32 1.442695, %v2583_v58  ;;  %2845 = vadd.xlane.f32.xlu0 %v7937_v37  ;;  %v9252_v63 = vld [vmem:[#allocation16_spill] sm:$0xff] }
 0x3fa   :  { %v4696_v12 = vadd.f32 %v4535_v24, %v3226_v11  ;;  %v4400_v27 = vpack.c.bf16 %v4351_v5, %v4350_v45  ;;  %2495 = vmax.xlane.f32.xlu2 %v7928_v6  ;;  %v1744_v52 = vpack.c.bf16 %v1704_v9, %v1703_v29  ;;  %v4538_v49 = vadd.f32 %v7625_v26, %v7369_v22  ;;  %vm3234_vm0 = vmor %vm3232_vm13, %vm3233_vm12 }
 0x3fb   :  { %v1470_v23 = vpop.f32.mrf.mxu2  ;;  %v3230_v14 = vmul.f32 %v5435_v0, %v3229_v62  ;;  %v2186_v16 = vpop.f32.mrf.mxu0  ;;  %5440 = vpow2.f32 %v2695_v35  ;;  %v2292_v1 = vadd.f32 %v7857_v56, %v9252_v63  ;;  %v3239_v15 = vor.u32 1.1754944e-38, %v3238_v54 }
 0x3fc   :  { %4772 = vst [vmem:[%s8989_s7 + $0x98] sm:$0xff] %v4696_v12  ;;  %4616 = vmatmul.bf16.gmra.mxu1 %v4400_v27  ;;  %v2293_v24 = vadd.f32 %v7884_v17, %v9253_v32  ;;  %v4540_v33 = vadd.f32 %v7625_v26, %v7445_v10  ;;  %v3251_v9 = vand.u32 2147483647, %v7917_v41  ;;  %v3253_v17 = vand.u32 2147483648, %v7917_v41 }
 0x3fd   :  { %v5439_v2 = vpop.eup %5438  ;;  %v3231_v53 = vadd.f32 %v5435_v0, %v3230_v14  ;;  %v7955_v22 = vpop.xlane.xlu2 %2819  ;;  %v4123_v54 = vadd.f32 %v7837_v44, %v2186_v16  ;;  %v1471_v45 = vadd.f32 %v7648_v7, %v1470_v23  ;;  %vm3247_vm1 = vweird.f32 %v7917_v41 }
 0x3fe   :  { %v3243_v11 = vmul.f32 %v5439_v2, %v7917_v41  ;;  %2026 = vmatmul.bf16.gmra.mxu3 %v1744_v52  ;;  %2225 = vmatmul.bf16.gmra.mxu0 %v1744_v52  ;;  %v2470_v62 = vpop.xlane.xlu1 %2469  ;;  %5442 = vrcp.f32 %v7955_v22  ;;  %vm3248_vm15 = vweird.f32 %v5439_v2  ;;  %v7972_v35 = vadd.f32 %v7889_v19, %v2293_v24 }
 0x3ff   :  { %v3235_v58 = vsel %vm3234_vm0, %v5435_v0, %v3231_v53  ;;  %v2584_v29 = vsub.f32 %v7454_v42, %v2470_v62  ;;  %v7969_v0 = vadd.f32 %v7889_v19, %v2292_v1  ;;  %vm7978_vm2 = vcmp.eq.f32.partialorder %v3251_v9, 8.507059e+37  ;;  %vm3249_vm3 = vmor %vm3247_vm1, %vm3248_vm15 }
 0x400   :  { %v3240_v56 = vsel %vm3237_vm14, %v3239_v15, %v3235_v58  ;;  %v3244_v5 = vsub.f32 1.0, %v3243_v11  ;;  %v3254_v63 = vor.u32 1.1754944e-38, %v3253_v17  ;;  %vm4199_vm4 = vcmp.gt.f32.partialorder %v4123_v54, 0.0  ;;  %v7994_v58 = vpop.f32.mrf.mxu1 }
 0x401   :  { %v3241_v12 = vmul.f32 %v7367_v61, %v3240_v56  ;;  %v7966_v14 = vpop.f32.mrf.mxu3  ;;  %v7974_v27 = vpop.eup %5440  ;;  %v2697_v16 = vmul.f32 1.442695, %v2584_v29  ;;  %2497 = vmax.xlane.f32.xlu0 %v7969_v0  ;;  %v4276_v41 = vmul.f32 %v6623_v55, %v4123_v54  ;;  %vm1552_vm5 = vcmp.gt.f32.partialorder %v1471_v45, 0.0 }
 0x402   :  { %v3245_v10 = vmul.f32 %v5439_v2, %v3244_v5  ;;  %2847 = vadd.xlane.f32.xlu1 %v7974_v27  ;;  %v1629_v9 = vmul.f32 %v6459_v38, %v1471_v45  ;;  %v3268_v29 = vand.u32 2147483648, %v7955_v22  ;;  %vm3262_vm9 = vweird.f32 %v7955_v22 }
 0x403   :  { %v1472_v50 = vpop.f32.mrf.mxu2  ;;  %v4697_v61 = vadd.f32 %v4538_v49, %v3241_v12  ;;  %v2188_v23 = vpop.f32.mrf.mxu0  ;;  %5444 = vpow2.f32 %v2697_v16  ;;  %v3266_v12 = vand.u32 2147483647, %v7955_v22 }
 0x404   :  { %v1473_v42 = vadd.f32 %v7648_v7, %v1472_v50  ;;  %v3246_v52 = vadd.f32 %v5439_v2, %v3245_v10  ;;  %v4124_v1 = vadd.f32 %v7837_v44, %v2188_v23  ;;  %v5443_v15 = vpop.eup %5442 }
 0x405   :  { %4773 = vst [vmem:[%s8989_s7 + $0xa0] sm:$0xff] %v4697_v61  ;;  %v3258_v32 = vmul.f32 %v5443_v15, %v7955_v22  ;;  %v7992_v11 = vpop.xlane.xlu0 %2821  ;;  %v2472_v62 = vpop.xlane.xlu2 %2471  ;;  %v4352_v61 = vsel %vm4199_vm4, %v4123_v54, %v4276_v41  ;;  %vm3263_vm8 = vweird.f32 %v5443_v15  ;;  %v3269_v41 = vor.u32 1.1754944e-38, %v3268_v29 }
 0x406   :  { %v3250_v49 = vsel %vm3249_vm3, %v5439_v2, %v3246_v52  ;;  %vm4200_vm6 = vcmp.gt.f32.partialorder %v4124_v1, 0.0  ;;  %v1630_v24 = vmul.f32 %v6459_v38, %v1473_v42  ;;  %v4277_v5 = vmul.f32 %v6623_v55, %v4124_v1  ;;  %vm3264_vm10 = vmor %vm3262_vm9, %vm3263_vm8 }
 0x407   :  { %v3255_v56 = vsel %vm7978_vm2, %v3254_v63, %v3250_v49  ;;  %vm1553_vm7 = vcmp.gt.f32.partialorder %v1473_v42, 0.0  ;;  %5446 = vrcp.f32 %v7992_v11  ;;  %v3259_v17 = vsub.f32 1.0, %v3258_v32 }
 0x408   :  { %v3256_v2 = vmul.f32 %v7426_v59, %v3255_v56  ;;  %v2585_v10 = vsub.f32 %v7495_v28, %v2472_v62  ;;  %v4353_v16 = vsel %vm4200_vm6, %v4124_v1, %v4277_v5  ;;  %v1706_v59 = vsel %vm1553_vm7, %v1473_v42, %v1630_v24  ;;  %v9256_v42 = vld [vmem:[#allocation18_spill] sm:$0xff] }
 0x409   :  { %v8005_v50 = vpop.f32.mrf.mxu3  ;;  %v3260_v52 = vmul.f32 %v5443_v15, %v3259_v17  ;;  %v8009_v63 = vpop.eup %5444  ;;  %v4401_v56 = vpack.c.bf16 %v4353_v16, %v4352_v61  ;;  %v2294_v1 = vadd.f32 %v7931_v47, %v9256_v42  ;;  %vm3267_vm11 = vcmp.eq.f32.partialorder %v3266_v12, 8.507059e+37 }
 0x40a   :  { %v4698_v23 = vadd.f32 %v4540_v33, %v3256_v2  ;;  %v2699_v49 = vmul.f32 1.442695, %v2585_v10  ;;  %2849 = vadd.xlane.f32.xlu2 %v8009_v63  ;;  %2499 = vmax.xlane.f32.xlu1 %v7972_v35  ;;  %v1705_v33 = vsel %vm1552_vm5, %v1471_v45, %v1629_v9  ;;  %v4543_v45 = vadd.f32 %v7625_v26, %v7485_v43  ;;  %v8031_v12 = vpop.f32.mrf.mxu1 }
 0x40b   :  { %v1475_v53 = vpop.f32.mrf.mxu2  ;;  %v2191_v32 = vpop.f32.mrf.mxu0  ;;  %v3261_v28 = vadd.f32 %v5443_v15, %v3260_v52  ;;  %v1745_v24 = vpack.c.bf16 %v1706_v59, %v1705_v33  ;;  %v3281_v17 = vand.u32 2147483647, %v7992_v11  ;;  %v3283_v47 = vand.u32 2147483648, %v7992_v11  ;;  %v9257_v52 = vld [vmem:[#allocation19_spill] sm:$0xff] }
 0x40c   :  { %4774 = vst [vmem:[%s8989_s7 + $0xa8] sm:$0xff] %v4698_v23  ;;  %5448 = vpow2.f32 %v2699_v49  ;;  %4621 = vmatmul.bf16.gmra.mxu1 %v4401_v56  ;;  %v8022_v5 = vpop.xlane.xlu1 %2823  ;;  %v1476_v61 = vadd.f32 %v7648_v7, %v1475_v53  ;;  %v8038_v16 = vadd.f32 %v7889_v19, %v2294_v1  ;;  %vm3277_vm13 = vweird.f32 %v7992_v11 }
 0x40d   :  { %v5447_v54 = vpop.eup %5446  ;;  %v3265_v62 = vsel %vm3264_vm10, %v5443_v15, %v3261_v28  ;;  %v2474_v2 = vpop.xlane.xlu0 %2473  ;;  %v4125_v15 = vadd.f32 %v7837_v44, %v2191_v32  ;;  %5450 = vrcp.f32 %v8022_v5  ;;  %vm8045_vm0 = vcmp.eq.f32.partialorder %v3281_v17, 8.507059e+37 }
 0x40e   :  { %v3273_v22 = vmul.f32 %v5447_v54, %v7992_v11  ;;  %v3270_v9 = vsel %vm3267_vm11, %v3269_v41, %v3265_v62  ;;  %2031 = vmatmul.bf16.gmra.mxu3 %v1745_v24  ;;  %2230 = vmatmul.bf16.gmra.mxu0 %v1745_v24  ;;  %v2586_v43 = vsub.f32 %v7521_v48, %v2474_v2  ;;  %vm3278_vm12 = vweird.f32 %v5447_v54 }
 0x40f   :  { %v3271_v29 = vmul.f32 %v7467_v3, %v3270_v9  ;;  %v2295_v3 = vadd.f32 %v7966_v14, %v9257_v52  ;;  %v3284_v33 = vor.u32 1.1754944e-38, %v3283_v47  ;;  %vm4201_vm14 = vcmp.gt.f32.partialorder %v4125_v15, 0.0  ;;  %vm3279_vm15 = vmor %vm3277_vm13, %vm3278_vm12 }
 0x410   :  { %v3274_v10 = vsub.f32 1.0, %v3273_v22  ;;  %v2701_v48 = vmul.f32 1.442695, %v2586_v43  ;;  %v4278_v11 = vmul.f32 %v6623_v55, %v4125_v15  ;;  %v1631_v1 = vmul.f32 %v6459_v38, %v1476_v61 }
 0x411   :  { %v8035_v26 = vpop.f32.mrf.mxu3  ;;  %v4699_v23 = vadd.f32 %v4543_v45, %v3271_v29  ;;  %vm1554_vm3 = vcmp.gt.f32.partialorder %v1476_v61, 0.0  ;;  %v3296_v47 = vand.u32 2147483647, %v8022_v5  ;;  %v8077_v29 = vadd.f32 %v7889_v19, %v2295_v3 }
 0x412   :  { %v3275_v59 = vmul.f32 %v5447_v54, %v3274_v10  ;;  %v8042_v32 = vpop.eup %5448  ;;  %2501 = vmax.xlane.f32.xlu2 %v8038_v16  ;;  %5452 = vpow2.f32 %v2701_v48  ;;  %v3298_v53 = vand.u32 2147483648, %v8022_v5  ;;  %v8089_v3 = vpop.f32.mrf.mxu1  ;;  %vm3292_vm5 = vweird.f32 %v8022_v5 }
 0x413   :  { %v1477_v49 = vpop.f32.mrf.mxu2  ;;  %v2193_v56 = vpop.f32.mrf.mxu0  ;;  %4775 = vst [vmem:[%s8989_s7 + $0xb0] sm:$0xff] %v4699_v23  ;;  %2851 = vadd.xlane.f32.xlu0 %v8042_v32  ;;  %vm3297_vm7 = vcmp.eq.f32.partialorder %v3296_v47, 8.507059e+37 }
 0x414   :  { %v1478_v28 = vadd.f32 %v7648_v7, %v1477_v49  ;;  %v3276_v14 = vadd.f32 %v5447_v54, %v3275_v59  ;;  %v4126_v42 = vadd.f32 %v7837_v44, %v2193_v56  ;;  %v5451_v41 = vpop.eup %5450  ;;  %v2476_v2 = vpop.xlane.xlu1 %2475 }
 0x415   :  { %v8061_v22 = vpop.xlane.xlu2 %2825  ;;  %v3288_v9 = vmul.f32 %v5451_v41, %v8022_v5  ;;  %v2587_v43 = vsub.f32 %v7562_v25, %v2476_v2  ;;  %vm3293_vm4 = vweird.f32 %v5451_v41 }
 0x416   :  { %v1632_v7 = vmul.f32 %v6459_v38, %v1478_v28  ;;  %v3280_v24 = vsel %vm3279_vm15, %v5447_v54, %v3276_v14  ;;  %vm4202_vm1 = vcmp.gt.f32.partialorder %v4126_v42, 0.0  ;;  %v4279_v62 = vmul.f32 %v6623_v55, %v4126_v42  ;;  %v8070_v38 = vld [vmem:[%s8988_s6 + $0x4] ss:$0 sm:$0xff]  ;;  %vm3294_vm6 = vmor %vm3292_vm5, %vm3293_vm4 }
 0x417   :  { %vm1555_vm2 = vcmp.gt.f32.partialorder %v1478_v28, 0.0  ;;  %v3285_v45 = vsel %vm8045_vm0, %v3284_v33, %v3280_v24  ;;  %5454 = vrcp.f32 %v8061_v22  ;;  %v4545_v54 = vadd.f32 %v8070_v38, %v7529_v8 }
 0x418   :  { %v3286_v17 = vmul.f32 %v7498_v36, %v3285_v45  ;;  %v3289_v10 = vsub.f32 1.0, %v3288_v9  ;;  %v4355_v52 = vsel %vm4202_vm1, %v4126_v42, %v4279_v62  ;;  %v1708_v59 = vsel %vm1555_vm2, %v1478_v28, %v1632_v7  ;;  %v8087_v48 = vpop.eup %5452 }
 0x419   :  { %v8080_v23 = vpop.f32.mrf.mxu3  ;;  %v4354_v8 = vsel %vm4201_vm14, %v4125_v15, %v4278_v11  ;;  %v1707_v36 = vsel %vm1554_vm3, %v1476_v61, %v1631_v1  ;;  %v2703_v25 = vmul.f32 1.442695, %v2587_v43  ;;  %2853 = vadd.xlane.f32.xlu1 %v8087_v48  ;;  %v9260_v61 = vld [vmem:[#allocation20_spill] sm:$0xff]  ;;  %v3299_v1 = vor.u32 1.1754944e-38, %v3298_v53 }
 0x41a   :  { %v4700_v49 = vadd.f32 %v4545_v54, %v3286_v17  ;;  %v3290_v56 = vmul.f32 %v5451_v41, %v3289_v10  ;;  %v4402_v33 = vpack.c.bf16 %v4355_v52, %v4354_v8  ;;  %v1746_v15 = vpack.c.bf16 %v1708_v59, %v1707_v36 }
 0x41b   :  { %v2196_v14 = vpop.f32.mrf.mxu0  ;;  %2503 = vmax.xlane.f32.xlu0 %v8077_v29  ;;  %v2296_v42 = vadd.f32 %v8005_v50, %v9260_v61  ;;  %5456 = vpow2.f32 %v2703_v25  ;;  %v4548_v50 = vadd.f32 %v8070_v38, %v7569_v51  ;;  %v3311_v17 = vand.u32 2147483647, %v8061_v22  ;;  %v8123_v25 = vpop.f32.mrf.mxu1 }
 0x41c   :  { %4776 = vst [vmem:[%s8989_s7 + $0xb8] sm:$0xff] %v4700_v49  ;;  %v3291_v11 = vadd.f32 %v5451_v41, %v3290_v56  ;;  %4626 = vmatmul.bf16.gmra.mxu1 %v4402_v33  ;;  %2235 = vmatmul.bf16.vlgmr.msra.gmra.mxu2 %v1746_v15  ;;  %v8100_v24 = vpop.xlane.xlu0 %2827  ;;  %v3313_v10 = vand.u32 2147483648, %v8061_v22  ;;  %v4127_v52 = vadd.f32 %v7837_v44, %v2196_v14  ;;  %vm3307_vm9 = vweird.f32 %v8061_v22 }
 0x41d   :  { %v5455_v28 = vpop.eup %5454  ;;  %v2478_v62 = vpop.xlane.xlu2 %2477  ;;  %5458 = vrcp.f32 %v8100_v24  ;;  %vm3312_vm11 = vcmp.eq.f32.partialorder %v3311_v17, 8.507059e+37  ;;  %vm3322_vm14 = vweird.f32 %v8100_v24 }
 0x41e   :  { %v3303_v7 = vmul.f32 %v5455_v28, %v8061_v22  ;;  %v3295_v2 = vsel %vm3294_vm6, %v5451_v41, %v3291_v11  ;;  %2036 = vmatmul.bf16.gmra.mxu3 %v1746_v15  ;;  %v2588_v9 = vsub.f32 %v7590_v60, %v2478_v62  ;;  %v8112_v41 = vadd.f32 %v7889_v19, %v2296_v42  ;;  %v9261_v60 = vld [vmem:[#allocation21_spill] sm:$0xff] }
 0x41f   :  { %v3300_v45 = vsel %vm3297_vm7, %v3299_v1, %v3295_v2  ;;  %vm3308_vm8 = vweird.f32 %v5455_v28  ;;  %v4280_v22 = vmul.f32 %v6623_v55, %v4127_v52  ;;  %vm4203_vm13 = vcmp.gt.f32.partialorder %v4127_v52, 0.0 }
 0x420   :  { %v3304_v5 = vsub.f32 1.0, %v3303_v7  ;;  %v3301_v54 = vmul.f32 %v7536_v34, %v3300_v45  ;;  %v2705_v51 = vmul.f32 1.442695, %v2588_v9  ;;  %v2297_v34 = vadd.f32 %v8035_v26, %v9261_v60  ;;  %vm3309_vm10 = vmor %vm3307_vm9, %vm3308_vm8  ;;  %v9262_v60 = vld [vmem:[#allocation22_spill] sm:$0xff] }
 0x421   :  { %v8109_v43 = vpop.f32.mrf.mxu3  ;;  %v8115_v59 = vpop.eup %5456  ;;  %2505 = vmax.xlane.f32.xlu1 %v8112_v41  ;;  %v3314_v26 = vor.u32 1.1754944e-38, %v3313_v10  ;;  %v4550_v1 = vadd.f32 %v8070_v38, %v7612_v4  ;;  %v3326_v2 = vand.u32 2147483647, %v8100_v24 }
 0x422   :  { %v3305_v47 = vmul.f32 %v5455_v28, %v3304_v5  ;;  %v4701_v49 = vadd.f32 %v4548_v50, %v3301_v54  ;;  %5460 = vpow2.f32 %v2705_v51  ;;  %2855 = vadd.xlane.f32.xlu2 %v8115_v59  ;;  %v8139_v62 = vadd.f32 %v7889_v19, %v2297_v34 }
 0x423   :  { %v2198_v53 = vpop.f32.mrf.mxu0  ;;  %v5459_v56 = vpop.eup %5458  ;;  %v3328_v50 = vand.u32 2147483648, %v8100_v24  ;;  %v2298_v34 = vadd.f32 %v8080_v23, %v9262_v60  ;;  %vm3327_vm1 = vcmp.eq.f32.partialorder %v3326_v2, 8.507059e+37  ;;  %v9264_v23 = vld [vmem:[#allocation69_spill] sm:$0xff] }
 0x424   :  { %v3306_v8 = vadd.f32 %v5455_v28, %v3305_v47  ;;  %v4128_v36 = vadd.f32 %v7837_v44, %v2198_v53  ;;  %4777 = vst [vmem:[%s8989_s7 + $0xc0] sm:$0xff] %v4701_v49  ;;  %v3318_v33 = vmul.f32 %v5459_v56, %v8100_v24  ;;  %v2480_v61 = vpop.xlane.xlu0 %2479  ;;  %vm3323_vm0 = vweird.f32 %v5459_v56  ;;  %v9263_v24 = vld [vmem:[#allocation75_spill] sm:$0xff] }
 0x425   :  { %v8131_v15 = vpop.xlane.xlu1 %2829  ;;  %v2589_v45 = vsub.f32 %v7637_v39, %v2480_v61  ;;  %vm3324_vm15 = vmor %vm3322_vm14, %vm3323_vm0  ;;  %v8172_v2 = vadd.f32 %v7889_v19, %v2298_v34 }
 0x426   :  { %v3310_v14 = vsel %vm3309_vm10, %v5455_v28, %v3306_v8  ;;  %vm4204_vm12 = vcmp.gt.f32.partialorder %v4128_v36, 0.0  ;;  %v4281_v11 = vmul.f32 %v6623_v55, %v4128_v36  ;;  %5462 = vrcp.f32 %v8131_v15 }
 0x427   :  { %v3315_v42 = vsel %vm3312_vm11, %v3314_v26, %v3310_v14  ;;  %v3319_v28 = vsub.f32 1.0, %v3318_v33  ;;  %v2707_v4 = vmul.f32 1.442695, %v2589_v45  ;;  %v8163_v33 = vpop.f32.mrf.mxu1  ;;  %vm3337_vm3 = vweird.f32 %v8131_v15 }
 0x428   :  { %v3316_v7 = vmul.f32 %v7565_v13, %v3315_v42  ;;  %v4357_v9 = vsel %vm4204_vm12, %v4128_v36, %v4281_v11  ;;  %v8146_v54 = vpop.eup %5460  ;;  %v4356_v13 = vsel %vm4203_vm13, %v4127_v52, %v4280_v22  ;;  %v3329_v52 = vor.u32 1.1754944e-38, %v3328_v50 }
 0x429   :  { %v8144_v5 = vpop.f32.mrf.mxu3  ;;  %v3320_v10 = vmul.f32 %v5459_v56, %v3319_v28  ;;  %v4403_v51 = vpack.c.bf16 %v4357_v9, %v4356_v13  ;;  %2857 = vadd.xlane.f32.xlu0 %v8146_v54  ;;  %5464 = vpow2.f32 %v2707_v4  ;;  %v4553_v22 = vadd.f32 %v8070_v38, %v9263_v24  ;;  %v9266_v4 = vld [vmem:[#allocation23_spill] sm:$0xff] }
 0x42a   :  { %v4702_v17 = vadd.f32 %v4550_v1, %v3316_v7  ;;  %2507 = vmax.xlane.f32.xlu2 %v8139_v62  ;;  %v3341_v11 = vand.u32 2147483647, %v8131_v15  ;;  %v9265_v1 = vld [vmem:[#allocation73_spill] sm:$0xff]  ;;  %v9267_v24 = vld [vmem:[#allocation79_spill] sm:$0xff] }
 0x42b   :  { %v2201_v47 = vpop.f32.mrf.mxu0  ;;  %v3321_v39 = vadd.f32 %v5459_v56, %v3320_v10 }
 0x42c   :  { %4778 = vst [vmem:[%s8989_s7 + $0xc8] sm:$0xff] %v4702_v17  ;;  %v5463_v49 = vpop.eup %5462  ;;  %4631 = vmatmul.bf16.gmra.mxu1 %v4403_v51  ;;  %v8158_v36 = vpop.xlane.xlu2 %2831  ;;  %v4129_v9 = vadd.f32 %v7837_v44, %v2201_v47  ;;  %v2299_v51 = vadd.f32 %v8109_v43, %v9266_v4  ;;  %vm3342_vm5 = vcmp.eq.f32.partialorder %v3341_v11, 8.507059e+37 }
 0x42d   :  { %v3325_v53 = vsel %vm3324_vm15, %v5459_v56, %v3321_v39  ;;  %v3333_v8 = vmul.f32 %v5463_v49, %v8131_v15  ;;  %v2482_v26 = vpop.xlane.xlu1 %2481  ;;  %5466 = vrcp.f32 %v8158_v36  ;;  %v3343_v56 = vand.u32 2147483648, %v8131_v15 }
 0x42e   :  { %v3330_v14 = vsel %vm3327_vm1, %v3329_v52, %v3325_v53  ;;  %v2590_v7 = vsub.f32 %v9265_v1, %v2482_v26  ;;  %vm3338_vm2 = vweird.f32 %v5463_v49  ;;  %v4282_v53 = vmul.f32 %v6623_v55, %v4129_v9  ;;  %v9269_v1 = vld [vmem:[#allocation77_spill] sm:$0xff] }
 0x42f   :  { %v3331_v61 = vmul.f32 %v9264_v23, %v3330_v14  ;;  %v3334_v42 = vsub.f32 1.0, %v3333_v8  ;;  %v8175_v17 = vpop.eup %5464  ;;  %vm3339_vm4 = vmor %vm3337_vm3, %vm3338_vm2  ;;  %v3344_v34 = vor.u32 1.1754944e-38, %v3343_v56  ;;  %vm4205_vm7 = vcmp.gt.f32.partialorder %v4129_v9, 0.0  ;;  %v9268_v23 = vld [vmem:[#allocation71_spill] sm:$0xff] }
 0x430   :  { %v2709_v10 = vmul.f32 1.442695, %v2590_v7  ;;  %2859 = vadd.xlane.f32.xlu1 %v8175_v17  ;;  %v3356_v11 = vand.u32 2147483647, %v8158_v36  ;;  %v3358_v56 = vand.u32 2147483648, %v8158_v36  ;;  %vm3352_vm9 = vweird.f32 %v8158_v36 }
 0x431   :  { %v8169_v28 = vpop.f32.mrf.mxu3  ;;  %v4703_v50 = vadd.f32 %v4553_v22, %v3331_v61  ;;  %v3335_v45 = vmul.f32 %v5463_v49, %v3334_v42  ;;  %2509 = vmax.xlane.f32.xlu0 %v8172_v2  ;;  %v4555_v22 = vadd.f32 %v8070_v38, %v9267_v24  ;;  %v8196_v42 = vadd.f32 %v7889_v19, %v2299_v51 }
 0x432   :  { %5468 = vpow2.f32 %v2709_v10  ;;  %v8203_v10 = vpop.f32.mrf.mxu1  ;;  %vm3357_vm11 = vcmp.eq.f32.partialorder %v3356_v11, 8.507059e+37 }
 0x433   :  { %v2203_v13 = vpop.f32.mrf.mxu0  ;;  %4779 = vst [vmem:[%s8989_s7 + $0xd0] sm:$0xff] %v4703_v50  ;;  %v3336_v39 = vadd.f32 %v5463_v49, %v3335_v45  ;;  %v5467_v47 = vpop.eup %5466 }
 0x434   :  { %v4130_v60 = vadd.f32 %v7837_v44, %v2203_v13  ;;  %v3348_v8 = vmul.f32 %v5467_v47, %v8158_v36  ;;  %v2484_v43 = vpop.xlane.xlu2 %2483  ;;  %vm3353_vm8 = vweird.f32 %v5467_v47 }
 0x435   :  { %v3340_v52 = vsel %vm3339_vm4, %v5463_v49, %v3336_v39  ;;  %v8188_v26 = vpop.xlane.xlu0 %2833  ;;  %v2591_v7 = vsub.f32 %v9269_v1, %v2484_v43  ;;  %v4358_v39 = vsel %vm4205_vm7, %v4129_v9, %v4282_v53  ;;  %vm3354_vm10 = vmor %vm3352_vm9, %vm3353_vm8  ;;  %v9270_v9 = vld [vmem:[#allocation24_spill] sm:$0xff] }
 0x436   :  { %vm4206_vm6 = vcmp.gt.f32.partialorder %v4130_v60, 0.0  ;;  %v3345_v14 = vsel %vm3342_vm5, %v3344_v34, %v3340_v52  ;;  %v4283_v15 = vmul.f32 %v6623_v55, %v4130_v60  ;;  %5470 = vrcp.f32 %v8188_v26 }
 0x437   :  { %v3346_v61 = vmul.f32 %v9268_v23, %v3345_v14  ;;  %v3349_v49 = vsub.f32 1.0, %v3348_v8  ;;  %v2711_v51 = vmul.f32 1.442695, %v2591_v7  ;;  %v3359_v14 = vor.u32 1.1754944e-38, %v3358_v56 }
 0x438   :  { %v4359_v45 = vsel %vm4206_vm6, %v4130_v60, %v4283_v15  ;;  %v8206_v34 = vpop.eup %5468  ;;  %2511 = vmax.xlane.f32.xlu1 %v8196_v42  ;;  %v2300_v53 = vadd.f32 %v8144_v5, %v9270_v9  ;;  %v3371_v7 = vand.u32 2147483647, %v8188_v26  ;;  %v3373_v5 = vand.u32 2147483648, %v8188_v26 }
 0x439   :  { %v8201_v50 = vpop.f32.mrf.mxu3  ;;  %v4704_v13 = vadd.f32 %v4555_v22, %v3346_v61  ;;  %v3350_v4 = vmul.f32 %v5467_v47, %v3349_v49  ;;  %v4404_v8 = vpack.c.bf16 %v4359_v45, %v4358_v39  ;;  %2861 = vadd.xlane.f32.xlu2 %v8206_v34  ;;  %5472 = vpow2.f32 %v2711_v51  ;;  %v9271_v49 = vld [vmem:[#allocation66_spill] sm:$0xff]  ;;  %v9272_v51 = vld [vmem:[#allocation25_spill] sm:$0xff] }
 0x43a   :  { %v4558_v61 = vadd.f32 %v8070_v38, %v7752_v18  ;;  %v8230_v39 = vadd.f32 %v7889_v19, %v2300_v53  ;;  %v8236_v9 = vpop.f32.mrf.mxu1  ;;  %vm3367_vm13 = vweird.f32 %v8188_v26  ;;  %vm3372_vm14 = vcmp.eq.f32.partialorder %v3371_v7, 8.507059e+37 }
 0x43b   :  { %v2206_v52 = vpop.f32.mrf.mxu0  ;;  %4780 = vst [vmem:[%s8989_s7 + $0xd8] sm:$0xff] %v4704_v13  ;;  %v3351_v43 = vadd.f32 %v5467_v47, %v3350_v4 }
 0x43c   :  { %v5471_v60 = vpop.eup %5470  ;;  %4636 = vmatmul.bf16.gmra.mxu1 %v4404_v8  ;;  %v2301_v8 = vadd.f32 %v8169_v28, %v9272_v51 }
 0x43d   :  { %v3355_v15 = vsel %vm3354_vm10, %v5467_v47, %v3351_v43  ;;  %v3363_v24 = vmul.f32 %v5471_v60, %v8188_v26  ;;  %v2486_v23 = vpop.xlane.xlu0 %2485  ;;  %v4131_v47 = vadd.f32 %v7837_v44, %v2206_v52  ;;  %vm3368_vm12 = vweird.f32 %v5471_v60 }
 0x43e   :  { %v8217_v22 = vpop.xlane.xlu1 %2835  ;;  %v3360_v36 = vsel %vm3357_vm11, %v3359_v14, %v3355_v15  ;;  %v2592_v11 = vsub.f32 %v7737_v21, %v2486_v23  ;;  %vm3369_vm0 = vmor %vm3367_vm13, %vm3368_vm12  ;;  %v3374_v15 = vor.u32 1.1754944e-38, %v3373_v5 }
 0x43f   :  { %5474 = vrcp.f32 %v8217_v22  ;;  %v3361_v56 = vmul.f32 %v9271_v49, %v3360_v36  ;;  %v3364_v1 = vsub.f32 1.0, %v3363_v24  ;;  %v8232_v18 = vpop.eup %5472  ;;  %v4284_v24 = vmul.f32 %v6623_v55, %v4131_v47 }
 0x440   :  { %v2713_v43 = vmul.f32 1.442695, %v2592_v11  ;;  %2863 = vadd.xlane.f32.xlu0 %v8232_v18  ;;  %vm4207_vm15 = vcmp.gt.f32.partialorder %v4131_v47, 0.0  ;;  %v4560_v36 = vadd.f32 %v8070_v38, %v7793_v30  ;;  %v3386_v11 = vand.u32 2147483647, %v8217_v22 }
 0x441   :  { %v8227_v45 = vpop.f32.mrf.mxu3  ;;  %v4705_v13 = vadd.f32 %v4558_v61, %v3361_v56  ;;  %v3365_v4 = vmul.f32 %v5471_v60, %v3364_v1  ;;  %2513 = vmax.xlane.f32.xlu2 %v8230_v39  ;;  %v9273_v56 = vld [vmem:[#allocation68_spill] sm:$0xff]  ;;  %v4360_v30 = vsel %vm4207_vm15, %v4131_v47, %v4284_v24  ;;  %vm3382_vm3 = vweird.f32 %v8217_v22 }
 0x442   :  { %5476 = vpow2.f32 %v2713_v43  ;;  %vm3387_vm5 = vcmp.eq.f32.partialorder %v3386_v11, 8.507059e+37 }
 0x443   :  { %v2208_v14 = vpop.f32.mrf.mxu0  ;;  %4781 = vst [vmem:[%s8989_s7 + $0xe0] sm:$0xff] %v4705_v13  ;;  %v3366_v21 = vadd.f32 %v5471_v60, %v3365_v4  ;;  %v3388_v13 = vand.u32 2147483648, %v8217_v22 }
 0x444   :  { %v4132_v52 = vadd.f32 %v7837_v44, %v2208_v14 }
 0x445   :  { %v8245_v53 = vpop.xlane.xlu2 %2837  ;;  %v5475_v28 = vpop.eup %5474  ;;  %v3370_v23 = vsel %vm3369_vm0, %v5471_v60, %v3366_v21  ;;  %v8257_v60 = vadd.f32 %v7889_v19, %v2301_v8 }
 0x446   :  { %v3378_v26 = vmul.f32 %v5475_v28, %v8217_v22  ;;  %vm4208_vm1 = vcmp.gt.f32.partialorder %v4132_v52, 0.0  ;;  %v2488_v44 = vpop.xlane.xlu1 %2487  ;;  %v3375_v61 = vsel %vm3372_vm14, %v3374_v15, %v3370_v23  ;;  %v4285_v49 = vmul.f32 %v6623_v55, %v4132_v52 }
 0x447   :  { %5478 = vrcp.f32 %v8245_v53  ;;  %v3376_v1 = vmul.f32 %v9273_v56, %v3375_v61  ;;  %v2593_v5 = vsub.f32 %v7778_v20, %v2488_v44  ;;  %vm3383_vm2 = vweird.f32 %v5475_v28 }
 0x448   :  { %v3379_v7 = vsub.f32 1.0, %v3378_v26  ;;  %v4361_v51 = vsel %vm4208_vm1, %v4132_v52, %v4285_v49  ;;  %v8263_v15 = vpop.eup %5476  ;;  %2515 = vmax.xlane.f32.xlu0 %v8257_v60  ;;  %v9275_v52 = vld [vmem:[#allocation26_spill] sm:$0xff]  ;;  %vm3384_vm4 = vmor %vm3382_vm3, %vm3383_vm2  ;;  %v3389_v44 = vor.u32 1.1754944e-38, %v3388_v13  ;;  %v8274_v49 = vpop.f32.mrf.mxu1  ;;  %vm3397_vm7 = vweird.f32 %v8245_v53 }
 0x449   :  { %v8261_v4 = vpop.f32.mrf.mxu3  ;;  %v4706_v43 = vadd.f32 %v4560_v36, %v3376_v1  ;;  %v2715_v21 = vmul.f32 1.442695, %v2593_v5  ;;  %9274 = vst [vmem:[#allocation82_spill] sm:$0xff] %v8263_v15  ;;  %v4405_v26 = vpack.c.bf16 %v4361_v51, %v4360_v30  ;;  %2865 = vadd.xlane.f32.xlu1 %v8263_v15  ;;  %v2302_v24 = vadd.f32 %v8201_v50, %v9275_v52  ;;  %v9276_v36 = vld [vmem:[#allocation83_spill] sm:$0xff]  ;;  %v9277_v5 = vld [vmem:[#allocation74_spill] sm:$0xff]  ;;  %v9278_v51 = vld [vmem:[#allocation81_spill] sm:$0xff] }
 0x44a   :  { %v3380_v14 = vmul.f32 %v5475_v28, %v3379_v7  ;;  %v4563_v30 = vadd.f32 %v8070_v38, %v9277_v5  ;;  %v8283_v50 = vld [vmem:[%s8988_s6 + $0x3] ss:$0 sm:$0xff]  ;;  %v3401_v52 = vand.u32 2147483647, %v8245_v53 }
 0x44b   :  { %v2211_v23 = vpop.f32.mrf.mxu0  ;;  %4782 = vst [vmem:[%s8989_s7 + $0xe8] sm:$0xff] %v4706_v43  ;;  %5480 = vpow2.f32 %v2715_v21  ;;  %v8290_v21 = vadd.f32 %v7889_v19, %v2302_v24 }
 0x44c   :  { %v3381_v20 = vadd.f32 %v5475_v28, %v3380_v14  ;;  %4641 = vmatmul.bf16.gmra.mxu1 %v4405_v26  ;;  %v4133_v13 = vadd.f32 %v8283_v50, %v2211_v23  ;;  %vm3402_vm10 = vcmp.eq.f32.partialorder %v3401_v52, 8.507059e+37 }
 0x44d   :  { %v2490_v47 = vpop.xlane.xlu2 %2489  ;;  %v5479_v8 = vpop.eup %5478 }
 0x44e   :  { %v2594_v61 = vsub.f32 %v9276_v36, %v2490_v47  ;;  %v3385_v56 = vsel %vm3384_vm4, %v5475_v28, %v3381_v20  ;;  %v3393_v22 = vmul.f32 %v5479_v8, %v8245_v53  ;;  %v3403_v28 = vand.u32 2147483648, %v8245_v53 }
 0x44f   :  { %v3390_v1 = vsel %vm3387_vm5, %v3389_v44, %v3385_v56  ;;  %vm3398_vm6 = vweird.f32 %v5479_v8  ;;  %v4286_v19 = vmul.f32 %v6623_v55, %v4133_v13  ;;  %vm4209_vm9 = vcmp.gt.f32.partialorder %v4133_v13, 0.0 }
 0x450   :  { %v2717_v7 = vmul.f32 1.442695, %v2594_v61  ;;  %v3391_v43 = vmul.f32 %v9278_v51, %v3390_v1  ;;  %v3394_v14 = vsub.f32 1.0, %v3393_v22  ;;  %v9280_v61 = vld [vmem:[#allocation27_spill] sm:$0xff]  ;;  %vm3399_vm8 = vmor %vm3397_vm7, %vm3398_vm6  ;;  %v3404_v22 = vor.u32 1.1754944e-38, %v3403_v28 }
 0x451   :  { %v8287_v11 = vpop.f32.mrf.mxu3  ;;  %v8292_v26 = vpop.eup %5480  ;;  %2517 = vmax.xlane.f32.xlu1 %v8290_v21  ;;  %v2303_v56 = vadd.f32 %v8227_v45, %v9280_v61 }
 0x452   :  { %5482 = vpow2.f32 %v2717_v7  ;;  %9279 = vst [vmem:[#allocation42_spill] sm:$0xff] %v8292_v26  ;;  %v4707_v20 = vadd.f32 %v4563_v30, %v3391_v43  ;;  %v3395_v47 = vmul.f32 %v5479_v8, %v3394_v14  ;;  %2867 = vadd.xlane.f32.xlu2 %v8292_v26  ;;  %v9282_v30 = vld [vmem:[#allocation78_spill] sm:$0xff]  ;;  %v8310_v43 = vpop.f32.mrf.mxu1 }
 0x453   :  { %v2840_v44 = vpop.xlane.xlu0 %2839  ;;  %v2213_v36 = vpop.f32.mrf.mxu0  ;;  %v4565_v51 = vadd.f32 %v8070_v38, %v9282_v30  ;;  %v9283_v14 = vld [vmem:[#allocation70_spill] sm:$0xff] }
 0x454   :  { %5484 = vrcp.f32 %v2840_v44  ;;  %4783 = vst [vmem:[%s8989_s7 + $0xf0] sm:$0xff] %v4707_v20  ;;  %v3396_v23 = vadd.f32 %v5479_v8, %v3395_v47  ;;  %v4134_v24 = vadd.f32 %v8283_v50, %v2213_v36  ;;  %v4362_v47 = vsel %vm4209_vm9, %v4133_v13, %v4286_v19  ;;  %v8319_v36 = vld [vmem:[%s8988_s6 + $0x2] ss:$0 sm:$0xff] }
 0x455   :  { %vm3412_vm13 = vweird.f32 %v2840_v44 }
 0x456   :  { %v3400_v1 = vsel %vm3399_vm8, %v5479_v8, %v3396_v23  ;;  %vm4210_vm11 = vcmp.gt.f32.partialorder %v4134_v24, 0.0  ;;  %v4287_v7 = vmul.f32 %v6623_v55, %v4134_v24  ;;  %v8322_v23 = vadd.f32 %v8319_v36, %v2303_v56 }
 0x457   :  { %v3405_v53 = vsel %vm3402_vm10, %v3404_v22, %v3400_v1  ;;  %v9285_v22 = vld [vmem:[#allocation28_spill] sm:$0xff] }
 0x458   :  { %v8306_v5 = vpop.eup %5482  ;;  %v3406_v20 = vmul.f32 %v9283_v14, %v3405_v53  ;;  %v4363_v45 = vsel %vm4210_vm11, %v4134_v24, %v4287_v7  ;;  %9284 = vst [vmem:[#allocation34_spill] sm:$0xff] %v8322_v23  ;;  %v2304_v1 = vadd.f32 %v8261_v4, %v9285_v22  ;;  %v9286_v7 = vld [vmem:[#allocation76_spill] sm:$0xff]  ;;  %v3418_v14 = vand.u32 2147483648, %v2840_v44 }
 0x459   :  { %9281 = vst [vmem:[#allocation5_spill] sm:$0xff] %v8306_v5  ;;  %2869 = vadd.xlane.f32.xlu0 %v8306_v5  ;;  %v8314_v8 = vpop.f32.mrf.mxu3  ;;  %v4406_v52 = vpack.c.bf16 %v4363_v45, %v4362_v47 }
 0x45a   :  { %v5485_v28 = vpop.eup %5484  ;;  %v4708_v61 = vadd.f32 %v4565_v51, %v3406_v20  ;;  %2519 = vmax.xlane.f32.xlu2 %v8322_v23  ;;  %v3416_v51 = vand.u32 2147483647, %v2840_v44  ;;  %v8332_v4 = vadd.f32 %v8319_v36, %v2304_v1  ;;  %v3419_v22 = vor.u32 1.1754944e-38, %v3418_v14 }
 0x45b   :  { %v3408_v13 = vmul.f32 %v5485_v28, %v2840_v44  ;;  %v2492_v19 = vpop.xlane.xlu0 %2491  ;;  %v2216_v24 = vpop.f32.mrf.mxu0  ;;  %vm3413_vm12 = vweird.f32 %v5485_v28  ;;  %v4568_v1 = vadd.f32 %v8070_v38, %v7898_v31  ;;  %v9290_v31 = vld [vmem:[#allocation29_spill] sm:$0xff] }
 0x45c   :  { %v2595_v53 = vsub.f32 %v9286_v7, %v2492_v19  ;;  %4784 = vst [vmem:[%s8989_s7 + $0xf8] sm:$0xff] %v4708_v61  ;;  %4646 = vmatmul.bf16.gmra.mxu1 %v4406_v52  ;;  %vm3414_vm0 = vmor %vm3412_vm13, %vm3413_vm12  ;;  %v4135_v61 = vadd.f32 %v8283_v50, %v2216_v24  ;;  %v8338_v52 = vpop.f32.mrf.mxu1  ;;  %vm3417_vm14 = vcmp.eq.f32.partialorder %v3416_v51, 8.507059e+37 }
 0x45d   :  { %v3409_v30 = vsub.f32 1.0, %v3408_v13  ;;  %v2842_v20 = vpop.xlane.xlu1 %2841  ;;  %9287 = vst [vmem:[#allocation32_spill] sm:$0xff] %v8332_v4 }
 0x45e   :  { %v2719_v56 = vmul.f32 1.442695, %v2595_v53  ;;  %5486 = vrcp.f32 %v2842_v20  ;;  %v4288_v14 = vmul.f32 %v6623_v55, %v4135_v61  ;;  %vm4211_vm15 = vcmp.gt.f32.partialorder %v4135_v61, 0.0 }
 0x45f   :  { %v3410_v47 = vmul.f32 %v5485_v28, %v3409_v30  ;;  %v9288_v30 = vld [vmem:[#allocation72_spill] sm:$0xff]  ;;  %vm3427_vm3 = vweird.f32 %v2842_v20 }
 0x460   :  { %5488 = vpow2.f32 %v2719_v56 }
 0x461   :  { %v3411_v45 = vadd.f32 %v5485_v28, %v3410_v47  ;;  %2521 = vmax.xlane.f32.xlu0 %v8332_v4  ;;  %v8336_v13 = vpop.f32.mrf.mxu3 }
 0x463   :  { %v3415_v19 = vsel %vm3414_vm0, %v5485_v28, %v3411_v45  ;;  %v2218_v53 = vpop.f32.mrf.mxu0 }
 0x464   :  { %v3420_v7 = vsel %vm3417_vm14, %v3419_v22, %v3415_v19  ;;  %v4136_v56 = vadd.f32 %v8283_v50, %v2218_v53  ;;  %v5487_v47 = vpop.eup %5486  ;;  %v2305_v19 = vadd.f32 %v8287_v11, %v9290_v31  ;;  %v3433_v53 = vand.u32 2147483648, %v2842_v20  ;;  %v8357_v23 = vpop.f32.mrf.mxu1 }
 0x465   :  { %v3421_v44 = vmul.f32 %v9288_v30, %v3420_v7  ;;  %v3423_v26 = vmul.f32 %v5487_v47, %v2842_v20  ;;  %v2494_v28 = vpop.xlane.xlu1 %2493  ;;  %v2844_v45 = vpop.xlane.xlu2 %2843  ;;  %vm3428_vm2 = vweird.f32 %v5487_v47 }
 0x466   :  { %v8345_v5 = vpop.eup %5488  ;;  %vm4212_vm1 = vcmp.gt.f32.partialorder %v4136_v56, 0.0  ;;  %v4289_v51 = vmul.f32 %v6623_v55, %v4136_v56  ;;  %v2596_v22 = vsub.f32 %v7892_v57, %v2494_v28  ;;  %5490 = vrcp.f32 %v2844_v45  ;;  %vm3429_vm4 = vmor %vm3427_vm3, %vm3428_vm2 }
 0x467   :  { %9289 = vst [vmem:[#allocation6_spill] sm:$0xff] %v8345_v5  ;;  %v4709_v24 = vadd.f32 %v4568_v1, %v3421_v44  ;;  %2871 = vadd.xlane.f32.xlu1 %v8345_v5  ;;  %v3424_v7 = vsub.f32 1.0, %v3423_v26  ;;  %v4364_v44 = vsel %vm4211_vm15, %v4135_v61, %v4288_v14  ;;  %v3431_v57 = vand.u32 2147483647, %v2842_v20 }
 0x468   :  { %v2721_v1 = vmul.f32 1.442695, %v2596_v22  ;;  %v4365_v4 = vsel %vm4212_vm1, %v4136_v56, %v4289_v51  ;;  %v8360_v26 = vadd.f32 %v8319_v36, %v2305_v19  ;;  %vm3442_vm7 = vweird.f32 %v2844_v45 }
 0x469   :  { %4785 = vst [vmem:[%s8989_s7 + $0x100] sm:$0xff] %v4709_v24  ;;  %v8355_v30 = vpop.f32.mrf.mxu3  ;;  %v3425_v15 = vmul.f32 %v5487_v47, %v3424_v7  ;;  %v4407_v28 = vpack.c.bf16 %v4365_v4, %v4364_v44  ;;  %v3434_v24 = vor.u32 1.1754944e-38, %v3433_v53  ;;  %vm3432_vm5 = vcmp.eq.f32.partialorder %v3431_v57, 8.507059e+37 }
 0x46a   :  { %5492 = vpow2.f32 %v2721_v1  ;;  %v3446_v1 = vand.u32 2147483647, %v2844_v45  ;;  %v3448_v44 = vand.u32 2147483648, %v2844_v45 }
 0x46b   :  { %v2221_v5 = vpop.f32.mrf.mxu0  ;;  %v3426_v11 = vadd.f32 %v5487_v47, %v3425_v15  ;;  %v4570_v15 = vadd.f32 %v8070_v38, %v7946_v46 }
 0x46c   :  { %4651 = vmatmul.bf16.gmra.mxu1 %v4407_v28  ;;  %v5491_v22 = vpop.eup %5490  ;;  %v8362_v14 = vpop.xlane.xlu0 %2845  ;;  %v4137_v57 = vadd.f32 %v8283_v50, %v2221_v5  ;;  %vm3447_vm9 = vcmp.eq.f32.partialorder %v3446_v1, 8.507059e+37  ;;  %v4573_v1 = vadd.f32 %v8070_v38, %v7994_v58 }
 0x46d   :  { %v3430_v31 = vsel %vm3429_vm4, %v5487_v47, %v3426_v11  ;;  %v3438_v56 = vmul.f32 %v5491_v22, %v2844_v45  ;;  %v2496_v4 = vpop.xlane.xlu2 %2495  ;;  %5494 = vrcp.f32 %v8362_v14  ;;  %vm3443_vm6 = vweird.f32 %v5491_v22  ;;  %v9292_v11 = vld [vmem:[#allocation30_spill] sm:$0xff]  ;;  %v8382_v5 = vpop.f32.mrf.mxu1 }
 0x46e   :  { %v3435_v61 = vsel %vm3432_vm5, %v3434_v24, %v3430_v31  ;;  %v2597_v47 = vsub.f32 %v7928_v6, %v2496_v4  ;;  %v2306_v24 = vadd.f32 %v8314_v8, %v9292_v11  ;;  %vm3444_vm8 = vmor %vm3442_vm7, %vm3443_vm6  ;;  %v4290_v4 = vmul.f32 %v6623_v55, %v4137_v57 }
 0x46f   :  { %2523 = vmax.xlane.f32.xlu1 %v8360_v26  ;;  %v3436_v20 = vmul.f32 %v7861_v40, %v3435_v61  ;;  %v3439_v19 = vsub.f32 1.0, %v3438_v56  ;;  %v3449_v56 = vor.u32 1.1754944e-38, %v3448_v44  ;;  %vm4213_vm10 = vcmp.gt.f32.partialorder %v4137_v57, 0.0  ;;  %v9293_v44 = vld [vmem:[#allocation80_spill] sm:$0xff] }
 0x470   :  { %v8369_v51 = vpop.eup %5492  ;;  %v2723_v46 = vmul.f32 1.442695, %v2597_v47  ;;  %v3461_v11 = vand.u32 2147483647, %v8362_v14  ;;  %vm3457_vm13 = vweird.f32 %v8362_v14 }
 0x471   :  { %9291 = vst [vmem:[#allocation38_spill] sm:$0xff] %v8369_v51  ;;  %v8372_v7 = vpop.f32.mrf.mxu3  ;;  %v4710_v53 = vadd.f32 %v4570_v15, %v3436_v20  ;;  %2873 = vadd.xlane.f32.xlu2 %v8369_v51  ;;  %v3440_v28 = vmul.f32 %v5491_v22, %v3439_v19 }
 0x472   :  { %5496 = vpow2.f32 %v2723_v46  ;;  %vm3462_vm14 = vcmp.eq.f32.partialorder %v3461_v11, 8.507059e+37 }
 0x473   :  { %v2223_v40 = vpop.f32.mrf.mxu0  ;;  %4786 = vst [vmem:[%s8989_s7 + $0x108] sm:$0xff] %v4710_v53  ;;  %v3441_v31 = vadd.f32 %v5491_v22, %v3440_v28  ;;  %v5495_v61 = vpop.eup %5494  ;;  %v8391_v53 = vadd.f32 %v8319_v36, %v2306_v24 }
 0x474   :  { %v4138_v6 = vadd.f32 %v8283_v50, %v2223_v40  ;;  %v3453_v20 = vmul.f32 %v5495_v61, %v8362_v14  ;;  %v2498_v47 = vpop.xlane.xlu0 %2497  ;;  %vm3458_vm12 = vweird.f32 %v5495_v61 }
 0x475   :  { %v3445_v8 = vsel %vm3444_vm8, %v5491_v22, %v3441_v31  ;;  %v8387_v19 = vpop.xlane.xlu1 %2847  ;;  %v2598_v22 = vsub.f32 %v7969_v0, %v2498_v47  ;;  %v3463_v31 = vand.u32 2147483648, %v8362_v14  ;;  %vm3459_vm0 = vmor %vm3457_vm13, %vm3458_vm12  ;;  %v4575_v14 = vadd.f32 %v8070_v38, %v8031_v12 }
 0x476   :  { %v4291_v15 = vmul.f32 %v6623_v55, %v4138_v6  ;;  %vm4214_vm11 = vcmp.gt.f32.partialorder %v4138_v6, 0.0  ;;  %v3450_v45 = vsel %vm3447_vm9, %v3449_v56, %v3445_v8  ;;  %5498 = vrcp.f32 %v8387_v19 }
 0x477   :  { %v3451_v28 = vmul.f32 %v9293_v44, %v3450_v45  ;;  %v3454_v46 = vsub.f32 1.0, %v3453_v20  ;;  %v4366_v56 = vsel %vm4213_vm10, %v4137_v57, %v4290_v4  ;;  %v2725_v45 = vmul.f32 1.442695, %v2598_v22  ;;  %v8415_v22 = vpop.f32.mrf.mxu1 }
 0x478   :  { %v4367_v24 = vsel %vm4214_vm11, %v4138_v6, %v4291_v15  ;;  %v8403_v8 = vpop.eup %5496  ;;  %v9294_v6 = vld [vmem:[#allocation31_spill] sm:$0xff]  ;;  %v3464_v15 = vor.u32 1.1754944e-38, %v3463_v31  ;;  %v3476_v11 = vand.u32 2147483647, %v8387_v19  ;;  %vm3472_vm1 = vweird.f32 %v8387_v19 }
 0x479   :  { %v8397_v40 = vpop.f32.mrf.mxu3  ;;  %2525 = vmax.xlane.f32.xlu2 %v8391_v53  ;;  %v4711_v51 = vadd.f32 %v4573_v1, %v3451_v28  ;;  %v3455_v58 = vmul.f32 %v5495_v61, %v3454_v46  ;;  %2875 = vadd.xlane.f32.xlu0 %v8403_v8  ;;  %v4408_v0 = vpack.c.bf16 %v4367_v24, %v4366_v56  ;;  %5500 = vpow2.f32 %v2725_v45 }
 0x47a   :  { %v2307_v4 = vadd.f32 %v8336_v13, %v9294_v6  ;;  %v3478_v24 = vand.u32 2147483648, %v8387_v19  ;;  %vm3477_vm3 = vcmp.eq.f32.partialorder %v3476_v11, 8.507059e+37 }
 0x47b   :  { %v2226_v20 = vpop.f32.mrf.mxu0  ;;  %4787 = vst [vmem:[%s8989_s7 + $0x110] sm:$0xff] %v4711_v51  ;;  %v3456_v47 = vadd.f32 %v5495_v61, %v3455_v58 }
 0x47c   :  { %v5499_v57 = vpop.eup %5498  ;;  %4656 = vmatmul.bf16.gmra.mxu1 %v4408_v0  ;;  %v4139_v58 = vadd.f32 %v8283_v50, %v2226_v20  ;;  %v8428_v45 = vadd.f32 %v8319_v36, %v2307_v4 }
 0x47d   :  { %v3460_v1 = vsel %vm3459_vm0, %v5495_v61, %v3456_v47  ;;  %v3468_v44 = vmul.f32 %v5499_v57, %v8387_v19  ;;  %v8413_v28 = vpop.xlane.xlu2 %2849  ;;  %v2500_v46 = vpop.xlane.xlu1 %2499  ;;  %vm3473_vm15 = vweird.f32 %v5499_v57  ;;  %v4578_v19 = vadd.f32 %v8070_v38, %v8089_v3 }
 0x47e   :  { %v3465_v51 = vsel %vm3462_vm14, %v3464_v15, %v3460_v1  ;;  %5502 = vrcp.f32 %v8413_v28  ;;  %v2599_v31 = vsub.f32 %v7972_v35, %v2500_v46  ;;  %v9295_v15 = vld [vmem:[#allocation33_spill] sm:$0xff]  ;;  %vm3474_vm2 = vmor %vm3472_vm1, %vm3473_vm15  ;;  %v4292_v46 = vmul.f32 %v6623_v55, %v4139_v58 }
 0x47f   :  { %v3466_v13 = vmul.f32 %v7937_v37, %v3465_v51  ;;  %v3469_v56 = vsub.f32 1.0, %v3468_v44  ;;  %v8430_v0 = vpop.eup %5500  ;;  %v2308_v1 = vadd.f32 %v8355_v30, %v9295_v15  ;;  %v3479_v44 = vor.u32 1.1754944e-38, %v3478_v24 }
 0x480   :  { %v2727_v37 = vmul.f32 1.442695, %v2599_v31  ;;  %2877 = vadd.xlane.f32.xlu1 %v8430_v0  ;;  %vm4215_vm4 = vcmp.gt.f32.partialorder %v4139_v58, 0.0  ;;  %v3493_v15 = vand.u32 2147483648, %v8413_v28  ;;  %vm3487_vm7 = vweird.f32 %v8413_v28 }
 0x481   :  { %v8422_v61 = vpop.f32.mrf.mxu3  ;;  %v4712_v47 = vadd.f32 %v4575_v14, %v3466_v13  ;;  %v3470_v12 = vmul.f32 %v5499_v57, %v3469_v56  ;;  %2527 = vmax.xlane.f32.xlu0 %v8428_v45  ;;  %v4368_v38 = vsel %vm4215_vm4, %v4139_v58, %v4292_v46 }
 0x482   :  { %5504 = vpow2.f32 %v2727_v37  ;;  %v8454_v37 = vpop.f32.mrf.mxu1 }
 0x483   :  { %v2228_v6 = vpop.f32.mrf.mxu0  ;;  %4788 = vst [vmem:[%s8989_s7 + $0x118] sm:$0xff] %v4712_v47  ;;  %v3471_v20 = vadd.f32 %v5499_v57, %v3470_v12 }
 0x484   :  { %v4140_v35 = vadd.f32 %v8283_v50, %v2228_v6  ;;  %v5503_v4 = vpop.eup %5502  ;;  %v3491_v6 = vand.u32 2147483647, %v8413_v28 }
 0x485   :  { %v3475_v14 = vsel %vm3474_vm2, %v5499_v57, %v3471_v20  ;;  %v3483_v30 = vmul.f32 %v5503_v4, %v8413_v28  ;;  %v2502_v56 = vpop.xlane.xlu2 %2501  ;;  %v8452_v57 = vadd.f32 %v8319_v36, %v2308_v1  ;;  %vm3488_vm6 = vweird.f32 %v5503_v4  ;;  %v8476_v28 = vld [vmem:[%s8988_s6 + $0x4] ss:$0 sm:$0xff] }
 0x486   :  { %v4293_v51 = vmul.f32 %v6623_v55, %v4140_v35  ;;  %vm4216_vm5 = vcmp.gt.f32.partialorder %v4140_v35, 0.0  ;;  %v8444_v13 = vpop.xlane.xlu0 %2851  ;;  %v3480_v31 = vsel %vm3477_vm3, %v3479_v44, %v3475_v14  ;;  %v2600_v47 = vsub.f32 %v8038_v16, %v2502_v56  ;;  %vm3489_vm8 = vmor %vm3487_vm7, %vm3488_vm6 }
 0x487   :  { %5506 = vrcp.f32 %v8444_v13  ;;  %v3481_v11 = vmul.f32 %v7974_v27, %v3480_v31  ;;  %v3484_v24 = vsub.f32 1.0, %v3483_v30  ;;  %vm3492_vm9 = vcmp.eq.f32.partialorder %v3491_v6, 8.507059e+37 }
 0x488   :  { %v4369_v3 = vsel %vm4216_vm5, %v4140_v35, %v4293_v51  ;;  %v8459_v20 = vpop.eup %5504  ;;  %v2729_v14 = vmul.f32 1.442695, %v2600_v47  ;;  %2529 = vmax.xlane.f32.xlu1 %v8452_v57  ;;  %v9296_v35 = vld [vmem:[#allocation35_spill] sm:$0xff]  ;;  %v3494_v51 = vor.u32 1.1754944e-38, %v3493_v15  ;;  %v3506_v6 = vand.u32 2147483647, %v8444_v13 }
 0x489   :  { %v2029_v12 = vpop.f32.mrf.mxu3  ;;  %v4713_v44 = vadd.f32 %v4578_v19, %v3481_v11  ;;  %v3485_v27 = vmul.f32 %v5503_v4, %v3484_v24  ;;  %2879 = vadd.xlane.f32.xlu2 %v8459_v20  ;;  %v4409_v1 = vpack.c.bf16 %v4369_v3, %v4368_v38  ;;  %v2309_v46 = vadd.f32 %v8372_v7, %v9296_v35 }
 0x48a   :  { %5508 = vpow2.f32 %v2729_v14  ;;  %v4580_v7 = vadd.f32 %v8476_v28, %v8123_v25  ;;  %v3508_v15 = vand.u32 2147483648, %v8444_v13  ;;  %vm3502_vm11 = vweird.f32 %v8444_v13 }
 0x48b   :  { %v2231_v16 = vpop.f32.mrf.mxu0  ;;  %4789 = vst [vmem:[%s8989_s7 + $0x120] sm:$0xff] %v4713_v44  ;;  %v3486_v30 = vadd.f32 %v5503_v4, %v3485_v27  ;;  %v8485_v44 = vadd.f32 %v8319_v36, %v2309_v46  ;;  %vm3507_vm13 = vcmp.eq.f32.partialorder %v3506_v6, 8.507059e+37  ;;  %v4583_v6 = vadd.f32 %v8476_v28, %v8163_v33 }
 0x48c   :  { %4661 = vmatmul.bf16.gmra.mxu1 %v4409_v1  ;;  %v8470_v31 = vpop.xlane.xlu1 %2853  ;;  %v4141_v25 = vadd.f32 %v8283_v50, %v2231_v16 }
 0x48d   :  { %v5507_v58 = vpop.eup %5506  ;;  %v3490_v56 = vsel %vm3489_vm8, %v5503_v4, %v3486_v30  ;;  %5510 = vrcp.f32 %v8470_v31  ;;  %v8490_v30 = vpop.f32.mrf.mxu1  ;;  %vm3517_vm1 = vweird.f32 %v8470_v31 }
 0x48e   :  { %v3498_v19 = vmul.f32 %v5507_v58, %v8444_v13  ;;  %v2504_v11 = vpop.xlane.xlu0 %2503  ;;  %v3495_v24 = vsel %vm3492_vm9, %v3494_v51, %v3490_v56  ;;  %vm3503_vm10 = vweird.f32 %v5507_v58  ;;  %vm4217_vm14 = vcmp.gt.f32.partialorder %v4141_v25, 0.0 }
 0x48f   :  { %v3496_v47 = vmul.f32 %v8009_v63, %v3495_v24  ;;  %v2601_v38 = vsub.f32 %v8077_v29, %v2504_v11  ;;  %v9297_v29 = vld [vmem:[#allocation37_spill] sm:$0xff]  ;;  %vm3504_vm12 = vmor %vm3502_vm11, %vm3503_vm10  ;;  %v9298_v11 = vld [vmem:[#allocation43_spill] sm:$0xff] }
 0x490   :  { %v3499_v4 = vsub.f32 1.0, %v3498_v19  ;;  %v8487_v27 = vpop.eup %5508  ;;  %v2310_v51 = vadd.f32 %v8397_v40, %v9297_v29  ;;  %v3509_v19 = vor.u32 1.1754944e-38, %v3508_v15  ;;  %v2312_v24 = vadd.f32 %v2029_v12, %v9298_v11 }
 0x491   :  { %v2032_v3 = vpop.f32.mrf.mxu3  ;;  %v4714_v14 = vadd.f32 %v4580_v7, %v3496_v47  ;;  %v2731_v63 = vmul.f32 1.442695, %v2601_v38  ;;  %2881 = vadd.xlane.f32.xlu0 %v8487_v27  ;;  %2531 = vmax.xlane.f32.xlu2 %v8485_v44  ;;  %v4294_v47 = vmul.f32 %v6623_v55, %v4141_v25 }
 0x492   :  { %v3500_v1 = vmul.f32 %v5507_v58, %v3499_v4 }
 0x493   :  { %v2233_v35 = vpop.f32.mrf.mxu0  ;;  %4790 = vst [vmem:[%s8989_s7 + $0x128] sm:$0xff] %v4714_v14  ;;  %v5511_v56 = vpop.eup %5510  ;;  %5512 = vpow2.f32 %v2731_v63  ;;  %v3521_v14 = vand.u32 2147483647, %v8470_v31  ;;  %v4370_v11 = vsel %vm4217_vm14, %v4141_v25, %v4294_v47  ;;  %v9299_v25 = vld [vmem:[#allocation40_spill] sm:$0xff] }
 0x494   :  { %v3501_v46 = vadd.f32 %v5507_v58, %v3500_v1  ;;  %v4142_v16 = vadd.f32 %v8283_v50, %v2233_v35  ;;  %v3513_v40 = vmul.f32 %v5511_v56, %v8470_v31  ;;  %v3523_v1 = vand.u32 2147483648, %v8470_v31 }
 0x495   :  { %v8504_v4 = vpop.xlane.xlu2 %2855  ;;  %v8517_v35 = vadd.f32 %v8319_v36, %v2312_v24  ;;  %vm3518_vm15 = vweird.f32 %v5511_v56  ;;  %v8528_v24 = vpop.f32.mrf.mxu1  ;;  %v2311_v47 = vadd.f32 %v8422_v61, %v9299_v25  ;;  %vm3522_vm3 = vcmp.eq.f32.partialorder %v3521_v14, 8.507059e+37 }
 0x496   :  { %v3505_v7 = vsel %vm3504_vm12, %v5507_v58, %v3501_v46  ;;  %vm4218_vm0 = vcmp.gt.f32.partialorder %v4142_v16, 0.0  ;;  %v4295_v13 = vmul.f32 %v6623_v55, %v4142_v16  ;;  %5514 = vrcp.f32 %v8504_v4  ;;  %vm3519_vm2 = vmor %vm3517_vm1, %vm3518_vm15 }
 0x497   :  { %v3510_v38 = vsel %vm3507_vm13, %v3509_v19, %v3505_v7  ;;  %v3514_v15 = vsub.f32 1.0, %v3513_v40  ;;  %v8512_v58 = vadd.f32 %v8319_v36, %v2310_v51  ;;  %v3524_v40 = vor.u32 1.1754944e-38, %v3523_v1 }
 0x498   :  { %v3511_v12 = vmul.f32 %v8042_v32, %v3510_v38  ;;  %v4371_v29 = vsel %vm4218_vm0, %v4142_v16, %v4295_v13  ;;  %v2506_v32 = vpop.xlane.xlu1 %2505  ;;  %v9300_v38 = vld [vmem:[#allocation45_spill] sm:$0xff]  ;;  %v3536_v1 = vand.u32 2147483647, %v8504_v4  ;;  %vm3532_vm5 = vweird.f32 %v8504_v4 }
 0x499   :  { %v2034_v63 = vpop.f32.mrf.mxu3  ;;  %v3515_v19 = vmul.f32 %v5511_v56, %v3514_v15  ;;  %v8519_v33 = vpop.eup %5512  ;;  %2533 = vmax.xlane.f32.xlu0 %v8512_v58  ;;  %2537 = vmax.xlane.f32.xlu2 %v8517_v35  ;;  %v4410_v51 = vpack.c.bf16 %v4371_v29, %v4370_v11  ;;  %v2313_v13 = vadd.f32 %v2032_v3, %v9300_v38  ;;  %v9302_v38 = vld [vmem:[#allocation48_spill] sm:$0xff] }
 0x49a   :  { %v4715_v46 = vadd.f32 %v4583_v6, %v3511_v12  ;;  %2883 = vadd.xlane.f32.xlu1 %v8519_v33  ;;  %v2602_v31 = vsub.f32 %v8112_v41, %v2506_v32  ;;  %vm3537_vm6 = vcmp.eq.f32.partialorder %v3536_v1, 8.507059e+37  ;;  %v4588_v1 = vadd.f32 %v8476_v28, %v8236_v9 }
 0x49b   :  { %v3516_v7 = vadd.f32 %v5511_v56, %v3515_v19  ;;  %v3538_v19 = vand.u32 2147483648, %v8504_v4  ;;  %v8547_v41 = vadd.f32 %v8319_v36, %v2313_v13  ;;  %v2314_v13 = vadd.f32 %v2034_v63, %v9302_v38 }
 0x49c   :  { %4791 = vst [vmem:[%s8989_s7 + $0x130] sm:$0xff] %v4715_v46  ;;  %v5515_v16 = vpop.eup %5514  ;;  %4666 = vmatmul.bf16.gmra.mxu1 %v4410_v51  ;;  %v8533_v6 = vpop.xlane.xlu0 %2857  ;;  %v4585_v46 = vadd.f32 %v8476_v28, %v8203_v10  ;;  %v9301_v10 = vld [vmem:[#allocation51_spill] sm:$0xff] }
 0x49d   :  { %v3520_v12 = vsel %vm3519_vm2, %v5511_v56, %v3516_v7  ;;  %v3528_v15 = vmul.f32 %v5515_v16, %v8504_v4  ;;  %5516 = vrcp.f32 %v8533_v6  ;;  %v8544_v56 = vadd.f32 %v8319_v36, %v2311_v47 }
 0x49e   :  { %v3525_v29 = vsel %vm3522_vm3, %v3524_v40, %v3520_v12  ;;  %vm3533_vm4 = vweird.f32 %v5515_v16  ;;  %v2733_v7 = vmul.f32 1.442695, %v2602_v31  ;;  %v3539_v47 = vor.u32 1.1754944e-38, %v3538_v19 }
 0x49f   :  { %v3526_v61 = vmul.f32 %v8087_v48, %v3525_v29  ;;  %v3529_v14 = vsub.f32 1.0, %v3528_v15  ;;  %v2236_v3 = vpop.f32.mrf.mxu2  ;;  %vm3534_vm7 = vmor %vm3532_vm5, %vm3533_vm4  ;;  %v2508_v15 = vpop.xlane.xlu2 %2507  ;;  %v3551_v9 = vand.u32 2147483647, %v8533_v6  ;;  %vm3547_vm9 = vweird.f32 %v8533_v6 }
 0x4a0   :  { %5518 = vpow2.f32 %v2733_v7 }
 0x4a1   :  { %v2037_v11 = vpop.f32.mrf.mxu3  ;;  %v4716_v32 = vadd.f32 %v4585_v46, %v3526_v61  ;;  %v3530_v51 = vmul.f32 %v5515_v16, %v3529_v14  ;;  %2539 = vmax.xlane.f32.xlu0 %v8547_v41  ;;  %v4143_v61 = vadd.f32 %v8283_v50, %v2236_v3  ;;  %v2603_v3 = vsub.f32 %v8139_v62, %v2508_v15  ;;  %v9303_v62 = vld [vmem:[#allocation54_spill] sm:$0xff] }
 0x4a2   :  { %v2315_v25 = vadd.f32 %v2037_v11, %v9301_v10  ;;  %2535 = vmax.xlane.f32.xlu1 %v8544_v56  ;;  %v8569_v11 = vpop.f32.mrf.mxu1  ;;  %vm3552_vm13 = vcmp.eq.f32.partialorder %v3551_v9, 8.507059e+37 }
 0x4a3   :  { %v5517_v48 = vpop.eup %5516  ;;  %4792 = vst [vmem:[%s8989_s7 + $0x138] sm:$0xff] %v4716_v32  ;;  %v3531_v40 = vadd.f32 %v5515_v16, %v3530_v51  ;;  %v8562_v14 = vpop.xlane.xlu1 %2859  ;;  %v3553_v32 = vand.u32 2147483648, %v8533_v6  ;;  %vm4219_vm12 = vcmp.gt.f32.partialorder %v4143_v61, 0.0 }
 0x4a4   :  { %v3543_v12 = vmul.f32 %v5517_v48, %v8533_v6  ;;  %v2510_v31 = vpop.xlane.xlu0 %2509  ;;  %v8559_v29 = vadd.f32 %v8319_v36, %v2315_v25  ;;  %5520 = vrcp.f32 %v8562_v14  ;;  %vm3548_vm8 = vweird.f32 %v5517_v48 }
 0x4a5   :  { %v3535_v46 = vsel %vm3534_vm7, %v5515_v16, %v3531_v40  ;;  %v2604_v4 = vsub.f32 %v8172_v2, %v2510_v31  ;;  %vm3549_vm11 = vmor %vm3547_vm9, %vm3548_vm8  ;;  %v2735_v31 = vmul.f32 1.442695, %v2603_v3  ;;  %vm3562_vm14 = vweird.f32 %v8562_v14 }
 0x4a6   :  { %v3540_v19 = vsel %vm3537_vm6, %v3539_v47, %v3535_v46  ;;  %v3544_v63 = vsub.f32 1.0, %v3543_v12  ;;  %2543 = vmax.xlane.f32.xlu2 %v8559_v29  ;;  %v4296_v47 = vmul.f32 %v6623_v55, %v4143_v61  ;;  %v8582_v15 = vpop.eup %5518 }
 0x4a7   :  { %v3541_v16 = vmul.f32 %v8115_v59, %v3540_v19  ;;  %v2737_v51 = vmul.f32 1.442695, %v2604_v4  ;;  %v2238_v7 = vpop.f32.mrf.mxu2  ;;  %v8579_v59 = vadd.f32 %v8319_v36, %v2314_v13 }
 0x4a8   :  { %v3545_v2 = vmul.f32 %v5517_v48, %v3544_v63  ;;  %v4144_v25 = vadd.f32 %v8283_v50, %v2238_v7  ;;  %v3554_v50 = vor.u32 1.1754944e-38, %v3553_v32  ;;  %v4590_v32 = vadd.f32 %v8476_v28, %v8274_v49 }
 0x4a9   :  { %v2039_v10 = vpop.f32.mrf.mxu3  ;;  %v4717_v40 = vadd.f32 %v4588_v1, %v3541_v16  ;;  %5522 = vpow2.f32 %v2737_v51 }
 0x4aa   :  { %v3546_v38 = vadd.f32 %v5517_v48, %v3545_v2  ;;  %v2316_v12 = vadd.f32 %v2039_v10, %v9303_v62  ;;  %vm4220_vm10 = vcmp.gt.f32.partialorder %v4144_v25, 0.0  ;;  %v4297_v6 = vmul.f32 %v6623_v55, %v4144_v25  ;;  %2541 = vmax.xlane.f32.xlu1 %v8579_v59  ;;  %v5521_v13 = vpop.eup %5520  ;;  %v8604_v49 = vpop.f32.mrf.mxu1 }
 0x4ab   :  { %4793 = vst [vmem:[%s8989_s7 + $0x140] sm:$0xff] %v4717_v40  ;;  %v3558_v19 = vmul.f32 %v5521_v13, %v8562_v14  ;;  %v2512_v16 = vpop.xlane.xlu1 %2511  ;;  %v3568_v10 = vand.u32 2147483648, %v8562_v14  ;;  %vm3563_vm0 = vweird.f32 %v5521_v13 }
 0x4ac   :  { %v3550_v46 = vsel %vm3549_vm11, %v5517_v48, %v3546_v38  ;;  %v8590_v4 = vadd.f32 %v8319_v36, %v2316_v12  ;;  %v2862_v63 = vpop.xlane.xlu2 %2861  ;;  %v4373_v51 = vsel %vm4220_vm10, %v4144_v25, %v4297_v6  ;;  %v4372_v36 = vsel %vm4219_vm12, %v4143_v61, %v4296_v47  ;;  %vm3564_vm15 = vmor %vm3562_vm14, %vm3563_vm0 }
 0x4ad   :  { %v3555_v1 = vsel %vm3552_vm13, %v3554_v50, %v3550_v46  ;;  %5524 = vrcp.f32 %v2862_v63  ;;  %v3559_v48 = vsub.f32 1.0, %v3558_v19  ;;  %v2605_v3 = vsub.f32 %v8196_v42, %v2512_v16 }
 0x4ae   :  { %v3556_v55 = vmul.f32 %v8146_v54, %v3555_v1  ;;  %2885 = vadd.xlane.f32.xlu2 %v8582_v15  ;;  %2545 = vmax.xlane.f32.xlu0 %v8590_v4  ;;  %5526 = vpow2.f32 %v2735_v31  ;;  %v4411_v7 = vpack.c.bf16 %v4373_v51, %v4372_v36  ;;  %v3566_v25 = vand.u32 2147483647, %v8562_v14 }
 0x4af   :  { %v8601_v2 = vpop.eup %5522  ;;  %v3560_v54 = vmul.f32 %v5521_v13, %v3559_v48  ;;  %v2739_v40 = vmul.f32 1.442695, %v2605_v3  ;;  %v3569_v47 = vor.u32 1.1754944e-38, %v3568_v10  ;;  %v4593_v14 = vadd.f32 %v8476_v28, %v8310_v43 }
 0x4b0   :  { %v4718_v9 = vadd.f32 %v4590_v32, %v3556_v55  ;;  %4671 = vmatmul.bf16.gmra.mxu1 %v4411_v7  ;;  %vm3567_vm1 = vcmp.eq.f32.partialorder %v3566_v25, 8.507059e+37  ;;  %v3581_v16 = vand.u32 2147483647, %v2862_v63  ;;  %v3583_v51 = vand.u32 2147483648, %v2862_v63 }
 0x4b1   :  { %v3561_v61 = vadd.f32 %v5521_v13, %v3560_v54  ;;  %5528 = vpow2.f32 %v2739_v40  ;;  %vm3577_vm3 = vweird.f32 %v2862_v63  ;;  %v4595_v54 = vadd.f32 %v8476_v28, %v8338_v52 }
 0x4b2   :  { %4794 = vst [vmem:[%s8989_s7 + $0x148] sm:$0xff] %v4718_v9  ;;  %2889 = vadd.xlane.f32.xlu1 %v8601_v2  ;;  %vm3582_vm5 = vcmp.eq.f32.partialorder %v3581_v16, 8.507059e+37  ;;  %v4598_v16 = vadd.f32 %v8476_v28, %v8357_v23 }
 0x4b3   :  { %v5525_v42 = vpop.eup %5524  ;;  %v3565_v62 = vsel %vm3564_vm15, %v5521_v13, %v3561_v61  ;;  %v2864_v50 = vpop.xlane.xlu0 %2863 }
 0x4b4   :  { %v8612_v38 = vpop.eup %5526  ;;  %v3573_v12 = vmul.f32 %v5525_v42, %v2862_v63  ;;  %v2514_v31 = vpop.xlane.xlu2 %2513  ;;  %v3570_v6 = vsel %vm3567_vm1, %v3569_v47, %v3565_v62  ;;  %5530 = vrcp.f32 %v2864_v50  ;;  %vm3578_vm2 = vweird.f32 %v5525_v42 }
 0x4b5   :  { %v3571_v46 = vmul.f32 %v8175_v17, %v3570_v6  ;;  %v2606_v19 = vsub.f32 %v8230_v39, %v2514_v31  ;;  %vm3579_vm4 = vmor %vm3577_vm3, %vm3578_vm2  ;;  %v3584_v39 = vor.u32 1.1754944e-38, %v3583_v51  ;;  %v3596_v63 = vand.u32 2147483647, %v2864_v50 }
 0x4b6   :  { %2887 = vadd.xlane.f32.xlu0 %v8612_v38  ;;  %v3574_v1 = vsub.f32 1.0, %v3573_v12  ;;  %v3598_v47 = vand.u32 2147483648, %v2864_v50  ;;  %vm3592_vm7 = vweird.f32 %v2864_v50 }
 0x4b7   :  { %v8619_v32 = vpop.eup %5528  ;;  %v4719_v13 = vadd.f32 %v4593_v14, %v3571_v46  ;;  %v2741_v36 = vmul.f32 1.442695, %v2606_v19  ;;  %vm3597_vm9 = vcmp.eq.f32.partialorder %v3596_v63, 8.507059e+37 }
 0x4b8   :  { %v3575_v55 = vmul.f32 %v5525_v42, %v3574_v1  ;;  %2891 = vadd.xlane.f32.xlu2 %v8619_v32 }
 0x4b9   :  { %4795 = vst [vmem:[%s8989_s7 + $0x150] sm:$0xff] %v4719_v13  ;;  %5532 = vpow2.f32 %v2741_v36 }
 0x4ba   :  { %v3576_v43 = vadd.f32 %v5525_v42, %v3575_v55  ;;  %v5531_v17 = vpop.eup %5530 }
 0x4bb   :  { %v3588_v3 = vmul.f32 %v5531_v17, %v2864_v50  ;;  %v2516_v9 = vpop.xlane.xlu0 %2515  ;;  %vm3593_vm6 = vweird.f32 %v5531_v17 }
 0x4bc   :  { %v3580_v48 = vsel %vm3579_vm4, %v5525_v42, %v3576_v43  ;;  %v2866_v7 = vpop.xlane.xlu1 %2865  ;;  %v2607_v61 = vsub.f32 %v8257_v60, %v2516_v9  ;;  %vm3594_vm8 = vmor %vm3592_vm7, %vm3593_vm6  ;;  %v3599_v60 = vor.u32 1.1754944e-38, %v3598_v47 }
 0x4bd   :  { %v3585_v10 = vsel %vm3582_vm5, %v3584_v39, %v3580_v48  ;;  %5534 = vrcp.f32 %v2866_v7  ;;  %v3589_v40 = vsub.f32 1.0, %v3588_v3  ;;  %v3611_v50 = vand.u32 2147483647, %v2866_v7 }
 0x4be   :  { %v3586_v25 = vmul.f32 %v8206_v34, %v3585_v10  ;;  %v2743_v31 = vmul.f32 1.442695, %v2607_v61  ;;  %v3613_v36 = vand.u32 2147483648, %v2866_v7  ;;  %vm3607_vm11 = vweird.f32 %v2866_v7 }
 0x4bf   :  { %v8629_v62 = vpop.eup %5532  ;;  %v3590_v42 = vmul.f32 %v5531_v17, %v3589_v40  ;;  %vm3612_vm13 = vcmp.eq.f32.partialorder %v3611_v50, 8.507059e+37  ;;  %v9304_v40 = vld [vmem:[#allocation34_spill] sm:$0xff] }
 0x4c0   :  { %v4720_v12 = vadd.f32 %v4595_v54, %v3586_v25  ;;  %2893 = vadd.xlane.f32.xlu0 %v8629_v62  ;;  %5536 = vpow2.f32 %v2743_v31  ;;  %v3614_v23 = vor.u32 1.1754944e-38, %v3613_v36 }
 0x4c1   :  { %v3591_v52 = vadd.f32 %v5531_v17, %v3590_v42  ;;  %v9305_v42 = vld [vmem:[#allocation82_spill] sm:$0xff] }
 0x4c2   :  { %4796 = vst [vmem:[%s8989_s7 + $0x158] sm:$0xff] %v4720_v12  ;;  %v4600_v12 = vadd.f32 %v8476_v28, %v8382_v5 }
 0x4c3   :  { %v5535_v34 = vpop.eup %5534  ;;  %v3595_v14 = vsel %vm3594_vm8, %v5531_v17, %v3591_v52 }
 0x4c4   :  { %v3603_v46 = vmul.f32 %v5535_v34, %v2866_v7  ;;  %v2518_v1 = vpop.xlane.xlu1 %2517  ;;  %v3600_v19 = vsel %vm3597_vm9, %v3599_v60, %v3595_v14  ;;  %vm3608_vm10 = vweird.f32 %v5535_v34 }
 0x4c5   :  { %v2868_v6 = vpop.xlane.xlu2 %2867  ;;  %v3601_v51 = vmul.f32 %v8232_v18, %v3600_v19  ;;  %v2608_v55 = vsub.f32 %v8290_v21, %v2518_v1  ;;  %v8645_v21 = vpop.f32.mrf.mxu1  ;;  %vm3609_vm12 = vmor %vm3607_vm11, %vm3608_vm10 }
 0x4c6   :  { %5538 = vrcp.f32 %v2868_v6  ;;  %v3604_v13 = vsub.f32 1.0, %v3603_v46  ;;  %v8639_v43 = vpop.eup %5536  ;;  %v3628_v52 = vand.u32 2147483648, %v2868_v6  ;;  %v3626_v46 = vand.u32 2147483647, %v2868_v6 }
 0x4c7   :  { %v4721_v39 = vadd.f32 %v4598_v16, %v3601_v51  ;;  %v2745_v17 = vmul.f32 1.442695, %v2608_v55  ;;  %2895 = vadd.xlane.f32.xlu1 %v8639_v43  ;;  %vm3622_vm14 = vweird.f32 %v2868_v6 }
 0x4c8   :  { %v3605_v48 = vmul.f32 %v5535_v34, %v3604_v13  ;;  %v9306_v13 = vld [vmem:[#allocation32_spill] sm:$0xff]  ;;  %v3629_v55 = vor.u32 1.1754944e-38, %v3628_v52  ;;  %vm3627_vm1 = vcmp.eq.f32.partialorder %v3626_v46, 8.507059e+37 }
 0x4c9   :  { %4797 = vst [vmem:[%s8989_s7 + $0x160] sm:$0xff] %v4721_v39 }
 0x4ca   :  { %v3606_v18 = vadd.f32 %v5535_v34, %v3605_v48 }
 0x4cc   :  { %v2870_v3 = vpop.xlane.xlu0 %2869  ;;  %v5539_v9 = vpop.eup %5538  ;;  %v3610_v25 = vsel %vm3609_vm12, %v5535_v34, %v3606_v18 }
 0x4cd   :  { %5540 = vrcp.f32 %v2870_v3  ;;  %v3618_v10 = vmul.f32 %v5539_v9, %v2868_v6  ;;  %v2520_v54 = vpop.xlane.xlu2 %2519  ;;  %v3615_v63 = vsel %vm3612_vm13, %v3614_v23, %v3610_v25  ;;  %vm3623_vm0 = vweird.f32 %v5539_v9 }
 0x4ce   :  { %5542 = vpow2.f32 %v2745_v17  ;;  %v2609_v61 = vsub.f32 %v9304_v40, %v2520_v54  ;;  %v3616_v31 = vmul.f32 %v9305_v42, %v3615_v63  ;;  %vm3624_vm15 = vmor %vm3622_vm14, %vm3623_vm0  ;;  %v3643_v39 = vand.u32 2147483648, %v2870_v3  ;;  %v9307_v54 = vld [vmem:[#allocation42_spill] sm:$0xff] }
 0x4cf   :  { %v3619_v47 = vsub.f32 1.0, %v3618_v10  ;;  %v3641_v23 = vand.u32 2147483647, %v2870_v3  ;;  %v4603_v6 = vadd.f32 %v8476_v28, %v8415_v22  ;;  %v8660_v10 = vpop.f32.mrf.mxu1  ;;  %vm3637_vm3 = vweird.f32 %v2870_v3 }
 0x4d0   :  { %v2747_v7 = vmul.f32 1.442695, %v2609_v61  ;;  %v4722_v19 = vadd.f32 %v4600_v12, %v3616_v31  ;;  %v3644_v63 = vor.u32 1.1754944e-38, %v3643_v39  ;;  %v4605_v42 = vadd.f32 %v8476_v28, %v8454_v37  ;;  %v9308_v31 = vld [vmem:[#allocation5_spill] sm:$0xff] }
 0x4d1   :  { %v3620_v14 = vmul.f32 %v5539_v9, %v3619_v47  ;;  %vm3642_vm5 = vcmp.eq.f32.partialorder %v3641_v23, 8.507059e+37  ;;  %v9309_v23 = vld [vmem:[#allocation6_spill] sm:$0xff] }
 0x4d2   :  { %5544 = vpow2.f32 %v2747_v7  ;;  %4798 = vst [vmem:[%s8989_s7 + $0x168] sm:$0xff] %v4722_v19 }
 0x4d3   :  { %v5541_v60 = vpop.eup %5540  ;;  %v3621_v51 = vadd.f32 %v5539_v9, %v3620_v14 }
 0x4d4   :  { %v8651_v1 = vpop.eup %5542  ;;  %v3633_v34 = vmul.f32 %v5541_v60, %v2870_v3  ;;  %v2522_v16 = vpop.xlane.xlu0 %2521  ;;  %vm3638_vm2 = vweird.f32 %v5541_v60 }
 0x4d5   :  { %2897 = vadd.xlane.f32.xlu2 %v8651_v1  ;;  %v2610_v5 = vsub.f32 %v9306_v13, %v2522_v16  ;;  %v3625_v36 = vsel %vm3624_vm15, %v5539_v9, %v3621_v51  ;;  %vm3639_vm4 = vmor %vm3637_vm3, %vm3638_vm2 }
 0x4d6   :  { %v3634_v50 = vsub.f32 1.0, %v3633_v34  ;;  %v3630_v17 = vsel %vm3627_vm1, %v3629_v55, %v3625_v36 }
 0x4d7   :  { %v2749_v48 = vmul.f32 1.442695, %v2610_v5  ;;  %v3631_v25 = vmul.f32 %v9307_v54, %v3630_v17 }
 0x4d8   :  { %v3635_v18 = vmul.f32 %v5541_v60, %v3634_v50  ;;  %v8663_v40 = vpop.eup %5544 }
 0x4d9   :  { %5546 = vpow2.f32 %v2749_v48  ;;  %v4723_v9 = vadd.f32 %v4603_v6, %v3631_v25  ;;  %2899 = vadd.xlane.f32.xlu0 %v8663_v40 }
 0x4da   :  { %v3636_v61 = vadd.f32 %v5541_v60, %v3635_v18  ;;  %v2872_v47 = vpop.xlane.xlu1 %2871 }
 0x4db   :  { %5548 = vrcp.f32 %v2872_v47  ;;  %4799 = vst [vmem:[%s8989_s7 + $0x170] sm:$0xff] %v4723_v9  ;;  %v3658_v37 = vand.u32 2147483648, %v2872_v47  ;;  %v3656_v55 = vand.u32 2147483647, %v2872_v47  ;;  %vm3652_vm7 = vweird.f32 %v2872_v47 }
 0x4dc   :  { %v3640_v12 = vsel %vm3639_vm4, %v5541_v60, %v3636_v61  ;;  %v8678_v60 = vpop.f32.mrf.mxu1 }
 0x4dd   :  { %v3645_v22 = vsel %vm3642_vm5, %v3644_v63, %v3640_v12  ;;  %v3659_v36 = vor.u32 1.1754944e-38, %v3658_v37  ;;  %vm3657_vm9 = vcmp.eq.f32.partialorder %v3656_v55, 8.507059e+37 }
 0x4de   :  { %v3646_v52 = vmul.f32 %v9308_v31, %v3645_v22 }
 0x4df   :  { %v8672_v3 = vpop.eup %5546 }
 0x4e0   :  { %v4724_v7 = vadd.f32 %v4605_v42, %v3646_v52  ;;  %2901 = vadd.xlane.f32.xlu1 %v8672_v3 }
 0x4e1   :  { %v5549_v14 = vpop.eup %5548 }
 0x4e2   :  { %4800 = vst [vmem:[%s8989_s7 + $0x178] sm:$0xff] %v4724_v7  ;;  %v3648_v46 = vmul.f32 %v5549_v14, %v2872_v47  ;;  %v2524_v19 = vpop.xlane.xlu1 %2523  ;;  %vm3653_vm6 = vweird.f32 %v5549_v14 }
 0x4e3   :  { %v2611_v34 = vsub.f32 %v8360_v26, %v2524_v19  ;;  %vm3654_vm8 = vmor %vm3652_vm7, %vm3653_vm6  ;;  %v4608_v26 = vadd.f32 %v8476_v28, %v8490_v30 }
 0x4e4   :  { %v3649_v16 = vsub.f32 1.0, %v3648_v46  ;;  %v2874_v51 = vpop.xlane.xlu2 %2873  ;;  %v8683_v18 = vpop.f32.mrf.mxu1 }
 0x4e5   :  { %v2751_v13 = vmul.f32 1.442695, %v2611_v34  ;;  %5550 = vrcp.f32 %v2874_v51  ;;  %v3673_v30 = vand.u32 2147483648, %v2874_v51  ;;  %v3671_v42 = vand.u32 2147483647, %v2874_v51 }
 0x4e6   :  { %v3650_v5 = vmul.f32 %v5549_v14, %v3649_v16  ;;  %vm3667_vm11 = vweird.f32 %v2874_v51  ;;  %v4610_v34 = vadd.f32 %v8476_v28, %v8528_v24  ;;  %v9310_v16 = vld [vmem:[#allocation38_spill] sm:$0xff] }
 0x4e7   :  { %5552 = vpow2.f32 %v2751_v13  ;;  %v3674_v7 = vor.u32 1.1754944e-38, %v3673_v30  ;;  %vm3672_vm13 = vcmp.eq.f32.partialorder %v3671_v42, 8.507059e+37 }
 0x4e8   :  { %v3651_v50 = vadd.f32 %v5549_v14, %v3650_v5 }
 0x4ea   :  { %v3655_v39 = vsel %vm3654_vm8, %v5549_v14, %v3651_v50 }
 0x4eb   :  { %v3660_v48 = vsel %vm3657_vm9, %v3659_v36, %v3655_v39  ;;  %v5551_v17 = vpop.eup %5550 }
 0x4ec   :  { %v3661_v6 = vmul.f32 %v9309_v23, %v3660_v48  ;;  %v3663_v25 = vmul.f32 %v5551_v17, %v2874_v51  ;;  %v2526_v61 = vpop.xlane.xlu2 %2525  ;;  %v2876_v12 = vpop.xlane.xlu0 %2875  ;;  %vm3668_vm10 = vweird.f32 %v5551_v17 }
 0x4ed   :  { %v8686_v54 = vpop.eup %5552  ;;  %v2612_v63 = vsub.f32 %v8391_v53, %v2526_v61  ;;  %5554 = vrcp.f32 %v2876_v12  ;;  %vm3669_vm12 = vmor %vm3667_vm11, %vm3668_vm10  ;;  %v8693_v46 = vpop.f32.mrf.mxu1  ;;  %v3688_v48 = vand.u32 2147483648, %v2876_v12  ;;  %vm3682_vm14 = vweird.f32 %v2876_v12 }
 0x4ee   :  { %v4725_v9 = vadd.f32 %v4608_v26, %v3661_v6  ;;  %2903 = vadd.xlane.f32.xlu2 %v8686_v54  ;;  %v3664_v47 = vsub.f32 1.0, %v3663_v25 }
 0x4ef   :  { %v2753_v31 = vmul.f32 1.442695, %v2612_v63  ;;  %v3689_v25 = vor.u32 1.1754944e-38, %v3688_v48 }
 0x4f0   :  { %4801 = vst [vmem:[%s8989_s7 + $0x180] sm:$0xff] %v4725_v9  ;;  %v3665_v22 = vmul.f32 %v5551_v17, %v3664_v47 }
 0x4f1   :  { %5556 = vpow2.f32 %v2753_v31 }
 0x4f2   :  { %v3666_v52 = vadd.f32 %v5551_v17, %v3665_v22  ;;  %v4613_v22 = vadd.f32 %v8476_v28, %v8569_v11 }
 0x4f3   :  { %v5555_v14 = vpop.eup %5554  ;;  %v2878_v5 = vpop.xlane.xlu1 %2877 }
 0x4f4   :  { %v3670_v53 = vsel %vm3669_vm12, %v5551_v17, %v3666_v52  ;;  %v3678_v13 = vmul.f32 %v5555_v14, %v2876_v12  ;;  %v2528_v55 = vpop.xlane.xlu0 %2527  ;;  %5558 = vrcp.f32 %v2878_v5  ;;  %vm3683_vm0 = vweird.f32 %v5555_v14 }
 0x4f5   :  { %v3675_v19 = vsel %vm3672_vm13, %v3674_v7, %v3670_v53  ;;  %v2613_v39 = vsub.f32 %v8428_v45, %v2528_v55  ;;  %v3686_v17 = vand.u32 2147483647, %v2876_v12  ;;  %vm3684_vm15 = vmor %vm3682_vm14, %vm3683_vm0  ;;  %v8705_v47 = vpop.f32.mrf.mxu1  ;;  %v3701_v52 = vand.u32 2147483647, %v2878_v5 }
 0x4f6   :  { %v3676_v37 = vmul.f32 %v9310_v16, %v3675_v19  ;;  %v3679_v36 = vsub.f32 1.0, %v3678_v13  ;;  %v3703_v7 = vand.u32 2147483648, %v2878_v5  ;;  %vm3697_vm3 = vweird.f32 %v2878_v5 }
 0x4f7   :  { %v8698_v50 = vpop.eup %5556  ;;  %v2755_v26 = vmul.f32 1.442695, %v2613_v39  ;;  %vm3687_vm1 = vcmp.eq.f32.partialorder %v3686_v17, 8.507059e+37  ;;  %vm3702_vm5 = vcmp.eq.f32.partialorder %v3701_v52, 8.507059e+37 }
 0x4f8   :  { %v4726_v51 = vadd.f32 %v4610_v34, %v3676_v37  ;;  %2905 = vadd.xlane.f32.xlu0 %v8698_v50  ;;  %v3680_v24 = vmul.f32 %v5555_v14, %v3679_v36  ;;  %v4615_v36 = vadd.f32 %v8476_v28, %v8604_v49 }
 0x4f9   :  { %5560 = vpow2.f32 %v2755_v26 }
 0x4fa   :  { %4802 = vst [vmem:[%s8989_s7 + $0x188] sm:$0xff] %v4726_v51  ;;  %v3681_v23 = vadd.f32 %v5555_v14, %v3680_v24  ;;  %v5559_v6 = vpop.eup %5558 }
 0x4fb   :  { %v3693_v45 = vmul.f32 %v5559_v6, %v2878_v5  ;;  %v2530_v63 = vpop.xlane.xlu1 %2529  ;;  %vm3698_vm2 = vweird.f32 %v5559_v6 }
 0x4fc   :  { %v3685_v61 = vsel %vm3684_vm15, %v5555_v14, %v3681_v23  ;;  %v2880_v9 = vpop.xlane.xlu2 %2879  ;;  %v2614_v12 = vsub.f32 %v8452_v57, %v2530_v63  ;;  %vm3699_vm4 = vmor %vm3697_vm3, %vm3698_vm2  ;;  %v3704_v57 = vor.u32 1.1754944e-38, %v3703_v7  ;;  %v4618_v7 = vadd.f32 %v8476_v28, %v8645_v21 }
 0x4fd   :  { %v3690_v30 = vsel %vm3687_vm1, %v3689_v25, %v3685_v61  ;;  %5562 = vrcp.f32 %v2880_v9  ;;  %v3694_v31 = vsub.f32 1.0, %v3693_v45  ;;  %v8721_v5 = vpop.f32.mrf.mxu1  ;;  %v3716_v17 = vand.u32 2147483647, %v2880_v9 }
 0x4fe   :  { %v3691_v42 = vmul.f32 %v8403_v8, %v3690_v30  ;;  %v2757_v34 = vmul.f32 1.442695, %v2614_v12  ;;  %v3718_v26 = vand.u32 2147483648, %v2880_v9  ;;  %vm3712_vm7 = vweird.f32 %v2880_v9 }
 0x4ff   :  { %v8711_v53 = vpop.eup %5560  ;;  %v3695_v19 = vmul.f32 %v5559_v6, %v3694_v31  ;;  %vm3717_vm9 = vcmp.eq.f32.partialorder %v3716_v17, 8.507059e+37  ;;  %v4620_v17 = vadd.f32 %v8476_v28, %v8660_v10 }
 0x500   :  { %v4727_v14 = vadd.f32 %v4613_v22, %v3691_v42  ;;  %2907 = vadd.xlane.f32.xlu1 %v8711_v53  ;;  %5564 = vpow2.f32 %v2757_v34  ;;  %v3719_v49 = vor.u32 1.1754944e-38, %v3718_v26 }
 0x501   :  { %v3696_v11 = vadd.f32 %v5559_v6, %v3695_v19 }
 0x502   :  { %4803 = vst [vmem:[%s8989_s7 + $0x190] sm:$0xff] %v4727_v14 }
 0x503   :  { %v5563_v8 = vpop.eup %5562  ;;  %v3700_v16 = vsel %vm3699_vm4, %v5559_v6, %v3696_v11 }
 0x504   :  { %v3708_v37 = vmul.f32 %v5563_v8, %v2880_v9  ;;  %v2882_v13 = vpop.xlane.xlu0 %2881  ;;  %v2532_v55 = vpop.xlane.xlu2 %2531  ;;  %v3705_v51 = vsel %vm3702_vm5, %v3704_v57, %v3700_v16  ;;  %vm3713_vm6 = vweird.f32 %v5563_v8 }
 0x505   :  { %5566 = vrcp.f32 %v2882_v13  ;;  %v3706_v39 = vmul.f32 %v8430_v0, %v3705_v51  ;;  %v2615_v24 = vsub.f32 %v8485_v44, %v2532_v55  ;;  %vm3714_vm8 = vmor %vm3712_vm7, %vm3713_vm6  ;;  %v3731_v19 = vand.u32 2147483647, %v2882_v13  ;;  %v8736_v55 = vpop.f32.mrf.mxu1 }
 0x506   :  { %v3709_v48 = vsub.f32 1.0, %v3708_v37  ;;  %v8723_v23 = vpop.eup %5564  ;;  %v3733_v34 = vand.u32 2147483648, %v2882_v13  ;;  %vm3727_vm11 = vweird.f32 %v2882_v13 }
 0x507   :  { %v4728_v6 = vadd.f32 %v4615_v36, %v3706_v39  ;;  %v2759_v61 = vmul.f32 1.442695, %v2615_v24  ;;  %2909 = vadd.xlane.f32.xlu2 %v8723_v23  ;;  %vm3732_vm13 = vcmp.eq.f32.partialorder %v3731_v19, 8.507059e+37 }
 0x508   :  { %v3710_v25 = vmul.f32 %v5563_v8, %v3709_v48 }
 0x509   :  { %4804 = vst [vmem:[%s8989_s7 + $0x198] sm:$0xff] %v4728_v6  ;;  %5568 = vpow2.f32 %v2759_v61 }
 0x50a   :  { %v3711_v0 = vadd.f32 %v5563_v8, %v3710_v25 }
 0x50b   :  { %v5567_v44 = vpop.eup %5566 }
 0x50c   :  { %v3715_v45 = vsel %vm3714_vm8, %v5563_v8, %v3711_v0  ;;  %v3723_v63 = vmul.f32 %v5567_v44, %v2882_v13  ;;  %v2534_v30 = vpop.xlane.xlu0 %2533  ;;  %v2538_v22 = vpop.xlane.xlu2 %2537  ;;  %vm3728_vm10 = vweird.f32 %v5567_v44 }
 0x50d   :  { %v3720_v42 = vsel %vm3717_vm9, %v3719_v49, %v3715_v45  ;;  %v2884_v31 = vpop.xlane.xlu1 %2883  ;;  %v2616_v12 = vsub.f32 %v8512_v58, %v2534_v30  ;;  %v2618_v52 = vsub.f32 %v8517_v35, %v2538_v22  ;;  %vm3729_vm12 = vmor %vm3727_vm11, %vm3728_vm10  ;;  %v3734_v58 = vor.u32 1.1754944e-38, %v3733_v34 }
 0x50e   :  { %v3721_v9 = vmul.f32 %v8459_v20, %v3720_v42  ;;  %v3724_v14 = vsub.f32 1.0, %v3723_v63  ;;  %5570 = vrcp.f32 %v2884_v31  ;;  %v3746_v49 = vand.u32 2147483647, %v2884_v31 }
 0x50f   :  { %v2761_v11 = vmul.f32 1.442695, %v2616_v12  ;;  %v8734_v8 = vpop.eup %5568  ;;  %v2765_v37 = vmul.f32 1.442695, %v2618_v52  ;;  %v3748_v45 = vand.u32 2147483648, %v2884_v31  ;;  %vm3742_vm14 = vweird.f32 %v2884_v31 }
 0x510   :  { %v4729_v57 = vadd.f32 %v4618_v7, %v3721_v9  ;;  %v3725_v16 = vmul.f32 %v5567_v44, %v3724_v14  ;;  %2911 = vadd.xlane.f32.xlu0 %v8734_v8  ;;  %vm3747_vm1 = vcmp.eq.f32.partialorder %v3746_v49, 8.507059e+37  ;;  %v8765_v9 = vld [vmem:[%s8988_s6 + $0x4] ss:$0 sm:$0xff] }
 0x511   :  { %5572 = vpow2.f32 %v2761_v11  ;;  %v3749_v22 = vor.u32 1.1754944e-38, %v3748_v45 }
 0x512   :  { %4805 = vst [vmem:[%s8989_s7 + $0x1a0] sm:$0xff] %v4729_v57  ;;  %v3726_v20 = vadd.f32 %v5567_v44, %v3725_v16  ;;  %5574 = vpow2.f32 %v2765_v37 }
 0x514   :  { %v5571_v35 = vpop.eup %5570  ;;  %v3730_v21 = vsel %vm3729_vm12, %v5567_v44, %v3726_v20  ;;  %v2540_v51 = vpop.xlane.xlu0 %2539 }
 0x515   :  { %v3735_v36 = vsel %vm3732_vm13, %v3734_v58, %v3730_v21  ;;  %v3738_v39 = vmul.f32 %v5571_v35, %v2884_v31  ;;  %v2536_v48 = vpop.xlane.xlu1 %2535  ;;  %v2619_v24 = vsub.f32 %v8547_v41, %v2540_v51  ;;  %vm3743_vm0 = vweird.f32 %v5571_v35 }
 0x516   :  { %v3736_v26 = vmul.f32 %v8487_v27, %v3735_v36  ;;  %v2617_v6 = vsub.f32 %v8544_v56, %v2536_v48  ;;  %v8757_v27 = vpop.f32.mrf.mxu1  ;;  %vm3744_vm15 = vmor %vm3742_vm14, %vm3743_vm0  ;;  %v4623_v31 = vadd.f32 %v8765_v9, %v8678_v60 }
 0x517   :  { %v8747_v13 = vpop.eup %5572  ;;  %v3739_v25 = vsub.f32 1.0, %v3738_v39  ;;  %v2767_v61 = vmul.f32 1.442695, %v2619_v24 }
 0x518   :  { %v8749_v0 = vpop.eup %5574  ;;  %v4730_v44 = vadd.f32 %v4620_v17, %v3736_v26  ;;  %v2763_v63 = vmul.f32 1.442695, %v2617_v6  ;;  %2913 = vadd.xlane.f32.xlu1 %v8747_v13 }
 0x519   :  { %v2544_v41 = vpop.xlane.xlu2 %2543  ;;  %v3740_v30 = vmul.f32 %v5571_v35, %v3739_v25  ;;  %5576 = vpow2.f32 %v2767_v61  ;;  %2917 = vadd.xlane.f32.xlu0 %v8749_v0 }
 0x51a   :  { %v2621_v28 = vsub.f32 %v8559_v29, %v2544_v41  ;;  %4806 = vst [vmem:[%s8989_s7 + $0x1a8] sm:$0xff] %v4730_v44  ;;  %5578 = vpow2.f32 %v2763_v63 }
 0x51b   :  { %v3741_v56 = vadd.f32 %v5571_v35, %v3740_v30  ;;  %v4625_v30 = vadd.f32 %v8765_v9, %v8683_v18 }
 0x51c   :  { %v2771_v10 = vmul.f32 1.442695, %v2621_v28 }
 0x51d   :  { %v3745_v42 = vsel %vm3744_vm15, %v5571_v35, %v3741_v56  ;;  %v2542_v12 = vpop.xlane.xlu1 %2541 }
 0x51e   :  { %5580 = vpow2.f32 %v2771_v10  ;;  %v3750_v52 = vsel %vm3747_vm1, %v3749_v22, %v3745_v42  ;;  %v2620_v29 = vsub.f32 %v8579_v59, %v2542_v12  ;;  %v8781_v60 = vpop.f32.mrf.mxu1 }
 0x51f   :  { %v8760_v7 = vpop.eup %5576  ;;  %v3751_v14 = vmul.f32 %v8519_v33, %v3750_v52  ;;  %v4630_v52 = vadd.f32 %v8765_v9, %v8705_v47 }
 0x520   :  { %v8770_v19 = vpop.eup %5578  ;;  %v2769_v34 = vmul.f32 1.442695, %v2620_v29  ;;  %2919 = vadd.xlane.f32.xlu1 %v8760_v7 }
 0x521   :  { %v2886_v11 = vpop.xlane.xlu2 %2885  ;;  %v4731_v57 = vadd.f32 %v4623_v31, %v3751_v14  ;;  %2915 = vadd.xlane.f32.xlu2 %v8770_v19  ;;  %v2546_v59 = vpop.xlane.xlu0 %2545 }
 0x522   :  { %5582 = vrcp.f32 %v2886_v11  ;;  %v2622_v16 = vsub.f32 %v8590_v4, %v2546_v59  ;;  %v3763_v36 = vand.u32 2147483648, %v2886_v11  ;;  %v3761_v24 = vand.u32 2147483647, %v2886_v11 }
 0x523   :  { %5584 = vpow2.f32 %v2769_v34  ;;  %4807 = vst [vmem:[%s8989_s7 + $0x1b0] sm:$0xff] %v4731_v57  ;;  %vm3757_vm3 = vweird.f32 %v2886_v11 }
 0x524   :  { %v8775_v37 = vpop.eup %5580  ;;  %v2773_v33 = vmul.f32 1.442695, %v2622_v16  ;;  %v3764_v44 = vor.u32 1.1754944e-38, %v3763_v36  ;;  %vm3762_vm5 = vcmp.eq.f32.partialorder %v3761_v24, 8.507059e+37 }
 0x525   :  { %2923 = vadd.xlane.f32.xlu0 %v8775_v37  ;;  %v2890_v20 = vpop.xlane.xlu1 %2889 }
 0x526   :  { %5586 = vpow2.f32 %v2773_v33  ;;  %v8792_v61 = vpop.f32.mrf.mxu1  ;;  %v3793_v41 = vand.u32 2147483648, %v2890_v20  ;;  %v3791_v42 = vand.u32 2147483647, %v2890_v20  ;;  %vm3787_vm7 = vweird.f32 %v2890_v20 }
 0x527   :  { %5588 = vrcp.f32 %v2890_v20 }
 0x528   :  { %v5583_v58 = vpop.eup %5582  ;;  %vm3792_vm10 = vcmp.eq.f32.partialorder %v3791_v42, 8.507059e+37 }
 0x529   :  { %v8783_v35 = vpop.eup %5584  ;;  %v3753_v21 = vmul.f32 %v5583_v58, %v2886_v11  ;;  %v2888_v4 = vpop.xlane.xlu0 %2887  ;;  %vm3758_vm2 = vweird.f32 %v5583_v58  ;;  %v3794_v11 = vor.u32 1.1754944e-38, %v3793_v41 }
 0x52a   :  { %2921 = vadd.xlane.f32.xlu2 %v8783_v35  ;;  %5590 = vrcp.f32 %v2888_v4  ;;  %vm3759_vm4 = vmor %vm3757_vm3, %vm3758_vm2  ;;  %v3778_v31 = vand.u32 2147483648, %v2888_v4  ;;  %vm3772_vm11 = vweird.f32 %v2888_v4 }
 0x52b   :  { %v3754_v51 = vsub.f32 1.0, %v3753_v21  ;;  %v8788_v17 = vpop.xlane.xlu2 %2891 }
 0x52c   :  { %v8786_v39 = vpop.eup %5586  ;;  %5592 = vrcp.f32 %v8788_v17  ;;  %v3808_v21 = vand.u32 2147483648, %v8788_v17  ;;  %vm3802_vm14 = vweird.f32 %v8788_v17 }
 0x52d   :  { %v3755_v48 = vmul.f32 %v5583_v58, %v3754_v51  ;;  %v5589_v26 = vpop.eup %5588  ;;  %2925 = vadd.xlane.f32.xlu1 %v8786_v39 }
 0x52e   :  { %v3783_v25 = vmul.f32 %v5589_v26, %v2890_v20  ;;  %vm3788_vm6 = vweird.f32 %v5589_v26  ;;  %v8806_v24 = vpop.f32.mrf.mxu1 }
 0x52f   :  { %v3756_v6 = vadd.f32 %v5583_v58, %v3755_v48  ;;  %vm3789_vm8 = vmor %vm3787_vm7, %vm3788_vm6  ;;  %v3806_v48 = vand.u32 2147483647, %v8788_v17 }
 0x530   :  { %v5591_v49 = vpop.eup %5590  ;;  %v3784_v63 = vsub.f32 1.0, %v3783_v25 }
 0x531   :  { %v3760_v45 = vsel %vm3759_vm4, %v5583_v58, %v3756_v6  ;;  %v3768_v56 = vmul.f32 %v5591_v49, %v2888_v4  ;;  %vm3773_vm9 = vweird.f32 %v5591_v49  ;;  %v3779_v58 = vor.u32 1.1754944e-38, %v3778_v31 }
 0x532   :  { %v3765_v28 = vsel %vm3762_vm5, %v3764_v44, %v3760_v45  ;;  %v3785_v22 = vmul.f32 %v5589_v26, %v3784_v63  ;;  %v5593_v12 = vpop.eup %5592  ;;  %vm3774_vm12 = vmor %vm3772_vm11, %vm3773_vm9  ;;  %v4628_v45 = vadd.f32 %v8765_v9, %v8693_v46  ;;  %v3809_v63 = vor.u32 1.1754944e-38, %v3808_v21 }
 0x533   :  { %v3766_v10 = vmul.f32 %v8582_v15, %v3765_v28  ;;  %v3769_v29 = vsub.f32 1.0, %v3768_v56  ;;  %v3798_v57 = vmul.f32 %v5593_v12, %v8788_v17  ;;  %v2894_v18 = vpop.xlane.xlu0 %2893  ;;  %v3776_v15 = vand.u32 2147483647, %v2888_v4 }
 0x534   :  { %v3786_v34 = vadd.f32 %v5589_v26, %v3785_v22  ;;  %5594 = vrcp.f32 %v2894_v18  ;;  %vm3803_vm13 = vweird.f32 %v5593_v12  ;;  %vm3807_vm1 = vcmp.eq.f32.partialorder %v3806_v48, 8.507059e+37 }
 0x535   :  { %v4732_v14 = vadd.f32 %v4625_v30, %v3766_v10  ;;  %v3770_v59 = vmul.f32 %v5591_v49, %v3769_v29  ;;  %v3799_v47 = vsub.f32 1.0, %v3798_v57  ;;  %vm3777_vm0 = vcmp.eq.f32.partialorder %v3776_v15, 8.507059e+37  ;;  %vm3804_vm15 = vmor %vm3802_vm14, %vm3803_vm13 }
 0x536   :  { %v3790_v16 = vsel %vm3789_vm8, %v5589_v26, %v3786_v34  ;;  %v4633_v17 = vadd.f32 %v8765_v9, %v8721_v5  ;;  %vm3817_vm3 = vweird.f32 %v2894_v18  ;;  %v8824_v5 = vpop.f32.mrf.mxu1  ;;  %v4635_v57 = vadd.f32 %v8765_v9, %v8736_v55 }
 0x537   :  { %4808 = vst [vmem:[%s8989_s7 + $0x1b8] sm:$0xff] %v4732_v14  ;;  %v3795_v33 = vsel %vm3792_vm10, %v3794_v11, %v3790_v16  ;;  %v3771_v20 = vadd.f32 %v5591_v49, %v3770_v59  ;;  %v3800_v36 = vmul.f32 %v5593_v12, %v3799_v47 }
 0x538   :  { %v3796_v51 = vmul.f32 %v8601_v2, %v3795_v33 }
 0x539   :  { %v3775_v6 = vsel %vm3774_vm12, %v5591_v49, %v3771_v20  ;;  %v3801_v4 = vadd.f32 %v5593_v12, %v3800_v36 }
 0x53a   :  { %v4734_v26 = vadd.f32 %v4630_v52, %v3796_v51  ;;  %v3780_v25 = vsel %vm3777_vm0, %v3779_v58, %v3775_v6  ;;  %v5595_v44 = vpop.eup %5594  ;;  %v2896_v30 = vpop.xlane.xlu1 %2895  ;;  %v4638_v6 = vadd.f32 %v8765_v9, %v8757_v27 }
 0x53b   :  { %v3781_v2 = vmul.f32 %v8612_v38, %v3780_v25  ;;  %v3805_v41 = vsel %vm3804_vm15, %v5593_v12, %v3801_v4  ;;  %v3813_v49 = vmul.f32 %v5595_v44, %v2894_v18  ;;  %5596 = vrcp.f32 %v2896_v30 }
 0x53c   :  { %4810 = vst [vmem:[%s8989_s7 + $0x1c8] sm:$0xff] %v4734_v26  ;;  %v3810_v56 = vsel %vm3807_vm1, %v3809_v63, %v3805_v41  ;;  %v3823_v38 = vand.u32 2147483648, %v2894_v18  ;;  %vm3818_vm2 = vweird.f32 %v5595_v44  ;;  %v3821_v12 = vand.u32 2147483647, %v2894_v18 }
 0x53d   :  { %v4733_v28 = vadd.f32 %v4628_v45, %v3781_v2  ;;  %v3811_v46 = vmul.f32 %v8619_v32, %v3810_v56  ;;  %v3814_v10 = vsub.f32 1.0, %v3813_v49  ;;  %vm3819_vm4 = vmor %vm3817_vm3, %vm3818_vm2  ;;  %v3838_v16 = vand.u32 2147483648, %v2896_v30 }
 0x53e   :  { %v3824_v32 = vor.u32 1.1754944e-38, %v3823_v38  ;;  %vm3822_vm5 = vcmp.eq.f32.partialorder %v3821_v12, 8.507059e+37  ;;  %v3836_v33 = vand.u32 2147483647, %v2896_v30  ;;  %vm3832_vm7 = vweird.f32 %v2896_v30  ;;  %v8832_v36 = vpop.f32.mrf.mxu1 }
 0x53f   :  { %4809 = vst [vmem:[%s8989_s7 + $0x1c0] sm:$0xff] %v4733_v28  ;;  %v4735_v22 = vadd.f32 %v4633_v17, %v3811_v46  ;;  %v3815_v42 = vmul.f32 %v5595_v44, %v3814_v10  ;;  %v3839_v51 = vor.u32 1.1754944e-38, %v3838_v16  ;;  %v4640_v56 = vadd.f32 %v8765_v9, %v8781_v60 }
 0x540   :  { %vm3837_vm9 = vcmp.eq.f32.partialorder %v3836_v33, 8.507059e+37 }
 0x541   :  { %4811 = vst [vmem:[%s8989_s7 + $0x1d0] sm:$0xff] %v4735_v22  ;;  %v3816_v52 = vadd.f32 %v5595_v44, %v3815_v42  ;;  %v5597_v29 = vpop.eup %5596 }
 0x542   :  { %v3828_v14 = vmul.f32 %v5597_v29, %v2896_v30  ;;  %vm3833_vm6 = vweird.f32 %v5597_v29 }
 0x543   :  { %v3820_v31 = vsel %vm3819_vm4, %v5595_v44, %v3816_v52  ;;  %vm3834_vm8 = vmor %vm3832_vm7, %vm3833_vm6 }
 0x544   :  { %v3825_v11 = vsel %vm3822_vm5, %v3824_v32, %v3820_v31  ;;  %v3829_v15 = vsub.f32 1.0, %v3828_v14 }
 0x545   :  { %v3826_v59 = vmul.f32 %v8629_v62, %v3825_v11 }
 0x546   :  { %v3830_v18 = vmul.f32 %v5597_v29, %v3829_v15  ;;  %v8843_v12 = vpop.f32.mrf.mxu1 }
 0x547   :  { %v4736_v47 = vadd.f32 %v4635_v57, %v3826_v59  ;;  %v4643_v59 = vadd.f32 %v8765_v9, %v8792_v61 }
 0x548   :  { %v2898_v34 = vpop.xlane.xlu2 %2897  ;;  %v3831_v20 = vadd.f32 %v5597_v29, %v3830_v18 }
 0x549   :  { %5598 = vrcp.f32 %v2898_v34  ;;  %4812 = vst [vmem:[%s8989_s7 + $0x1d8] sm:$0xff] %v4736_v47  ;;  %v3851_v4 = vand.u32 2147483647, %v2898_v34  ;;  %v3853_v44 = vand.u32 2147483648, %v2898_v34  ;;  %vm3847_vm11 = vweird.f32 %v2898_v34 }
 0x54a   :  { %v3835_v55 = vsel %vm3834_vm8, %v5597_v29, %v3831_v20 }
 0x54b   :  { %v3840_v48 = vsel %vm3837_vm9, %v3839_v51, %v3835_v55  ;;  %v3854_v27 = vor.u32 1.1754944e-38, %v3853_v44  ;;  %vm3852_vm13 = vcmp.eq.f32.partialorder %v3851_v4, 8.507059e+37 }
 0x54c   :  { %v2900_v58 = vpop.xlane.xlu0 %2899  ;;  %v3841_v26 = vmul.f32 %v8639_v43, %v3840_v48 }
 0x54d   :  { %5600 = vrcp.f32 %v2900_v58  ;;  %v3868_v46 = vand.u32 2147483648, %v2900_v58  ;;  %v3866_v42 = vand.u32 2147483647, %v2900_v58  ;;  %vm3862_vm14 = vweird.f32 %v2900_v58 }
 0x54e   :  { %v4737_v2 = vadd.f32 %v4638_v6, %v3841_v26  ;;  %v8856_v61 = vpop.f32.mrf.mxu1 }
 0x54f   :  { %v5599_v21 = vpop.eup %5598  ;;  %v3869_v31 = vor.u32 1.1754944e-38, %v3868_v46  ;;  %vm3867_vm1 = vcmp.eq.f32.partialorder %v3866_v42, 8.507059e+37 }
 0x550   :  { %v3843_v62 = vmul.f32 %v5599_v21, %v2898_v34  ;;  %vm3848_vm10 = vweird.f32 %v5599_v21  ;;  %4813 = vst [vmem:[%s8989_s7 + $0x1e0] sm:$0xff] %v4737_v2 }
 0x551   :  { %vm3849_vm12 = vmor %vm3847_vm11, %vm3848_vm10 }
 0x552   :  { %v3844_v25 = vsub.f32 1.0, %v3843_v62 }
 0x553   :  { %v2902_v45 = vpop.xlane.xlu1 %2901  ;;  %v5601_v41 = vpop.eup %5600 }
 0x554   :  { %v3845_v63 = vmul.f32 %v5599_v21, %v3844_v25  ;;  %5602 = vrcp.f32 %v2902_v45  ;;  %v3858_v30 = vmul.f32 %v5601_v41, %v2900_v58  ;;  %vm3863_vm0 = vweird.f32 %v5601_v41 }
 0x555   :  { %vm3864_vm15 = vmor %vm3862_vm14, %vm3863_vm0  ;;  %v3883_v34 = vand.u32 2147483648, %v2902_v45  ;;  %v3881_v57 = vand.u32 2147483647, %v2902_v45  ;;  %vm3877_vm3 = vweird.f32 %v2902_v45 }
 0x556   :  { %v3846_v49 = vadd.f32 %v5599_v21, %v3845_v63  ;;  %v3859_v43 = vsub.f32 1.0, %v3858_v30  ;;  %v8862_v44 = vpop.f32.mrf.mxu1  ;;  %v4648_v63 = vadd.f32 %v8765_v9, %v8824_v5 }
 0x557   :  { %v3884_v18 = vor.u32 1.1754944e-38, %v3883_v34  ;;  %vm3882_vm5 = vcmp.eq.f32.partialorder %v3881_v57, 8.507059e+37 }
 0x558   :  { %v3850_v28 = vsel %vm3849_vm12, %v5599_v21, %v3846_v49  ;;  %v3860_v22 = vmul.f32 %v5601_v41, %v3859_v43  ;;  %v4645_v21 = vadd.f32 %v8765_v9, %v8806_v24 }
 0x559   :  { %v3855_v17 = vsel %vm3852_vm13, %v3854_v27, %v3850_v28 }
 0x55a   :  { %v5603_v10 = vpop.eup %5602  ;;  %v3856_v38 = vmul.f32 %v8651_v1, %v3855_v17  ;;  %v3861_v32 = vadd.f32 %v5601_v41, %v3860_v22 }
 0x55b   :  { %v3873_v52 = vmul.f32 %v5603_v10, %v2902_v45  ;;  %vm3878_vm2 = vweird.f32 %v5603_v10 }
 0x55c   :  { %v4738_v29 = vadd.f32 %v4640_v56, %v3856_v38  ;;  %v3865_v60 = vsel %vm3864_vm15, %v5601_v41, %v3861_v32  ;;  %vm3879_vm4 = vmor %vm3877_vm3, %vm3878_vm2 }
 0x55d   :  { %v3874_v14 = vsub.f32 1.0, %v3873_v52  ;;  %v3870_v1 = vsel %vm3867_vm1, %v3869_v31, %v3865_v60  ;;  %v4650_v52 = vadd.f32 %v8765_v9, %v8832_v36 }
 0x55e   :  { %4814 = vst [vmem:[%s8989_s7 + $0x1e8] sm:$0xff] %v4738_v29  ;;  %v3871_v15 = vmul.f32 %v8663_v40, %v3870_v1  ;;  %v8870_v56 = vpop.f32.mrf.mxu1 }
 0x55f   :  { %v3875_v11 = vmul.f32 %v5603_v10, %v3874_v14 }
 0x560   :  { %v4739_v47 = vadd.f32 %v4643_v59, %v3871_v15 }
 0x561   :  { %v3876_v16 = vadd.f32 %v5603_v10, %v3875_v11  ;;  %v2904_v33 = vpop.xlane.xlu2 %2903 }
 0x562   :  { %5604 = vrcp.f32 %v2904_v33  ;;  %4815 = vst [vmem:[%s8989_s7 + $0x1f0] sm:$0xff] %v4739_v47  ;;  %v3898_v6 = vand.u32 2147483648, %v2904_v33  ;;  %v3896_v25 = vand.u32 2147483647, %v2904_v33  ;;  %vm3892_vm7 = vweird.f32 %v2904_v33 }
 0x563   :  { %v3880_v20 = vsel %vm3879_vm4, %v5603_v10, %v3876_v16 }
 0x564   :  { %v3885_v58 = vsel %vm3882_vm5, %v3884_v18, %v3880_v20  ;;  %vm3897_vm9 = vcmp.eq.f32.partialorder %v3896_v25, 8.507059e+37 }
 0x565   :  { %v3886_v40 = vmul.f32 %v8672_v3, %v3885_v58  ;;  %v3899_v3 = vor.u32 1.1754944e-38, %v3898_v6 }
 0x566   :  { %v8875_v34 = vpop.f32.mrf.mxu1 }
 0x567   :  { %v4740_v51 = vadd.f32 %v4645_v21, %v3886_v40 }
 0x568   :  { %v5605_v55 = vpop.eup %5604 }
 0x569   :  { %4816 = vst [vmem:[%s8989_s7 + $0x1f8] sm:$0xff] %v4740_v51  ;;  %v3888_v62 = vmul.f32 %v5605_v55, %v2904_v33  ;;  %vm3893_vm6 = vweird.f32 %v5605_v55  ;;  %v4653_v33 = vadd.f32 %v8765_v9, %v8843_v12 }
 0x56a   :  { %vm3894_vm8 = vmor %vm3892_vm7, %vm3893_vm6 }
 0x56b   :  { %v3889_v48 = vsub.f32 1.0, %v3888_v62  ;;  %v2906_v4 = vpop.xlane.xlu0 %2905 }
 0x56c   :  { %5606 = vrcp.f32 %v2906_v4  ;;  %v3913_v17 = vand.u32 2147483648, %v2906_v4  ;;  %v3911_v10 = vand.u32 2147483647, %v2906_v4  ;;  %vm3907_vm11 = vweird.f32 %v2906_v4 }
 0x56d   :  { %v3890_v26 = vmul.f32 %v5605_v55, %v3889_v48 }
 0x56e   :  { %vm3912_vm13 = vcmp.eq.f32.partialorder %v3911_v10, 8.507059e+37  ;;  %v4664_v62 = vpop.f32.mrf.mxu1 }
 0x56f   :  { %v3891_v24 = vadd.f32 %v5605_v55, %v3890_v26 }
 0x571   :  { %v3895_v45 = vsel %vm3894_vm8, %v5605_v55, %v3891_v24 }
 0x572   :  { %v3900_v2 = vsel %vm3897_vm9, %v3899_v3, %v3895_v45  ;;  %v5607_v49 = vpop.eup %5606  ;;  %v4655_v3 = vadd.f32 %v8765_v9, %v8856_v61 }
 0x573   :  { %v3901_v41 = vmul.f32 %v8686_v54, %v3900_v2  ;;  %v3903_v27 = vmul.f32 %v5607_v49, %v2906_v4  ;;  %v2908_v43 = vpop.xlane.xlu1 %2907  ;;  %vm3908_vm10 = vweird.f32 %v5607_v49  ;;  %v3914_v54 = vor.u32 1.1754944e-38, %v3913_v17 }
 0x574   :  { %5608 = vrcp.f32 %v2908_v43  ;;  %vm3909_vm12 = vmor %vm3907_vm11, %vm3908_vm10  ;;  %v3928_v1 = vand.u32 2147483648, %v2908_v43  ;;  %v3926_v57 = vand.u32 2147483647, %v2908_v43  ;;  %vm3922_vm14 = vweird.f32 %v2908_v43 }
 0x575   :  { %v4741_v30 = vadd.f32 %v4648_v63, %v3901_v41  ;;  %v3904_v28 = vsub.f32 1.0, %v3903_v27 }
 0x576   :  { %vm3927_vm1 = vcmp.eq.f32.partialorder %v3926_v57, 8.507059e+37  ;;  %v4667_v61 = vpop.f32.mrf.mxu1 }
 0x577   :  { %4817 = vst [vmem:[%s8989_s7 + $0x200] sm:$0xff] %v4741_v30  ;;  %v3905_v46 = vmul.f32 %v5607_v49, %v3904_v28 }
 0x579   :  { %v3906_v38 = vadd.f32 %v5607_v49, %v3905_v46 }
 0x57a   :  { %v5609_v22 = vpop.eup %5608  ;;  %v2910_v31 = vpop.xlane.xlu2 %2909 }
 0x57b   :  { %v3910_v5 = vsel %vm3909_vm12, %v5607_v49, %v3906_v38  ;;  %v3918_v32 = vmul.f32 %v5609_v22, %v2908_v43  ;;  %5610 = vrcp.f32 %v2910_v31  ;;  %vm3923_vm0 = vweird.f32 %v5609_v22 }
 0x57c   :  { %v3915_v42 = vsel %vm3912_vm13, %v3914_v54, %v3910_v5  ;;  %vm3924_vm15 = vmor %vm3922_vm14, %vm3923_vm0  ;;  %v3943_v21 = vand.u32 2147483648, %v2910_v31  ;;  %v3941_v55 = vand.u32 2147483647, %v2910_v31  ;;  %vm3937_vm3 = vweird.f32 %v2910_v31 }
 0x57d   :  { %v3916_v29 = vmul.f32 %v8698_v50, %v3915_v42  ;;  %v3919_v60 = vsub.f32 1.0, %v3918_v32  ;;  %v3929_v50 = vor.u32 1.1754944e-38, %v3928_v1  ;;  %v4658_v43 = vadd.f32 %v8765_v9, %v8862_v44 }
 0x57e   :  { %v3944_v26 = vor.u32 1.1754944e-38, %v3943_v21  ;;  %vm3942_vm5 = vcmp.eq.f32.partialorder %v3941_v55, 8.507059e+37  ;;  %v4660_v38 = vadd.f32 %v8765_v9, %v8870_v56  ;;  %v8923_v55 = vpop.f32.mrf.mxu1 }
 0x57f   :  { %v4742_v14 = vadd.f32 %v4650_v52, %v3916_v29  ;;  %v3920_v11 = vmul.f32 %v5609_v22, %v3919_v60 }
 0x581   :  { %4818 = vst [vmem:[%s8989_s7 + $0x208] sm:$0xff] %v4742_v14  ;;  %v3921_v59 = vadd.f32 %v5609_v22, %v3920_v11  ;;  %v5611_v36 = vpop.eup %5610  ;;  %v4665_v11 = vadd.f32 %v8765_v9, %v4664_v62 }
 0x582   :  { %v3933_v16 = vmul.f32 %v5611_v36, %v2910_v31  ;;  %vm3938_vm2 = vweird.f32 %v5611_v36 }
 0x583   :  { %v3925_v15 = vsel %vm3924_vm15, %v5609_v22, %v3921_v59  ;;  %v2912_v47 = vpop.xlane.xlu0 %2911  ;;  %vm3939_vm4 = vmor %vm3937_vm3, %vm3938_vm2  ;;  %v8903_v22 = vadd.f32 %v8765_v9, %v8875_v34 }
 0x584   :  { %v3930_v18 = vsel %vm3927_vm1, %v3929_v50, %v3925_v15  ;;  %5612 = vrcp.f32 %v2912_v47  ;;  %v3934_v58 = vsub.f32 1.0, %v3933_v16  ;;  %v3958_v63 = vand.u32 2147483648, %v2912_v47 }
 0x585   :  { %v3931_v20 = vmul.f32 %v8711_v53, %v3930_v18  ;;  %v3956_v30 = vand.u32 2147483647, %v2912_v47  ;;  %vm3952_vm7 = vweird.f32 %v2912_v47  ;;  %v8912_v50 = vadd.f32 %v8765_v9, %v4667_v61 }
 0x586   :  { %v3935_v51 = vmul.f32 %v5611_v36, %v3934_v58 }
 0x587   :  { %v4743_v40 = vadd.f32 %v4653_v33, %v3931_v20  ;;  %vm3957_vm9 = vcmp.eq.f32.partialorder %v3956_v30, 8.507059e+37 }
 0x588   :  { %v3936_v48 = vadd.f32 %v5611_v36, %v3935_v51 }
 0x589   :  { %4819 = vst [vmem:[%s8989_s7 + $0x210] sm:$0xff] %v4743_v40 }
 0x58a   :  { %v5613_v6 = vpop.eup %5612  ;;  %v3940_v12 = vsel %vm3939_vm4, %v5611_v36, %v3936_v48 }
 0x58b   :  { %v2914_v25 = vpop.xlane.xlu1 %2913  ;;  %v3948_v53 = vmul.f32 %v5613_v6, %v2912_v47  ;;  %v3945_v24 = vsel %vm3942_vm5, %v3944_v26, %v3940_v12  ;;  %vm3953_vm6 = vweird.f32 %v5613_v6 }
 0x58c   :  { %5614 = vrcp.f32 %v2914_v25  ;;  %v2918_v4 = vpop.xlane.xlu0 %2917  ;;  %v3946_v45 = vmul.f32 %v8723_v23, %v3945_v24  ;;  %vm3954_vm8 = vmor %vm3952_vm7, %vm3953_vm6  ;;  %v3959_v23 = vor.u32 1.1754944e-38, %v3958_v63  ;;  %v3971_v32 = vand.u32 2147483647, %v2914_v25 }
 0x58d   :  { %v3949_v2 = vsub.f32 1.0, %v3948_v53  ;;  %5616 = vrcp.f32 %v2918_v4  ;;  %v3973_v31 = vand.u32 2147483648, %v2914_v25  ;;  %v4001_v60 = vand.u32 2147483647, %v2918_v4 }
 0x58e   :  { %v4744_v41 = vadd.f32 %v4655_v3, %v3946_v45  ;;  %v4003_v34 = vand.u32 2147483648, %v2918_v4  ;;  %vm3967_vm11 = vweird.f32 %v2914_v25  ;;  %vm3972_vm0 = vcmp.eq.f32.partialorder %v3971_v32, 8.507059e+37 }
 0x58f   :  { %v3950_v49 = vmul.f32 %v5613_v6, %v3949_v2  ;;  %v3974_v15 = vor.u32 1.1754944e-38, %v3973_v31  ;;  %vm3997_vm14 = vweird.f32 %v2918_v4  ;;  %vm4002_vm15 = vcmp.eq.f32.partialorder %v4001_v60, 8.507059e+37 }
 0x590   :  { %4820 = vst [vmem:[%s8989_s7 + $0x218] sm:$0xff] %v4744_v41  ;;  %v4004_v58 = vor.u32 1.1754944e-38, %v4003_v34 }
 0x591   :  { %v3951_v28 = vadd.f32 %v5613_v6, %v3950_v49 }
 0x592   :  { %v5615_v27 = vpop.eup %5614 }
 0x593   :  { %v3963_v17 = vmul.f32 %v5615_v27, %v2914_v25  ;;  %v8894_v46 = vpop.xlane.xlu1 %2919  ;;  %v5617_v10 = vpop.eup %5616  ;;  %v3955_v54 = vsel %vm3954_vm8, %v5613_v6, %v3951_v28  ;;  %vm3968_vm10 = vweird.f32 %v5615_v27 }
 0x594   :  { %5618 = vrcp.f32 %v8894_v46  ;;  %v8899_v5 = vpop.xlane.xlu2 %2915  ;;  %v3960_v44 = vsel %vm3957_vm9, %v3959_v23, %v3955_v54  ;;  %v3993_v52 = vmul.f32 %v5617_v10, %v2918_v4  ;;  %vm3998_vm12 = vweird.f32 %v5617_v10  ;;  %vm3969_vm13 = vmor %vm3967_vm11, %vm3968_vm10  ;;  %v4672_v54 = vpop.f32.mrf.mxu1 }
 0x595   :  { %v3964_v42 = vsub.f32 1.0, %v3963_v17  ;;  %v3961_v29 = vmul.f32 %v8734_v8, %v3960_v44  ;;  %5620 = vrcp.f32 %v8899_v5  ;;  %vm3999_vm1 = vmor %vm3997_vm14, %vm3998_vm12  ;;  %v4016_v21 = vand.u32 2147483647, %v8894_v46 }
 0x596   :  { %v3994_v14 = vsub.f32 1.0, %v3993_v52  ;;  %v4018_v40 = vand.u32 2147483648, %v8894_v46  ;;  %v3988_v53 = vand.u32 2147483648, %v8899_v5  ;;  %vm4012_vm3 = vweird.f32 %v8894_v46 }
 0x597   :  { %v3965_v56 = vmul.f32 %v5615_v27, %v3964_v42  ;;  %v4745_v57 = vadd.f32 %v4658_v43, %v3961_v29  ;;  %vm4017_vm6 = vcmp.eq.f32.partialorder %v4016_v21, 8.507059e+37  ;;  %vm3982_vm7 = vweird.f32 %v8899_v5 }
 0x598   :  { %v8907_v1 = vpop.xlane.xlu0 %2923  ;;  %v3995_v36 = vmul.f32 %v5617_v10, %v3994_v14  ;;  %v3989_v23 = vor.u32 1.1754944e-38, %v3988_v53  ;;  %v4670_v21 = vadd.f32 %v8765_v9, %v8923_v55 }
 0x599   :  { %5622 = vrcp.f32 %v8907_v1  ;;  %v3966_v59 = vadd.f32 %v5615_v27, %v3965_v56  ;;  %4821 = vst [vmem:[%s8989_s7 + $0x220] sm:$0xff] %v4745_v57  ;;  %v4048_v28 = vand.u32 2147483648, %v8907_v1  ;;  %vm4042_vm11 = vweird.f32 %v8907_v1 }
 0x59a   :  { %v5619_v8 = vpop.eup %5618  ;;  %v3996_v47 = vadd.f32 %v5617_v10, %v3995_v36 }
 0x59b   :  { %v3970_v16 = vsel %vm3969_vm13, %v5615_v27, %v3966_v59  ;;  %v4008_v18 = vmul.f32 %v5619_v8, %v8894_v46  ;;  %v5621_v33 = vpop.eup %5620  ;;  %vm4013_vm2 = vweird.f32 %v5619_v8 }
 0x59c   :  { %v3975_v20 = vsel %vm3972_vm0, %v3974_v15, %v3970_v16  ;;  %v4000_v48 = vsel %vm3999_vm1, %v5617_v10, %v3996_v47  ;;  %v3978_v26 = vmul.f32 %v5621_v33, %v8899_v5  ;;  %vm3983_vm4 = vweird.f32 %v5621_v33  ;;  %vm4014_vm5 = vmor %vm4012_vm3, %vm4013_vm2 }
 0x59d   :  { %v8921_v51 = vpop.xlane.xlu2 %2921  ;;  %v3976_v62 = vmul.f32 %v8747_v13, %v3975_v20  ;;  %v4009_v6 = vsub.f32 1.0, %v4008_v18  ;;  %v4005_v12 = vsel %vm4002_vm15, %v4004_v58, %v4000_v48  ;;  %v3986_v13 = vand.u32 2147483647, %v8899_v5  ;;  %vm3984_vm8 = vmor %vm3982_vm7, %vm3983_vm4 }
 0x59e   :  { %5624 = vrcp.f32 %v8921_v51  ;;  %v4006_v24 = vmul.f32 %v8749_v0, %v4005_v12  ;;  %v3979_v45 = vsub.f32 1.0, %v3978_v26  ;;  %v4019_v0 = vor.u32 1.1754944e-38, %v4018_v40  ;;  %v4674_v40 = vpop.f32.mrf.mxu1 }
 0x59f   :  { %v5623_v25 = vpop.eup %5622  ;;  %v4746_v4 = vadd.f32 %v4660_v38, %v3976_v62  ;;  %v4010_v3 = vmul.f32 %v5619_v8, %v4009_v6  ;;  %v4046_v38 = vand.u32 2147483647, %v8907_v1  ;;  %vm3987_vm10 = vcmp.eq.f32.partialorder %v3986_v13, 8.507059e+37 }
 0x5a0   :  { %v4038_v2 = vmul.f32 %v5623_v25, %v8907_v1  ;;  %v8933_v63 = vpop.xlane.xlu1 %2925  ;;  %v4748_v41 = vadd.f32 %v4665_v11, %v4006_v24  ;;  %v3980_v30 = vmul.f32 %v5621_v33, %v3979_v45  ;;  %vm4043_vm9 = vweird.f32 %v5623_v25 }
 0x5a1   :  { %4822 = vst [vmem:[%s8989_s7 + $0x228] sm:$0xff] %v4746_v4  ;;  %v4011_v49 = vadd.f32 %v5619_v8, %v4010_v3  ;;  %5626 = vrcp.f32 %v8933_v63  ;;  %v4049_v5 = vor.u32 1.1754944e-38, %v4048_v28  ;;  %vm4044_vm12 = vmor %vm4042_vm11, %vm4043_vm9  ;;  %v4033_v11 = vand.u32 2147483648, %v8921_v51 }
 0x5a2   :  { %v4039_v27 = vsub.f32 1.0, %v4038_v2  ;;  %4824 = vst [vmem:[%s8989_s7 + $0x238] sm:$0xff] %v4748_v41  ;;  %v3981_v61 = vadd.f32 %v5621_v33, %v3980_v30  ;;  %vm4047_vm13 = vcmp.eq.f32.partialorder %v4046_v38, 8.507059e+37  ;;  %vm4027_vm14 = vweird.f32 %v8921_v51 }
 0x5a3   :  { %v4015_v43 = vsel %vm4014_vm5, %v5619_v8, %v4011_v49  ;;  %v4034_v16 = vor.u32 1.1754944e-38, %v4033_v11  ;;  %v4063_v47 = vand.u32 2147483648, %v8933_v63  ;;  %vm4057_vm3 = vweird.f32 %v8933_v63 }
 0x5a4   :  { %v5625_v17 = vpop.eup %5624  ;;  %v4020_v46 = vsel %vm4017_vm6, %v4019_v0, %v4015_v43  ;;  %v4040_v10 = vmul.f32 %v5623_v25, %v4039_v27  ;;  %v3985_v42 = vsel %vm3984_vm8, %v5621_v33, %v3981_v61  ;;  %v4061_v33 = vand.u32 2147483647, %v8933_v63 }
 0x5a5   :  { %v4021_v44 = vmul.f32 %v8760_v7, %v4020_v46  ;;  %v4023_v52 = vmul.f32 %v5625_v17, %v8921_v51  ;;  %v3990_v29 = vsel %vm3987_vm10, %v3989_v23, %v3985_v42  ;;  %v4031_v7 = vand.u32 2147483647, %v8921_v51 }
 0x5a6   :  { %v4041_v32 = vadd.f32 %v5623_v25, %v4040_v10  ;;  %v3991_v14 = vmul.f32 %v8770_v19, %v3990_v29  ;;  %vm4028_vm0 = vweird.f32 %v5625_v17  ;;  %v4673_v19 = vadd.f32 %v8765_v9, %v4672_v54 }
 0x5a7   :  { %v5627_v31 = vpop.eup %5626  ;;  %v4749_v56 = vadd.f32 %v8912_v50, %v4021_v44  ;;  %v4024_v60 = vsub.f32 1.0, %v4023_v52  ;;  %vm4029_vm15 = vmor %vm4027_vm14, %vm4028_vm0  ;;  %vm4032_vm2 = vcmp.eq.f32.partialorder %v4031_v7, 8.507059e+37  ;;  %v4064_v62 = vor.u32 1.1754944e-38, %v4063_v47 }
 0x5a8   :  { %v4045_v57 = vsel %vm4044_vm12, %v5623_v25, %v4041_v32  ;;  %v4053_v34 = vmul.f32 %v5627_v31, %v8933_v63  ;;  %v4747_v1 = vadd.f32 %v8903_v22, %v3991_v14  ;;  %vm4058_vm1 = vweird.f32 %v5627_v31 }
 0x5a9   :  { %4825 = vst [vmem:[%s8989_s7 + $0x240] sm:$0xff] %v4749_v56  ;;  %v4050_v59 = vsel %vm4047_vm13, %v4049_v5, %v4045_v57  ;;  %v4025_v36 = vmul.f32 %v5625_v17, %v4024_v60  ;;  %vm4059_vm4 = vmor %vm4057_vm3, %vm4058_vm1  ;;  %vm4062_vm5 = vcmp.eq.f32.partialorder %v4061_v33, 8.507059e+37  ;;  %v4675_v25 = vadd.f32 %v8765_v9, %v4674_v40 }
 0x5aa   :  { %v4051_v8 = vmul.f32 %v8775_v37, %v4050_v59  ;;  %v4054_v50 = vsub.f32 1.0, %v4053_v34  ;;  %4823 = vst [vmem:[%s8989_s7 + $0x230] sm:$0xff] %v4747_v1 }
 0x5ab   :  { %v4026_v15 = vadd.f32 %v5625_v17, %v4025_v36 }
 0x5ac   :  { %v4751_v18 = vadd.f32 %v4673_v19, %v4051_v8  ;;  %v4055_v22 = vmul.f32 %v5627_v31, %v4054_v50 }
 0x5ad   :  { %v4030_v20 = vsel %vm4029_vm15, %v5625_v17, %v4026_v15 }
 0x5ae   :  { %4827 = vst [vmem:[%s8989_s7 + $0x250] sm:$0xff] %v4751_v18  ;;  %v4035_v37 = vsel %vm4032_vm2, %v4034_v16, %v4030_v20  ;;  %v4056_v58 = vadd.f32 %v5627_v31, %v4055_v22 }
 0x5af   :  { %v4036_v51 = vmul.f32 %v8783_v35, %v4035_v37 }
 0x5b0   :  { %v4060_v48 = vsel %vm4059_vm4, %v5627_v31, %v4056_v58 }
 0x5b1   :  { %v4750_v6 = vadd.f32 %v4670_v21, %v4036_v51  ;;  %v4065_v26 = vsel %vm4062_vm5, %v4064_v62, %v4060_v48 }
 0x5b2   :  { %v4066_v12 = vmul.f32 %v8786_v39, %v4065_v26 }
 0x5b3   :  { %4826 = vst [vmem:[%s8989_s7 + $0x248] sm:$0xff] %v4750_v6 }
 0x5b4   :  { %v4752_v53 = vadd.f32 %v4675_v25, %v4066_v12 }
 0x5b6   :  { %4828 = vst [vmem:[%s8989_s7 + $0x258] sm:$0xff] %v4752_v53 }
 0x5b7   :  { %4833 = vsyncpa [#allocation3], 1 }

</bundles_post_ra>
